<compile_context>
chip_gen: v7x
topology: tpu7x:2x2x1
jax: 0.10.0
libtpu: 0.0.40
codegen_flags: <defaults>
</compile_context>

<pallas_src>
import functools
import math

import jax
import jax.numpy as jnp
import numpy as np
from jax.experimental import pallas as pl
from jax.experimental.pallas import tpu as pltpu

FPAD = 64  # per-batch padded feature width -> lane dim = B * FPAD (=128 for B=2)


# ----------------------------- kernel helpers --------------------------------

def _cheb_terms(x, two_l, t_ref, K):
    """Chebyshev recursion.  x: (N, BF) f32 value, two_l: (N, N) bf16 (= 2*L_hat).
    Writes all K terms (bf16) into t_ref[:, k*BF:(k+1)*BF]."""
    f32, bf16 = jnp.float32, jnp.bfloat16
    _, BF = x.shape
    x_bf = x.astype(bf16)
    t_ref[:, 0:BF] = x_bf                                              # Tx_0 = x
    if K > 1:
        prev_f32 = x                                                   # Tx_0 (f32)
        # Tx_1 = L x = 0.5 * (2L) x  (exact: scale by power of two, off the chain)
        cur_f32 = 0.5 * jnp.dot(two_l, x_bf, preferred_element_type=f32)
        cur_bf = cur_f32.astype(bf16)
        t_ref[:, BF:2 * BF] = cur_bf
        for k in range(2, K):
            # Tx_k = (2L) Tx_{k-1} - Tx_{k-2}: one MXU dot + one VPU sub +
            # one bf16 cast per step on the serial chain.
            nxt_f32 = jnp.dot(two_l, cur_bf, preferred_element_type=f32) - prev_f32
            nxt_bf = nxt_f32.astype(bf16)
            t_ref[:, k * BF:(k + 1) * BF] = nxt_bf
            prev_f32, cur_f32, cur_bf = cur_f32, nxt_f32, nxt_bf


def _pool4(acc_ref):
    """gcn_pool_4: max over contiguous groups of 4 nodes via stride-4 VMEM reads."""
    Np = acc_ref.shape[0] // 4
    p = acc_ref[pl.ds(0, Np, stride=4), :]
    for i in range(1, 4):
        p = jnp.maximum(p, acc_ref[pl.ds(i, Np, stride=4), :])
    return p                                           # (N//4, B*FPAD) f32


def _net_kernel(xw_ref, l0_ref, l2_ref, b1_ref, b2_ref, bf1_ref, bf2_ref, wf2_ref,
                wbig1_hbm, wbig2_hbm, wf1_hbm,
                o_ref,
                wbig1_v, wbig2_v, wf1_v, sem,
                t1_ref, acc1_ref, t2_ref, acc2_ref,
                *, K1, K2, B):
    f32, bf16 = jnp.float32, jnp.bfloat16

    # Prefetch the late-use weight slabs behind the conv1 Chebyshev chain.
    cp_w1 = pltpu.make_async_copy(wbig1_hbm, wbig1_v, sem.at[0]); cp_w1.start()
    cp_w2 = pltpu.make_async_copy(wbig2_hbm, wbig2_v, sem.at[1]); cp_w2.start()
    cp_f1 = pltpu.make_async_copy(wf1_hbm, wf1_v, sem.at[2]);     cp_f1.start()

    # ---------------- conv1: ChebConv + bias + ReLU + pool4 ----------------
    _cheb_terms(xw_ref[...], l0_ref[...], t1_ref, K1)
    cp_w1.wait()
    conv1 = jnp.dot(t1_ref[...], wbig1_v[...], preferred_element_type=f32)
    acc1_ref[...] = jnp.maximum(conv1 + b1_ref[...], 0.0)
    h1 = _pool4(acc1_ref)                              # (N2, B*FPAD) f32, stays in VMEM

    # ---------------- conv2: ChebConv + bias + ReLU + pool4 ----------------
    _cheb_terms(h1, l2_ref[...], t2_ref, K2)
    cp_w2.wait()
    conv2 = jnp.dot(t2_ref[...], wbig2_v[...], preferred_element_type=f32)
    acc2_ref[...] = jnp.maximum(conv2 + b2_ref[...], 0.0)
    p = _pool4(acc2_ref)                               # (Np2, B*FPAD) f32

    # ---------------- flatten + fc1 + ReLU ----------------
    # (Np2, B*FPAD) -> (B, Np2*FPAD): tiny lane/sublane move (<=25 KB), then one
    # matmul against the host-stacked, zero-row-padded Wf1.
    Np2, BF = p.shape
    fp = BF // B                                       # = FPAD
    rows = []
    for b in range(B):
        pb = p[:, b * fp:(b + 1) * fp]                 # (Np2, FPAD)
        rows.append(jnp.concatenate([pb[n:n + 1, :] for n in range(Np2)], axis=1))
    pf = jnp.concatenate(rows, axis=0).astype(bf16)    # (B, Np2*FPAD)
    cp_f1.wait()
    h = jnp.maximum(jnp.dot(pf, wf1_v[...], preferred_element_type=f32)
                    + bf1_ref[...], 0.0)               # (B, D)

    # ---------------- fc2 + log_softmax ----------------
    logits = jnp.dot(h.astype(bf16), wf2_ref[...],
                     preferred_element_type=f32) + bf2_ref[...]
    m = jnp.max(logits, axis=-1, keepdims=True)
    lse = m + jnp.log(jnp.sum(jnp.exp(logits - m), axis=-1, keepdims=True))
    o_ref[...] = logits - lse


# ------------------------------ wrapper ---------------------------------------

def net_pallas(xw, l0two, l2two, b1row, b2row, bf1row, bf2row, wf2,
               wbig1, wbig2, wf1s, *, B):
    """Whole fused forward: conv1 -> pool -> conv2 -> pool -> fc1 -> fc2 -> log_softmax."""
    N0, BF = xw.shape
    K1 = wbig1.shape[0] // BF
    K2 = wbig2.shape[0] // BF
    N2 = N0 // 4
    C = wf2.shape[1]
    vmem = pltpu.MemorySpace.VMEM
    return pl.pallas_call(
        functools.partial(_net_kernel, K1=K1, K2=K2, B=B),
        out_shape=jax.ShapeDtypeStruct((B, C), jnp.float32),
        in_specs=[pl.BlockSpec(memory_space=vmem)] * 8        # xw, 2L0, 2L2, biases, wf2
                 + [pl.BlockSpec(memory_space=pl.ANY)] * 3,   # wbig1, wbig2, wf1s (manual DMA)
        out_specs=pl.BlockSpec(memory_space=vmem),
        scratch_shapes=[
            pltpu.VMEM(wbig1.shape, jnp.bfloat16),            # prefetched conv1 weight
            pltpu.VMEM(wbig2.shape, jnp.bfloat16),            # prefetched conv2 weight
            pltpu.VMEM(wf1s.shape, jnp.bfloat16),             # prefetched fc1 weight
            pltpu.SemaphoreType.DMA((3,)),
            pltpu.VMEM((N0, K1 * BF), jnp.bfloat16),          # stacked Tx_k (conv1)
            pltpu.VMEM((N0, BF), jnp.float32),                # pre-pool conv1 output
            pltpu.VMEM((N2, K2 * BF), jnp.bfloat16),          # stacked Tx_k (conv2)
            pltpu.VMEM((N2, BF), jnp.float32),                # pre-pool conv2 output
        ],
    )(xw, l0two, l2two, b1row, b2row, bf1row, bf2row, wf2, wbig1, wbig2, wf1s)


# ------------------------ one-time host-side prep ------------------------------

def stack_cheb_weight(W, B, fin_pad, fout_pad):
    # (K, Fin, Fout) -> (K*B*fin_pad, B*fout_pad) bf16, block-diagonal over the
    # batch so the batch-folded lane layout (batch major, feature minor) holds.
    K, Fin, Fout = W.shape
    Wp = jnp.pad(W, ((0, 0), (0, fin_pad - Fin), (0, fout_pad - Fout)))
    eyeB = jnp.eye(B, dtype=W.dtype)
    Wbig = jnp.einsum('kfo,bc->kbfco', Wp, eyeB)
    return Wbig.reshape(K * B * fin_pad, B * fout_pad).astype(jnp.bfloat16)


def pad_tile_bias(b, B, fout_pad):
    return jnp.tile(jnp.pad(b, (0, fout_pad - b.shape[0])), B).reshape(1, B * fout_pad)


def stack_fc1_weight(Wf1, Np, G, fpad):
    # (Np*G, D) -> (Np*fpad, D): row n*fpad + f holds Wf1[n*G + f] for f < G,
    # zero rows in the padded feature slots (so padded lanes contribute nothing).
    DIN, D = Wf1.shape
    assert DIN == Np * G
    W3 = jnp.pad(Wf1.reshape(Np, G, D), ((0, 0), (0, fpad - G), (0, 0)))
    return W3.reshape(Np * fpad, D).astype(jnp.bfloat16)


def prepare_inputs(params, L0, L2, B):
    """Hoisted out of the per-call path: weight stacking, bias tiling, bf16 casts."""
    W1, b1, W2, b2, Wf1, bf1, Wf2, bf2 = params
    G2 = W2.shape[2]
    Np2 = L2.shape[0] // 4
    prep = (
        (2.0 * L0).astype(jnp.bfloat16),          # l0two (= 2*L_hat for graph 0)
        (2.0 * L2).astype(jnp.bfloat16),          # l2two (= 2*L_hat for graph 2)
        pad_tile_bias(b1, B, FPAD),               # b1row
        pad_tile_bias(b2, B, FPAD),               # b2row
        bf1.reshape(1, -1),                       # bf1row
        bf2.reshape(1, -1),                       # bf2row
        Wf2.astype(jnp.bfloat16),                 # wf2
        stack_cheb_weight(W1, B, FPAD, FPAD),     # wbig1
        stack_cheb_weight(W2, B, FPAD, FPAD),     # wbig2
        stack_fc1_weight(Wf1, Np2, G2, FPAD),     # wf1s
    )
    return jax.block_until_ready(prep)


# ------------------------------ JAX glue ---------------------------------------

@functools.partial(jax.jit, static_argnames=("B",))
def net_forward(x, prep, *, B):
    (l0two, l2two, b1row, b2row, bf1row, bf2row, wf2, wbig1, wbig2, wf1s) = prep
    N0 = x.shape[1]
    # fold batch into lanes: (B, N0) -> (N0, B*FPAD), zero-padded features
    x3 = jnp.pad(x[..., None], ((0, 0), (0, 0), (0, FPAD - 1)))
    xw = jnp.transpose(x3, (1, 0, 2)).reshape(N0, B * FPAD)
    return net_pallas(xw, l0two, l2two, b1row, b2row, bf1row, bf2row, wf2,
                      wbig1, wbig2, wf1s, B=B)             # (B, 10)


def ring_edges(n):
    # undirected ring graph, no self loops (remove_self_loops is a no-op here)
    src = np.arange(n)
    dst = (src + 1) % n
    row = np.concatenate([src, dst])
    col = np.concatenate([dst, src])
    return row, col


def build_lap_dense(row, col, n):
    # lap = -deg[row]^-1/2 * 1 * deg[col]^-1/2 scattered into a dense (n, n) L
    # (exactly what ChebConv.forward builds with unit edge weights).
    deg = np.bincount(row, minlength=n).astype(np.float32)
    dinv = np.where(deg > 0, deg ** -0.5, 0.0).astype(np.float32)
    vals = -dinv[row] * dinv[col]
    L = np.zeros((n, n), np.float32)
    np.add.at(L, (row, col), vals)
    return jnp.asarray(L)


def uni(key, shape, fan):
    stdv = 1.0 / math.sqrt(fan)
    return jax.random.uniform(key, shape, jnp.float32, -stdv, stdv)


# -------------------------------- main -----------------------------------------

if __name__ == "__main__":
    B = 2
    N0 = 64            # nodes of graphs[0] (small stand-in for 784 MNIST pixels)
    N2 = N0 // 4       # nodes of graphs[2] (after one pool-by-4)

    K1, F1, G1 = 25, 1, 32
    K2, F2, G2 = 25, 32, 64
    DIN = (N2 // 4) * G2      # = int(n2 * g2 / 4)
    D, C = 512, 10

    key = jax.random.PRNGKey(0)
    ks = jax.random.split(key, 9)
    # ChebConv init: uniform(-1/sqrt(in*K), 1/sqrt(in*K))
    W1 = uni(ks[0], (K1, F1, G1), F1 * K1)
    b1 = uni(ks[1], (G1,), F1 * K1)
    W2 = uni(ks[2], (K2, F2, G2), F2 * K2)
    b2 = uni(ks[3], (G2,), F2 * K2)
    # Linear layers: uniform(-1/sqrt(fan_in), 1/sqrt(fan_in))
    Wf1 = uni(ks[4], (DIN, D), DIN)
    bf1 = uni(ks[5], (D,), DIN)
    Wf2 = uni(ks[6], (D, C), D)
    bf2 = uni(ks[7], (C,), D)
    params = (W1, b1, W2, b2, Wf1, bf1, Wf2, bf2)

    # synthetic graphs (coos[0] on N0 nodes, coos[2] on N2 nodes) -> dense Laplacians
    r0, c0 = ring_edges(N0)
    r2, c2 = ring_edges(N2)
    L0 = build_lap_dense(r0, c0, N0)
    L2 = build_lap_dense(r2, c2, N2)

    # one-time weight preprocessing (not part of the per-call forward)
    prep = prepare_inputs(params, L0, L2, B)

    x = jax.random.normal(ks[8], (B, N0), jnp.float32)   # (batch, nodes), 1 feature

    out = jax.block_until_ready(net_forward(x, prep, B=B))

    assert out.shape == (B, C), out.shape
    assert bool(jnp.all(jnp.isfinite(out)))
    # rows of log_softmax should (approximately) exp-sum to 1
    assert bool(jnp.allclose(jnp.sum(jnp.exp(out), axis=1), 1.0, atol=1e-4))
    print("KERNEL_OK")
</pallas_src>

<mosaic_0001>
module attributes {stable_mosaic.version = 11 : i64} {
  func.func @_net_kernel(%arg0: memref<64x128xf32, #tpu.memory_space<vmem>>, %arg1: memref<64x64xbf16, #tpu.memory_space<vmem>>, %arg2: memref<16x16xbf16, #tpu.memory_space<vmem>>, %arg3: memref<1x128xf32, #tpu.memory_space<vmem>>, %arg4: memref<1x128xf32, #tpu.memory_space<vmem>>, %arg5: memref<1x512xf32, #tpu.memory_space<vmem>>, %arg6: memref<1x10xf32, #tpu.memory_space<vmem>>, %arg7: memref<512x10xbf16, #tpu.memory_space<vmem>>, %arg8: memref<3200x128xbf16, #tpu.memory_space<any>>, %arg9: memref<3200x128xbf16, #tpu.memory_space<any>>, %arg10: memref<256x512xbf16, #tpu.memory_space<any>>, %arg11: memref<2x10xf32, #tpu.memory_space<vmem>>, %arg12: memref<3200x128xbf16, #tpu.memory_space<vmem>>, %arg13: memref<3200x128xbf16, #tpu.memory_space<vmem>>, %arg14: memref<256x512xbf16, #tpu.memory_space<vmem>>, %arg15: memref<3x!tpu.dma_semaphore, #tpu.memory_space<semaphore_mem>>, %arg16: memref<64x3200xbf16, #tpu.memory_space<vmem>>, %arg17: memref<64x128xf32, #tpu.memory_space<vmem>>, %arg18: memref<16x3200xbf16, #tpu.memory_space<vmem>>, %arg19: memref<16x128xf32, #tpu.memory_space<vmem>>) attributes {dimension_semantics = [], scalar_prefetch = 0 : i64, scratch_operands = 8 : i64, tpu.core_type = #tpu.core_type<tc>} {
    %c0_i32 = arith.constant 0 : i32
    %0 = tpu.memref_slice %arg15[%c0_i32] : memref<3x!tpu.dma_semaphore, #tpu.memory_space<semaphore_mem>> -> memref<1x!tpu.dma_semaphore, #tpu.memory_space<semaphore_mem>>
    %1 = tpu.memref_squeeze %0 : memref<1x!tpu.dma_semaphore, #tpu.memory_space<semaphore_mem>> -> memref<!tpu.dma_semaphore, #tpu.memory_space<semaphore_mem>>
    tpu.enqueue_dma source(%arg8 : memref<3200x128xbf16, #tpu.memory_space<any>>) target(%arg12 : memref<3200x128xbf16, #tpu.memory_space<vmem>>) target_semaphore(%1 : memref<!tpu.dma_semaphore, #tpu.memory_space<semaphore_mem>>)
    %c1_i32 = arith.constant 1 : i32
    %2 = tpu.memref_slice %arg15[%c1_i32] : memref<3x!tpu.dma_semaphore, #tpu.memory_space<semaphore_mem>> -> memref<1x!tpu.dma_semaphore, #tpu.memory_space<semaphore_mem>>
    %3 = tpu.memref_squeeze %2 : memref<1x!tpu.dma_semaphore, #tpu.memory_space<semaphore_mem>> -> memref<!tpu.dma_semaphore, #tpu.memory_space<semaphore_mem>>
    tpu.enqueue_dma source(%arg9 : memref<3200x128xbf16, #tpu.memory_space<any>>) target(%arg13 : memref<3200x128xbf16, #tpu.memory_space<vmem>>) target_semaphore(%3 : memref<!tpu.dma_semaphore, #tpu.memory_space<semaphore_mem>>)
    %c2_i32 = arith.constant 2 : i32
    %4 = tpu.memref_slice %arg15[%c2_i32] : memref<3x!tpu.dma_semaphore, #tpu.memory_space<semaphore_mem>> -> memref<1x!tpu.dma_semaphore, #tpu.memory_space<semaphore_mem>>
    %5 = tpu.memref_squeeze %4 : memref<1x!tpu.dma_semaphore, #tpu.memory_space<semaphore_mem>> -> memref<!tpu.dma_semaphore, #tpu.memory_space<semaphore_mem>>
    tpu.enqueue_dma source(%arg10 : memref<256x512xbf16, #tpu.memory_space<any>>) target(%arg14 : memref<256x512xbf16, #tpu.memory_space<vmem>>) target_semaphore(%5 : memref<!tpu.dma_semaphore, #tpu.memory_space<semaphore_mem>>)
    %c0 = arith.constant 0 : index
    %c0_0 = arith.constant 0 : index
    %6 = vector.load %arg0[%c0, %c0_0] : memref<64x128xf32, #tpu.memory_space<vmem>>, vector<64x128xf32>
    %c0_1 = arith.constant 0 : index
    %c0_2 = arith.constant 0 : index
    %7 = vector.load %arg1[%c0_1, %c0_2] : memref<64x64xbf16, #tpu.memory_space<vmem>>, vector<64x64xbf16>
    %8 = arith.truncf %6 : vector<64x128xf32> to vector<64x128xbf16>
    %c0_3 = arith.constant 0 : index
    %c0_4 = arith.constant 0 : index
    %9 = vector.load %arg16[%c0_3, %c0_4] : memref<64x3200xbf16, #tpu.memory_space<vmem>>, vector<64x128xbf16>
    tpu.vector_store %arg16[%c0_3, %c0_4], %8 {strides = array<i32>} : memref<64x3200xbf16, #tpu.memory_space<vmem>>, vector<64x128xbf16>,
    %cst = arith.constant dense<0.000000e+00> : vector<64x128xf32>
    %10 = tpu.matmul %7, %8, %cst {dimension_numbers = #tpu.dot_dimension_numbers<[1], [0], [0], [1], [0, 0, 1, 1], [], []>} : vector<64x64xbf16>, vector<64x128xbf16>, vector<64x128xf32> -> vector<64x128xf32>
    %cst_5 = arith.constant 5.000000e-01 : f32
    %11 = vector.broadcast %cst_5 : f32 to vector<64x128xf32>
    %12 = arith.mulf %11, %10 : vector<64x128xf32>
    %13 = arith.truncf %12 : vector<64x128xf32> to vector<64x128xbf16>
    %c0_6 = arith.constant 0 : index
    %c128 = arith.constant 128 : index
    %14 = vector.load %arg16[%c0_6, %c128] : memref<64x3200xbf16, #tpu.memory_space<vmem>>, vector<64x128xbf16>
    tpu.vector_store %arg16[%c0_6, %c128], %13 {strides = array<i32>} : memref<64x3200xbf16, #tpu.memory_space<vmem>>, vector<64x128xbf16>,
    %cst_7 = arith.constant dense<0.000000e+00> : vector<64x128xf32>
    %15 = tpu.matmul %7, %13, %cst_7 {dimension_numbers = #tpu.dot_dimension_numbers<[1], [0], [0], [1], [0, 0, 1, 1], [], []>} : vector<64x64xbf16>, vector<64x128xbf16>, vector<64x128xf32> -> vector<64x128xf32>
    %16 = arith.subf %15, %6 : vector<64x128xf32>
    %17 = arith.truncf %16 : vector<64x128xf32> to vector<64x128xbf16>
    %c0_8 = arith.constant 0 : index
    %c256 = arith.constant 256 : index
    %18 = vector.load %arg16[%c0_8, %c256] : memref<64x3200xbf16, #tpu.memory_space<vmem>>, vector<64x128xbf16>
    tpu.vector_store %arg16[%c0_8, %c256], %17 {strides = array<i32>} : memref<64x3200xbf16, #tpu.memory_space<vmem>>, vector<64x128xbf16>,
    %cst_9 = arith.constant dense<0.000000e+00> : vector<64x128xf32>
    %19 = tpu.matmul %7, %17, %cst_9 {dimension_numbers = #tpu.dot_dimension_numbers<[1], [0], [0], [1], [0, 0, 1, 1], [], []>} : vector<64x64xbf16>, vector<64x128xbf16>, vector<64x128xf32> -> vector<64x128xf32>
    %20 = arith.subf %19, %12 : vector<64x128xf32>
    %21 = arith.truncf %20 : vector<64x128xf32> to vector<64x128xbf16>
    %c0_10 = arith.constant 0 : index
    %c384 = arith.constant 384 : index
    %22 = vector.load %arg16[%c0_10, %c384] : memref<64x3200xbf16, #tpu.memory_space<vmem>>, vector<64x128xbf16>
    tpu.vector_store %arg16[%c0_10, %c384], %21 {strides = array<i32>} : memref<64x3200xbf16, #tpu.memory_space<vmem>>, vector<64x128xbf16>,
    %cst_11 = arith.constant dense<0.000000e+00> : vector<64x128xf32>
    %23 = tpu.matmul %7, %21, %cst_11 {dimension_numbers = #tpu.dot_dimension_numbers<[1], [0], [0], [1], [0, 0, 1, 1], [], []>} : vector<64x64xbf16>, vector<64x128xbf16>, vector<64x128xf32> -> vector<64x128xf32>
    %24 = arith.subf %23, %16 : vector<64x128xf32>
    %25 = arith.truncf %24 : vector<64x128xf32> to vector<64x128xbf16>
    %c0_12 = arith.constant 0 : index
    %c512 = arith.constant 512 : index
    %26 = vector.load %arg16[%c0_12, %c512] : memref<64x3200xbf16, #tpu.memory_space<vmem>>, vector<64x128xbf16>
    tpu.vector_store %arg16[%c0_12, %c512], %25 {strides = array<i32>} : memref<64x3200xbf16, #tpu.memory_space<vmem>>, vector<64x128xbf16>,
    %cst_13 = arith.constant dense<0.000000e+00> : vector<64x128xf32>
    %27 = tpu.matmul %7, %25, %cst_13 {dimension_numbers = #tpu.dot_dimension_numbers<[1], [0], [0], [1], [0, 0, 1, 1], [], []>} : vector<64x64xbf16>, vector<64x128xbf16>, vector<64x128xf32> -> vector<64x128xf32>
    %28 = arith.subf %27, %20 : vector<64x128xf32>
    %29 = arith.truncf %28 : vector<64x128xf32> to vector<64x128xbf16>
    %c0_14 = arith.constant 0 : index
    %c640 = arith.constant 640 : index
    %30 = vector.load %arg16[%c0_14, %c640] : memref<64x3200xbf16, #tpu.memory_space<vmem>>, vector<64x128xbf16>
    tpu.vector_store %arg16[%c0_14, %c640], %29 {strides = array<i32>} : memref<64x3200xbf16, #tpu.memory_space<vmem>>, vector<64x128xbf16>,
    %cst_15 = arith.constant dense<0.000000e+00> : vector<64x128xf32>
    %31 = tpu.matmul %7, %29, %cst_15 {dimension_numbers = #tpu.dot_dimension_numbers<[1], [0], [0], [1], [0, 0, 1, 1], [], []>} : vector<64x64xbf16>, vector<64x128xbf16>, vector<64x128xf32> -> vector<64x128xf32>
    %32 = arith.subf %31, %24 : vector<64x128xf32>
    %33 = arith.truncf %32 : vector<64x128xf32> to vector<64x128xbf16>
    %c0_16 = arith.constant 0 : index
    %c768 = arith.constant 768 : index
    %34 = vector.load %arg16[%c0_16, %c768] : memref<64x3200xbf16, #tpu.memory_space<vmem>>, vector<64x128xbf16>
    tpu.vector_store %arg16[%c0_16, %c768], %33 {strides = array<i32>} : memref<64x3200xbf16, #tpu.memory_space<vmem>>, vector<64x128xbf16>,
    %cst_17 = arith.constant dense<0.000000e+00> : vector<64x128xf32>
    %35 = tpu.matmul %7, %33, %cst_17 {dimension_numbers = #tpu.dot_dimension_numbers<[1], [0], [0], [1], [0, 0, 1, 1], [], []>} : vector<64x64xbf16>, vector<64x128xbf16>, vector<64x128xf32> -> vector<64x128xf32>
    %36 = arith.subf %35, %28 : vector<64x128xf32>
    %37 = arith.truncf %36 : vector<64x128xf32> to vector<64x128xbf16>
    %c0_18 = arith.constant 0 : index
    %c896 = arith.constant 896 : index
    %38 = vector.load %arg16[%c0_18, %c896] : memref<64x3200xbf16, #tpu.memory_space<vmem>>, vector<64x128xbf16>
    tpu.vector_store %arg16[%c0_18, %c896], %37 {strides = array<i32>} : memref<64x3200xbf16, #tpu.memory_space<vmem>>, vector<64x128xbf16>,
    %cst_19 = arith.constant dense<0.000000e+00> : vector<64x128xf32>
    %39 = tpu.matmul %7, %37, %cst_19 {dimension_numbers = #tpu.dot_dimension_numbers<[1], [0], [0], [1], [0, 0, 1, 1], [], []>} : vector<64x64xbf16>, vector<64x128xbf16>, vector<64x128xf32> -> vector<64x128xf32>
    %40 = arith.subf %39, %32 : vector<64x128xf32>
    %41 = arith.truncf %40 : vector<64x128xf32> to vector<64x128xbf16>
    %c0_20 = arith.constant 0 : index
    %c1024 = arith.constant 1024 : index
    %42 = vector.load %arg16[%c0_20, %c1024] : memref<64x3200xbf16, #tpu.memory_space<vmem>>, vector<64x128xbf16>
    tpu.vector_store %arg16[%c0_20, %c1024], %41 {strides = array<i32>} : memref<64x3200xbf16, #tpu.memory_space<vmem>>, vector<64x128xbf16>,
    %cst_21 = arith.constant dense<0.000000e+00> : vector<64x128xf32>
    %43 = tpu.matmul %7, %41, %cst_21 {dimension_numbers = #tpu.dot_dimension_numbers<[1], [0], [0], [1], [0, 0, 1, 1], [], []>} : vector<64x64xbf16>, vector<64x128xbf16>, vector<64x128xf32> -> vector<64x128xf32>
    %44 = arith.subf %43, %36 : vector<64x128xf32>
    %45 = arith.truncf %44 : vector<64x128xf32> to vector<64x128xbf16>
    %c0_22 = arith.constant 0 : index
    %c1152 = arith.constant 1152 : index
    %46 = vector.load %arg16[%c0_22, %c1152] : memref<64x3200xbf16, #tpu.memory_space<vmem>>, vector<64x128xbf16>
    tpu.vector_store %arg16[%c0_22, %c1152], %45 {strides = array<i32>} : memref<64x3200xbf16, #tpu.memory_space<vmem>>, vector<64x128xbf16>,
    %cst_23 = arith.constant dense<0.000000e+00> : vector<64x128xf32>
    %47 = tpu.matmul %7, %45, %cst_23 {dimension_numbers = #tpu.dot_dimension_numbers<[1], [0], [0], [1], [0, 0, 1, 1], [], []>} : vector<64x64xbf16>, vector<64x128xbf16>, vector<64x128xf32> -> vector<64x128xf32>
    %48 = arith.subf %47, %40 : vector<64x128xf32>
    %49 = arith.truncf %48 : vector<64x128xf32> to vector<64x128xbf16>
    %c0_24 = arith.constant 0 : index
    %c1280 = arith.constant 1280 : index
    %50 = vector.load %arg16[%c0_24, %c1280] : memref<64x3200xbf16, #tpu.memory_space<vmem>>, vector<64x128xbf16>
    tpu.vector_store %arg16[%c0_24, %c1280], %49 {strides = array<i32>} : memref<64x3200xbf16, #tpu.memory_space<vmem>>, vector<64x128xbf16>,
    %cst_25 = arith.constant dense<0.000000e+00> : vector<64x128xf32>
    %51 = tpu.matmul %7, %49, %cst_25 {dimension_numbers = #tpu.dot_dimension_numbers<[1], [0], [0], [1], [0, 0, 1, 1], [], []>} : vector<64x64xbf16>, vector<64x128xbf16>, vector<64x128xf32> -> vector<64x128xf32>
    %52 = arith.subf %51, %44 : vector<64x128xf32>
    %53 = arith.truncf %52 : vector<64x128xf32> to vector<64x128xbf16>
    %c0_26 = arith.constant 0 : index
    %c1408 = arith.constant 1408 : index
    %54 = vector.load %arg16[%c0_26, %c1408] : memref<64x3200xbf16, #tpu.memory_space<vmem>>, vector<64x128xbf16>
    tpu.vector_store %arg16[%c0_26, %c1408], %53 {strides = array<i32>} : memref<64x3200xbf16, #tpu.memory_space<vmem>>, vector<64x128xbf16>,
    %cst_27 = arith.constant dense<0.000000e+00> : vector<64x128xf32>
    %55 = tpu.matmul %7, %53, %cst_27 {dimension_numbers = #tpu.dot_dimension_numbers<[1], [0], [0], [1], [0, 0, 1, 1], [], []>} : vector<64x64xbf16>, vector<64x128xbf16>, vector<64x128xf32> -> vector<64x128xf32>
    %56 = arith.subf %55, %48 : vector<64x128xf32>
    %57 = arith.truncf %56 : vector<64x128xf32> to vector<64x128xbf16>
    %c0_28 = arith.constant 0 : index
    %c1536 = arith.constant 1536 : index
    %58 = vector.load %arg16[%c0_28, %c1536] : memref<64x3200xbf16, #tpu.memory_space<vmem>>, vector<64x128xbf16>
    tpu.vector_store %arg16[%c0_28, %c1536], %57 {strides = array<i32>} : memref<64x3200xbf16, #tpu.memory_space<vmem>>, vector<64x128xbf16>,
    %cst_29 = arith.constant dense<0.000000e+00> : vector<64x128xf32>
    %59 = tpu.matmul %7, %57, %cst_29 {dimension_numbers = #tpu.dot_dimension_numbers<[1], [0], [0], [1], [0, 0, 1, 1], [], []>} : vector<64x64xbf16>, vector<64x128xbf16>, vector<64x128xf32> -> vector<64x128xf32>
    %60 = arith.subf %59, %52 : vector<64x128xf32>
    %61 = arith.truncf %60 : vector<64x128xf32> to vector<64x128xbf16>
    %c0_30 = arith.constant 0 : index
    %c1664 = arith.constant 1664 : index
    %62 = vector.load %arg16[%c0_30, %c1664] : memref<64x3200xbf16, #tpu.memory_space<vmem>>, vector<64x128xbf16>
    tpu.vector_store %arg16[%c0_30, %c1664], %61 {strides = array<i32>} : memref<64x3200xbf16, #tpu.memory_space<vmem>>, vector<64x128xbf16>,
    %cst_31 = arith.constant dense<0.000000e+00> : vector<64x128xf32>
    %63 = tpu.matmul %7, %61, %cst_31 {dimension_numbers = #tpu.dot_dimension_numbers<[1], [0], [0], [1], [0, 0, 1, 1], [], []>} : vector<64x64xbf16>, vector<64x128xbf16>, vector<64x128xf32> -> vector<64x128xf32>
    %64 = arith.subf %63, %56 : vector<64x128xf32>
    %65 = arith.truncf %64 : vector<64x128xf32> to vector<64x128xbf16>
    %c0_32 = arith.constant 0 : index
    %c1792 = arith.constant 1792 : index
    %66 = vector.load %arg16[%c0_32, %c1792] : memref<64x3200xbf16, #tpu.memory_space<vmem>>, vector<64x128xbf16>
    tpu.vector_store %arg16[%c0_32, %c1792], %65 {strides = array<i32>} : memref<64x3200xbf16, #tpu.memory_space<vmem>>, vector<64x128xbf16>,
    %cst_33 = arith.constant dense<0.000000e+00> : vector<64x128xf32>
    %67 = tpu.matmul %7, %65, %cst_33 {dimension_numbers = #tpu.dot_dimension_numbers<[1], [0], [0], [1], [0, 0, 1, 1], [], []>} : vector<64x64xbf16>, vector<64x128xbf16>, vector<64x128xf32> -> vector<64x128xf32>
    %68 = arith.subf %67, %60 : vector<64x128xf32>
    %69 = arith.truncf %68 : vector<64x128xf32> to vector<64x128xbf16>
    %c0_34 = arith.constant 0 : index
    %c1920 = arith.constant 1920 : index
    %70 = vector.load %arg16[%c0_34, %c1920] : memref<64x3200xbf16, #tpu.memory_space<vmem>>, vector<64x128xbf16>
    tpu.vector_store %arg16[%c0_34, %c1920], %69 {strides = array<i32>} : memref<64x3200xbf16, #tpu.memory_space<vmem>>, vector<64x128xbf16>,
    %cst_35 = arith.constant dense<0.000000e+00> : vector<64x128xf32>
    %71 = tpu.matmul %7, %69, %cst_35 {dimension_numbers = #tpu.dot_dimension_numbers<[1], [0], [0], [1], [0, 0, 1, 1], [], []>} : vector<64x64xbf16>, vector<64x128xbf16>, vector<64x128xf32> -> vector<64x128xf32>
    %72 = arith.subf %71, %64 : vector<64x128xf32>
    %73 = arith.truncf %72 : vector<64x128xf32> to vector<64x128xbf16>
    %c0_36 = arith.constant 0 : index
    %c2048 = arith.constant 2048 : index
    %74 = vector.load %arg16[%c0_36, %c2048] : memref<64x3200xbf16, #tpu.memory_space<vmem>>, vector<64x128xbf16>
    tpu.vector_store %arg16[%c0_36, %c2048], %73 {strides = array<i32>} : memref<64x3200xbf16, #tpu.memory_space<vmem>>, vector<64x128xbf16>,
    %cst_37 = arith.constant dense<0.000000e+00> : vector<64x128xf32>
    %75 = tpu.matmul %7, %73, %cst_37 {dimension_numbers = #tpu.dot_dimension_numbers<[1], [0], [0], [1], [0, 0, 1, 1], [], []>} : vector<64x64xbf16>, vector<64x128xbf16>, vector<64x128xf32> -> vector<64x128xf32>
    %76 = arith.subf %75, %68 : vector<64x128xf32>
    %77 = arith.truncf %76 : vector<64x128xf32> to vector<64x128xbf16>
    %c0_38 = arith.constant 0 : index
    %c2176 = arith.constant 2176 : index
    %78 = vector.load %arg16[%c0_38, %c2176] : memref<64x3200xbf16, #tpu.memory_space<vmem>>, vector<64x128xbf16>
    tpu.vector_store %arg16[%c0_38, %c2176], %77 {strides = array<i32>} : memref<64x3200xbf16, #tpu.memory_space<vmem>>, vector<64x128xbf16>,
    %cst_39 = arith.constant dense<0.000000e+00> : vector<64x128xf32>
    %79 = tpu.matmul %7, %77, %cst_39 {dimension_numbers = #tpu.dot_dimension_numbers<[1], [0], [0], [1], [0, 0, 1, 1], [], []>} : vector<64x64xbf16>, vector<64x128xbf16>, vector<64x128xf32> -> vector<64x128xf32>
    %80 = arith.subf %79, %72 : vector<64x128xf32>
    %81 = arith.truncf %80 : vector<64x128xf32> to vector<64x128xbf16>
    %c0_40 = arith.constant 0 : index
    %c2304 = arith.constant 2304 : index
    %82 = vector.load %arg16[%c0_40, %c2304] : memref<64x3200xbf16, #tpu.memory_space<vmem>>, vector<64x128xbf16>
    tpu.vector_store %arg16[%c0_40, %c2304], %81 {strides = array<i32>} : memref<64x3200xbf16, #tpu.memory_space<vmem>>, vector<64x128xbf16>,
    %cst_41 = arith.constant dense<0.000000e+00> : vector<64x128xf32>
    %83 = tpu.matmul %7, %81, %cst_41 {dimension_numbers = #tpu.dot_dimension_numbers<[1], [0], [0], [1], [0, 0, 1, 1], [], []>} : vector<64x64xbf16>, vector<64x128xbf16>, vector<64x128xf32> -> vector<64x128xf32>
    %84 = arith.subf %83, %76 : vector<64x128xf32>
    %85 = arith.truncf %84 : vector<64x128xf32> to vector<64x128xbf16>
    %c0_42 = arith.constant 0 : index
    %c2432 = arith.constant 2432 : index
    %86 = vector.load %arg16[%c0_42, %c2432] : memref<64x3200xbf16, #tpu.memory_space<vmem>>, vector<64x128xbf16>
    tpu.vector_store %arg16[%c0_42, %c2432], %85 {strides = array<i32>} : memref<64x3200xbf16, #tpu.memory_space<vmem>>, vector<64x128xbf16>,
    %cst_43 = arith.constant dense<0.000000e+00> : vector<64x128xf32>
    %87 = tpu.matmul %7, %85, %cst_43 {dimension_numbers = #tpu.dot_dimension_numbers<[1], [0], [0], [1], [0, 0, 1, 1], [], []>} : vector<64x64xbf16>, vector<64x128xbf16>, vector<64x128xf32> -> vector<64x128xf32>
    %88 = arith.subf %87, %80 : vector<64x128xf32>
    %89 = arith.truncf %88 : vector<64x128xf32> to vector<64x128xbf16>
    %c0_44 = arith.constant 0 : index
    %c2560 = arith.constant 2560 : index
    %90 = vector.load %arg16[%c0_44, %c2560] : memref<64x3200xbf16, #tpu.memory_space<vmem>>, vector<64x128xbf16>
    tpu.vector_store %arg16[%c0_44, %c2560], %89 {strides = array<i32>} : memref<64x3200xbf16, #tpu.memory_space<vmem>>, vector<64x128xbf16>,
    %cst_45 = arith.constant dense<0.000000e+00> : vector<64x128xf32>
    %91 = tpu.matmul %7, %89, %cst_45 {dimension_numbers = #tpu.dot_dimension_numbers<[1], [0], [0], [1], [0, 0, 1, 1], [], []>} : vector<64x64xbf16>, vector<64x128xbf16>, vector<64x128xf32> -> vector<64x128xf32>
    %92 = arith.subf %91, %84 : vector<64x128xf32>
    %93 = arith.truncf %92 : vector<64x128xf32> to vector<64x128xbf16>
    %c0_46 = arith.constant 0 : index
    %c2688 = arith.constant 2688 : index
    %94 = vector.load %arg16[%c0_46, %c2688] : memref<64x3200xbf16, #tpu.memory_space<vmem>>, vector<64x128xbf16>
    tpu.vector_store %arg16[%c0_46, %c2688], %93 {strides = array<i32>} : memref<64x3200xbf16, #tpu.memory_space<vmem>>, vector<64x128xbf16>,
    %cst_47 = arith.constant dense<0.000000e+00> : vector<64x128xf32>
    %95 = tpu.matmul %7, %93, %cst_47 {dimension_numbers = #tpu.dot_dimension_numbers<[1], [0], [0], [1], [0, 0, 1, 1], [], []>} : vector<64x64xbf16>, vector<64x128xbf16>, vector<64x128xf32> -> vector<64x128xf32>
    %96 = arith.subf %95, %88 : vector<64x128xf32>
    %97 = arith.truncf %96 : vector<64x128xf32> to vector<64x128xbf16>
    %c0_48 = arith.constant 0 : index
    %c2816 = arith.constant 2816 : index
    %98 = vector.load %arg16[%c0_48, %c2816] : memref<64x3200xbf16, #tpu.memory_space<vmem>>, vector<64x128xbf16>
    tpu.vector_store %arg16[%c0_48, %c2816], %97 {strides = array<i32>} : memref<64x3200xbf16, #tpu.memory_space<vmem>>, vector<64x128xbf16>,
    %cst_49 = arith.constant dense<0.000000e+00> : vector<64x128xf32>
    %99 = tpu.matmul %7, %97, %cst_49 {dimension_numbers = #tpu.dot_dimension_numbers<[1], [0], [0], [1], [0, 0, 1, 1], [], []>} : vector<64x64xbf16>, vector<64x128xbf16>, vector<64x128xf32> -> vector<64x128xf32>
    %100 = arith.subf %99, %92 : vector<64x128xf32>
    %101 = arith.truncf %100 : vector<64x128xf32> to vector<64x128xbf16>
    %c0_50 = arith.constant 0 : index
    %c2944 = arith.constant 2944 : index
    %102 = vector.load %arg16[%c0_50, %c2944] : memref<64x3200xbf16, #tpu.memory_space<vmem>>, vector<64x128xbf16>
    tpu.vector_store %arg16[%c0_50, %c2944], %101 {strides = array<i32>} : memref<64x3200xbf16, #tpu.memory_space<vmem>>, vector<64x128xbf16>,
    %cst_51 = arith.constant dense<0.000000e+00> : vector<64x128xf32>
    %103 = tpu.matmul %7, %101, %cst_51 {dimension_numbers = #tpu.dot_dimension_numbers<[1], [0], [0], [1], [0, 0, 1, 1], [], []>} : vector<64x64xbf16>, vector<64x128xbf16>, vector<64x128xf32> -> vector<64x128xf32>
    %104 = arith.subf %103, %96 : vector<64x128xf32>
    %105 = arith.truncf %104 : vector<64x128xf32> to vector<64x128xbf16>
    %c0_52 = arith.constant 0 : index
    %c3072 = arith.constant 3072 : index
    %106 = vector.load %arg16[%c0_52, %c3072] : memref<64x3200xbf16, #tpu.memory_space<vmem>>, vector<64x128xbf16>
    tpu.vector_store %arg16[%c0_52, %c3072], %105 {strides = array<i32>} : memref<64x3200xbf16, #tpu.memory_space<vmem>>, vector<64x128xbf16>,
    %c0_i32_53 = arith.constant 0 : i32
    %107 = tpu.memref_slice %arg15[%c0_i32_53] : memref<3x!tpu.dma_semaphore, #tpu.memory_space<semaphore_mem>> -> memref<1x!tpu.dma_semaphore, #tpu.memory_space<semaphore_mem>>
    %108 = tpu.memref_squeeze %107 : memref<1x!tpu.dma_semaphore, #tpu.memory_space<semaphore_mem>> -> memref<!tpu.dma_semaphore, #tpu.memory_space<semaphore_mem>>
    tpu.wait_dma2 semaphore(%108 : memref<!tpu.dma_semaphore, #tpu.memory_space<semaphore_mem>>) src(%arg8 : memref<3200x128xbf16, #tpu.memory_space<any>>) dst(%arg12 : memref<3200x128xbf16, #tpu.memory_space<vmem>>)
    %c0_54 = arith.constant 0 : index
    %c0_55 = arith.constant 0 : index
    %109 = vector.load %arg16[%c0_54, %c0_55] : memref<64x3200xbf16, #tpu.memory_space<vmem>>, vector<64x3200xbf16>
    %c0_56 = arith.constant 0 : index
    %c0_57 = arith.constant 0 : index
    %110 = vector.load %arg12[%c0_56, %c0_57] : memref<3200x128xbf16, #tpu.memory_space<vmem>>, vector<3200x128xbf16>
    %cst_58 = arith.constant dense<0.000000e+00> : vector<64x128xf32>
    %111 = tpu.matmul %109, %110, %cst_58 {dimension_numbers = #tpu.dot_dimension_numbers<[1], [0], [0], [1], [0, 0, 1, 1], [], []>} : vector<64x3200xbf16>, vector<3200x128xbf16>, vector<64x128xf32> -> vector<64x128xf32>
    %c0_59 = arith.constant 0 : index
    %c0_60 = arith.constant 0 : index
    %112 = vector.load %arg3[%c0_59, %c0_60] : memref<1x128xf32, #tpu.memory_space<vmem>>, vector<1x128xf32>
    %113 = vector.broadcast %112 : vector<1x128xf32> to vector<64x128xf32>
    %114 = arith.addf %111, %113 : vector<64x128xf32>
    %cst_61 = arith.constant 0.000000e+00 : f32
    %115 = vector.broadcast %cst_61 : f32 to vector<64x128xf32>
    %116 = arith.maximumf %114, %115 : vector<64x128xf32>
    %c0_62 = arith.constant 0 : index
    %c0_63 = arith.constant 0 : index
    %117 = vector.load %arg17[%c0_62, %c0_63] : memref<64x128xf32, #tpu.memory_space<vmem>>, vector<64x128xf32>
    tpu.vector_store %arg17[%c0_62, %c0_63], %116 {strides = array<i32>} : memref<64x128xf32, #tpu.memory_space<vmem>>, vector<64x128xf32>,
    %c0_64 = arith.constant 0 : index
    %c0_65 = arith.constant 0 : index
    %118 = tpu.strided_load %arg17[%c0_64, %c0_65] {strides = array<i32: 4, 1>} : memref<64x128xf32, #tpu.memory_space<vmem>>, vector<16x128xf32>
    %c1 = arith.constant 1 : index
    %c0_66 = arith.constant 0 : index
    %119 = tpu.strided_load %arg17[%c1, %c0_66] {strides = array<i32: 4, 1>} : memref<64x128xf32, #tpu.memory_space<vmem>>, vector<16x128xf32>
    %120 = arith.maximumf %118, %119 : vector<16x128xf32>
    %c2 = arith.constant 2 : index
    %c0_67 = arith.constant 0 : index
    %121 = tpu.strided_load %arg17[%c2, %c0_67] {strides = array<i32: 4, 1>} : memref<64x128xf32, #tpu.memory_space<vmem>>, vector<16x128xf32>
    %122 = arith.maximumf %120, %121 : vector<16x128xf32>
    %c3 = arith.constant 3 : index
    %c0_68 = arith.constant 0 : index
    %123 = tpu.strided_load %arg17[%c3, %c0_68] {strides = array<i32: 4, 1>} : memref<64x128xf32, #tpu.memory_space<vmem>>, vector<16x128xf32>
    %124 = arith.maximumf %122, %123 : vector<16x128xf32>
    %c0_69 = arith.constant 0 : index
    %c0_70 = arith.constant 0 : index
    %125 = vector.load %arg2[%c0_69, %c0_70] : memref<16x16xbf16, #tpu.memory_space<vmem>>, vector<16x16xbf16>
    %126 = arith.truncf %124 : vector<16x128xf32> to vector<16x128xbf16>
    %c0_71 = arith.constant 0 : index
    %c0_72 = arith.constant 0 : index
    %127 = vector.load %arg18[%c0_71, %c0_72] : memref<16x3200xbf16, #tpu.memory_space<vmem>>, vector<16x128xbf16>
    tpu.vector_store %arg18[%c0_71, %c0_72], %126 {strides = array<i32>} : memref<16x3200xbf16, #tpu.memory_space<vmem>>, vector<16x128xbf16>,
    %cst_73 = arith.constant dense<0.000000e+00> : vector<16x128xf32>
    %128 = tpu.matmul %125, %126, %cst_73 {dimension_numbers = #tpu.dot_dimension_numbers<[1], [0], [0], [1], [0, 0, 1, 1], [], []>} : vector<16x16xbf16>, vector<16x128xbf16>, vector<16x128xf32> -> vector<16x128xf32>
    %cst_74 = arith.constant 5.000000e-01 : f32
    %129 = vector.broadcast %cst_74 : f32 to vector<16x128xf32>
    %130 = arith.mulf %129, %128 : vector<16x128xf32>
    %131 = arith.truncf %130 : vector<16x128xf32> to vector<16x128xbf16>
    %c0_75 = arith.constant 0 : index
    %c128_76 = arith.constant 128 : index
    %132 = vector.load %arg18[%c0_75, %c128_76] : memref<16x3200xbf16, #tpu.memory_space<vmem>>, vector<16x128xbf16>
    tpu.vector_store %arg18[%c0_75, %c128_76], %131 {strides = array<i32>} : memref<16x3200xbf16, #tpu.memory_space<vmem>>, vector<16x128xbf16>,
    %cst_77 = arith.constant dense<0.000000e+00> : vector<16x128xf32>
    %133 = tpu.matmul %125, %131, %cst_77 {dimension_numbers = #tpu.dot_dimension_numbers<[1], [0], [0], [1], [0, 0, 1, 1], [], []>} : vector<16x16xbf16>, vector<16x128xbf16>, vector<16x128xf32> -> vector<16x128xf32>
    %134 = arith.subf %133, %124 : vector<16x128xf32>
    %135 = arith.truncf %134 : vector<16x128xf32> to vector<16x128xbf16>
    %c0_78 = arith.constant 0 : index
    %c256_79 = arith.constant 256 : index
    %136 = vector.load %arg18[%c0_78, %c256_79] : memref<16x3200xbf16, #tpu.memory_space<vmem>>, vector<16x128xbf16>
    tpu.vector_store %arg18[%c0_78, %c256_79], %135 {strides = array<i32>} : memref<16x3200xbf16, #tpu.memory_space<vmem>>, vector<16x128xbf16>,
    %cst_80 = arith.constant dense<0.000000e+00> : vector<16x128xf32>
    %137 = tpu.matmul %125, %135, %cst_80 {dimension_numbers = #tpu.dot_dimension_numbers<[1], [0], [0], [1], [0, 0, 1, 1], [], []>} : vector<16x16xbf16>, vector<16x128xbf16>, vector<16x128xf32> -> vector<16x128xf32>
    %138 = arith.subf %137, %130 : vector<16x128xf32>
    %139 = arith.truncf %138 : vector<16x128xf32> to vector<16x128xbf16>
    %c0_81 = arith.constant 0 : index
    %c384_82 = arith.constant 384 : index
    %140 = vector.load %arg18[%c0_81, %c384_82] : memref<16x3200xbf16, #tpu.memory_space<vmem>>, vector<16x128xbf16>
    tpu.vector_store %arg18[%c0_81, %c384_82], %139 {strides = array<i32>} : memref<16x3200xbf16, #tpu.memory_space<vmem>>, vector<16x128xbf16>,
    %cst_83 = arith.constant dense<0.000000e+00> : vector<16x128xf32>
    %141 = tpu.matmul %125, %139, %cst_83 {dimension_numbers = #tpu.dot_dimension_numbers<[1], [0], [0], [1], [0, 0, 1, 1], [], []>} : vector<16x16xbf16>, vector<16x128xbf16>, vector<16x128xf32> -> vector<16x128xf32>
    %142 = arith.subf %141, %134 : vector<16x128xf32>
    %143 = arith.truncf %142 : vector<16x128xf32> to vector<16x128xbf16>
    %c0_84 = arith.constant 0 : index
    %c512_85 = arith.constant 512 : index
    %144 = vector.load %arg18[%c0_84, %c512_85] : memref<16x3200xbf16, #tpu.memory_space<vmem>>, vector<16x128xbf16>
    tpu.vector_store %arg18[%c0_84, %c512_85], %143 {strides = array<i32>} : memref<16x3200xbf16, #tpu.memory_space<vmem>>, vector<16x128xbf16>,
    %cst_86 = arith.constant dense<0.000000e+00> : vector<16x128xf32>
    %145 = tpu.matmul %125, %143, %cst_86 {dimension_numbers = #tpu.dot_dimension_numbers<[1], [0], [0], [1], [0, 0, 1, 1], [], []>} : vector<16x16xbf16>, vector<16x128xbf16>, vector<16x128xf32> -> vector<16x128xf32>
    %146 = arith.subf %145, %138 : vector<16x128xf32>
    %147 = arith.truncf %146 : vector<16x128xf32> to vector<16x128xbf16>
    %c0_87 = arith.constant 0 : index
    %c640_88 = arith.constant 640 : index
    %148 = vector.load %arg18[%c0_87, %c640_88] : memref<16x3200xbf16, #tpu.memory_space<vmem>>, vector<16x128xbf16>
    tpu.vector_store %arg18[%c0_87, %c640_88], %147 {strides = array<i32>} : memref<16x3200xbf16, #tpu.memory_space<vmem>>, vector<16x128xbf16>,
    %cst_89 = arith.constant dense<0.000000e+00> : vector<16x128xf32>
    %149 = tpu.matmul %125, %147, %cst_89 {dimension_numbers = #tpu.dot_dimension_numbers<[1], [0], [0], [1], [0, 0, 1, 1], [], []>} : vector<16x16xbf16>, vector<16x128xbf16>, vector<16x128xf32> -> vector<16x128xf32>
    %150 = arith.subf %149, %142 : vector<16x128xf32>
    %151 = arith.truncf %150 : vector<16x128xf32> to vector<16x128xbf16>
    %c0_90 = arith.constant 0 : index
    %c768_91 = arith.constant 768 : index
    %152 = vector.load %arg18[%c0_90, %c768_91] : memref<16x3200xbf16, #tpu.memory_space<vmem>>, vector<16x128xbf16>
    tpu.vector_store %arg18[%c0_90, %c768_91], %151 {strides = array<i32>} : memref<16x3200xbf16, #tpu.memory_space<vmem>>, vector<16x128xbf16>,
    %cst_92 = arith.constant dense<0.000000e+00> : vector<16x128xf32>
    %153 = tpu.matmul %125, %151, %cst_92 {dimension_numbers = #tpu.dot_dimension_numbers<[1], [0], [0], [1], [0, 0, 1, 1], [], []>} : vector<16x16xbf16>, vector<16x128xbf16>, vector<16x128xf32> -> vector<16x128xf32>
    %154 = arith.subf %153, %146 : vector<16x128xf32>
    %155 = arith.truncf %154 : vector<16x128xf32> to vector<16x128xbf16>
    %c0_93 = arith.constant 0 : index
    %c896_94 = arith.constant 896 : index
    %156 = vector.load %arg18[%c0_93, %c896_94] : memref<16x3200xbf16, #tpu.memory_space<vmem>>, vector<16x128xbf16>
    tpu.vector_store %arg18[%c0_93, %c896_94], %155 {strides = array<i32>} : memref<16x3200xbf16, #tpu.memory_space<vmem>>, vector<16x128xbf16>,
    %cst_95 = arith.constant dense<0.000000e+00> : vector<16x128xf32>
    %157 = tpu.matmul %125, %155, %cst_95 {dimension_numbers = #tpu.dot_dimension_numbers<[1], [0], [0], [1], [0, 0, 1, 1], [], []>} : vector<16x16xbf16>, vector<16x128xbf16>, vector<16x128xf32> -> vector<16x128xf32>
    %158 = arith.subf %157, %150 : vector<16x128xf32>
    %159 = arith.truncf %158 : vector<16x128xf32> to vector<16x128xbf16>
    %c0_96 = arith.constant 0 : index
    %c1024_97 = arith.constant 1024 : index
    %160 = vector.load %arg18[%c0_96, %c1024_97] : memref<16x3200xbf16, #tpu.memory_space<vmem>>, vector<16x128xbf16>
    tpu.vector_store %arg18[%c0_96, %c1024_97], %159 {strides = array<i32>} : memref<16x3200xbf16, #tpu.memory_space<vmem>>, vector<16x128xbf16>,
    %cst_98 = arith.constant dense<0.000000e+00> : vector<16x128xf32>
    %161 = tpu.matmul %125, %159, %cst_98 {dimension_numbers = #tpu.dot_dimension_numbers<[1], [0], [0], [1], [0, 0, 1, 1], [], []>} : vector<16x16xbf16>, vector<16x128xbf16>, vector<16x128xf32> -> vector<16x128xf32>
    %162 = arith.subf %161, %154 : vector<16x128xf32>
    %163 = arith.truncf %162 : vector<16x128xf32> to vector<16x128xbf16>
    %c0_99 = arith.constant 0 : index
    %c1152_100 = arith.constant 1152 : index
    %164 = vector.load %arg18[%c0_99, %c1152_100] : memref<16x3200xbf16, #tpu.memory_space<vmem>>, vector<16x128xbf16>
    tpu.vector_store %arg18[%c0_99, %c1152_100], %163 {strides = array<i32>} : memref<16x3200xbf16, #tpu.memory_space<vmem>>, vector<16x128xbf16>,
    %cst_101 = arith.constant dense<0.000000e+00> : vector<16x128xf32>
    %165 = tpu.matmul %125, %163, %cst_101 {dimension_numbers = #tpu.dot_dimension_numbers<[1], [0], [0], [1], [0, 0, 1, 1], [], []>} : vector<16x16xbf16>, vector<16x128xbf16>, vector<16x128xf32> -> vector<16x128xf32>
    %166 = arith.subf %165, %158 : vector<16x128xf32>
    %167 = arith.truncf %166 : vector<16x128xf32> to vector<16x128xbf16>
    %c0_102 = arith.constant 0 : index
    %c1280_103 = arith.constant 1280 : index
    %168 = vector.load %arg18[%c0_102, %c1280_103] : memref<16x3200xbf16, #tpu.memory_space<vmem>>, vector<16x128xbf16>
    tpu.vector_store %arg18[%c0_102, %c1280_103], %167 {strides = array<i32>} : memref<16x3200xbf16, #tpu.memory_space<vmem>>, vector<16x128xbf16>,
    %cst_104 = arith.constant dense<0.000000e+00> : vector<16x128xf32>
    %169 = tpu.matmul %125, %167, %cst_104 {dimension_numbers = #tpu.dot_dimension_numbers<[1], [0], [0], [1], [0, 0, 1, 1], [], []>} : vector<16x16xbf16>, vector<16x128xbf16>, vector<16x128xf32> -> vector<16x128xf32>
    %170 = arith.subf %169, %162 : vector<16x128xf32>
    %171 = arith.truncf %170 : vector<16x128xf32> to vector<16x128xbf16>
    %c0_105 = arith.constant 0 : index
    %c1408_106 = arith.constant 1408 : index
    %172 = vector.load %arg18[%c0_105, %c1408_106] : memref<16x3200xbf16, #tpu.memory_space<vmem>>, vector<16x128xbf16>
    tpu.vector_store %arg18[%c0_105, %c1408_106], %171 {strides = array<i32>} : memref<16x3200xbf16, #tpu.memory_space<vmem>>, vector<16x128xbf16>,
    %cst_107 = arith.constant dense<0.000000e+00> : vector<16x128xf32>
    %173 = tpu.matmul %125, %171, %cst_107 {dimension_numbers = #tpu.dot_dimension_numbers<[1], [0], [0], [1], [0, 0, 1, 1], [], []>} : vector<16x16xbf16>, vector<16x128xbf16>, vector<16x128xf32> -> vector<16x128xf32>
    %174 = arith.subf %173, %166 : vector<16x128xf32>
    %175 = arith.truncf %174 : vector<16x128xf32> to vector<16x128xbf16>
    %c0_108 = arith.constant 0 : index
    %c1536_109 = arith.constant 1536 : index
    %176 = vector.load %arg18[%c0_108, %c1536_109] : memref<16x3200xbf16, #tpu.memory_space<vmem>>, vector<16x128xbf16>
    tpu.vector_store %arg18[%c0_108, %c1536_109], %175 {strides = array<i32>} : memref<16x3200xbf16, #tpu.memory_space<vmem>>, vector<16x128xbf16>,
    %cst_110 = arith.constant dense<0.000000e+00> : vector<16x128xf32>
    %177 = tpu.matmul %125, %175, %cst_110 {dimension_numbers = #tpu.dot_dimension_numbers<[1], [0], [0], [1], [0, 0, 1, 1], [], []>} : vector<16x16xbf16>, vector<16x128xbf16>, vector<16x128xf32> -> vector<16x128xf32>
    %178 = arith.subf %177, %170 : vector<16x128xf32>
    %179 = arith.truncf %178 : vector<16x128xf32> to vector<16x128xbf16>
    %c0_111 = arith.constant 0 : index
    %c1664_112 = arith.constant 1664 : index
    %180 = vector.load %arg18[%c0_111, %c1664_112] : memref<16x3200xbf16, #tpu.memory_space<vmem>>, vector<16x128xbf16>
    tpu.vector_store %arg18[%c0_111, %c1664_112], %179 {strides = array<i32>} : memref<16x3200xbf16, #tpu.memory_space<vmem>>, vector<16x128xbf16>,
    %cst_113 = arith.constant dense<0.000000e+00> : vector<16x128xf32>
    %181 = tpu.matmul %125, %179, %cst_113 {dimension_numbers = #tpu.dot_dimension_numbers<[1], [0], [0], [1], [0, 0, 1, 1], [], []>} : vector<16x16xbf16>, vector<16x128xbf16>, vector<16x128xf32> -> vector<16x128xf32>
    %182 = arith.subf %181, %174 : vector<16x128xf32>
    %183 = arith.truncf %182 : vector<16x128xf32> to vector<16x128xbf16>
    %c0_114 = arith.constant 0 : index
    %c1792_115 = arith.constant 1792 : index
    %184 = vector.load %arg18[%c0_114, %c1792_115] : memref<16x3200xbf16, #tpu.memory_space<vmem>>, vector<16x128xbf16>
    tpu.vector_store %arg18[%c0_114, %c1792_115], %183 {strides = array<i32>} : memref<16x3200xbf16, #tpu.memory_space<vmem>>, vector<16x128xbf16>,
    %cst_116 = arith.constant dense<0.000000e+00> : vector<16x128xf32>
    %185 = tpu.matmul %125, %183, %cst_116 {dimension_numbers = #tpu.dot_dimension_numbers<[1], [0], [0], [1], [0, 0, 1, 1], [], []>} : vector<16x16xbf16>, vector<16x128xbf16>, vector<16x128xf32> -> vector<16x128xf32>
    %186 = arith.subf %185, %178 : vector<16x128xf32>
    %187 = arith.truncf %186 : vector<16x128xf32> to vector<16x128xbf16>
    %c0_117 = arith.constant 0 : index
    %c1920_118 = arith.constant 1920 : index
    %188 = vector.load %arg18[%c0_117, %c1920_118] : memref<16x3200xbf16, #tpu.memory_space<vmem>>, vector<16x128xbf16>
    tpu.vector_store %arg18[%c0_117, %c1920_118], %187 {strides = array<i32>} : memref<16x3200xbf16, #tpu.memory_space<vmem>>, vector<16x128xbf16>,
    %cst_119 = arith.constant dense<0.000000e+00> : vector<16x128xf32>
    %189 = tpu.matmul %125, %187, %cst_119 {dimension_numbers = #tpu.dot_dimension_numbers<[1], [0], [0], [1], [0, 0, 1, 1], [], []>} : vector<16x16xbf16>, vector<16x128xbf16>, vector<16x128xf32> -> vector<16x128xf32>
    %190 = arith.subf %189, %182 : vector<16x128xf32>
    %191 = arith.truncf %190 : vector<16x128xf32> to vector<16x128xbf16>
    %c0_120 = arith.constant 0 : index
    %c2048_121 = arith.constant 2048 : index
    %192 = vector.load %arg18[%c0_120, %c2048_121] : memref<16x3200xbf16, #tpu.memory_space<vmem>>, vector<16x128xbf16>
    tpu.vector_store %arg18[%c0_120, %c2048_121], %191 {strides = array<i32>} : memref<16x3200xbf16, #tpu.memory_space<vmem>>, vector<16x128xbf16>,
    %cst_122 = arith.constant dense<0.000000e+00> : vector<16x128xf32>
    %193 = tpu.matmul %125, %191, %cst_122 {dimension_numbers = #tpu.dot_dimension_numbers<[1], [0], [0], [1], [0, 0, 1, 1], [], []>} : vector<16x16xbf16>, vector<16x128xbf16>, vector<16x128xf32> -> vector<16x128xf32>
    %194 = arith.subf %193, %186 : vector<16x128xf32>
    %195 = arith.truncf %194 : vector<16x128xf32> to vector<16x128xbf16>
    %c0_123 = arith.constant 0 : index
    %c2176_124 = arith.constant 2176 : index
    %196 = vector.load %arg18[%c0_123, %c2176_124] : memref<16x3200xbf16, #tpu.memory_space<vmem>>, vector<16x128xbf16>
    tpu.vector_store %arg18[%c0_123, %c2176_124], %195 {strides = array<i32>} : memref<16x3200xbf16, #tpu.memory_space<vmem>>, vector<16x128xbf16>,
    %cst_125 = arith.constant dense<0.000000e+00> : vector<16x128xf32>
    %197 = tpu.matmul %125, %195, %cst_125 {dimension_numbers = #tpu.dot_dimension_numbers<[1], [0], [0], [1], [0, 0, 1, 1], [], []>} : vector<16x16xbf16>, vector<16x128xbf16>, vector<16x128xf32> -> vector<16x128xf32>
    %198 = arith.subf %197, %190 : vector<16x128xf32>
    %199 = arith.truncf %198 : vector<16x128xf32> to vector<16x128xbf16>
    %c0_126 = arith.constant 0 : index
    %c2304_127 = arith.constant 2304 : index
    %200 = vector.load %arg18[%c0_126, %c2304_127] : memref<16x3200xbf16, #tpu.memory_space<vmem>>, vector<16x128xbf16>
    tpu.vector_store %arg18[%c0_126, %c2304_127], %199 {strides = array<i32>} : memref<16x3200xbf16, #tpu.memory_space<vmem>>, vector<16x128xbf16>,
    %cst_128 = arith.constant dense<0.000000e+00> : vector<16x128xf32>
    %201 = tpu.matmul %125, %199, %cst_128 {dimension_numbers = #tpu.dot_dimension_numbers<[1], [0], [0], [1], [0, 0, 1, 1], [], []>} : vector<16x16xbf16>, vector<16x128xbf16>, vector<16x128xf32> -> vector<16x128xf32>
    %202 = arith.subf %201, %194 : vector<16x128xf32>
    %203 = arith.truncf %202 : vector<16x128xf32> to vector<16x128xbf16>
    %c0_129 = arith.constant 0 : index
    %c2432_130 = arith.constant 2432 : index
    %204 = vector.load %arg18[%c0_129, %c2432_130] : memref<16x3200xbf16, #tpu.memory_space<vmem>>, vector<16x128xbf16>
    tpu.vector_store %arg18[%c0_129, %c2432_130], %203 {strides = array<i32>} : memref<16x3200xbf16, #tpu.memory_space<vmem>>, vector<16x128xbf16>,
    %cst_131 = arith.constant dense<0.000000e+00> : vector<16x128xf32>
    %205 = tpu.matmul %125, %203, %cst_131 {dimension_numbers = #tpu.dot_dimension_numbers<[1], [0], [0], [1], [0, 0, 1, 1], [], []>} : vector<16x16xbf16>, vector<16x128xbf16>, vector<16x128xf32> -> vector<16x128xf32>
    %206 = arith.subf %205, %198 : vector<16x128xf32>
    %207 = arith.truncf %206 : vector<16x128xf32> to vector<16x128xbf16>
    %c0_132 = arith.constant 0 : index
    %c2560_133 = arith.constant 2560 : index
    %208 = vector.load %arg18[%c0_132, %c2560_133] : memref<16x3200xbf16, #tpu.memory_space<vmem>>, vector<16x128xbf16>
    tpu.vector_store %arg18[%c0_132, %c2560_133], %207 {strides = array<i32>} : memref<16x3200xbf16, #tpu.memory_space<vmem>>, vector<16x128xbf16>,
    %cst_134 = arith.constant dense<0.000000e+00> : vector<16x128xf32>
    %209 = tpu.matmul %125, %207, %cst_134 {dimension_numbers = #tpu.dot_dimension_numbers<[1], [0], [0], [1], [0, 0, 1, 1], [], []>} : vector<16x16xbf16>, vector<16x128xbf16>, vector<16x128xf32> -> vector<16x128xf32>
    %210 = arith.subf %209, %202 : vector<16x128xf32>
    %211 = arith.truncf %210 : vector<16x128xf32> to vector<16x128xbf16>
    %c0_135 = arith.constant 0 : index
    %c2688_136 = arith.constant 2688 : index
    %212 = vector.load %arg18[%c0_135, %c2688_136] : memref<16x3200xbf16, #tpu.memory_space<vmem>>, vector<16x128xbf16>
    tpu.vector_store %arg18[%c0_135, %c2688_136], %211 {strides = array<i32>} : memref<16x3200xbf16, #tpu.memory_space<vmem>>, vector<16x128xbf16>,
    %cst_137 = arith.constant dense<0.000000e+00> : vector<16x128xf32>
    %213 = tpu.matmul %125, %211, %cst_137 {dimension_numbers = #tpu.dot_dimension_numbers<[1], [0], [0], [1], [0, 0, 1, 1], [], []>} : vector<16x16xbf16>, vector<16x128xbf16>, vector<16x128xf32> -> vector<16x128xf32>
    %214 = arith.subf %213, %206 : vector<16x128xf32>
    %215 = arith.truncf %214 : vector<16x128xf32> to vector<16x128xbf16>
    %c0_138 = arith.constant 0 : index
    %c2816_139 = arith.constant 2816 : index
    %216 = vector.load %arg18[%c0_138, %c2816_139] : memref<16x3200xbf16, #tpu.memory_space<vmem>>, vector<16x128xbf16>
    tpu.vector_store %arg18[%c0_138, %c2816_139], %215 {strides = array<i32>} : memref<16x3200xbf16, #tpu.memory_space<vmem>>, vector<16x128xbf16>,
    %cst_140 = arith.constant dense<0.000000e+00> : vector<16x128xf32>
    %217 = tpu.matmul %125, %215, %cst_140 {dimension_numbers = #tpu.dot_dimension_numbers<[1], [0], [0], [1], [0, 0, 1, 1], [], []>} : vector<16x16xbf16>, vector<16x128xbf16>, vector<16x128xf32> -> vector<16x128xf32>
    %218 = arith.subf %217, %210 : vector<16x128xf32>
    %219 = arith.truncf %218 : vector<16x128xf32> to vector<16x128xbf16>
    %c0_141 = arith.constant 0 : index
    %c2944_142 = arith.constant 2944 : index
    %220 = vector.load %arg18[%c0_141, %c2944_142] : memref<16x3200xbf16, #tpu.memory_space<vmem>>, vector<16x128xbf16>
    tpu.vector_store %arg18[%c0_141, %c2944_142], %219 {strides = array<i32>} : memref<16x3200xbf16, #tpu.memory_space<vmem>>, vector<16x128xbf16>,
    %cst_143 = arith.constant dense<0.000000e+00> : vector<16x128xf32>
    %221 = tpu.matmul %125, %219, %cst_143 {dimension_numbers = #tpu.dot_dimension_numbers<[1], [0], [0], [1], [0, 0, 1, 1], [], []>} : vector<16x16xbf16>, vector<16x128xbf16>, vector<16x128xf32> -> vector<16x128xf32>
    %222 = arith.subf %221, %214 : vector<16x128xf32>
    %223 = arith.truncf %222 : vector<16x128xf32> to vector<16x128xbf16>
    %c0_144 = arith.constant 0 : index
    %c3072_145 = arith.constant 3072 : index
    %224 = vector.load %arg18[%c0_144, %c3072_145] : memref<16x3200xbf16, #tpu.memory_space<vmem>>, vector<16x128xbf16>
    tpu.vector_store %arg18[%c0_144, %c3072_145], %223 {strides = array<i32>} : memref<16x3200xbf16, #tpu.memory_space<vmem>>, vector<16x128xbf16>,
    %c1_i32_146 = arith.constant 1 : i32
    %225 = tpu.memref_slice %arg15[%c1_i32_146] : memref<3x!tpu.dma_semaphore, #tpu.memory_space<semaphore_mem>> -> memref<1x!tpu.dma_semaphore, #tpu.memory_space<semaphore_mem>>
    %226 = tpu.memref_squeeze %225 : memref<1x!tpu.dma_semaphore, #tpu.memory_space<semaphore_mem>> -> memref<!tpu.dma_semaphore, #tpu.memory_space<semaphore_mem>>
    tpu.wait_dma2 semaphore(%226 : memref<!tpu.dma_semaphore, #tpu.memory_space<semaphore_mem>>) src(%arg9 : memref<3200x128xbf16, #tpu.memory_space<any>>) dst(%arg13 : memref<3200x128xbf16, #tpu.memory_space<vmem>>)
    %c0_147 = arith.constant 0 : index
    %c0_148 = arith.constant 0 : index
    %227 = vector.load %arg18[%c0_147, %c0_148] : memref<16x3200xbf16, #tpu.memory_space<vmem>>, vector<16x3200xbf16>
    %c0_149 = arith.constant 0 : index
    %c0_150 = arith.constant 0 : index
    %228 = vector.load %arg13[%c0_149, %c0_150] : memref<3200x128xbf16, #tpu.memory_space<vmem>>, vector<3200x128xbf16>
    %cst_151 = arith.constant dense<0.000000e+00> : vector<16x128xf32>
    %229 = tpu.matmul %227, %228, %cst_151 {dimension_numbers = #tpu.dot_dimension_numbers<[1], [0], [0], [1], [0, 0, 1, 1], [], []>} : vector<16x3200xbf16>, vector<3200x128xbf16>, vector<16x128xf32> -> vector<16x128xf32>
    %c0_152 = arith.constant 0 : index
    %c0_153 = arith.constant 0 : index
    %230 = vector.load %arg4[%c0_152, %c0_153] : memref<1x128xf32, #tpu.memory_space<vmem>>, vector<1x128xf32>
    %231 = vector.broadcast %230 : vector<1x128xf32> to vector<16x128xf32>
    %232 = arith.addf %229, %231 : vector<16x128xf32>
    %cst_154 = arith.constant 0.000000e+00 : f32
    %233 = vector.broadcast %cst_154 : f32 to vector<16x128xf32>
    %234 = arith.maximumf %232, %233 : vector<16x128xf32>
    %c0_155 = arith.constant 0 : index
    %c0_156 = arith.constant 0 : index
    %235 = vector.load %arg19[%c0_155, %c0_156] : memref<16x128xf32, #tpu.memory_space<vmem>>, vector<16x128xf32>
    tpu.vector_store %arg19[%c0_155, %c0_156], %234 {strides = array<i32>} : memref<16x128xf32, #tpu.memory_space<vmem>>, vector<16x128xf32>,
    %c0_157 = arith.constant 0 : index
    %c0_158 = arith.constant 0 : index
    %236 = tpu.strided_load %arg19[%c0_157, %c0_158] {strides = array<i32: 4, 1>} : memref<16x128xf32, #tpu.memory_space<vmem>>, vector<4x128xf32>
    %c1_159 = arith.constant 1 : index
    %c0_160 = arith.constant 0 : index
    %237 = tpu.strided_load %arg19[%c1_159, %c0_160] {strides = array<i32: 4, 1>} : memref<16x128xf32, #tpu.memory_space<vmem>>, vector<4x128xf32>
    %238 = arith.maximumf %236, %237 : vector<4x128xf32>
    %c2_161 = arith.constant 2 : index
    %c0_162 = arith.constant 0 : index
    %239 = tpu.strided_load %arg19[%c2_161, %c0_162] {strides = array<i32: 4, 1>} : memref<16x128xf32, #tpu.memory_space<vmem>>, vector<4x128xf32>
    %240 = arith.maximumf %238, %239 : vector<4x128xf32>
    %c3_163 = arith.constant 3 : index
    %c0_164 = arith.constant 0 : index
    %241 = tpu.strided_load %arg19[%c3_163, %c0_164] {strides = array<i32: 4, 1>} : memref<16x128xf32, #tpu.memory_space<vmem>>, vector<4x128xf32>
    %242 = arith.maximumf %240, %241 : vector<4x128xf32>
    %243 = vector.extract_strided_slice %242 {offsets = [0, 0], sizes = [4, 64], strides = [1, 1]} : vector<4x128xf32> to vector<4x64xf32>
    %244 = vector.extract_strided_slice %243 {offsets = [0, 0], sizes = [1, 64], strides = [1, 1]} : vector<4x64xf32> to vector<1x64xf32>
    %245 = vector.extract_strided_slice %243 {offsets = [1, 0], sizes = [1, 64], strides = [1, 1]} : vector<4x64xf32> to vector<1x64xf32>
    %246 = vector.extract_strided_slice %243 {offsets = [2, 0], sizes = [1, 64], strides = [1, 1]} : vector<4x64xf32> to vector<1x64xf32>
    %247 = vector.extract_strided_slice %243 {offsets = [3, 0], sizes = [1, 64], strides = [1, 1]} : vector<4x64xf32> to vector<1x64xf32>
    %248 = tpu.concatenate %244, %245, %246, %247 in 1 : vector<1x64xf32>, vector<1x64xf32>, vector<1x64xf32>, vector<1x64xf32> -> vector<1x256xf32>
    %249 = vector.extract_strided_slice %242 {offsets = [0, 64], sizes = [4, 64], strides = [1, 1]} : vector<4x128xf32> to vector<4x64xf32>
    %250 = vector.extract_strided_slice %249 {offsets = [0, 0], sizes = [1, 64], strides = [1, 1]} : vector<4x64xf32> to vector<1x64xf32>
    %251 = vector.extract_strided_slice %249 {offsets = [1, 0], sizes = [1, 64], strides = [1, 1]} : vector<4x64xf32> to vector<1x64xf32>
    %252 = vector.extract_strided_slice %249 {offsets = [2, 0], sizes = [1, 64], strides = [1, 1]} : vector<4x64xf32> to vector<1x64xf32>
    %253 = vector.extract_strided_slice %249 {offsets = [3, 0], sizes = [1, 64], strides = [1, 1]} : vector<4x64xf32> to vector<1x64xf32>
    %254 = tpu.concatenate %250, %251, %252, %253 in 1 : vector<1x64xf32>, vector<1x64xf32>, vector<1x64xf32>, vector<1x64xf32> -> vector<1x256xf32>
    %255 = tpu.concatenate %248, %254 in 0 : vector<1x256xf32>, vector<1x256xf32> -> vector<2x256xf32>
    %256 = arith.truncf %255 : vector<2x256xf32> to vector<2x256xbf16>
    %c2_i32_165 = arith.constant 2 : i32
    %257 = tpu.memref_slice %arg15[%c2_i32_165] : memref<3x!tpu.dma_semaphore, #tpu.memory_space<semaphore_mem>> -> memref<1x!tpu.dma_semaphore, #tpu.memory_space<semaphore_mem>>
    %258 = tpu.memref_squeeze %257 : memref<1x!tpu.dma_semaphore, #tpu.memory_space<semaphore_mem>> -> memref<!tpu.dma_semaphore, #tpu.memory_space<semaphore_mem>>
    tpu.wait_dma2 semaphore(%258 : memref<!tpu.dma_semaphore, #tpu.memory_space<semaphore_mem>>) src(%arg10 : memref<256x512xbf16, #tpu.memory_space<any>>) dst(%arg14 : memref<256x512xbf16, #tpu.memory_space<vmem>>)
    %c0_166 = arith.constant 0 : index
    %c0_167 = arith.constant 0 : index
    %259 = vector.load %arg14[%c0_166, %c0_167] : memref<256x512xbf16, #tpu.memory_space<vmem>>, vector<256x512xbf16>
    %cst_168 = arith.constant dense<0.000000e+00> : vector<2x512xf32>
    %260 = tpu.matmul %256, %259, %cst_168 {dimension_numbers = #tpu.dot_dimension_numbers<[1], [0], [0], [1], [0, 0, 1, 1], [], []>} : vector<2x256xbf16>, vector<256x512xbf16>, vector<2x512xf32> -> vector<2x512xf32>
    %c0_169 = arith.constant 0 : index
    %c0_170 = arith.constant 0 : index
    %261 = vector.load %arg5[%c0_169, %c0_170] : memref<1x512xf32, #tpu.memory_space<vmem>>, vector<1x512xf32>
    %262 = vector.broadcast %261 : vector<1x512xf32> to vector<2x512xf32>
    %263 = arith.addf %260, %262 : vector<2x512xf32>
    %cst_171 = arith.constant 0.000000e+00 : f32
    %264 = vector.broadcast %cst_171 : f32 to vector<2x512xf32>
    %265 = arith.maximumf %263, %264 : vector<2x512xf32>
    %266 = arith.truncf %265 : vector<2x512xf32> to vector<2x512xbf16>
    %c0_172 = arith.constant 0 : index
    %c0_173 = arith.constant 0 : index
    %267 = vector.load %arg7[%c0_172, %c0_173] : memref<512x10xbf16, #tpu.memory_space<vmem>>, vector<512x10xbf16>
    %cst_174 = arith.constant dense<0.000000e+00> : vector<2x10xf32>
    %268 = tpu.matmul %266, %267, %cst_174 {dimension_numbers = #tpu.dot_dimension_numbers<[1], [0], [0], [1], [0, 0, 1, 1], [], []>} : vector<2x512xbf16>, vector<512x10xbf16>, vector<2x10xf32> -> vector<2x10xf32>
    %c0_175 = arith.constant 0 : index
    %c0_176 = arith.constant 0 : index
    %269 = vector.load %arg6[%c0_175, %c0_176] : memref<1x10xf32, #tpu.memory_space<vmem>>, vector<1x10xf32>
    %270 = vector.broadcast %269 : vector<1x10xf32> to vector<2x10xf32>
    %271 = arith.addf %268, %270 : vector<2x10xf32>
    %cst_177 = arith.constant dense<0xFF800000> : vector<2xf32>
    %272 = vector.multi_reduction <maximumf>, %271, %cst_177 [1] : vector<2x10xf32> to vector<2xf32>
    %273 = vector.shape_cast %272 : vector<2xf32> to vector<2x1xf32>
    %274 = vector.broadcast %273 : vector<2x1xf32> to vector<2x10xf32>
    %275 = arith.subf %271, %274 : vector<2x10xf32>
    %276 = math.exp %275 : vector<2x10xf32>
    %cst_178 = arith.constant dense<0.000000e+00> : vector<2xf32>
    %277 = vector.multi_reduction <add>, %276, %cst_178 [1] : vector<2x10xf32> to vector<2xf32>
    %278 = vector.shape_cast %277 : vector<2xf32> to vector<2x1xf32>
    %279 = math.log %278 : vector<2x1xf32>
    %280 = arith.addf %273, %279 : vector<2x1xf32>
    %281 = vector.broadcast %280 : vector<2x1xf32> to vector<2x10xf32>
    %282 = arith.subf %271, %281 : vector<2x10xf32>
    %c0_179 = arith.constant 0 : index
    %c0_180 = arith.constant 0 : index
    %283 = vector.load %arg11[%c0_179, %c0_180] : memref<2x10xf32, #tpu.memory_space<vmem>>, vector<2x10xf32>
    tpu.vector_store %arg11[%c0_179, %c0_180], %282 {strides = array<i32>} : memref<2x10xf32, #tpu.memory_space<vmem>>, vector<2x10xf32>,
    return
  }
}

</mosaic_0001>

<bundles_post_ra>
// kernel: net_forward.1
= control target key start
LH: loop header
LB: loop body
LE: loop exit
PB: predicated region body
PF: predicated region fallthrough
CT: control target
= control target key end

     0   :  { %16 = vsyncpa [#allocation11], 0  ;;  %s8225_s19 = smov [#allocation2]   ;;  %s8226_s21 = smov [#allocation3]   ;;  %s10542_s0 = inlined_call_operand.vmem [shape: f32[64,128], index: 0, kind: input, shape index: {}]   ;;  %s10543_s1 = inlined_call_operand.vmem [shape: bf16[64,64], index: 1, kind: input, shape index: {}]   ;;  %s10544_s2 = inlined_call_operand.vmem [shape: bf16[16,16], index: 2, kind: input, shape index: {}]   ;;  %s10545_s3 = inlined_call_operand.vmem [shape: f32[1,128], index: 3, kind: input, shape index: {}]   ;;  %s10546_s4 = inlined_call_operand.vmem [shape: f32[1,128], index: 4, kind: input, shape index: {}]   ;;  %s10547_s5 = inlined_call_operand.vmem [shape: f32[1,512], index: 5, kind: input, shape index: {}]   ;;  %s10548_s6 = inlined_call_operand.vmem [shape: f32[1,10], index: 6, kind: input, shape index: {}]   ;;  %s10549_s7 = inlined_call_operand.vmem [shape: bf16[512,10], index: 7, kind: input, shape index: {}]   ;;  %s10550_s8 = inlined_call_operand.hbm [shape: bf16[3200,128], index: 8, kind: input, shape index: {}]   ;;  %s10551_s9 = inlined_call_operand.hbm [shape: bf16[3200,128], index: 9, kind: input, shape index: {}]   ;;  %s10552_s10 = inlined_call_operand.vmem [shape: bf16[256,512], index: 10, kind: input, shape index: {}]   ;;  %s10553_s11 = inlined_call_operand.hbm [shape: f32[2,10], index: 11, kind: output, shape index: {}]  }
   0x1   :  { %v75_v0 = vld [vmem:[%s10552_s10] sm:$0xf]  ;;  %s41_s20 = sshll.u32 %s8225_s19, 4  ;;  %s53_s22 = sshll.u32 %s8226_s21, 4  ;;  %v77_v1 = vld [vmem:[%s10552_s10 + $0x10] sm:$0xf]  ;;  %s42_s20 = int_to_ptr.vmem [resolvable:$true] %s41_s20  ;;  %s8300_s22 = int_to_ptr.vmem [resolvable:$true] %s53_s22 }
   0x2   :  { %76 = vst [vmem:[#allocation4] sm:$0xf] %v75_v0  ;;  %v79_v2 = vld [vmem:[%s10552_s10 + $0x4] sm:$0xf]  ;;  %78 = vst [vmem:[#allocation4 + $0x4] sm:$0xf] %v77_v1 }
   0x3   :  { %80 = vst [vmem:[#allocation4 + $0x8] sm:$0xf] %v79_v2  ;;  %v81_v3 = vld [vmem:[%s10552_s10 + $0x14] sm:$0xf]  ;;  %v83_v4 = vld [vmem:[%s10552_s10 + $0x8] sm:$0xf] }
   0x4   :  { %v85_v5 = vld [vmem:[%s10552_s10 + $0x18] sm:$0xf]  ;;  %s8151_s16 = scalar_lea.hbm %s10550_s8, 25600 }
   0x5   :  { %p8152_p0 = scmp.ne.s32.totalorder %s10550_s8, %s8151_s16  ;;  %p8155_p1 = scmp.lt.u32.totalorder %s8151_s16, %s10550_s8 }
   0x7   :  { %p8157_p2 = pnand %p8155_p1, %p8152_p0 }
   0x9   :  { %8160 = shalt.err (!%p8157_p2)  }
   0xa   :  { %s8161_s23 = scalar_lea.vmem %s42_s20, 25600  ;;  %p8166_p4 = scmp.lt.s32.totalorder %s42_s20, %s42_s20 }
   0xb   :  { %p8162_p3 = scmp.ne.s32.totalorder %s42_s20, %s8161_s23  ;;  %p8167_p5 = scmp.lt.s32.totalorder %s8161_s23, %s8161_s23 }
   0xd   :  { %p8168_p6 = por %p8167_p5, %p8166_p4 }
   0xf   :  { %p8169_p7 = pnand %p8168_p6, %p8162_p3 }
  0x11   :  { %8172 = shalt.err (!%p8169_p7)  }
  0x12   :  { %44 = dma.hbm_to_vmem [thread:$0]  %s10550_s8, 25600, %s42_s20, [#allocation5]  ;;  %82 = vst [vmem:[#allocation4 + $0xc] sm:$0xf] %v81_v3  ;;  %84 = vst [vmem:[#allocation4 + $0x10] sm:$0xf] %v83_v4 }
  0x13   :  { %86 = vst [vmem:[#allocation4 + $0x14] sm:$0xf] %v85_v5  ;;  %v87_v6 = vld [vmem:[%s10552_s10 + $0xc] sm:$0xf]  ;;  %v89_v7 = vld [vmem:[%s10552_s10 + $0x1c] sm:$0xff]   ;;  %s8173_s15 = scalar_lea.hbm %s10551_s9, 25600 }
  0x14   :  { %v105_v8 = vld [vmem:[%s10552_s10 + $0x3c] sm:$0xff]   ;;  %p8174_p8 = scmp.ne.s32.totalorder %s10551_s9, %s8173_s15  ;;  %p8177_p9 = scmp.lt.u32.totalorder %s8173_s15, %s10551_s9 }
  0x16   :  { %p8179_p10 = pnand %p8177_p9, %p8174_p8 }
  0x18   :  { %8182 = shalt.err (!%p8179_p10)  }
  0x19   :  { %s8183_s18 = scalar_lea.vmem %s8300_s22, 25600  ;;  %p8188_p12 = scmp.lt.s32.totalorder %s8300_s22, %s8300_s22 }
  0x1a   :  { %p8184_p11 = scmp.ne.s32.totalorder %s8300_s22, %s8183_s18  ;;  %p8189_p13 = scmp.lt.s32.totalorder %s8183_s18, %s8183_s18 }
  0x1c   :  { %p8190_p0 = por %p8189_p13, %p8188_p12 }
  0x1e   :  { %p8191_p1 = pnand %p8190_p0, %p8184_p11 }
  0x20   :  { %8194 = shalt.err (!%p8191_p1)  }
  0x21   :  { %56 = dma.hbm_to_vmem [thread:$0]  %s10551_s9, 25600, %s8300_s22, [#allocation5 + $0x1]  ;;  %88 = vst [vmem:[#allocation4 + $0x18] sm:$0xf] %v87_v6  ;;  %90 = vst [vmem:[#allocation4 + $0x1c] sm:$0xff] %v89_v7   ;;  %v121_v21 = vld [vmem:[%s10552_s10 + $0x5c] sm:$0xff]  }
  0x22   :  { %v93_v9 = vld [vmem:[%s10552_s10 + $0x30] sm:$0xf]  ;;  %v95_v10 = vld [vmem:[%s10552_s10 + $0x24] sm:$0xf]  ;;  %106 = vst [vmem:[#allocation4 + $0x3c] sm:$0xff] %v105_v8   ;;  %122 = vst [vmem:[#allocation4 + $0x5c] sm:$0xff] %v121_v21  }
  0x23   :  { %94 = vst [vmem:[#allocation4 + $0x24] sm:$0xf] %v93_v9  ;;  %96 = vst [vmem:[#allocation4 + $0x28] sm:$0xf] %v95_v10  ;;  %v97_v11 = vld [vmem:[%s10552_s10 + $0x34] sm:$0xf] }
  0x24   :  { %v99_v12 = vld [vmem:[%s10552_s10 + $0x28] sm:$0xf]  ;;  %v101_v13 = vld [vmem:[%s10552_s10 + $0x38] sm:$0xf]  ;;  %98 = vst [vmem:[#allocation4 + $0x2c] sm:$0xf] %v97_v11 }
  0x25   :  { %100 = vst [vmem:[#allocation4 + $0x30] sm:$0xf] %v99_v12  ;;  %102 = vst [vmem:[#allocation4 + $0x34] sm:$0xf] %v101_v13  ;;  %v103_v14 = vld [vmem:[%s10552_s10 + $0x2c] sm:$0xf] }
  0x26   :  { %v109_v15 = vld [vmem:[%s10552_s10 + $0x50] sm:$0xf]  ;;  %v111_v16 = vld [vmem:[%s10552_s10 + $0x44] sm:$0xf]  ;;  %104 = vst [vmem:[#allocation4 + $0x38] sm:$0xf] %v103_v14 }
  0x27   :  { %110 = vst [vmem:[#allocation4 + $0x44] sm:$0xf] %v109_v15  ;;  %112 = vst [vmem:[#allocation4 + $0x48] sm:$0xf] %v111_v16  ;;  %v113_v17 = vld [vmem:[%s10552_s10 + $0x54] sm:$0xf] }
  0x28   :  { %v115_v18 = vld [vmem:[%s10552_s10 + $0x48] sm:$0xf]  ;;  %v117_v19 = vld [vmem:[%s10552_s10 + $0x58] sm:$0xf]  ;;  %114 = vst [vmem:[#allocation4 + $0x4c] sm:$0xf] %v113_v17 }
  0x29   :  { %116 = vst [vmem:[#allocation4 + $0x50] sm:$0xf] %v115_v18  ;;  %118 = vst [vmem:[#allocation4 + $0x54] sm:$0xf] %v117_v19  ;;  %v119_v20 = vld [vmem:[%s10552_s10 + $0x4c] sm:$0xf] }
  0x2a   :  { %v125_v22 = vld [vmem:[%s10552_s10 + $0x70] sm:$0xf]  ;;  %120 = vst [vmem:[#allocation4 + $0x58] sm:$0xf] %v119_v20  ;;  %v127_v23 = vld [vmem:[%s10552_s10 + $0x64] sm:$0xf] }
  0x2b   :  { %126 = vst [vmem:[#allocation4 + $0x64] sm:$0xf] %v125_v22  ;;  %v129_v24 = vld [vmem:[%s10552_s10 + $0x74] sm:$0xf]  ;;  %v131_v25 = vld [vmem:[%s10552_s10 + $0x68] sm:$0xf] }
  0x2c   :  { %128 = vst [vmem:[#allocation4 + $0x68] sm:$0xf] %v127_v23  ;;  %130 = vst [vmem:[#allocation4 + $0x6c] sm:$0xf] %v129_v24  ;;  %v133_v26 = vld [vmem:[%s10552_s10 + $0x78] sm:$0xf] }
  0x2d   :  { %132 = vst [vmem:[#allocation4 + $0x70] sm:$0xf] %v131_v25  ;;  %v135_v27 = vld [vmem:[%s10552_s10 + $0x6c] sm:$0xf]  ;;  %v137_v28 = vld [vmem:[%s10552_s10 + $0x7c] sm:$0xff]  }
  0x2e   :  { %134 = vst [vmem:[#allocation4 + $0x74] sm:$0xf] %v133_v26  ;;  %136 = vst [vmem:[#allocation4 + $0x78] sm:$0xf] %v135_v27  ;;  %v141_v29 = vld [vmem:[%s10552_s10 + $0x90] sm:$0xf] }
  0x2f   :  { %138 = vst [vmem:[#allocation4 + $0x7c] sm:$0xff] %v137_v28   ;;  %v143_v30 = vld [vmem:[%s10552_s10 + $0x84] sm:$0xf]  ;;  %v145_v31 = vld [vmem:[%s10552_s10 + $0x94] sm:$0xf]  ;;  %v153_v35 = vld [vmem:[%s10552_s10 + $0x9c] sm:$0xff]  }
  0x30   :  { %142 = vst [vmem:[#allocation4 + $0x84] sm:$0xf] %v141_v29  ;;  %144 = vst [vmem:[#allocation4 + $0x88] sm:$0xf] %v143_v30  ;;  %v147_v32 = vld [vmem:[%s10552_s10 + $0x88] sm:$0xf] }
  0x31   :  { %146 = vst [vmem:[#allocation4 + $0x8c] sm:$0xf] %v145_v31  ;;  %v149_v33 = vld [vmem:[%s10552_s10 + $0x98] sm:$0xf]  ;;  %v151_v34 = vld [vmem:[%s10552_s10 + $0x8c] sm:$0xf] }
  0x32   :  { %148 = vst [vmem:[#allocation4 + $0x90] sm:$0xf] %v147_v32  ;;  %150 = vst [vmem:[#allocation4 + $0x94] sm:$0xf] %v149_v33  ;;  %v157_v36 = vld [vmem:[%s10552_s10 + $0xb0] sm:$0xf] }
  0x33   :  { %152 = vst [vmem:[#allocation4 + $0x98] sm:$0xf] %v151_v34  ;;  %v159_v37 = vld [vmem:[%s10552_s10 + $0xa4] sm:$0xf]  ;;  %154 = vst [vmem:[#allocation4 + $0x9c] sm:$0xff] %v153_v35   ;;  %v169_v42 = vld [vmem:[%s10552_s10 + $0xbc] sm:$0xff]  }
  0x34   :  { %158 = vst [vmem:[#allocation4 + $0xa4] sm:$0xf] %v157_v36  ;;  %160 = vst [vmem:[#allocation4 + $0xa8] sm:$0xf] %v159_v37  ;;  %v161_v38 = vld [vmem:[%s10552_s10 + $0xb4] sm:$0xf] }
  0x35   :  { %v163_v39 = vld [vmem:[%s10552_s10 + $0xa8] sm:$0xf]  ;;  %v165_v40 = vld [vmem:[%s10552_s10 + $0xb8] sm:$0xf]  ;;  %162 = vst [vmem:[#allocation4 + $0xac] sm:$0xf] %v161_v38 }
  0x36   :  { %164 = vst [vmem:[#allocation4 + $0xb0] sm:$0xf] %v163_v39  ;;  %166 = vst [vmem:[#allocation4 + $0xb4] sm:$0xf] %v165_v40  ;;  %v167_v41 = vld [vmem:[%s10552_s10 + $0xac] sm:$0xf] }
  0x37   :  { %v173_v43 = vld [vmem:[%s10552_s10 + $0xd0] sm:$0xf]  ;;  %168 = vst [vmem:[#allocation4 + $0xb8] sm:$0xf] %v167_v41  ;;  %170 = vst [vmem:[#allocation4 + $0xbc] sm:$0xff] %v169_v42   ;;  %v185_v49 = vld [vmem:[%s10552_s10 + $0xdc] sm:$0xff]  }
  0x38   :  { %174 = vst [vmem:[#allocation4 + $0xc4] sm:$0xf] %v173_v43  ;;  %v175_v44 = vld [vmem:[%s10552_s10 + $0xc4] sm:$0xf]  ;;  %v177_v45 = vld [vmem:[%s10552_s10 + $0xd4] sm:$0xf] }
  0x39   :  { %v179_v46 = vld [vmem:[%s10552_s10 + $0xc8] sm:$0xf]  ;;  %176 = vst [vmem:[#allocation4 + $0xc8] sm:$0xf] %v175_v44  ;;  %178 = vst [vmem:[#allocation4 + $0xcc] sm:$0xf] %v177_v45 }
  0x3a   :  { %180 = vst [vmem:[#allocation4 + $0xd0] sm:$0xf] %v179_v46  ;;  %v181_v47 = vld [vmem:[%s10552_s10 + $0xd8] sm:$0xf]  ;;  %v183_v48 = vld [vmem:[%s10552_s10 + $0xcc] sm:$0xf] }
  0x3b   :  { %182 = vst [vmem:[#allocation4 + $0xd4] sm:$0xf] %v181_v47  ;;  %184 = vst [vmem:[#allocation4 + $0xd8] sm:$0xf] %v183_v48  ;;  %v189_v50 = vld [vmem:[%s10552_s10 + $0xf0] sm:$0xf] }
  0x3c   :  { %186 = vst [vmem:[#allocation4 + $0xdc] sm:$0xff] %v185_v49   ;;  %v191_v51 = vld [vmem:[%s10552_s10 + $0xe4] sm:$0xf]  ;;  %v193_v52 = vld [vmem:[%s10552_s10 + $0xf4] sm:$0xf]  ;;  %v201_v56 = vld [vmem:[%s10552_s10 + $0xfc] sm:$0xff]  }
  0x3d   :  { %190 = vst [vmem:[#allocation4 + $0xe4] sm:$0xf] %v189_v50  ;;  %192 = vst [vmem:[#allocation4 + $0xe8] sm:$0xf] %v191_v51  ;;  %v195_v53 = vld [vmem:[%s10552_s10 + $0xe8] sm:$0xf] }
  0x3e   :  { %194 = vst [vmem:[#allocation4 + $0xec] sm:$0xf] %v193_v52  ;;  %v197_v54 = vld [vmem:[%s10552_s10 + $0xf8] sm:$0xf]  ;;  %v199_v55 = vld [vmem:[%s10552_s10 + $0xec] sm:$0xf] }
  0x3f   :  { %196 = vst [vmem:[#allocation4 + $0xf0] sm:$0xf] %v195_v53  ;;  %198 = vst [vmem:[#allocation4 + $0xf4] sm:$0xf] %v197_v54  ;;  %v205_v57 = vld [vmem:[%s10552_s10 + $0x110] sm:$0xf] }
  0x40   :  { %200 = vst [vmem:[#allocation4 + $0xf8] sm:$0xf] %v199_v55  ;;  %v207_v58 = vld [vmem:[%s10552_s10 + $0x104] sm:$0xf]  ;;  %202 = vst [vmem:[#allocation4 + $0xfc] sm:$0xff] %v201_v56   ;;  %v217_v63 = vld [vmem:[%s10552_s10 + $0x11c] sm:$0xff]  }
  0x41   :  { %206 = vst [vmem:[#allocation4 + $0x104] sm:$0xf] %v205_v57  ;;  %208 = vst [vmem:[#allocation4 + $0x108] sm:$0xf] %v207_v58  ;;  %v209_v59 = vld [vmem:[%s10552_s10 + $0x114] sm:$0xf] }
  0x42   :  { %v211_v60 = vld [vmem:[%s10552_s10 + $0x108] sm:$0xf]  ;;  %v213_v61 = vld [vmem:[%s10552_s10 + $0x118] sm:$0xf]  ;;  %210 = vst [vmem:[#allocation4 + $0x10c] sm:$0xf] %v209_v59 }
  0x43   :  { %212 = vst [vmem:[#allocation4 + $0x110] sm:$0xf] %v211_v60  ;;  %214 = vst [vmem:[#allocation4 + $0x114] sm:$0xf] %v213_v61  ;;  %v215_v62 = vld [vmem:[%s10552_s10 + $0x10c] sm:$0xf] }
  0x44   :  { %v221_v0 = vld [vmem:[%s10552_s10 + $0x130] sm:$0xf]  ;;  %216 = vst [vmem:[#allocation4 + $0x118] sm:$0xf] %v215_v62  ;;  %218 = vst [vmem:[#allocation4 + $0x11c] sm:$0xff] %v217_v63   ;;  %v233_v6 = vld [vmem:[%s10552_s10 + $0x13c] sm:$0xff]  }
  0x45   :  { %222 = vst [vmem:[#allocation4 + $0x124] sm:$0xf] %v221_v0  ;;  %v223_v1 = vld [vmem:[%s10552_s10 + $0x124] sm:$0xf]  ;;  %v225_v2 = vld [vmem:[%s10552_s10 + $0x134] sm:$0xf] }
  0x46   :  { %v227_v3 = vld [vmem:[%s10552_s10 + $0x128] sm:$0xf]  ;;  %224 = vst [vmem:[#allocation4 + $0x128] sm:$0xf] %v223_v1  ;;  %226 = vst [vmem:[#allocation4 + $0x12c] sm:$0xf] %v225_v2 }
  0x47   :  { %228 = vst [vmem:[#allocation4 + $0x130] sm:$0xf] %v227_v3  ;;  %v229_v4 = vld [vmem:[%s10552_s10 + $0x138] sm:$0xf]  ;;  %v231_v5 = vld [vmem:[%s10552_s10 + $0x12c] sm:$0xf] }
  0x48   :  { %230 = vst [vmem:[#allocation4 + $0x134] sm:$0xf] %v229_v4  ;;  %232 = vst [vmem:[#allocation4 + $0x138] sm:$0xf] %v231_v5  ;;  %v237_v7 = vld [vmem:[%s10552_s10 + $0x150] sm:$0xf] }
  0x49   :  { %234 = vst [vmem:[#allocation4 + $0x13c] sm:$0xff] %v233_v6   ;;  %v239_v8 = vld [vmem:[%s10552_s10 + $0x144] sm:$0xf]  ;;  %v241_v9 = vld [vmem:[%s10552_s10 + $0x154] sm:$0xf]  ;;  %v249_v13 = vld [vmem:[%s10552_s10 + $0x15c] sm:$0xff]  }
  0x4a   :  { %238 = vst [vmem:[#allocation4 + $0x144] sm:$0xf] %v237_v7  ;;  %240 = vst [vmem:[#allocation4 + $0x148] sm:$0xf] %v239_v8  ;;  %v243_v10 = vld [vmem:[%s10552_s10 + $0x148] sm:$0xf] }
  0x4b   :  { %242 = vst [vmem:[#allocation4 + $0x14c] sm:$0xf] %v241_v9  ;;  %v245_v11 = vld [vmem:[%s10552_s10 + $0x158] sm:$0xf]  ;;  %v247_v12 = vld [vmem:[%s10552_s10 + $0x14c] sm:$0xf] }
  0x4c   :  { %244 = vst [vmem:[#allocation4 + $0x150] sm:$0xf] %v243_v10  ;;  %246 = vst [vmem:[#allocation4 + $0x154] sm:$0xf] %v245_v11  ;;  %v253_v14 = vld [vmem:[%s10552_s10 + $0x170] sm:$0xf] }
  0x4d   :  { %248 = vst [vmem:[#allocation4 + $0x158] sm:$0xf] %v247_v12  ;;  %v255_v15 = vld [vmem:[%s10552_s10 + $0x164] sm:$0xf]  ;;  %250 = vst [vmem:[#allocation4 + $0x15c] sm:$0xff] %v249_v13   ;;  %v265_v20 = vld [vmem:[%s10552_s10 + $0x17c] sm:$0xff]  }
  0x4e   :  { %254 = vst [vmem:[#allocation4 + $0x164] sm:$0xf] %v253_v14  ;;  %256 = vst [vmem:[#allocation4 + $0x168] sm:$0xf] %v255_v15  ;;  %v257_v16 = vld [vmem:[%s10552_s10 + $0x174] sm:$0xf] }
  0x4f   :  { %v259_v17 = vld [vmem:[%s10552_s10 + $0x168] sm:$0xf]  ;;  %v261_v18 = vld [vmem:[%s10552_s10 + $0x178] sm:$0xf]  ;;  %258 = vst [vmem:[#allocation4 + $0x16c] sm:$0xf] %v257_v16 }
  0x50   :  { %260 = vst [vmem:[#allocation4 + $0x170] sm:$0xf] %v259_v17  ;;  %262 = vst [vmem:[#allocation4 + $0x174] sm:$0xf] %v261_v18  ;;  %v263_v19 = vld [vmem:[%s10552_s10 + $0x16c] sm:$0xf] }
  0x51   :  { %v269_v21 = vld [vmem:[%s10552_s10 + $0x190] sm:$0xf]  ;;  %264 = vst [vmem:[#allocation4 + $0x178] sm:$0xf] %v263_v19  ;;  %266 = vst [vmem:[#allocation4 + $0x17c] sm:$0xff] %v265_v20   ;;  %v281_v27 = vld [vmem:[%s10552_s10 + $0x19c] sm:$0xff]  }
  0x52   :  { %270 = vst [vmem:[#allocation4 + $0x184] sm:$0xf] %v269_v21  ;;  %v271_v22 = vld [vmem:[%s10552_s10 + $0x184] sm:$0xf]  ;;  %v273_v23 = vld [vmem:[%s10552_s10 + $0x194] sm:$0xf] }
  0x53   :  { %v275_v24 = vld [vmem:[%s10552_s10 + $0x188] sm:$0xf]  ;;  %272 = vst [vmem:[#allocation4 + $0x188] sm:$0xf] %v271_v22  ;;  %274 = vst [vmem:[#allocation4 + $0x18c] sm:$0xf] %v273_v23 }
  0x54   :  { %276 = vst [vmem:[#allocation4 + $0x190] sm:$0xf] %v275_v24  ;;  %v277_v25 = vld [vmem:[%s10552_s10 + $0x198] sm:$0xf]  ;;  %v279_v26 = vld [vmem:[%s10552_s10 + $0x18c] sm:$0xf] }
  0x55   :  { %278 = vst [vmem:[#allocation4 + $0x194] sm:$0xf] %v277_v25  ;;  %280 = vst [vmem:[#allocation4 + $0x198] sm:$0xf] %v279_v26  ;;  %v285_v28 = vld [vmem:[%s10552_s10 + $0x1b0] sm:$0xf] }
  0x56   :  { %282 = vst [vmem:[#allocation4 + $0x19c] sm:$0xff] %v281_v27   ;;  %v287_v29 = vld [vmem:[%s10552_s10 + $0x1a4] sm:$0xf]  ;;  %v289_v30 = vld [vmem:[%s10552_s10 + $0x1b4] sm:$0xf]  ;;  %v297_v34 = vld [vmem:[%s10552_s10 + $0x1bc] sm:$0xff]  }
  0x57   :  { %286 = vst [vmem:[#allocation4 + $0x1a4] sm:$0xf] %v285_v28  ;;  %288 = vst [vmem:[#allocation4 + $0x1a8] sm:$0xf] %v287_v29  ;;  %v291_v31 = vld [vmem:[%s10552_s10 + $0x1a8] sm:$0xf] }
  0x58   :  { %290 = vst [vmem:[#allocation4 + $0x1ac] sm:$0xf] %v289_v30  ;;  %v293_v32 = vld [vmem:[%s10552_s10 + $0x1b8] sm:$0xf]  ;;  %v295_v33 = vld [vmem:[%s10552_s10 + $0x1ac] sm:$0xf] }
  0x59   :  { %292 = vst [vmem:[#allocation4 + $0x1b0] sm:$0xf] %v291_v31  ;;  %294 = vst [vmem:[#allocation4 + $0x1b4] sm:$0xf] %v293_v32  ;;  %v301_v35 = vld [vmem:[%s10552_s10 + $0x1d0] sm:$0xf] }
  0x5a   :  { %296 = vst [vmem:[#allocation4 + $0x1b8] sm:$0xf] %v295_v33  ;;  %v303_v36 = vld [vmem:[%s10552_s10 + $0x1c4] sm:$0xf]  ;;  %298 = vst [vmem:[#allocation4 + $0x1bc] sm:$0xff] %v297_v34   ;;  %v313_v41 = vld [vmem:[%s10552_s10 + $0x1dc] sm:$0xff]  }
  0x5b   :  { %302 = vst [vmem:[#allocation4 + $0x1c4] sm:$0xf] %v301_v35  ;;  %304 = vst [vmem:[#allocation4 + $0x1c8] sm:$0xf] %v303_v36  ;;  %v305_v37 = vld [vmem:[%s10552_s10 + $0x1d4] sm:$0xf] }
  0x5c   :  { %v307_v38 = vld [vmem:[%s10552_s10 + $0x1c8] sm:$0xf]  ;;  %v309_v39 = vld [vmem:[%s10552_s10 + $0x1d8] sm:$0xf]  ;;  %306 = vst [vmem:[#allocation4 + $0x1cc] sm:$0xf] %v305_v37 }
  0x5d   :  { %308 = vst [vmem:[#allocation4 + $0x1d0] sm:$0xf] %v307_v38  ;;  %310 = vst [vmem:[#allocation4 + $0x1d4] sm:$0xf] %v309_v39  ;;  %v311_v40 = vld [vmem:[%s10552_s10 + $0x1cc] sm:$0xf] }
  0x5e   :  { %v317_v42 = vld [vmem:[%s10552_s10 + $0x1f0] sm:$0xf]  ;;  %312 = vst [vmem:[#allocation4 + $0x1d8] sm:$0xf] %v311_v40  ;;  %314 = vst [vmem:[#allocation4 + $0x1dc] sm:$0xff] %v313_v41  }
  0x5f   :  { %318 = vst [vmem:[#allocation4 + $0x1e4] sm:$0xf] %v317_v42  ;;  %v319_v43 = vld [vmem:[%s10552_s10 + $0x1e4] sm:$0xf]  ;;  %v321_v44 = vld [vmem:[%s10552_s10 + $0x1f4] sm:$0xf] }
  0x60   :  { %v323_v45 = vld [vmem:[%s10552_s10 + $0x1e8] sm:$0xf]  ;;  %320 = vst [vmem:[#allocation4 + $0x1e8] sm:$0xf] %v319_v43  ;;  %322 = vst [vmem:[#allocation4 + $0x1ec] sm:$0xf] %v321_v44 }
  0x61   :  { %324 = vst [vmem:[#allocation4 + $0x1f0] sm:$0xf] %v323_v45  ;;  %v325_v46 = vld [vmem:[%s10552_s10 + $0x1f8] sm:$0xf]  ;;  %v327_v47 = vld [vmem:[%s10552_s10 + $0x1ec] sm:$0xf] }
  0x62   :  { %v329_v48 = vld [vmem:[%s10552_s10 + $0x1fc] sm:$0xf]  ;;  %326 = vst [vmem:[#allocation4 + $0x1f4] sm:$0xf] %v325_v46  ;;  %328 = vst [vmem:[#allocation4 + $0x1f8] sm:$0xf] %v327_v47 }
  0x63   :  { %330 = vst [vmem:[#allocation4 + $0x1fc] sm:$0xf] %v329_v48 }
  0x64   :  { %617 = vsyncadd [#allocation5 + $0x2], 8192  ;;  %v8664_v49 = vld [vmem:[%s10542_s0] sm:$0xff]  ;;  %v8669_v50 = vld [vmem:[%s10542_s0 + $0x8] sm:$0xff]  ;;  %vm662_vm0 = vcmask 523264  }
  0x65   :  { %v8673_v51 = vpack.c.bf16 %v8669_v50, %v8664_v49  ;;  %v8678_v52 = vld [vmem:[%s10542_s0 + $0x10] sm:$0xff]  ;;  %v8683_v53 = vld [vmem:[%s10542_s0 + $0x18] sm:$0xff]  ;;  %v8692_v55 = vld [vmem:[%s10542_s0 + $0x20] sm:$0xff] }
  0x66   :  { %v8687_v54 = vpack.c.bf16 %v8683_v53, %v8678_v52  ;;  %v8697_v56 = vld [vmem:[%s10542_s0 + $0x28] sm:$0xff]  ;;  %v8703_v57 = vld [vmem:[%s10543_s1] sm:$0xff]   ;;  %v8714_v59 = vld [vmem:[%s10542_s0 + $0x30] sm:$0xff] }
  0x67   :  { %7518 = vmatprep.subr.bf16.mxu1 %v8673_v51  ;;  %v8709_v58 = vpack.c.bf16 %v8697_v56, %v8692_v55  ;;  %7526 = vmatprep.mubr.msk.bf16.mxu1 %vm662_vm0, %v8703_v57  ;;  %v8721_v60 = vld [vmem:[%s10542_s0 + $0x38] sm:$0xff]  ;;  %v8736_v62 = vld [vmem:[%s10543_s1 + $0x8] sm:$0xff]   ;;  %v8742_v63 = vld [vmem:[%s10543_s1 + $0x10] sm:$0xff]  }
  0x68   :  { %7519 = vmatpush3.bf16.msra.mxu1 %v8673_v51  ;;  %7558 = vmatprep.mubr.msk.bf16.mxu0 %vm662_vm0, %v8703_v57  ;;  %v8729_v61 = vpack.c.bf16 %v8721_v60, %v8714_v59  ;;  %v8751_v0 = vld [vmem:[%s10543_s1 + $0x18] sm:$0xff]  }
  0x69   :  { %7520 = vmatprep.subr.bf16.mxu1 %v8687_v54 }
  0x6c   :  { %7521 = vmatpush3.bf16.msra.mxu1 %v8687_v54 }
  0x6d   :  { %7522 = vmatprep.subr.bf16.mxu1 %v8709_v58 }
  0x70   :  { %7523 = vmatpush3.bf16.msra.mxu1 %v8709_v58 }
  0x71   :  { %7524 = vmatprep.subr.bf16.mxu1 %v8729_v61 }
  0x74   :  { %7525 = vmatpush3.bf16.msra.mxu1 %v8729_v61 }
  0x77   :  { %7527 = vmatmul.mubr.msk.bf16.vlgmr.msra.gmra.mrb[0].mxu1 %vm662_vm0, %v8736_v62 }
  0x78   :  { %7530 = vmatprep.mubr.msk.bf16.mxu1 %vm662_vm0, %v8742_v63 }
  0x7f   :  { %7531 = vmatmul.mubr.msk.bf16.gmra.mrb[4].mxu1 %vm662_vm0, %v8751_v0 }
  0x80   :  { %7542 = vmatprep.mubr.msk.bf16.mxu1 %vm662_vm0, %v8703_v57 }
 0x14a   :  { %v7528_v1 = vpop.f32.mrb[0].mxu1 }
 0x14b   :  { %v709_v2 = vpop.f32.mrb[1].mxu1  ;;  %v8763_v8 = vmul.f32 0.5, %v7528_v1 }
 0x14c   :  { %v7529_v3 = vpop.f32.mrb[2].mxu1  ;;  %v8757_v5 = vmul.f32 0.5, %v709_v2 }
 0x14d   :  { %v712_v4 = vpop.f32.mrb[3].mxu1  ;;  %v8759_v6 = vmul.f32 0.5, %v7529_v3 }
 0x14e   :  { %v8761_v7 = vmul.f32 0.5, %v712_v4 }
 0x14f   :  { %v8771_v10 = vpack.c.bf16 %v8759_v6, %v8763_v8 }
 0x150   :  { %v8767_v9 = vpack.c.bf16 %v8761_v7, %v8757_v5 }
 0x152   :  { %v7532_v11 = vpop.f32.mrb[4].mxu1  ;;  %7534 = vmatprep.subr.bf16.mxu1 %v8767_v9 }
 0x153   :  { %v725_v12 = vpop.f32.mrb[5].mxu1  ;;  %7535 = vmatpush3.bf16.msra.mxu1 %v8767_v9  ;;  %v8783_v18 = vmul.f32 0.5, %v7532_v11 }
 0x154   :  { %v7533_v13 = vpop.f32.mrb[6].mxu1  ;;  %7536 = vmatprep.subr.bf16.mxu1 %v8771_v10  ;;  %v8776_v15 = vmul.f32 0.5, %v725_v12 }
 0x155   :  { %v728_v14 = vpop.f32.mrb[7].mxu1  ;;  %v8778_v16 = vmul.f32 0.5, %v7533_v13 }
 0x156   :  { %v8780_v17 = vmul.f32 0.5, %v728_v14 }
 0x157   :  { %7537 = vmatpush3.bf16.msra.mxu1 %v8771_v10  ;;  %v8791_v20 = vpack.c.bf16 %v8778_v16, %v8783_v18 }
 0x158   :  { %v8787_v19 = vpack.c.bf16 %v8780_v17, %v8776_v15 }
 0x15a   :  { %7538 = vmatprep.subr.bf16.mxu1 %v8787_v19 }
 0x15b   :  { %7539 = vmatpush3.bf16.msra.mxu1 %v8787_v19 }
 0x15c   :  { %7540 = vmatprep.subr.bf16.mxu1 %v8791_v20 }
 0x15f   :  { %7541 = vmatpush3.bf16.msra.mxu1 %v8791_v20 }
 0x162   :  { %7543 = vmatmul.mubr.msk.bf16.vlgmr.msra.gmra.mrb[8].mxu1 %vm662_vm0, %v8736_v62 }
 0x163   :  { %7546 = vmatprep.mubr.msk.bf16.mxu1 %vm662_vm0, %v8742_v63 }
 0x16a   :  { %7547 = vmatmul.mubr.msk.bf16.gmra.mrb[12].mxu1 %vm662_vm0, %v8751_v0 }
 0x16b   :  { %7574 = vmatprep.mubr.msk.bf16.mxu1 %vm662_vm0, %v8703_v57 }
 0x235   :  { %v7544_v21 = vpop.f32.mrb[8].mxu1 }
 0x236   :  { %v790_v22 = vpop.f32.mrb[9].mxu1  ;;  %v8815_v28 = vsub.f32 %v7544_v21, %v8678_v52 }
 0x237   :  { %v7545_v23 = vpop.f32.mrb[10].mxu1  ;;  %v8806_v25 = vsub.f32 %v790_v22, %v8664_v49 }
 0x238   :  { %v793_v24 = vpop.f32.mrb[11].mxu1  ;;  %v8809_v26 = vsub.f32 %v7545_v23, %v8683_v53 }
 0x239   :  { %v8812_v27 = vsub.f32 %v793_v24, %v8669_v50 }
 0x23a   :  { %v8823_v30 = vpack.c.bf16 %v8809_v26, %v8815_v28 }
 0x23b   :  { %v8819_v29 = vpack.c.bf16 %v8812_v27, %v8806_v25 }
 0x23d   :  { %v7548_v31 = vpop.f32.mrb[12].mxu1  ;;  %7550 = vmatprep.subr.bf16.mxu0 %v8819_v29 }
 0x23e   :  { %v806_v32 = vpop.f32.mrb[13].mxu1  ;;  %7551 = vmatpush3.bf16.msra.mxu0 %v8819_v29  ;;  %v8839_v38 = vsub.f32 %v7548_v31, %v8714_v59 }
 0x23f   :  { %v7549_v33 = vpop.f32.mrb[14].mxu1  ;;  %7552 = vmatprep.subr.bf16.mxu0 %v8823_v30  ;;  %v8829_v35 = vsub.f32 %v806_v32, %v8692_v55 }
 0x240   :  { %v809_v34 = vpop.f32.mrb[15].mxu1  ;;  %v8832_v36 = vsub.f32 %v7549_v33, %v8721_v60 }
 0x241   :  { %v8835_v37 = vsub.f32 %v809_v34, %v8697_v56 }
 0x242   :  { %7553 = vmatpush3.bf16.msra.mxu0 %v8823_v30  ;;  %v8847_v40 = vpack.c.bf16 %v8832_v36, %v8839_v38 }
 0x243   :  { %v8843_v39 = vpack.c.bf16 %v8835_v37, %v8829_v35 }
 0x245   :  { %7554 = vmatprep.subr.bf16.mxu0 %v8843_v39 }
 0x246   :  { %7555 = vmatpush3.bf16.msra.mxu0 %v8843_v39 }
 0x247   :  { %7556 = vmatprep.subr.bf16.mxu0 %v8847_v40 }
 0x24a   :  { %7557 = vmatpush3.bf16.msra.mxu0 %v8847_v40 }
 0x24d   :  { %7559 = vmatmul.mubr.msk.bf16.vlgmr.msra.gmra.mrb[0].mxu0 %vm662_vm0, %v8736_v62 }
 0x24e   :  { %7562 = vmatprep.mubr.msk.bf16.mxu0 %vm662_vm0, %v8742_v63 }
 0x255   :  { %7563 = vmatmul.mubr.msk.bf16.gmra.mrb[4].mxu0 %vm662_vm0, %v8751_v0 }
 0x256   :  { %7590 = vmatprep.mubr.msk.bf16.mxu0 %vm662_vm0, %v8703_v57 }
 0x320   :  { %v7560_v41 = vpop.f32.mrb[0].mxu0 }
 0x321   :  { %v871_v42 = vpop.f32.mrb[1].mxu0  ;;  %v8871_v48 = vsub.f32 %v7560_v41, %v8763_v8 }
 0x322   :  { %v7561_v43 = vpop.f32.mrb[2].mxu0  ;;  %v8862_v45 = vsub.f32 %v871_v42, %v8757_v5 }
 0x323   :  { %v874_v44 = vpop.f32.mrb[3].mxu0  ;;  %v8865_v46 = vsub.f32 %v7561_v43, %v8759_v6 }
 0x324   :  { %v8868_v47 = vsub.f32 %v874_v44, %v8761_v7 }
 0x325   :  { %v8879_v50 = vpack.c.bf16 %v8865_v46, %v8871_v48 }
 0x326   :  { %v8875_v49 = vpack.c.bf16 %v8868_v47, %v8862_v45 }
 0x328   :  { %v7564_v52 = vpop.f32.mrb[4].mxu0  ;;  %7566 = vmatprep.subr.bf16.mxu1 %v8875_v49 }
 0x329   :  { %v887_v53 = vpop.f32.mrb[5].mxu0  ;;  %7567 = vmatpush3.bf16.msra.mxu1 %v8875_v49  ;;  %v8895_v2 = vsub.f32 %v7564_v52, %v8783_v18 }
 0x32a   :  { %v7565_v55 = vpop.f32.mrb[6].mxu0  ;;  %7568 = vmatprep.subr.bf16.mxu1 %v8879_v50  ;;  %v8885_v59 = vsub.f32 %v887_v53, %v8776_v15 }
 0x32b   :  { %v890_v56 = vpop.f32.mrb[7].mxu0  ;;  %v8888_v60 = vsub.f32 %v7565_v55, %v8778_v16 }
 0x32c   :  { %v8891_v1 = vsub.f32 %v890_v56, %v8780_v17 }
 0x32d   :  { %7569 = vmatpush3.bf16.msra.mxu1 %v8879_v50  ;;  %v8903_v4 = vpack.c.bf16 %v8888_v60, %v8895_v2 }
 0x32e   :  { %v8899_v3 = vpack.c.bf16 %v8891_v1, %v8885_v59 }
 0x330   :  { %7570 = vmatprep.subr.bf16.mxu1 %v8899_v3 }
 0x331   :  { %7571 = vmatpush3.bf16.msra.mxu1 %v8899_v3 }
 0x332   :  { %7572 = vmatprep.subr.bf16.mxu1 %v8903_v4 }
 0x335   :  { %7573 = vmatpush3.bf16.msra.mxu1 %v8903_v4 }
 0x338   :  { %7575 = vmatmul.mubr.msk.bf16.vlgmr.msra.gmra.mrb[16].mxu1 %vm662_vm0, %v8736_v62 }
 0x339   :  { %7578 = vmatprep.mubr.msk.bf16.mxu1 %vm662_vm0, %v8742_v63 }
 0x340   :  { %7579 = vmatmul.mubr.msk.bf16.gmra.mrb[20].mxu1 %vm662_vm0, %v8751_v0 }
 0x341   :  { %7606 = vmatprep.mubr.msk.bf16.mxu1 %vm662_vm0, %v8703_v57 }
 0x40b   :  { %v7576_v5 = vpop.f32.mrb[16].mxu1 }
 0x40c   :  { %v952_v6 = vpop.f32.mrb[17].mxu1  ;;  %v8927_v14 = vsub.f32 %v7576_v5, %v8815_v28 }
 0x40d   :  { %v7577_v7 = vpop.f32.mrb[18].mxu1  ;;  %v8918_v11 = vsub.f32 %v952_v6, %v8806_v25 }
 0x40e   :  { %v955_v8 = vpop.f32.mrb[19].mxu1  ;;  %v8921_v12 = vsub.f32 %v7577_v7, %v8809_v26 }
 0x40f   :  { %v8924_v13 = vsub.f32 %v955_v8, %v8812_v27 }
 0x410   :  { %v8935_v16 = vpack.c.bf16 %v8921_v12, %v8927_v14 }
 0x411   :  { %v8931_v15 = vpack.c.bf16 %v8924_v13, %v8918_v11 }
 0x413   :  { %v7580_v17 = vpop.f32.mrb[20].mxu1  ;;  %7582 = vmatprep.subr.bf16.mxu0 %v8931_v15 }
 0x414   :  { %v968_v18 = vpop.f32.mrb[21].mxu1  ;;  %7583 = vmatpush3.bf16.msra.mxu0 %v8931_v15  ;;  %v8951_v26 = vsub.f32 %v7580_v17, %v8839_v38 }
 0x415   :  { %v7581_v21 = vpop.f32.mrb[22].mxu1  ;;  %7584 = vmatprep.subr.bf16.mxu0 %v8935_v16  ;;  %v8941_v23 = vsub.f32 %v968_v18, %v8829_v35 }
 0x416   :  { %v971_v22 = vpop.f32.mrb[23].mxu1  ;;  %v8944_v24 = vsub.f32 %v7581_v21, %v8832_v36 }
 0x417   :  { %v8947_v25 = vsub.f32 %v971_v22, %v8835_v37 }
 0x418   :  { %7585 = vmatpush3.bf16.msra.mxu0 %v8935_v16  ;;  %v8959_v28 = vpack.c.bf16 %v8944_v24, %v8951_v26 }
 0x419   :  { %v8955_v27 = vpack.c.bf16 %v8947_v25, %v8941_v23 }
 0x41b   :  { %7586 = vmatprep.subr.bf16.mxu0 %v8955_v27 }
 0x41c   :  { %7587 = vmatpush3.bf16.msra.mxu0 %v8955_v27 }
 0x41d   :  { %7588 = vmatprep.subr.bf16.mxu0 %v8959_v28 }
 0x420   :  { %7589 = vmatpush3.bf16.msra.mxu0 %v8959_v28 }
 0x423   :  { %7591 = vmatmul.mubr.msk.bf16.vlgmr.msra.gmra.mrb[8].mxu0 %vm662_vm0, %v8736_v62 }
 0x424   :  { %7594 = vmatprep.mubr.msk.bf16.mxu0 %vm662_vm0, %v8742_v63 }
 0x42b   :  { %7595 = vmatmul.mubr.msk.bf16.gmra.mrb[12].mxu0 %vm662_vm0, %v8751_v0 }
 0x42c   :  { %7622 = vmatprep.mubr.msk.bf16.mxu0 %vm662_vm0, %v8703_v57 }
 0x4f6   :  { %v7592_v31 = vpop.f32.mrb[8].mxu0 }
 0x4f7   :  { %v1033_v32 = vpop.f32.mrb[9].mxu0  ;;  %v8983_v38 = vsub.f32 %v7592_v31, %v8871_v48 }
 0x4f8   :  { %v7593_v33 = vpop.f32.mrb[10].mxu0  ;;  %v8974_v35 = vsub.f32 %v1033_v32, %v8862_v45 }
 0x4f9   :  { %v1036_v34 = vpop.f32.mrb[11].mxu0  ;;  %v8977_v36 = vsub.f32 %v7593_v33, %v8865_v46 }
 0x4fa   :  { %v8980_v37 = vsub.f32 %v1036_v34, %v8868_v47 }
 0x4fb   :  { %v8991_v42 = vpack.c.bf16 %v8977_v36, %v8983_v38 }
 0x4fc   :  { %v8987_v41 = vpack.c.bf16 %v8980_v37, %v8974_v35 }
 0x4fe   :  { %v7596_v43 = vpop.f32.mrb[12].mxu0  ;;  %7598 = vmatprep.subr.bf16.mxu1 %v8987_v41 }
 0x4ff   :  { %v1049_v44 = vpop.f32.mrb[13].mxu0  ;;  %7599 = vmatpush3.bf16.msra.mxu1 %v8987_v41  ;;  %v9007_v53 = vsub.f32 %v7596_v43, %v8895_v2 }
 0x500   :  { %v7597_v45 = vpop.f32.mrb[14].mxu0  ;;  %7600 = vmatprep.subr.bf16.mxu1 %v8991_v42  ;;  %v8997_v47 = vsub.f32 %v1049_v44, %v8885_v59 }
 0x501   :  { %v1052_v46 = vpop.f32.mrb[15].mxu0  ;;  %v9000_v48 = vsub.f32 %v7597_v45, %v8888_v60 }
 0x502   :  { %v9003_v52 = vsub.f32 %v1052_v46, %v8891_v1 }
 0x503   :  { %7601 = vmatpush3.bf16.msra.mxu1 %v8991_v42  ;;  %v9015_v56 = vpack.c.bf16 %v9000_v48, %v9007_v53 }
 0x504   :  { %v9011_v55 = vpack.c.bf16 %v9003_v52, %v8997_v47 }
 0x506   :  { %7602 = vmatprep.subr.bf16.mxu1 %v9011_v55 }
 0x507   :  { %7603 = vmatpush3.bf16.msra.mxu1 %v9011_v55 }
 0x508   :  { %7604 = vmatprep.subr.bf16.mxu1 %v9015_v56 }
 0x50b   :  { %7605 = vmatpush3.bf16.msra.mxu1 %v9015_v56 }
 0x50e   :  { %7607 = vmatmul.mubr.msk.bf16.vlgmr.msra.gmra.mrb[24].mxu1 %vm662_vm0, %v8736_v62 }
 0x50f   :  { %7610 = vmatprep.mubr.msk.bf16.mxu1 %vm662_vm0, %v8742_v63 }
 0x516   :  { %7611 = vmatmul.mubr.msk.bf16.gmra.mrb[28].mxu1 %vm662_vm0, %v8751_v0 }
 0x517   :  { %7638 = vmatprep.mubr.msk.bf16.mxu1 %vm662_vm0, %v8703_v57 }
 0x5e1   :  { %v7608_v59 = vpop.f32.mrb[24].mxu1 }
 0x5e2   :  { %v1114_v60 = vpop.f32.mrb[25].mxu1  ;;  %v9039_v8 = vsub.f32 %v7608_v59, %v8927_v14 }
 0x5e3   :  { %v7609_v1 = vpop.f32.mrb[26].mxu1  ;;  %v9030_v5 = vsub.f32 %v1114_v60, %v8918_v11 }
 0x5e4   :  { %v1117_v2 = vpop.f32.mrb[27].mxu1  ;;  %v9033_v6 = vsub.f32 %v7609_v1, %v8921_v12 }
 0x5e5   :  { %v9036_v7 = vsub.f32 %v1117_v2, %v8924_v13 }
 0x5e6   :  { %v9047_v18 = vpack.c.bf16 %v9033_v6, %v9039_v8 }
 0x5e7   :  { %v9043_v17 = vpack.c.bf16 %v9036_v7, %v9030_v5 }
 0x5e9   :  { %v7612_v21 = vpop.f32.mrb[28].mxu1  ;;  %7614 = vmatprep.subr.bf16.mxu0 %v9043_v17 }
 0x5ea   :  { %v1130_v11 = vpop.f32.mrb[29].mxu1  ;;  %7615 = vmatpush3.bf16.msra.mxu0 %v9043_v17  ;;  %v9063_v32 = vsub.f32 %v7612_v21, %v8951_v26 }
 0x5eb   :  { %v7613_v12 = vpop.f32.mrb[30].mxu1  ;;  %7616 = vmatprep.subr.bf16.mxu0 %v9047_v18  ;;  %v9053_v14 = vsub.f32 %v1130_v11, %v8941_v23 }
 0x5ec   :  { %v1133_v13 = vpop.f32.mrb[31].mxu1  ;;  %v9056_v22 = vsub.f32 %v7613_v12, %v8944_v24 }
 0x5ed   :  { %v9059_v31 = vsub.f32 %v1133_v13, %v8947_v25 }
 0x5ee   :  { %7617 = vmatpush3.bf16.msra.mxu0 %v9047_v18  ;;  %v9071_v34 = vpack.c.bf16 %v9056_v22, %v9063_v32 }
 0x5ef   :  { %v9067_v33 = vpack.c.bf16 %v9059_v31, %v9053_v14 }
 0x5f1   :  { %7618 = vmatprep.subr.bf16.mxu0 %v9067_v33 }
 0x5f2   :  { %7619 = vmatpush3.bf16.msra.mxu0 %v9067_v33 }
 0x5f3   :  { %7620 = vmatprep.subr.bf16.mxu0 %v9071_v34 }
 0x5f6   :  { %7621 = vmatpush3.bf16.msra.mxu0 %v9071_v34 }
 0x5f9   :  { %7623 = vmatmul.mubr.msk.bf16.vlgmr.msra.gmra.mrb[16].mxu0 %vm662_vm0, %v8736_v62 }
 0x5fa   :  { %7626 = vmatprep.mubr.msk.bf16.mxu0 %vm662_vm0, %v8742_v63 }
 0x601   :  { %7627 = vmatmul.mubr.msk.bf16.gmra.mrb[20].mxu0 %vm662_vm0, %v8751_v0 }
 0x602   :  { %7654 = vmatprep.mubr.msk.bf16.mxu0 %vm662_vm0, %v8703_v57 }
 0x6cc   :  { %v7624_v23 = vpop.f32.mrb[16].mxu0 }
 0x6cd   :  { %v1195_v24 = vpop.f32.mrb[17].mxu0  ;;  %v9095_v46 = vsub.f32 %v7624_v23, %v8983_v38 }
 0x6ce   :  { %v7625_v25 = vpop.f32.mrb[18].mxu0  ;;  %v9086_v43 = vsub.f32 %v1195_v24, %v8974_v35 }
 0x6cf   :  { %v1198_v26 = vpop.f32.mrb[19].mxu0  ;;  %v9089_v44 = vsub.f32 %v7625_v25, %v8977_v36 }
 0x6d0   :  { %v9092_v45 = vsub.f32 %v1198_v26, %v8980_v37 }
 0x6d1   :  { %v9103_v60 = vpack.c.bf16 %v9089_v44, %v9095_v46 }
 0x6d2   :  { %v9099_v59 = vpack.c.bf16 %v9092_v45, %v9086_v43 }
 0x6d4   :  { %v7628_v1 = vpop.f32.mrb[20].mxu0  ;;  %7630 = vmatprep.subr.bf16.mxu1 %v9099_v59 }
 0x6d5   :  { %v1211_v35 = vpop.f32.mrb[21].mxu0  ;;  %7631 = vmatpush3.bf16.msra.mxu1 %v9099_v59  ;;  %v9119_v11 = vsub.f32 %v7628_v1, %v9007_v53 }
 0x6d6   :  { %v7629_v36 = vpop.f32.mrb[22].mxu0  ;;  %7632 = vmatprep.subr.bf16.mxu1 %v9103_v60  ;;  %v9109_v38 = vsub.f32 %v1211_v35, %v8997_v47 }
 0x6d7   :  { %v1214_v37 = vpop.f32.mrb[23].mxu0  ;;  %v9112_v2 = vsub.f32 %v7629_v36, %v9000_v48 }
 0x6d8   :  { %v9115_v21 = vsub.f32 %v1214_v37, %v9003_v52 }
 0x6d9   :  { %7633 = vmatpush3.bf16.msra.mxu1 %v9103_v60  ;;  %v9127_v13 = vpack.c.bf16 %v9112_v2, %v9119_v11 }
 0x6da   :  { %v9123_v12 = vpack.c.bf16 %v9115_v21, %v9109_v38 }
 0x6dc   :  { %7634 = vmatprep.subr.bf16.mxu1 %v9123_v12 }
 0x6dd   :  { %7635 = vmatpush3.bf16.msra.mxu1 %v9123_v12 }
 0x6de   :  { %7636 = vmatprep.subr.bf16.mxu1 %v9127_v13 }
 0x6e1   :  { %7637 = vmatpush3.bf16.msra.mxu1 %v9127_v13 }
 0x6e4   :  { %7639 = vmatmul.mubr.msk.bf16.vlgmr.msra.gmra.mrb[32].mxu1 %vm662_vm0, %v8736_v62 }
 0x6e5   :  { %7642 = vmatprep.mubr.msk.bf16.mxu1 %vm662_vm0, %v8742_v63 }
 0x6ec   :  { %7643 = vmatmul.mubr.msk.bf16.gmra.mrb[36].mxu1 %vm662_vm0, %v8751_v0 }
 0x6ed   :  { %7670 = vmatprep.mubr.msk.bf16.mxu1 %vm662_vm0, %v8703_v57 }
 0x7b7   :  { %v7640_v47 = vpop.f32.mrb[32].mxu1 }
 0x7b8   :  { %v1276_v48 = vpop.f32.mrb[33].mxu1  ;;  %v9151_v26 = vsub.f32 %v7640_v47, %v9039_v8 }
 0x7b9   :  { %v7641_v52 = vpop.f32.mrb[34].mxu1  ;;  %v9142_v23 = vsub.f32 %v1276_v48, %v9030_v5 }
 0x7ba   :  { %v1279_v53 = vpop.f32.mrb[35].mxu1  ;;  %v9145_v24 = vsub.f32 %v7641_v52, %v9033_v6 }
 0x7bb   :  { %v9148_v25 = vsub.f32 %v1279_v53, %v9036_v7 }
 0x7bc   :  { %v9159_v35 = vpack.c.bf16 %v9145_v24, %v9151_v26 }
 0x7bd   :  { %v9155_v1 = vpack.c.bf16 %v9148_v25, %v9142_v23 }
 0x7be   :  { %10615 = vst [vmem:[#allocation24_spill] sm:$0xff] %v9159_v35 }
 0x7bf   :  { %10614 = vst [vmem:[#allocation23_spill] sm:$0xff] %v9155_v1  ;;  %v7644_v36 = vpop.f32.mrb[36].mxu1  ;;  %7646 = vmatprep.subr.bf16.mxu0 %v9155_v1 }
 0x7c0   :  { %v1292_v5 = vpop.f32.mrb[37].mxu1  ;;  %7647 = vmatpush3.bf16.msra.mxu0 %v9155_v1  ;;  %v9175_v48 = vsub.f32 %v7644_v36, %v9063_v32 }
 0x7c1   :  { %v7645_v6 = vpop.f32.mrb[38].mxu1  ;;  %7648 = vmatprep.subr.bf16.mxu0 %v9159_v35  ;;  %v9165_v8 = vsub.f32 %v1292_v5, %v9053_v14 }
 0x7c2   :  { %v1295_v7 = vpop.f32.mrb[39].mxu1  ;;  %v9168_v37 = vsub.f32 %v7645_v6, %v9056_v22 }
 0x7c3   :  { %v9171_v47 = vsub.f32 %v1295_v7, %v9059_v31 }
 0x7c4   :  { %7649 = vmatpush3.bf16.msra.mxu0 %v9159_v35  ;;  %v9183_v53 = vpack.c.bf16 %v9168_v37, %v9175_v48 }
 0x7c5   :  { %v9179_v52 = vpack.c.bf16 %v9171_v47, %v9165_v8 }
 0x7c6   :  { %10617 = vst [vmem:[#allocation26_spill] sm:$0xff] %v9183_v53 }
 0x7c7   :  { %10616 = vst [vmem:[#allocation25_spill] sm:$0xff] %v9179_v52  ;;  %7650 = vmatprep.subr.bf16.mxu0 %v9179_v52 }
 0x7c8   :  { %7651 = vmatpush3.bf16.msra.mxu0 %v9179_v52 }
 0x7c9   :  { %7652 = vmatprep.subr.bf16.mxu0 %v9183_v53 }
 0x7cc   :  { %7653 = vmatpush3.bf16.msra.mxu0 %v9183_v53 }
 0x7cf   :  { %7655 = vmatmul.mubr.msk.bf16.vlgmr.msra.gmra.mrb[24].mxu0 %vm662_vm0, %v8736_v62 }
 0x7d0   :  { %7658 = vmatprep.mubr.msk.bf16.mxu0 %vm662_vm0, %v8742_v63 }
 0x7d7   :  { %7659 = vmatmul.mubr.msk.bf16.gmra.mrb[28].mxu0 %vm662_vm0, %v8751_v0 }
 0x7d8   :  { %7686 = vmatprep.mubr.msk.bf16.mxu0 %vm662_vm0, %v8703_v57 }
 0x8a2   :  { %v7656_v14 = vpop.f32.mrb[24].mxu0 }
 0x8a3   :  { %v1357_v22 = vpop.f32.mrb[25].mxu0  ;;  %v9207_v7 = vsub.f32 %v7656_v14, %v9095_v46 }
 0x8a4   :  { %v7657_v31 = vpop.f32.mrb[26].mxu0  ;;  %v9198_v36 = vsub.f32 %v1357_v22, %v9086_v43 }
 0x8a5   :  { %v1360_v32 = vpop.f32.mrb[27].mxu0  ;;  %v9201_v5 = vsub.f32 %v7657_v31, %v9089_v44 }
 0x8a6   :  { %v9204_v6 = vsub.f32 %v1360_v32, %v9092_v45 }
 0x8a7   :  { %v9215_v52 = vpack.c.bf16 %v9201_v5, %v9207_v7 }
 0x8a8   :  { %v9211_v53 = vpack.c.bf16 %v9204_v6, %v9198_v36 }
 0x8a9   :  { %10619 = vst [vmem:[#allocation28_spill] sm:$0xff] %v9215_v52 }
 0x8aa   :  { %10618 = vst [vmem:[#allocation27_spill] sm:$0xff] %v9211_v53  ;;  %v7660_v35 = vpop.f32.mrb[28].mxu0  ;;  %7662 = vmatprep.subr.bf16.mxu1 %v9211_v53 }
 0x8ab   :  { %v1373_v43 = vpop.f32.mrb[29].mxu0  ;;  %7663 = vmatpush3.bf16.msra.mxu1 %v9211_v53  ;;  %v9231_v31 = vsub.f32 %v7660_v35, %v9119_v11 }
 0x8ac   :  { %v7661_v44 = vpop.f32.mrb[30].mxu0  ;;  %7664 = vmatprep.subr.bf16.mxu1 %v9215_v52  ;;  %v9221_v46 = vsub.f32 %v1373_v43, %v9109_v38 }
 0x8ad   :  { %v1376_v45 = vpop.f32.mrb[31].mxu0  ;;  %v9224_v14 = vsub.f32 %v7661_v44, %v9112_v2 }
 0x8ae   :  { %v9227_v22 = vsub.f32 %v1376_v45, %v9115_v21 }
 0x8af   :  { %7665 = vmatpush3.bf16.msra.mxu1 %v9215_v52  ;;  %v9239_v1 = vpack.c.bf16 %v9224_v14, %v9231_v31 }
 0x8b0   :  { %v9235_v32 = vpack.c.bf16 %v9227_v22, %v9221_v46 }
 0x8b1   :  { %10621 = vst [vmem:[#allocation30_spill] sm:$0xff] %v9239_v1 }
 0x8b2   :  { %10620 = vst [vmem:[#allocation29_spill] sm:$0xff] %v9235_v32  ;;  %7666 = vmatprep.subr.bf16.mxu1 %v9235_v32 }
 0x8b3   :  { %7667 = vmatpush3.bf16.msra.mxu1 %v9235_v32 }
 0x8b4   :  { %7668 = vmatprep.subr.bf16.mxu1 %v9239_v1 }
 0x8b7   :  { %7669 = vmatpush3.bf16.msra.mxu1 %v9239_v1 }
 0x8ba   :  { %7671 = vmatmul.mubr.msk.bf16.vlgmr.msra.gmra.mrb[40].mxu1 %vm662_vm0, %v8736_v62 }
 0x8bb   :  { %7674 = vmatprep.mubr.msk.bf16.mxu1 %vm662_vm0, %v8742_v63 }
 0x8c2   :  { %7675 = vmatmul.mubr.msk.bf16.gmra.mrb[44].mxu1 %vm662_vm0, %v8751_v0 }
 0x8c3   :  { %7702 = vmatprep.mubr.msk.bf16.mxu1 %vm662_vm0, %v8703_v57 }
 0x98d   :  { %v7672_v38 = vpop.f32.mrb[40].mxu1 }
 0x98e   :  { %v1438_v2 = vpop.f32.mrb[41].mxu1  ;;  %v9263_v45 = vsub.f32 %v7672_v38, %v9151_v26 }
 0x98f   :  { %v7673_v21 = vpop.f32.mrb[42].mxu1  ;;  %v9254_v35 = vsub.f32 %v1438_v2, %v9142_v23 }
 0x990   :  { %v1441_v11 = vpop.f32.mrb[43].mxu1  ;;  %v9257_v43 = vsub.f32 %v7673_v21, %v9145_v24 }
 0x991   :  { %v9260_v44 = vsub.f32 %v1441_v11, %v9148_v25 }
 0x992   :  { %v9271_v32 = vpack.c.bf16 %v9257_v43, %v9263_v45 }
 0x993   :  { %v9267_v1 = vpack.c.bf16 %v9260_v44, %v9254_v35 }
 0x994   :  { %10623 = vst [vmem:[#allocation32_spill] sm:$0xff] %v9271_v32 }
 0x995   :  { %10622 = vst [vmem:[#allocation31_spill] sm:$0xff] %v9267_v1  ;;  %v7676_v52 = vpop.f32.mrb[44].mxu1  ;;  %7678 = vmatprep.subr.bf16.mxu0 %v9267_v1 }
 0x996   :  { %v1454_v23 = vpop.f32.mrb[45].mxu1  ;;  %7679 = vmatpush3.bf16.msra.mxu0 %v9267_v1  ;;  %v9287_v21 = vsub.f32 %v7676_v52, %v9175_v48 }
 0x997   :  { %v7677_v24 = vpop.f32.mrb[46].mxu1  ;;  %7680 = vmatprep.subr.bf16.mxu0 %v9271_v32  ;;  %v9277_v26 = vsub.f32 %v1454_v23, %v9165_v8 }
 0x998   :  { %v1457_v25 = vpop.f32.mrb[47].mxu1  ;;  %v9280_v38 = vsub.f32 %v7677_v24, %v9168_v37 }
 0x999   :  { %v9283_v2 = vsub.f32 %v1457_v25, %v9171_v47 }
 0x99a   :  { %7681 = vmatpush3.bf16.msra.mxu0 %v9271_v32  ;;  %v9295_v1 = vpack.c.bf16 %v9280_v38, %v9287_v21 }
 0x99b   :  { %v9291_v11 = vpack.c.bf16 %v9283_v2, %v9277_v26 }
 0x99c   :  { %10625 = vst [vmem:[#allocation34_spill] sm:$0xff] %v9295_v1 }
 0x99d   :  { %10624 = vst [vmem:[#allocation33_spill] sm:$0xff] %v9291_v11  ;;  %7682 = vmatprep.subr.bf16.mxu0 %v9291_v11 }
 0x99e   :  { %7683 = vmatpush3.bf16.msra.mxu0 %v9291_v11 }
 0x99f   :  { %7684 = vmatprep.subr.bf16.mxu0 %v9295_v1 }
 0x9a2   :  { %7685 = vmatpush3.bf16.msra.mxu0 %v9295_v1 }
 0x9a5   :  { %7687 = vmatmul.mubr.msk.bf16.vlgmr.msra.gmra.mrb[32].mxu0 %vm662_vm0, %v8736_v62 }
 0x9a6   :  { %7690 = vmatprep.mubr.msk.bf16.mxu0 %vm662_vm0, %v8742_v63 }
 0x9ad   :  { %7691 = vmatmul.mubr.msk.bf16.gmra.mrb[36].mxu0 %vm662_vm0, %v8751_v0 }
 0x9ae   :  { %7718 = vmatprep.mubr.msk.bf16.mxu0 %vm662_vm0, %v8703_v57 }
 0xa78   :  { %v7688_v8 = vpop.f32.mrb[32].mxu0 }
 0xa79   :  { %v1519_v37 = vpop.f32.mrb[33].mxu0  ;;  %v9319_v25 = vsub.f32 %v7688_v8, %v9207_v7 }
 0xa7a   :  { %v7689_v47 = vpop.f32.mrb[34].mxu0  ;;  %v9310_v52 = vsub.f32 %v1519_v37, %v9198_v36 }
 0xa7b   :  { %v1522_v48 = vpop.f32.mrb[35].mxu0  ;;  %v9313_v23 = vsub.f32 %v7689_v47, %v9201_v5 }
 0xa7c   :  { %v9316_v24 = vsub.f32 %v1522_v48, %v9204_v6 }
 0xa7d   :  { %v9327_v11 = vpack.c.bf16 %v9313_v23, %v9319_v25 }
 0xa7e   :  { %v9323_v1 = vpack.c.bf16 %v9316_v24, %v9310_v52 }
 0xa7f   :  { %10627 = vst [vmem:[#allocation36_spill] sm:$0xff] %v9327_v11 }
 0xa80   :  { %10626 = vst [vmem:[#allocation35_spill] sm:$0xff] %v9323_v1  ;;  %v7692_v32 = vpop.f32.mrb[36].mxu0  ;;  %7694 = vmatprep.subr.bf16.mxu1 %v9323_v1 }
 0xa81   :  { %v1535_v36 = vpop.f32.mrb[37].mxu0  ;;  %7695 = vmatpush3.bf16.msra.mxu1 %v9323_v1  ;;  %v9343_v47 = vsub.f32 %v7692_v32, %v9231_v31 }
 0xa82   :  { %v7693_v5 = vpop.f32.mrb[38].mxu0  ;;  %7696 = vmatprep.subr.bf16.mxu1 %v9327_v11  ;;  %v9333_v7 = vsub.f32 %v1535_v36, %v9221_v46 }
 0xa83   :  { %v1538_v6 = vpop.f32.mrb[39].mxu0  ;;  %v9336_v8 = vsub.f32 %v7693_v5, %v9224_v14 }
 0xa84   :  { %v9339_v37 = vsub.f32 %v1538_v6, %v9227_v22 }
 0xa85   :  { %7697 = vmatpush3.bf16.msra.mxu1 %v9327_v11  ;;  %v9351_v1 = vpack.c.bf16 %v9336_v8, %v9343_v47 }
 0xa86   :  { %v9347_v48 = vpack.c.bf16 %v9339_v37, %v9333_v7 }
 0xa87   :  { %10629 = vst [vmem:[#allocation38_spill] sm:$0xff] %v9351_v1 }
 0xa88   :  { %10628 = vst [vmem:[#allocation37_spill] sm:$0xff] %v9347_v48  ;;  %7698 = vmatprep.subr.bf16.mxu1 %v9347_v48 }
 0xa89   :  { %7699 = vmatpush3.bf16.msra.mxu1 %v9347_v48 }
 0xa8a   :  { %7700 = vmatprep.subr.bf16.mxu1 %v9351_v1 }
 0xa8d   :  { %7701 = vmatpush3.bf16.msra.mxu1 %v9351_v1 }
 0xa90   :  { %7703 = vmatmul.mubr.msk.bf16.vlgmr.msra.gmra.mrb[48].mxu1 %vm662_vm0, %v8736_v62 }
 0xa91   :  { %7706 = vmatprep.mubr.msk.bf16.mxu1 %vm662_vm0, %v8742_v63 }
 0xa98   :  { %7707 = vmatmul.mubr.msk.bf16.gmra.mrb[52].mxu1 %vm662_vm0, %v8751_v0 }
 0xa99   :  { %7734 = vmatprep.mubr.msk.bf16.mxu1 %vm662_vm0, %v8703_v57 }
 0xb63   :  { %v7704_v46 = vpop.f32.mrb[48].mxu1 }
 0xb64   :  { %v1600_v14 = vpop.f32.mrb[49].mxu1  ;;  %v9375_v6 = vsub.f32 %v7704_v46, %v9263_v45 }
 0xb65   :  { %v7705_v22 = vpop.f32.mrb[50].mxu1  ;;  %v9366_v32 = vsub.f32 %v1600_v14, %v9254_v35 }
 0xb66   :  { %v1603_v31 = vpop.f32.mrb[51].mxu1  ;;  %v9369_v36 = vsub.f32 %v7705_v22, %v9257_v43 }
 0xb67   :  { %v9372_v5 = vsub.f32 %v1603_v31, %v9260_v44 }
 0xb68   :  { %v9383_v48 = vpack.c.bf16 %v9369_v36, %v9375_v6 }
 0xb69   :  { %v9379_v1 = vpack.c.bf16 %v9372_v5, %v9366_v32 }
 0xb6a   :  { %10631 = vst [vmem:[#allocation40_spill] sm:$0xff] %v9383_v48 }
 0xb6b   :  { %10630 = vst [vmem:[#allocation39_spill] sm:$0xff] %v9379_v1  ;;  %v7708_v11 = vpop.f32.mrb[52].mxu1  ;;  %7710 = vmatprep.subr.bf16.mxu0 %v9379_v1 }
 0xb6c   :  { %v1616_v35 = vpop.f32.mrb[53].mxu1  ;;  %7711 = vmatpush3.bf16.msra.mxu0 %v9379_v1  ;;  %v9399_v22 = vsub.f32 %v7708_v11, %v9287_v21 }
 0xb6d   :  { %v7709_v43 = vpop.f32.mrb[54].mxu1  ;;  %7712 = vmatprep.subr.bf16.mxu0 %v9383_v48  ;;  %v9389_v45 = vsub.f32 %v1616_v35, %v9277_v26 }
 0xb6e   :  { %v1619_v44 = vpop.f32.mrb[55].mxu1  ;;  %v9392_v46 = vsub.f32 %v7709_v43, %v9280_v38 }
 0xb6f   :  { %v9395_v14 = vsub.f32 %v1619_v44, %v9283_v2 }
 0xb70   :  { %7713 = vmatpush3.bf16.msra.mxu0 %v9383_v48  ;;  %v9407_v1 = vpack.c.bf16 %v9392_v46, %v9399_v22 }
 0xb71   :  { %v9403_v31 = vpack.c.bf16 %v9395_v14, %v9389_v45 }
 0xb72   :  { %10633 = vst [vmem:[#allocation42_spill] sm:$0xff] %v9407_v1 }
 0xb73   :  { %10632 = vst [vmem:[#allocation41_spill] sm:$0xff] %v9403_v31  ;;  %7714 = vmatprep.subr.bf16.mxu0 %v9403_v31 }
 0xb74   :  { %7715 = vmatpush3.bf16.msra.mxu0 %v9403_v31 }
 0xb75   :  { %7716 = vmatprep.subr.bf16.mxu0 %v9407_v1 }
 0xb78   :  { %7717 = vmatpush3.bf16.msra.mxu0 %v9407_v1 }
 0xb7b   :  { %7719 = vmatmul.mubr.msk.bf16.vlgmr.msra.gmra.mrb[40].mxu0 %vm662_vm0, %v8736_v62 }
 0xb7c   :  { %7722 = vmatprep.mubr.msk.bf16.mxu0 %vm662_vm0, %v8742_v63 }
 0xb83   :  { %7723 = vmatmul.mubr.msk.bf16.gmra.mrb[44].mxu0 %vm662_vm0, %v8751_v0 }
 0xb84   :  { %7750 = vmatprep.mubr.msk.bf16.mxu0 %vm662_vm0, %v8703_v57 }
 0xc4e   :  { %v7720_v26 = vpop.f32.mrb[40].mxu0 }
 0xc4f   :  { %v1681_v38 = vpop.f32.mrb[41].mxu0  ;;  %v9431_v44 = vsub.f32 %v7720_v26, %v9319_v25 }
 0xc50   :  { %v7721_v2 = vpop.f32.mrb[42].mxu0  ;;  %v9422_v11 = vsub.f32 %v1681_v38, %v9310_v52 }
 0xc51   :  { %v1684_v21 = vpop.f32.mrb[43].mxu0  ;;  %v9425_v35 = vsub.f32 %v7721_v2, %v9313_v23 }
 0xc52   :  { %v9428_v43 = vsub.f32 %v1684_v21, %v9316_v24 }
 0xc53   :  { %v9439_v31 = vpack.c.bf16 %v9425_v35, %v9431_v44 }
 0xc54   :  { %v9435_v1 = vpack.c.bf16 %v9428_v43, %v9422_v11 }
 0xc55   :  { %10635 = vst [vmem:[#allocation44_spill] sm:$0xff] %v9439_v31 }
 0xc56   :  { %10634 = vst [vmem:[#allocation43_spill] sm:$0xff] %v9435_v1  ;;  %v7724_v48 = vpop.f32.mrb[44].mxu0  ;;  %7726 = vmatprep.subr.bf16.mxu1 %v9435_v1 }
 0xc57   :  { %v1697_v52 = vpop.f32.mrb[45].mxu0  ;;  %7727 = vmatpush3.bf16.msra.mxu1 %v9435_v1  ;;  %v9455_v2 = vsub.f32 %v7724_v48, %v9343_v47 }
 0xc58   :  { %v7725_v23 = vpop.f32.mrb[46].mxu0  ;;  %7728 = vmatprep.subr.bf16.mxu1 %v9439_v31  ;;  %v9445_v25 = vsub.f32 %v1697_v52, %v9333_v7 }
 0xc59   :  { %v1700_v24 = vpop.f32.mrb[47].mxu0  ;;  %v9448_v26 = vsub.f32 %v7725_v23, %v9336_v8 }
 0xc5a   :  { %v9451_v38 = vsub.f32 %v1700_v24, %v9339_v37 }
 0xc5b   :  { %7729 = vmatpush3.bf16.msra.mxu1 %v9439_v31  ;;  %v9463_v1 = vpack.c.bf16 %v9448_v26, %v9455_v2 }
 0xc5c   :  { %v9459_v21 = vpack.c.bf16 %v9451_v38, %v9445_v25 }
 0xc5d   :  { %10637 = vst [vmem:[#allocation46_spill] sm:$0xff] %v9463_v1 }
 0xc5e   :  { %10636 = vst [vmem:[#allocation45_spill] sm:$0xff] %v9459_v21  ;;  %7730 = vmatprep.subr.bf16.mxu1 %v9459_v21 }
 0xc5f   :  { %7731 = vmatpush3.bf16.msra.mxu1 %v9459_v21 }
 0xc60   :  { %7732 = vmatprep.subr.bf16.mxu1 %v9463_v1 }
 0xc63   :  { %7733 = vmatpush3.bf16.msra.mxu1 %v9463_v1 }
 0xc66   :  { %7735 = vmatmul.mubr.msk.bf16.vlgmr.msra.gmra.mrb[56].mxu1 %vm662_vm0, %v8736_v62 }
 0xc67   :  { %7738 = vmatprep.mubr.msk.bf16.mxu1 %vm662_vm0, %v8742_v63 }
 0xc6e   :  { %7739 = vmatmul.mubr.msk.bf16.gmra.mrb[60].mxu1 %vm662_vm0, %v8751_v0 }
 0xc6f   :  { %7766 = vmatprep.mubr.msk.bf16.mxu1 %vm662_vm0, %v8703_v57 }
 0xd39   :  { %v7736_v7 = vpop.f32.mrb[56].mxu1 }
 0xd3a   :  { %v1762_v8 = vpop.f32.mrb[57].mxu1  ;;  %v9487_v24 = vsub.f32 %v7736_v7, %v9375_v6 }
 0xd3b   :  { %v7737_v37 = vpop.f32.mrb[58].mxu1  ;;  %v9478_v48 = vsub.f32 %v1762_v8, %v9366_v32 }
 0xd3c   :  { %v1765_v47 = vpop.f32.mrb[59].mxu1  ;;  %v9481_v52 = vsub.f32 %v7737_v37, %v9369_v36 }
 0xd3d   :  { %v9484_v23 = vsub.f32 %v1765_v47, %v9372_v5 }
 0xd3e   :  { %v9495_v21 = vpack.c.bf16 %v9481_v52, %v9487_v24 }
 0xd3f   :  { %v9491_v1 = vpack.c.bf16 %v9484_v23, %v9478_v48 }
 0xd40   :  { %10639 = vst [vmem:[#allocation48_spill] sm:$0xff] %v9495_v21 }
 0xd41   :  { %10638 = vst [vmem:[#allocation47_spill] sm:$0xff] %v9491_v1  ;;  %v7740_v31 = vpop.f32.mrb[60].mxu1  ;;  %7742 = vmatprep.subr.bf16.mxu0 %v9491_v1 }
 0xd42   :  { %v1778_v32 = vpop.f32.mrb[61].mxu1  ;;  %7743 = vmatpush3.bf16.msra.mxu0 %v9491_v1  ;;  %v9511_v37 = vsub.f32 %v7740_v31, %v9399_v22 }
 0xd43   :  { %v7741_v36 = vpop.f32.mrb[62].mxu1  ;;  %7744 = vmatprep.subr.bf16.mxu0 %v9495_v21  ;;  %v9501_v6 = vsub.f32 %v1778_v32, %v9389_v45 }
 0xd44   :  { %v1781_v5 = vpop.f32.mrb[63].mxu1  ;;  %v9504_v7 = vsub.f32 %v7741_v36, %v9392_v46 }
 0xd45   :  { %v9507_v8 = vsub.f32 %v1781_v5, %v9395_v14 }
 0xd46   :  { %7745 = vmatpush3.bf16.msra.mxu0 %v9495_v21  ;;  %v9519_v1 = vpack.c.bf16 %v9504_v7, %v9511_v37 }
 0xd47   :  { %v9515_v47 = vpack.c.bf16 %v9507_v8, %v9501_v6 }
 0xd48   :  { %10641 = vst [vmem:[#allocation50_spill] sm:$0xff] %v9519_v1 }
 0xd49   :  { %10640 = vst [vmem:[#allocation49_spill] sm:$0xff] %v9515_v47  ;;  %7746 = vmatprep.subr.bf16.mxu0 %v9515_v47 }
 0xd4a   :  { %7747 = vmatpush3.bf16.msra.mxu0 %v9515_v47 }
 0xd4b   :  { %7748 = vmatprep.subr.bf16.mxu0 %v9519_v1 }
 0xd4e   :  { %7749 = vmatpush3.bf16.msra.mxu0 %v9519_v1 }
 0xd51   :  { %7751 = vmatmul.mubr.msk.bf16.vlgmr.msra.gmra.mrb[48].mxu0 %vm662_vm0, %v8736_v62 }
 0xd52   :  { %7754 = vmatprep.mubr.msk.bf16.mxu0 %vm662_vm0, %v8742_v63 }
 0xd59   :  { %7755 = vmatmul.mubr.msk.bf16.gmra.mrb[52].mxu0 %vm662_vm0, %v8751_v0 }
 0xd5a   :  { %7782 = vmatprep.mubr.msk.bf16.mxu0 %vm662_vm0, %v8703_v57 }
 0xe24   :  { %v7752_v45 = vpop.f32.mrb[48].mxu0 }
 0xe25   :  { %v1843_v46 = vpop.f32.mrb[49].mxu0  ;;  %v9543_v5 = vsub.f32 %v7752_v45, %v9431_v44 }
 0xe26   :  { %v7753_v14 = vpop.f32.mrb[50].mxu0  ;;  %v9534_v31 = vsub.f32 %v1843_v46, %v9422_v11 }
 0xe27   :  { %v1846_v22 = vpop.f32.mrb[51].mxu0  ;;  %v9537_v32 = vsub.f32 %v7753_v14, %v9425_v35 }
 0xe28   :  { %v9540_v36 = vsub.f32 %v1846_v22, %v9428_v43 }
 0xe29   :  { %v9551_v47 = vpack.c.bf16 %v9537_v32, %v9543_v5 }
 0xe2a   :  { %v9547_v1 = vpack.c.bf16 %v9540_v36, %v9534_v31 }
 0xe2b   :  { %10643 = vst [vmem:[#allocation52_spill] sm:$0xff] %v9551_v47 }
 0xe2c   :  { %10642 = vst [vmem:[#allocation51_spill] sm:$0xff] %v9547_v1  ;;  %v7756_v21 = vpop.f32.mrb[52].mxu0  ;;  %7758 = vmatprep.subr.bf16.mxu1 %v9547_v1 }
 0xe2d   :  { %v1859_v11 = vpop.f32.mrb[53].mxu0  ;;  %7759 = vmatpush3.bf16.msra.mxu1 %v9547_v1  ;;  %v9567_v14 = vsub.f32 %v7756_v21, %v9455_v2 }
 0xe2e   :  { %v7757_v35 = vpop.f32.mrb[54].mxu0  ;;  %7760 = vmatprep.subr.bf16.mxu1 %v9551_v47  ;;  %v9557_v44 = vsub.f32 %v1859_v11, %v9445_v25 }
 0xe2f   :  { %v1862_v43 = vpop.f32.mrb[55].mxu0  ;;  %v9560_v45 = vsub.f32 %v7757_v35, %v9448_v26 }
 0xe30   :  { %v9563_v46 = vsub.f32 %v1862_v43, %v9451_v38 }
 0xe31   :  { %7761 = vmatpush3.bf16.msra.mxu1 %v9551_v47  ;;  %v9575_v1 = vpack.c.bf16 %v9560_v45, %v9567_v14 }
 0xe32   :  { %v9571_v22 = vpack.c.bf16 %v9563_v46, %v9557_v44 }
 0xe33   :  { %10645 = vst [vmem:[#allocation54_spill] sm:$0xff] %v9575_v1 }
 0xe34   :  { %10644 = vst [vmem:[#allocation53_spill] sm:$0xff] %v9571_v22  ;;  %7762 = vmatprep.subr.bf16.mxu1 %v9571_v22 }
 0xe35   :  { %7763 = vmatpush3.bf16.msra.mxu1 %v9571_v22 }
 0xe36   :  { %7764 = vmatprep.subr.bf16.mxu1 %v9575_v1 }
 0xe39   :  { %7765 = vmatpush3.bf16.msra.mxu1 %v9575_v1 }
 0xe3c   :  { %7767 = vmatmul.mubr.msk.bf16.vlgmr.msra.gmra.mrb[64].mxu1 %vm662_vm0, %v8736_v62 }
 0xe3d   :  { %7770 = vmatprep.mubr.msk.bf16.mxu1 %vm662_vm0, %v8742_v63 }
 0xe44   :  { %7771 = vmatmul.mubr.msk.bf16.gmra.mrb[68].mxu1 %vm662_vm0, %v8751_v0 }
 0xe45   :  { %7798 = vmatprep.mubr.msk.bf16.mxu1 %vm662_vm0, %v8703_v57 }
 0xf0f   :  { %v7768_v25 = vpop.f32.mrb[64].mxu1 }
 0xf10   :  { %v1924_v26 = vpop.f32.mrb[65].mxu1  ;;  %v9599_v63 = vsub.f32 %v7768_v25, %v9487_v24 }
 0xf11   :  { %v7769_v38 = vpop.f32.mrb[66].mxu1  ;;  %v9590_v21 = vsub.f32 %v1924_v26, %v9478_v48 }
 0xf12   :  { %v1927_v2 = vpop.f32.mrb[67].mxu1  ;;  %v9593_v11 = vsub.f32 %v7769_v38, %v9481_v52 }
 0xf13   :  { %v9596_v62 = vsub.f32 %v1927_v2, %v9484_v23 }
 0xf14   :  { %v9607_v57 = vpack.c.bf16 %v9593_v11, %v9599_v63 }
 0xf15   :  { %v9603_v0 = vpack.c.bf16 %v9596_v62, %v9590_v21 }
 0xf16   :  { %10647 = vst [vmem:[#allocation56_spill] sm:$0xff] %v9607_v57 }
 0xf17   :  { %10646 = vst [vmem:[#allocation55_spill] sm:$0xff] %v9603_v0  ;;  %v7772_v35 = vpop.f32.mrb[68].mxu1  ;;  %7774 = vmatprep.subr.bf16.mxu0 %v9603_v0 }
 0xf18   :  { %v1940_v48 = vpop.f32.mrb[69].mxu1  ;;  %7775 = vmatpush3.bf16.msra.mxu0 %v9603_v0  ;;  %v9623_v26 = vsub.f32 %v7772_v35, %v9511_v37  ;;  %v9661_v37 = vld [vmem:[%s10543_s1] sm:$0xff]  }
 0xf19   :  { %v7773_v52 = vpop.f32.mrb[70].mxu1  ;;  %7776 = vmatprep.subr.bf16.mxu0 %v9607_v57  ;;  %v9613_v24 = vsub.f32 %v1940_v48, %v9501_v6  ;;  %v9640_v6 = vld [vmem:[%s10543_s1 + $0x8] sm:$0xff]  }
 0xf1a   :  { %v1943_v23 = vpop.f32.mrb[71].mxu1  ;;  %v9616_v43 = vsub.f32 %v7773_v52, %v9504_v7  ;;  %v9647_v7 = vld [vmem:[%s10543_s1 + $0x10] sm:$0xff]  }
 0xf1b   :  { %v9619_v25 = vsub.f32 %v1943_v23, %v9507_v8  ;;  %v9654_v8 = vld [vmem:[%s10543_s1 + $0x18] sm:$0xff]  }
 0xf1c   :  { %7777 = vmatpush3.bf16.msra.mxu0 %v9607_v57  ;;  %v9631_v2 = vpack.c.bf16 %v9616_v43, %v9623_v26 }
 0xf1d   :  { %v9627_v38 = vpack.c.bf16 %v9619_v25, %v9613_v24 }
 0xf1e   :  { %10649 = vst [vmem:[#allocation58_spill] sm:$0xff] %v9631_v2 }
 0xf1f   :  { %10648 = vst [vmem:[#allocation57_spill] sm:$0xff] %v9627_v38  ;;  %7778 = vmatprep.subr.bf16.mxu0 %v9627_v38 }
 0xf20   :  { %7779 = vmatpush3.bf16.msra.mxu0 %v9627_v38 }
 0xf21   :  { %7780 = vmatprep.subr.bf16.mxu0 %v9631_v2 }
 0xf24   :  { %7781 = vmatpush3.bf16.msra.mxu0 %v9631_v2 }
 0xf27   :  { %7783 = vmatmul.mubr.msk.bf16.vlgmr.msra.gmra.mrb[56].mxu0 %vm662_vm0, %v9640_v6 }
 0xf28   :  { %7786 = vmatprep.mubr.msk.bf16.mxu0 %vm662_vm0, %v9647_v7 }
 0xf2f   :  { %7787 = vmatmul.mubr.msk.bf16.gmra.mrb[60].mxu0 %vm662_vm0, %v9654_v8 }
 0xf30   :  { %7814 = vmatprep.mubr.msk.bf16.mxu0 %vm662_vm0, %v9661_v37 }
 0xffa   :  { %v7784_v35 = vpop.f32.mrb[56].mxu0 }
 0xffb   :  { %v2005_v48 = vpop.f32.mrb[57].mxu0  ;;  %v9675_v0 = vsub.f32 %v7784_v35, %v9543_v5 }
 0xffc   :  { %v7785_v52 = vpop.f32.mrb[58].mxu0  ;;  %v9666_v2 = vsub.f32 %v2005_v48, %v9534_v31 }
 0xffd   :  { %v2008_v23 = vpop.f32.mrb[59].mxu0  ;;  %v9669_v38 = vsub.f32 %v7785_v52, %v9537_v32 }
 0xffe   :  { %v9672_v57 = vsub.f32 %v2008_v23, %v9540_v36 }
 0xfff   :  { %v9683_v22 = vpack.c.bf16 %v9669_v38, %v9675_v0 }
0x1000   :  { %v9679_v1 = vpack.c.bf16 %v9672_v57, %v9666_v2 }
0x1001   :  { %10651 = vst [vmem:[#allocation60_spill] sm:$0xff] %v9683_v22 }
0x1002   :  { %10650 = vst [vmem:[#allocation59_spill] sm:$0xff] %v9679_v1  ;;  %v7788_v47 = vpop.f32.mrb[60].mxu0  ;;  %7790 = vmatprep.subr.bf16.mxu1 %v9679_v1 }
0x1003   :  { %v2021_v31 = vpop.f32.mrb[61].mxu0  ;;  %7791 = vmatpush3.bf16.msra.mxu1 %v9679_v1  ;;  %v9699_v52 = vsub.f32 %v7788_v47, %v9567_v14 }
0x1004   :  { %v7789_v32 = vpop.f32.mrb[62].mxu0  ;;  %7792 = vmatprep.subr.bf16.mxu1 %v9683_v22  ;;  %v9689_v5 = vsub.f32 %v2021_v31, %v9557_v44 }
0x1005   :  { %v2024_v36 = vpop.f32.mrb[63].mxu0  ;;  %v9692_v35 = vsub.f32 %v7789_v32, %v9560_v45 }
0x1006   :  { %v9695_v48 = vsub.f32 %v2024_v36, %v9563_v46 }
0x1007   :  { %7793 = vmatpush3.bf16.msra.mxu1 %v9683_v22  ;;  %v9707_v1 = vpack.c.bf16 %v9692_v35, %v9699_v52 }
0x1008   :  { %v9703_v23 = vpack.c.bf16 %v9695_v48, %v9689_v5 }
0x1009   :  { %10653 = vst [vmem:[#allocation62_spill] sm:$0xff] %v9707_v1 }
0x100a   :  { %10652 = vst [vmem:[#allocation61_spill] sm:$0xff] %v9703_v23  ;;  %7794 = vmatprep.subr.bf16.mxu1 %v9703_v23 }
0x100b   :  { %7795 = vmatpush3.bf16.msra.mxu1 %v9703_v23 }
0x100c   :  { %7796 = vmatprep.subr.bf16.mxu1 %v9707_v1 }
0x100f   :  { %7797 = vmatpush3.bf16.msra.mxu1 %v9707_v1 }
0x1012   :  { %7799 = vmatmul.mubr.msk.bf16.vlgmr.msra.gmra.mrb[72].mxu1 %vm662_vm0, %v9640_v6 }
0x1013   :  { %7802 = vmatprep.mubr.msk.bf16.mxu1 %vm662_vm0, %v9647_v7 }
0x101a   :  { %7803 = vmatmul.mubr.msk.bf16.gmra.mrb[76].mxu1 %vm662_vm0, %v9654_v8 }
0x101b   :  { %7830 = vmatprep.mubr.msk.bf16.mxu1 %vm662_vm0, %v9661_v37 }
0x10e5   :  { %v7800_v47 = vpop.f32.mrb[72].mxu1 }
0x10e6   :  { %v2086_v44 = vpop.f32.mrb[73].mxu1  ;;  %v9731_v36 = vsub.f32 %v7800_v47, %v9599_v63 }
0x10e7   :  { %v7801_v45 = vpop.f32.mrb[74].mxu1  ;;  %v9722_v14 = vsub.f32 %v2086_v44, %v9590_v21 }
0x10e8   :  { %v2089_v46 = vpop.f32.mrb[75].mxu1  ;;  %v9725_v31 = vsub.f32 %v7801_v45, %v9593_v11 }
0x10e9   :  { %v9728_v32 = vsub.f32 %v2089_v46, %v9596_v62 }
0x10ea   :  { %v9739_v23 = vpack.c.bf16 %v9725_v31, %v9731_v36 }
0x10eb   :  { %v9735_v1 = vpack.c.bf16 %v9728_v32, %v9722_v14 }
0x10ec   :  { %10655 = vst [vmem:[#allocation64_spill] sm:$0xff] %v9739_v23 }
0x10ed   :  { %10654 = vst [vmem:[#allocation63_spill] sm:$0xff] %v9735_v1  ;;  %v7804_v22 = vpop.f32.mrb[76].mxu1  ;;  %7806 = vmatprep.subr.bf16.mxu0 %v9735_v1 }
0x10ee   :  { %v2102_v21 = vpop.f32.mrb[77].mxu1  ;;  %7807 = vmatpush3.bf16.msra.mxu0 %v9735_v1  ;;  %v9755_v45 = vsub.f32 %v7804_v22, %v9623_v26 }
0x10ef   :  { %v7805_v11 = vpop.f32.mrb[78].mxu1  ;;  %7808 = vmatprep.subr.bf16.mxu0 %v9739_v23  ;;  %v9745_v63 = vsub.f32 %v2102_v21, %v9613_v24 }
0x10f0   :  { %v2105_v62 = vpop.f32.mrb[79].mxu1  ;;  %v9748_v47 = vsub.f32 %v7805_v11, %v9616_v43 }
0x10f1   :  { %v9751_v44 = vsub.f32 %v2105_v62, %v9619_v25 }
0x10f2   :  { %7809 = vmatpush3.bf16.msra.mxu0 %v9739_v23  ;;  %v9763_v1 = vpack.c.bf16 %v9748_v47, %v9755_v45 }
0x10f3   :  { %v9759_v46 = vpack.c.bf16 %v9751_v44, %v9745_v63 }
0x10f4   :  { %10657 = vst [vmem:[#allocation66_spill] sm:$0xff] %v9763_v1 }
0x10f5   :  { %10656 = vst [vmem:[#allocation65_spill] sm:$0xff] %v9759_v46  ;;  %7810 = vmatprep.subr.bf16.mxu0 %v9759_v46 }
0x10f6   :  { %7811 = vmatpush3.bf16.msra.mxu0 %v9759_v46 }
0x10f7   :  { %7812 = vmatprep.subr.bf16.mxu0 %v9763_v1 }
0x10fa   :  { %7813 = vmatpush3.bf16.msra.mxu0 %v9763_v1 }
0x10fd   :  { %7815 = vmatmul.mubr.msk.bf16.vlgmr.msra.gmra.mrb[64].mxu0 %vm662_vm0, %v9640_v6 }
0x10fe   :  { %7818 = vmatprep.mubr.msk.bf16.mxu0 %vm662_vm0, %v9647_v7 }
0x1105   :  { %7819 = vmatmul.mubr.msk.bf16.gmra.mrb[68].mxu0 %vm662_vm0, %v9654_v8 }
0x1106   :  { %7846 = vmatprep.mubr.msk.bf16.mxu0 %vm662_vm0, %v9661_v37 }
0x11d0   :  { %v7816_v22 = vpop.f32.mrb[64].mxu0 }
0x11d1   :  { %v2167_v24 = vpop.f32.mrb[65].mxu0  ;;  %v9787_v62 = vsub.f32 %v7816_v22, %v9675_v0 }
0x11d2   :  { %v7817_v43 = vpop.f32.mrb[66].mxu0  ;;  %v9778_v26 = vsub.f32 %v2167_v24, %v9666_v2 }
0x11d3   :  { %v2170_v25 = vpop.f32.mrb[67].mxu0  ;;  %v9781_v21 = vsub.f32 %v7817_v43, %v9669_v38 }
0x11d4   :  { %v9784_v11 = vsub.f32 %v2170_v25, %v9672_v57 }
0x11d5   :  { %v9795_v46 = vpack.c.bf16 %v9781_v21, %v9787_v62 }
0x11d6   :  { %v9791_v1 = vpack.c.bf16 %v9784_v11, %v9778_v26 }
0x11d7   :  { %10659 = vst [vmem:[#allocation68_spill] sm:$0xff] %v9795_v46 }
0x11d8   :  { %10658 = vst [vmem:[#allocation67_spill] sm:$0xff] %v9791_v1  ;;  %v7820_v23 = vpop.f32.mrb[68].mxu0  ;;  %7822 = vmatprep.subr.bf16.mxu1 %v9791_v1 }
0x11d9   :  { %v2183_v2 = vpop.f32.mrb[69].mxu0  ;;  %7823 = vmatpush3.bf16.msra.mxu1 %v9791_v1  ;;  %v9811_v43 = vsub.f32 %v7820_v23, %v9699_v52 }
0x11da   :  { %v7821_v38 = vpop.f32.mrb[70].mxu0  ;;  %7824 = vmatprep.subr.bf16.mxu1 %v9795_v46  ;;  %v9801_v0 = vsub.f32 %v2183_v2, %v9689_v5 }
0x11db   :  { %v2186_v57 = vpop.f32.mrb[71].mxu0  ;;  %v9804_v22 = vsub.f32 %v7821_v38, %v9692_v35 }
0x11dc   :  { %v9807_v24 = vsub.f32 %v2186_v57, %v9695_v48 }
0x11dd   :  { %7825 = vmatpush3.bf16.msra.mxu1 %v9795_v46  ;;  %v9819_v1 = vpack.c.bf16 %v9804_v22, %v9811_v43 }
0x11de   :  { %v9815_v25 = vpack.c.bf16 %v9807_v24, %v9801_v0 }
0x11df   :  { %10661 = vst [vmem:[#allocation70_spill] sm:$0xff] %v9819_v1 }
0x11e0   :  { %10660 = vst [vmem:[#allocation69_spill] sm:$0xff] %v9815_v25  ;;  %7826 = vmatprep.subr.bf16.mxu1 %v9815_v25 }
0x11e1   :  { %7827 = vmatpush3.bf16.msra.mxu1 %v9815_v25 }
0x11e2   :  { %7828 = vmatprep.subr.bf16.mxu1 %v9819_v1 }
0x11e5   :  { %7829 = vmatpush3.bf16.msra.mxu1 %v9819_v1 }
0x11e8   :  { %7831 = vmatmul.mubr.msk.bf16.vlgmr.msra.gmra.mrb[80].mxu1 %vm662_vm0, %v9640_v6 }
0x11e9   :  { %7834 = vmatprep.mubr.msk.bf16.mxu1 %vm662_vm0, %v9647_v7 }
0x11f0   :  { %7835 = vmatmul.mubr.msk.bf16.gmra.mrb[84].mxu1 %vm662_vm0, %v9654_v8 }
0x11f1   :  { %7862 = vmatprep.mubr.msk.bf16.mxu1 %vm662_vm0, %v9661_v37 }
0x12bb   :  { %v7832_v5 = vpop.f32.mrb[80].mxu1 }
0x12bc   :  { %v2248_v35 = vpop.f32.mrb[81].mxu1  ;;  %v9843_v57 = vsub.f32 %v7832_v5, %v9731_v36 }
0x12bd   :  { %v7833_v48 = vpop.f32.mrb[82].mxu1  ;;  %v9834_v23 = vsub.f32 %v2248_v35, %v9722_v14 }
0x12be   :  { %v2251_v52 = vpop.f32.mrb[83].mxu1  ;;  %v9837_v2 = vsub.f32 %v7833_v48, %v9725_v31 }
0x12bf   :  { %v9840_v38 = vsub.f32 %v2251_v52, %v9728_v32 }
0x12c0   :  { %v9851_v25 = vpack.c.bf16 %v9837_v2, %v9843_v57 }
0x12c1   :  { %v9847_v1 = vpack.c.bf16 %v9840_v38, %v9834_v23 }
0x12c2   :  { %10663 = vst [vmem:[#allocation72_spill] sm:$0xff] %v9851_v25 }
0x12c3   :  { %10662 = vst [vmem:[#allocation71_spill] sm:$0xff] %v9847_v1  ;;  %v7836_v46 = vpop.f32.mrb[84].mxu1  ;;  %7838 = vmatprep.subr.bf16.mxu0 %v9847_v1 }
0x12c4   :  { %v2264_v14 = vpop.f32.mrb[85].mxu1  ;;  %7839 = vmatpush3.bf16.msra.mxu0 %v9847_v1  ;;  %v9867_v48 = vsub.f32 %v7836_v46, %v9755_v45 }
0x12c5   :  { %v7837_v31 = vpop.f32.mrb[86].mxu1  ;;  %7840 = vmatprep.subr.bf16.mxu0 %v9851_v25  ;;  %v9857_v36 = vsub.f32 %v2264_v14, %v9745_v63 }
0x12c6   :  { %v2267_v32 = vpop.f32.mrb[87].mxu1  ;;  %v9860_v5 = vsub.f32 %v7837_v31, %v9748_v47 }
0x12c7   :  { %v9863_v35 = vsub.f32 %v2267_v32, %v9751_v44 }
0x12c8   :  { %7841 = vmatpush3.bf16.msra.mxu0 %v9851_v25  ;;  %v9875_v1 = vpack.c.bf16 %v9860_v5, %v9867_v48 }
0x12c9   :  { %v9871_v52 = vpack.c.bf16 %v9863_v35, %v9857_v36 }
0x12ca   :  { %10665 = vst [vmem:[#allocation74_spill] sm:$0xff] %v9875_v1 }
0x12cb   :  { %10664 = vst [vmem:[#allocation73_spill] sm:$0xff] %v9871_v52  ;;  %7842 = vmatprep.subr.bf16.mxu0 %v9871_v52 }
0x12cc   :  { %7843 = vmatpush3.bf16.msra.mxu0 %v9871_v52 }
0x12cd   :  { %7844 = vmatprep.subr.bf16.mxu0 %v9875_v1 }
0x12d0   :  { %7845 = vmatpush3.bf16.msra.mxu0 %v9875_v1 }
0x12d3   :  { %7847 = vmatmul.mubr.msk.bf16.vlgmr.msra.gmra.mrb[72].mxu0 %vm662_vm0, %v9640_v6 }
0x12d4   :  { %7850 = vmatprep.mubr.msk.bf16.mxu0 %vm662_vm0, %v9647_v7 }
0x12db   :  { %7851 = vmatmul.mubr.msk.bf16.gmra.mrb[76].mxu0 %vm662_vm0, %v9654_v8 }
0x12dc   :  { %7878 = vmatprep.mubr.msk.bf16.mxu0 %vm662_vm0, %v9661_v37 }
0x13a6   :  { %v7848_v63 = vpop.f32.mrb[72].mxu0 }
0x13a7   :  { %v2329_v47 = vpop.f32.mrb[73].mxu0  ;;  %v9899_v32 = vsub.f32 %v7848_v63, %v9787_v62 }
0x13a8   :  { %v7849_v44 = vpop.f32.mrb[74].mxu0  ;;  %v9890_v46 = vsub.f32 %v2329_v47, %v9778_v26 }
0x13a9   :  { %v2332_v45 = vpop.f32.mrb[75].mxu0  ;;  %v9893_v14 = vsub.f32 %v7849_v44, %v9781_v21 }
0x13aa   :  { %v9896_v31 = vsub.f32 %v2332_v45, %v9784_v11 }
0x13ab   :  { %v9907_v52 = vpack.c.bf16 %v9893_v14, %v9899_v32 }
0x13ac   :  { %v9903_v1 = vpack.c.bf16 %v9896_v31, %v9890_v46 }
0x13ad   :  { %10667 = vst [vmem:[#allocation76_spill] sm:$0xff] %v9907_v52 }
0x13ae   :  { %10666 = vst [vmem:[#allocation75_spill] sm:$0xff] %v9903_v1  ;;  %v7852_v25 = vpop.f32.mrb[76].mxu0  ;;  %7854 = vmatprep.subr.bf16.mxu1 %v9903_v1 }
0x13af   :  { %v2345_v26 = vpop.f32.mrb[77].mxu0  ;;  %7855 = vmatpush3.bf16.msra.mxu1 %v9903_v1  ;;  %v9923_v44 = vsub.f32 %v7852_v25, %v9811_v43 }
0x13b0   :  { %v7853_v21 = vpop.f32.mrb[78].mxu0  ;;  %7856 = vmatprep.subr.bf16.mxu1 %v9907_v52  ;;  %v9913_v62 = vsub.f32 %v2345_v26, %v9801_v0 }
0x13b1   :  { %v2348_v11 = vpop.f32.mrb[79].mxu0  ;;  %v9916_v63 = vsub.f32 %v7853_v21, %v9804_v22 }
0x13b2   :  { %v9919_v47 = vsub.f32 %v2348_v11, %v9807_v24 }
0x13b3   :  { %7857 = vmatpush3.bf16.msra.mxu1 %v9907_v52  ;;  %v9931_v1 = vpack.c.bf16 %v9916_v63, %v9923_v44 }
0x13b4   :  { %v9927_v45 = vpack.c.bf16 %v9919_v47, %v9913_v62 }
0x13b5   :  { %10669 = vst [vmem:[#allocation78_spill] sm:$0xff] %v9931_v1 }
0x13b6   :  { %10668 = vst [vmem:[#allocation77_spill] sm:$0xff] %v9927_v45  ;;  %7858 = vmatprep.subr.bf16.mxu1 %v9927_v45 }
0x13b7   :  { %7859 = vmatpush3.bf16.msra.mxu1 %v9927_v45 }
0x13b8   :  { %7860 = vmatprep.subr.bf16.mxu1 %v9931_v1 }
0x13bb   :  { %7861 = vmatpush3.bf16.msra.mxu1 %v9931_v1 }
0x13be   :  { %7863 = vmatmul.mubr.msk.bf16.vlgmr.msra.gmra.mrb[88].mxu1 %vm662_vm0, %v9640_v6 }
0x13bf   :  { %7866 = vmatprep.mubr.msk.bf16.mxu1 %vm662_vm0, %v9647_v7 }
0x13c6   :  { %7867 = vmatmul.mubr.msk.bf16.gmra.mrb[92].mxu1 %vm662_vm0, %v9654_v8 }
0x13c7   :  { %7894 = vmatprep.mubr.msk.bf16.mxu1 %vm662_vm0, %v9661_v37 }
0x1491   :  { %v7864_v0 = vpop.f32.mrb[88].mxu1 }
0x1492   :  { %v2410_v22 = vpop.f32.mrb[89].mxu1  ;;  %v9955_v11 = vsub.f32 %v7864_v0, %v9843_v57 }
0x1493   :  { %v7865_v24 = vpop.f32.mrb[90].mxu1  ;;  %v9946_v25 = vsub.f32 %v2410_v22, %v9834_v23 }
0x1494   :  { %v2413_v43 = vpop.f32.mrb[91].mxu1  ;;  %v9949_v26 = vsub.f32 %v7865_v24, %v9837_v2 }
0x1495   :  { %v9952_v21 = vsub.f32 %v2413_v43, %v9840_v38 }
0x1496   :  { %v9963_v37 = vpack.c.bf16 %v9949_v26, %v9955_v11 }
0x1497   :  { %v9959_v1 = vpack.c.bf16 %v9952_v21, %v9946_v25 }
0x1498   :  { %10671 = vst [vmem:[#allocation80_spill] sm:$0xff] %v9963_v37 }
0x1499   :  { %10670 = vst [vmem:[#allocation79_spill] sm:$0xff] %v9959_v1  ;;  %v7868_v45 = vpop.f32.mrb[92].mxu1  ;;  %7870 = vmatprep.subr.bf16.mxu0 %v9959_v1 }
0x149a   :  { %v2426_v23 = vpop.f32.mrb[93].mxu1  ;;  %7871 = vmatpush3.bf16.msra.mxu0 %v9959_v1  ;;  %v2447_v24 = vsub.f32 %v7868_v45, %v9867_v48 }
0x149b   :  { %v7869_v2 = vpop.f32.mrb[94].mxu1  ;;  %7872 = vmatprep.subr.bf16.mxu0 %v9963_v37  ;;  %v9969_v57 = vsub.f32 %v2426_v23, %v9857_v36 }
0x149c   :  { %v2429_v38 = vpop.f32.mrb[95].mxu1  ;;  %v9972_v0 = vsub.f32 %v7869_v2, %v9860_v5 }
0x149d   :  { %v9975_v22 = vsub.f32 %v2429_v38, %v9863_v35 }
0x149e   :  { %7873 = vmatpush3.bf16.msra.mxu0 %v9963_v37  ;;  %v9984_v52 = vpack.c.bf16 %v9972_v0, %v2447_v24 }
0x149f   :  { %v9981_v43 = vpack.c.bf16 %v9975_v22, %v9969_v57 }
0x14a0   :  { %10673 = vst [vmem:[#allocation82_spill] sm:$0xff] %v9984_v52 }
0x14a1   :  { %10672 = vst [vmem:[#allocation81_spill] sm:$0xff] %v9981_v43  ;;  %7874 = vmatprep.subr.bf16.mxu0 %v9981_v43 }
0x14a2   :  { %7875 = vmatpush3.bf16.msra.mxu0 %v9981_v43 }
0x14a3   :  { %7876 = vmatprep.subr.bf16.mxu0 %v9984_v52 }
0x14a6   :  { %7877 = vmatpush3.bf16.msra.mxu0 %v9984_v52 }
0x14a9   :  { %7879 = vmatmul.mubr.msk.bf16.vlgmr.msra.gmra.mrb[80].mxu0 %vm662_vm0, %v9640_v6 }
0x14aa   :  { %7882 = vmatprep.mubr.msk.bf16.mxu0 %vm662_vm0, %v9647_v7 }
0x14b1   :  { %7883 = vmatmul.mubr.msk.bf16.gmra.mrb[84].mxu0 %vm662_vm0, %v9654_v8 }
0x157c   :  { %v7880_v36 = vpop.f32.mrb[80].mxu0 }
0x157d   :  { %v2491_v5 = vpop.f32.mrb[81].mxu0  ;;  %v2524_v48 = vsub.f32 %v7880_v36, %v9899_v32 }
0x157e   :  { %v7881_v35 = vpop.f32.mrb[82].mxu0  ;;  %v2522_v2 = vsub.f32 %v2491_v5, %v9890_v46 }
0x157f   :  { %v2525_v45 = vsub.f32 %v7881_v35, %v9893_v14  ;;  %v2494_v23 = vpop.f32.mrb[83].mxu0 }
0x1580   :  { %v2523_v38 = vsub.f32 %v2494_v23, %v9896_v31 }
0x1581   :  { %v10000_v52 = vpack.c.bf16 %v2525_v45, %v2524_v48 }
0x1582   :  { %v10002_v43 = vpack.c.bf16 %v2523_v38, %v2522_v2 }
0x1584   :  { %v7884_v37 = vpop.f32.mrb[84].mxu0  ;;  %7886 = vmatprep.subr.bf16.mxu1 %v10002_v43 }
0x1585   :  { %v2507_v1 = vpop.f32.mrb[85].mxu0  ;;  %7887 = vmatpush3.bf16.msra.mxu1 %v10002_v43  ;;  %v2528_v14 = vsub.f32 %v7884_v37, %v9923_v44 }
0x1586   :  { %v7885_v53 = vpop.f32.mrb[86].mxu0  ;;  %7888 = vmatprep.subr.bf16.mxu1 %v10000_v52  ;;  %v2526_v31 = vsub.f32 %v2507_v1, %v9913_v62 }
0x1587   :  { %v2529_v32 = vsub.f32 %v7885_v53, %v9916_v63  ;;  %v2510_v46 = vpop.f32.mrb[87].mxu0 }
0x1588   :  { %v2527_v36 = vsub.f32 %v2510_v46, %v9919_v47 }
0x1589   :  { %v10011_v5 = vpack.c.bf16 %v2529_v32, %v2528_v14  ;;  %7889 = vmatpush3.bf16.msra.mxu1 %v10000_v52 }
0x158a   :  { %v10014_v35 = vpack.c.bf16 %v2527_v36, %v2526_v31 }
0x158c   :  { %7890 = vmatprep.subr.bf16.mxu1 %v10014_v35 }
0x158d   :  { %7891 = vmatpush3.bf16.msra.mxu1 %v10014_v35 }
0x158e   :  { %7892 = vmatprep.subr.bf16.mxu1 %v10011_v5 }
0x1591   :  { %7893 = vmatpush3.bf16.msra.mxu1 %v10011_v5 }
0x1594   :  { %7895 = vmatmul.mubr.msk.bf16.vlgmr.msra.gmra.mrb[96].mxu1 %vm662_vm0, %v9640_v6 }
0x1595   :  { %7898 = vmatprep.mubr.msk.bf16.mxu1 %vm662_vm0, %v9647_v7 }
0x159c   :  { %7899 = vmatmul.mubr.msk.bf16.gmra.mrb[100].mxu1 %vm662_vm0, %v9654_v8 }
0x1667   :  { %v7896_v1 = vpop.f32.mrb[96].mxu1 }
0x1668   :  { %v2572_v53 = vpop.f32.mrb[97].mxu1  ;;  %v2605_v63 = vsub.f32 %v7896_v1, %v9955_v11 }
0x1669   :  { %v7897_v62 = vpop.f32.mrb[98].mxu1  ;;  %v2603_v37 = vsub.f32 %v2572_v53, %v9946_v25 }
0x166a   :  { %v2606_v47 = vsub.f32 %v7897_v62, %v9949_v26  ;;  %v2575_v44 = vpop.f32.mrb[99].mxu1 }
0x166b   :  { %v2604_v48 = vsub.f32 %v2575_v44, %v9952_v21 }
0x166c   :  { %v10030_v45 = vpack.c.bf16 %v2606_v47, %v2605_v63 }
0x166d   :  { %v10032_v6 = vpack.c.bf16 %v2604_v48, %v2603_v37 }
0x166f   :  { %v7900_v7 = vpop.f32.mrb[100].mxu1 }
0x1670   :  { %v2588_v23 = vpop.f32.mrb[101].mxu1  ;;  %v2609_v8 = vsub.f32 %v7900_v7, %v2447_v24 }
0x1671   :  { %v7901_v2 = vpop.f32.mrb[102].mxu1  ;;  %v2607_v11 = vsub.f32 %v2588_v23, %v9969_v57 }
0x1672   :  { %v2610_v38 = vsub.f32 %v7901_v2, %v9972_v0  ;;  %v2591_v14 = vpop.f32.mrb[103].mxu1 }
0x1673   :  { %v2608_v26 = vsub.f32 %v2591_v14, %v9975_v22 }
0x1674   :  { %v10037_v32 = vpack.c.bf16 %v2610_v38, %v2609_v8 }
0x1675   :  { %v10039_v25 = vpack.c.bf16 %v2608_v26, %v2607_v11 }
0x1676   :  { %8217 = dma.done.wait [#allocation5], 25600 }
0x1677   :  { %8218 = vsyncadd [#allocation5], 4294941696  ;;  %2962 = vmatprep.mubr.bf16.mxu0 %v8767_v9  ;;  %3027 = vmatprep.mubr.bf16.mxu1 %v8875_v49  ;;  %v2731_v21 = vld [vmem:[#allocation2 + $0x40] sm:$0xff]  ;;  %v2732_v31 = vld [vmem:[#allocation2 + $0x48] sm:$0xff]  ;;  %vm8228_vm1 = vmmov 0   ;;  %vm3821_vm2 = vcmask 130048  }
0x1678   :  { %v2723_v46 = vld [vmem:[#allocation2] sm:$0xff]  ;;  %6661 = vmatprep.subr.bf16.mxu0 %v2731_v21  ;;  %v2748_v57 = vld [vmem:[#allocation2 + $0xc8] sm:$0xff]  ;;  %v2733_v1 = vld [vmem:[#allocation2 + $0x50] sm:$0xff] }
0x1679   :  { %v2747_v24 = vld [vmem:[#allocation2 + $0xc0] sm:$0xff]  ;;  %6662 = vmatpush3.bf16.msra.mxu0 %v2723_v46  ;;  %v2724_v22 = vld [vmem:[#allocation2 + $0x8] sm:$0xff]  ;;  %v2749_v53 = vld [vmem:[#allocation2 + $0xd0] sm:$0xff] }
0x167a   :  { %6701 = vmatprep.subr.bf16.mxu1 %v2747_v24  ;;  %v2739_v0 = vld [vmem:[#allocation2 + $0x80] sm:$0xff]  ;;  %6663 = vmatprep.subr.bf16.mxu0 %v2732_v31  ;;  %v2740_v36 = vld [vmem:[#allocation2 + $0x88] sm:$0xff]  ;;  %v2725_v9 = vld [vmem:[#allocation2 + $0x10] sm:$0xff] }
0x167b   :  { %6702 = vmatpush3.bf16.msra.mxu1 %v2739_v0  ;;  %v2741_v49 = vld [vmem:[#allocation2 + $0x90] sm:$0xff]  ;;  %v2734_v62 = vld [vmem:[#allocation2 + $0x58] sm:$0xff]  ;;  %v2735_v37 = vld [vmem:[#allocation2 + $0x60] sm:$0xff] }
0x167c   :  { %6703 = vmatprep.subr.bf16.mxu1 %v2748_v57  ;;  %v2750_v63 = vld [vmem:[#allocation2 + $0xd8] sm:$0xff]  ;;  %v2751_v48 = vld [vmem:[#allocation2 + $0xe0] sm:$0xff]  ;;  %v2736_v2 = vld [vmem:[#allocation2 + $0x68] sm:$0xff] }
0x167d   :  { %6664 = vmatpush3.bf16.msra.mxu0 %v2724_v22  ;;  %v2726_v47 = vld [vmem:[#allocation2 + $0x18] sm:$0xff]  ;;  %v2727_v7 = vld [vmem:[#allocation2 + $0x20] sm:$0xff]  ;;  %v2752_v8 = vld [vmem:[#allocation2 + $0xe8] sm:$0xff] }
0x167e   :  { %6665 = vmatprep.subr.bf16.mxu0 %v2733_v1  ;;  %v2742_v44 = vld [vmem:[#allocation2 + $0x98] sm:$0xff]  ;;  %v2743_v23 = vld [vmem:[#allocation2 + $0xa0] sm:$0xff]  ;;  %v2728_v38 = vld [vmem:[#allocation2 + $0x28] sm:$0xff] }
0x167f   :  { %6704 = vmatpush3.bf16.msra.mxu1 %v2740_v36  ;;  %v2744_v14 = vld [vmem:[#allocation2 + $0xa8] sm:$0xff]  ;;  %v2737_v11 = vld [vmem:[#allocation2 + $0x70] sm:$0xff]  ;;  %v2738_v24 = vld [vmem:[#allocation2 + $0x78] sm:$0xff] }
0x1680   :  { %6705 = vmatprep.subr.bf16.mxu1 %v2749_v53  ;;  %v2753_v26 = vld [vmem:[#allocation2 + $0xf0] sm:$0xff]  ;;  %v2754_v0 = vld [vmem:[#allocation2 + $0xf8] sm:$0xff]  ;;  %v2763_v22 = vld [vmem:[#allocation2 + $0x140] sm:$0xff] }
0x1681   :  { %6666 = vmatpush3.bf16.msra.mxu0 %v2725_v9  ;;  %v2729_v21 = vld [vmem:[#allocation2 + $0x30] sm:$0xff]  ;;  %v2730_v31 = vld [vmem:[#allocation2 + $0x38] sm:$0xff]  ;;  %v2779_v36 = vld [vmem:[#allocation2 + $0x1c0] sm:$0xff] }
0x1682   :  { %6667 = vmatprep.subr.bf16.mxu0 %v2734_v62  ;;  %v2745_v46 = vld [vmem:[#allocation2 + $0xb0] sm:$0xff]  ;;  %v2746_v57 = vld [vmem:[#allocation2 + $0xb8] sm:$0xff]  ;;  %v2755_v1 = vld [vmem:[#allocation2 + $0x100] sm:$0xff] }
0x1683   :  { %6706 = vmatpush3.bf16.msra.mxu1 %v2741_v49  ;;  %v2771_v53 = vld [vmem:[#allocation2 + $0x180] sm:$0xff]  ;;  %v2764_v9 = vld [vmem:[#allocation2 + $0x148] sm:$0xff] }
0x1684   :  { %6707 = vmatprep.subr.bf16.mxu1 %v2750_v63  ;;  %v2780_v49 = vld [vmem:[#allocation2 + $0x1c8] sm:$0xff] }
0x1685   :  { %6668 = vmatpush3.bf16.msra.mxu0 %v2726_v47  ;;  %v2756_v62 = vld [vmem:[#allocation2 + $0x108] sm:$0xff]  ;;  %v2765_v47 = vld [vmem:[#allocation2 + $0x150] sm:$0xff] }
0x1686   :  { %6669 = vmatprep.subr.bf16.mxu0 %v2735_v37  ;;  %v2772_v63 = vld [vmem:[#allocation2 + $0x188] sm:$0xff]  ;;  %v2757_v37 = vld [vmem:[#allocation2 + $0x110] sm:$0xff] }
0x1687   :  { %6708 = vmatpush3.bf16.msra.mxu1 %v2742_v44  ;;  %v2781_v44 = vld [vmem:[#allocation2 + $0x1d0] sm:$0xff] }
0x1688   :  { %6709 = vmatprep.subr.bf16.mxu1 %v2751_v48  ;;  %v2766_v48 = vld [vmem:[#allocation2 + $0x158] sm:$0xff] }
0x1689   :  { %6670 = vmatpush3.bf16.msra.mxu0 %v2727_v7  ;;  %v2774_v7 = vld [vmem:[#allocation2 + $0x198] sm:$0xff] }
0x168a   :  { %6671 = vmatprep.subr.bf16.mxu0 %v2736_v2  ;;  %v2759_v2 = vld [vmem:[#allocation2 + $0x120] sm:$0xff] }
0x168b   :  { %6710 = vmatpush3.bf16.msra.mxu1 %v2743_v23  ;;  %v2783_v23 = vld [vmem:[#allocation2 + $0x1e0] sm:$0xff] }
0x168c   :  { %6711 = vmatprep.subr.bf16.mxu1 %v2752_v8  ;;  %v2768_v8 = vld [vmem:[#allocation2 + $0x168] sm:$0xff] }
0x168d   :  { %6672 = vmatpush3.bf16.msra.mxu0 %v2728_v38  ;;  %v2776_v38 = vld [vmem:[#allocation2 + $0x1a8] sm:$0xff] }
0x168e   :  { %6673 = vmatprep.subr.bf16.mxu0 %v2737_v11  ;;  %v2761_v11 = vld [vmem:[#allocation2 + $0x130] sm:$0xff] }
0x168f   :  { %6712 = vmatpush3.bf16.msra.mxu1 %v2744_v14  ;;  %v2785_v14 = vld [vmem:[#allocation2 + $0x1f0] sm:$0xff] }
0x1690   :  { %6713 = vmatprep.subr.bf16.mxu1 %v2753_v26  ;;  %v2770_v26 = vld [vmem:[#allocation2 + $0x178] sm:$0xff] }
0x1691   :  { %6674 = vmatpush3.bf16.msra.mxu0 %v2729_v21  ;;  %v2778_v21 = vld [vmem:[#allocation2 + $0x1b8] sm:$0xff] }
0x1692   :  { %6675 = vmatprep.subr.bf16.mxu0 %v2738_v24  ;;  %v2787_v24 = vld [vmem:[#allocation2 + $0x200] sm:$0xff] }
0x1693   :  { %6714 = vmatpush3.bf16.msra.mxu1 %v2745_v46  ;;  %v2811_v46 = vld [vmem:[#allocation2 + $0x2c0] sm:$0xff] }
0x1694   :  { %6715 = vmatprep.subr.bf16.mxu1 %v2754_v0  ;;  %v2796_v0 = vld [vmem:[#allocation2 + $0x248] sm:$0xff] }
0x1695   :  { %6676 = vmatpush3.bf16.msra.mxu0 %v2730_v31  ;;  %v2804_v31 = vld [vmem:[#allocation2 + $0x288] sm:$0xff] }
0x1696   :  { %6741 = vmatprep.subr.bf16.mxu0 %v2763_v22  ;;  %v2789_v22 = vld [vmem:[#allocation2 + $0x210] sm:$0xff] }
0x1697   :  { %6716 = vmatpush3.bf16.msra.mxu1 %v2746_v57  ;;  %v2813_v57 = vld [vmem:[#allocation2 + $0x2d0] sm:$0xff] }
0x1698   :  { %6781 = vmatprep.subr.bf16.mxu1 %v2779_v36  ;;  %2963 = vmatmul.mubr.bf16.vlgmr.msra.gmra.mrb[88].mxu0 %v8673_v51  ;;  %v2773_v51 = vld [vmem:[#allocation2 + $0x190] sm:$0xff]  ;;  %v2798_v36 = vld [vmem:[#allocation2 + $0x258] sm:$0xff] }
0x1699   :  { %6742 = vmatpush3.bf16.msra.mxu0 %v2755_v1  ;;  %2970 = vmatprep.mubr.bf16.mxu0 %v8771_v10  ;;  %v2758_v10 = vld [vmem:[#allocation2 + $0x118] sm:$0xff] }
0x169a   :  { %3028 = vmatmul.mubr.bf16.vlgmr.msra.gmra.mrb[104].mxu1 %v8819_v29  ;;  %6743 = vmatprep.subr.bf16.mxu0 %v2764_v9  ;;  %v2782_v29 = vld [vmem:[#allocation2 + $0x1d8] sm:$0xff]  ;;  %v2791_v9 = vld [vmem:[#allocation2 + $0x220] sm:$0xff] }
0x169b   :  { %6782 = vmatpush3.bf16.msra.mxu1 %v2771_v53  ;;  %3035 = vmatprep.mubr.bf16.mxu1 %v8879_v50  ;;  %v2767_v50 = vld [vmem:[#allocation2 + $0x160] sm:$0xff]  ;;  %v2806_v1 = vld [vmem:[#allocation2 + $0x298] sm:$0xff] }
0x169c   :  { %6783 = vmatprep.subr.bf16.mxu1 %v2780_v49  ;;  %v2815_v53 = vld [vmem:[#allocation2 + $0x2e0] sm:$0xff]  ;;  %v2800_v49 = vld [vmem:[#allocation2 + $0x268] sm:$0xff] }
0x169d   :  { %6744 = vmatpush3.bf16.msra.mxu0 %v2756_v62  ;;  %v2808_v62 = vld [vmem:[#allocation2 + $0x2a8] sm:$0xff] }
0x169e   :  { %6745 = vmatprep.subr.bf16.mxu0 %v2765_v47  ;;  %v2793_v47 = vld [vmem:[#allocation2 + $0x230] sm:$0xff] }
0x169f   :  { %6784 = vmatpush3.bf16.msra.mxu1 %v2772_v63  ;;  %v2817_v63 = vld [vmem:[#allocation2 + $0x2f0] sm:$0xff] }
0x16a0   :  { %6785 = vmatprep.subr.bf16.mxu1 %v2781_v44  ;;  %2971 = vmatmul.mubr.bf16.gmra.mrb[92].mxu0 %v8687_v54  ;;  %v2775_v54 = vld [vmem:[#allocation2 + $0x1a0] sm:$0xff]  ;;  %v2802_v44 = vld [vmem:[#allocation2 + $0x278] sm:$0xff] }
0x16a1   :  { %6746 = vmatpush3.bf16.msra.mxu0 %v2757_v37  ;;  %2978 = vmatprep.mubr.bf16.mxu0 %v8787_v19  ;;  %v2760_v19 = vld [vmem:[#allocation2 + $0x128] sm:$0xff]  ;;  %v2810_v37 = vld [vmem:[#allocation2 + $0x2b8] sm:$0xff] }
0x16a2   :  { %3036 = vmatmul.mubr.bf16.gmra.mrb[108].mxu1 %v8823_v30  ;;  %6747 = vmatprep.subr.bf16.mxu0 %v2766_v48  ;;  %v2784_v30 = vld [vmem:[#allocation2 + $0x1e8] sm:$0xff]  ;;  %v10675_v48 = vld [vmem:[#allocation35_spill] sm:$0xff] }
0x16a3   :  { %6786 = vmatpush3.bf16.msra.mxu1 %v2773_v51  ;;  %3043 = vmatprep.mubr.bf16.mxu1 %v8899_v3  ;;  %v2769_v3 = vld [vmem:[#allocation2 + $0x170] sm:$0xff]  ;;  %v2827_v51 = vld [vmem:[#allocation2 + $0x340] sm:$0xff] }
0x16a4   :  { %6787 = vmatprep.subr.bf16.mxu1 %v2782_v29  ;;  %v2843_v29 = vld [vmem:[#allocation2 + $0x3c0] sm:$0xff] }
0x16a5   :  { %6748 = vmatpush3.bf16.msra.mxu0 %v2758_v10  ;;  %v2819_v10 = vld [vmem:[#allocation2 + $0x300] sm:$0xff] }
0x16a6   :  { %6749 = vmatprep.subr.bf16.mxu0 %v2767_v50  ;;  %v10676_v50 = vld [vmem:[#allocation23_spill] sm:$0xff] }
0x16a7   :  { %6788 = vmatpush3.bf16.msra.mxu1 %v2774_v7  ;;  %v2828_v7 = vld [vmem:[#allocation2 + $0x348] sm:$0xff] }
0x16a8   :  { %6789 = vmatprep.subr.bf16.mxu1 %v2783_v23  ;;  %2979 = vmatmul.mubr.bf16.gmra.mrb[96].mxu0 %v8709_v58  ;;  %v2777_v58 = vld [vmem:[#allocation2 + $0x1b0] sm:$0xff] }
0x16a9   :  { %6750 = vmatpush3.bf16.msra.mxu0 %v2759_v2  ;;  %2986 = vmatprep.mubr.bf16.mxu0 %v8791_v20  ;;  %v2762_v20 = vld [vmem:[#allocation2 + $0x138] sm:$0xff]  ;;  %v2820_v2 = vld [vmem:[#allocation2 + $0x308] sm:$0xff] }
0x16aa   :  { %3044 = vmatmul.mubr.bf16.gmra.mrb[112].mxu1 %v8843_v39  ;;  %6751 = vmatprep.subr.bf16.mxu0 %v2768_v8  ;;  %v2786_v39 = vld [vmem:[#allocation2 + $0x1f8] sm:$0xff] }
0x16ab   :  { %6790 = vmatpush3.bf16.msra.mxu1 %v2775_v54  ;;  %3051 = vmatprep.mubr.bf16.mxu1 %v8903_v4  ;;  %v2795_v4 = vld [vmem:[#allocation2 + $0x240] sm:$0xff]  ;;  %v10677_v23 = vld [vmem:[#allocation31_spill] sm:$0xff]  ;;  %v2836_v54 = vld [vmem:[#allocation2 + $0x388] sm:$0xff] }
0x16ac   :  { %6791 = vmatprep.subr.bf16.mxu1 %v2784_v30  ;;  %v10678_v8 = vld [vmem:[#allocation28_spill] sm:$0xff]  ;;  %v2829_v30 = vld [vmem:[#allocation2 + $0x350] sm:$0xff] }
0x16ad   :  { %6752 = vmatpush3.bf16.msra.mxu0 %v2760_v19  ;;  %v10679_v19 = vld [vmem:[#allocation36_spill] sm:$0xff] }
0x16ae   :  { %6753 = vmatprep.subr.bf16.mxu0 %v2769_v3  ;;  %v2821_v3 = vld [vmem:[#allocation2 + $0x310] sm:$0xff] }
0x16af   :  { %6792 = vmatpush3.bf16.msra.mxu1 %v2776_v38  ;;  %v2845_v38 = vld [vmem:[#allocation2 + $0x3d0] sm:$0xff] }
0x16b0   :  { %6793 = vmatprep.subr.bf16.mxu1 %v2785_v14  ;;  %2987 = vmatmul.mubr.bf16.gmra.mrb[100].mxu0 %v8729_v61  ;;  %v2803_v61 = vld [vmem:[#allocation2 + $0x280] sm:$0xff]  ;;  %v2837_v14 = vld [vmem:[#allocation2 + $0x390] sm:$0xff] }
0x16b1   :  { %6754 = vmatpush3.bf16.msra.mxu0 %v2761_v11  ;;  %3092 = vmatprep.mubr.bf16.mxu0 %v8987_v41  ;;  %v2788_v41 = vld [vmem:[#allocation2 + $0x208] sm:$0xff]  ;;  %v2830_v11 = vld [vmem:[#allocation2 + $0x358] sm:$0xff] }
0x16b2   :  { %3052 = vmatmul.mubr.bf16.gmra.mrb[116].mxu1 %v8847_v40  ;;  %6755 = vmatprep.subr.bf16.mxu0 %v2770_v26  ;;  %v2812_v40 = vld [vmem:[#allocation2 + $0x2c8] sm:$0xff]  ;;  %v10680_v26 = vld [vmem:[#allocation24_spill] sm:$0xff] }
0x16b3   :  { %6794 = vmatpush3.bf16.msra.mxu1 %v2777_v58  ;;  %3157 = vmatprep.mubr.bf16.mxu1 %v9099_v59  ;;  %v2797_v59 = vld [vmem:[#allocation2 + $0x250] sm:$0xff]  ;;  %v2846_v58 = vld [vmem:[#allocation2 + $0x3d8] sm:$0xff] }
0x16b4   :  { %6795 = vmatprep.subr.bf16.mxu1 %v2786_v39  ;;  %v10681_v39 = vld [vmem:[#allocation32_spill] sm:$0xff] }
0x16b5   :  { %6756 = vmatpush3.bf16.msra.mxu0 %v2762_v20  ;;  %v2822_v20 = vld [vmem:[#allocation2 + $0x318] sm:$0xff] }
0x16b6   :  { %6821 = vmatprep.subr.bf16.mxu0 %v2795_v4  ;;  %v10682_v4 = vld [vmem:[#allocation29_spill] sm:$0xff] }
0x16b7   :  { %6796 = vmatpush3.bf16.msra.mxu1 %v2778_v21  ;;  %v2838_v21 = vld [vmem:[#allocation2 + $0x398] sm:$0xff] }
0x16b8   :  { %6861 = vmatprep.subr.bf16.mxu1 %v2811_v46  ;;  %3093 = vmatmul.mubr.bf16.vlgmr.msra.gmra.mrb[104].mxu0 %v8931_v15  ;;  %v2805_v15 = vld [vmem:[#allocation2 + $0x290] sm:$0xff]  ;;  %v2831_v46 = vld [vmem:[#allocation2 + $0x360] sm:$0xff] }
0x16b9   :  { %6822 = vmatpush3.bf16.msra.mxu0 %v2787_v24  ;;  %3100 = vmatprep.mubr.bf16.mxu0 %v8991_v42  ;;  %v2790_v42 = vld [vmem:[#allocation2 + $0x218] sm:$0xff]  ;;  %v10683_v24 = vld [vmem:[#allocation37_spill] sm:$0xff] }
0x16ba   :  { %3158 = vmatmul.mubr.bf16.vlgmr.msra.gmra.mrb[120].mxu1 %v9043_v17  ;;  %6823 = vmatprep.subr.bf16.mxu0 %v2796_v0  ;;  %v2814_v17 = vld [vmem:[#allocation2 + $0x2d8] sm:$0xff]  ;;  %v2823_v0 = vld [vmem:[#allocation2 + $0x320] sm:$0xff] }
0x16bb   :  { %6862 = vmatpush3.bf16.msra.mxu1 %v2803_v61  ;;  %3165 = vmatprep.mubr.bf16.mxu1 %v9103_v60  ;;  %v2799_v60 = vld [vmem:[#allocation2 + $0x260] sm:$0xff] }
0x16bc   :  { %6863 = vmatprep.subr.bf16.mxu1 %v2812_v40  ;;  %v2847_v61 = vld [vmem:[#allocation2 + $0x3e0] sm:$0xff] }
0x16bd   :  { %6824 = vmatpush3.bf16.msra.mxu0 %v2788_v41  ;;  %v2839_v40 = vld [vmem:[#allocation2 + $0x3a0] sm:$0xff]  ;;  %v2832_v41 = vld [vmem:[#allocation2 + $0x368] sm:$0xff] }
0x16be   :  { %6825 = vmatprep.subr.bf16.mxu0 %v2797_v59  ;;  %v10684_v59 = vld [vmem:[#allocation25_spill] sm:$0xff] }
0x16bf   :  { %6864 = vmatpush3.bf16.msra.mxu1 %v2804_v31  ;;  %v2848_v31 = vld [vmem:[#allocation2 + $0x3e8] sm:$0xff] }
0x16c0   :  { %6865 = vmatprep.subr.bf16.mxu1 %v2813_v57  ;;  %3101 = vmatmul.mubr.bf16.gmra.mrb[108].mxu0 %v8935_v16  ;;  %v2807_v16 = vld [vmem:[#allocation2 + $0x2a0] sm:$0xff] }
0x16c1   :  { %6826 = vmatpush3.bf16.msra.mxu0 %v2789_v22  ;;  %3108 = vmatprep.mubr.bf16.mxu0 %v9011_v55  ;;  %v2792_v55 = vld [vmem:[#allocation2 + $0x228] sm:$0xff] }
0x16c2   :  { %3166 = vmatmul.mubr.bf16.gmra.mrb[124].mxu1 %v9047_v18  ;;  %6827 = vmatprep.subr.bf16.mxu0 %v2798_v36  ;;  %v2816_v18 = vld [vmem:[#allocation2 + $0x2e8] sm:$0xff] }
0x16c3   :  { %6866 = vmatpush3.bf16.msra.mxu1 %v2805_v15  ;;  %3173 = vmatprep.mubr.bf16.mxu1 %v9123_v12  ;;  %v2801_v12 = vld [vmem:[#allocation2 + $0x270] sm:$0xff]  ;;  %v10685_v57 = vld [vmem:[#allocation33_spill] sm:$0xff] }
0x16c4   :  { %6867 = vmatprep.subr.bf16.mxu1 %v2814_v17  ;;  %v2824_v22 = vld [vmem:[#allocation2 + $0x328] sm:$0xff]  ;;  %v2833_v17 = vld [vmem:[#allocation2 + $0x370] sm:$0xff] }
0x16c5   :  { %6828 = vmatpush3.bf16.msra.mxu0 %v2790_v42  ;;  %v2840_v15 = vld [vmem:[#allocation2 + $0x3a8] sm:$0xff] }
0x16c6   :  { %6829 = vmatprep.subr.bf16.mxu0 %v2799_v60  ;;  %v10686_v36 = vld [vmem:[#allocation30_spill] sm:$0xff] }
0x16c7   :  { %6868 = vmatpush3.bf16.msra.mxu1 %v2806_v1  ;;  %v10687_v42 = vld [vmem:[#allocation38_spill] sm:$0xff] }
0x16c8   :  { %6869 = vmatprep.subr.bf16.mxu1 %v2815_v53  ;;  %3109 = vmatmul.mubr.bf16.gmra.mrb[112].mxu0 %v8955_v27  ;;  %v2809_v27 = vld [vmem:[#allocation2 + $0x2b0] sm:$0xff] }
0x16c9   :  { %6830 = vmatpush3.bf16.msra.mxu0 %v2791_v9  ;;  %3116 = vmatprep.mubr.bf16.mxu0 %v9015_v56  ;;  %v2794_v56 = vld [vmem:[#allocation2 + $0x238] sm:$0xff]  ;;  %v2849_v1 = vld [vmem:[#allocation2 + $0x3f0] sm:$0xff] }
0x16ca   :  { %3174 = vmatmul.mubr.bf16.gmra.mrb[128].mxu1 %v9067_v33  ;;  %6831 = vmatprep.subr.bf16.mxu0 %v2800_v49  ;;  %v2818_v33 = vld [vmem:[#allocation2 + $0x2f8] sm:$0xff]  ;;  %v2825_v60 = vld [vmem:[#allocation2 + $0x330] sm:$0xff] }
0x16cb   :  { %6870 = vmatpush3.bf16.msra.mxu1 %v2807_v16  ;;  %3181 = vmatprep.mubr.bf16.mxu1 %v9127_v13  ;;  %v10674_v13 = vld [vmem:[#allocation27_spill] sm:$0xff]  ;;  %v10688_v49 = vld [vmem:[#allocation26_spill] sm:$0xff] }
0x16cc   :  { %6871 = vmatprep.subr.bf16.mxu1 %v2816_v18  ;;  %v2841_v53 = vld [vmem:[#allocation2 + $0x3b0] sm:$0xff]  ;;  %v2834_v9 = vld [vmem:[#allocation2 + $0x378] sm:$0xff] }
0x16cd   :  { %6832 = vmatpush3.bf16.msra.mxu0 %v2792_v55  ;;  %v2850_v16 = vld [vmem:[#allocation2 + $0x3f8] sm:$0xff]  ;;  %v10689_v18 = vld [vmem:[#allocation34_spill] sm:$0xff] }
0x16ce   :  { %6833 = vmatprep.subr.bf16.mxu0 %v2801_v12  ;;  %v2826_v55 = vld [vmem:[#allocation2 + $0x338] sm:$0xff] }
0x16cf   :  { %6872 = vmatpush3.bf16.msra.mxu1 %v2808_v62  ;;  %v2842_v62 = vld [vmem:[#allocation2 + $0x3b8] sm:$0xff] }
0x16d0   :  { %6873 = vmatprep.subr.bf16.mxu1 %v2817_v63  ;;  %3117 = vmatmul.mubr.bf16.gmra.mrb[116].mxu0 %v8959_v28  ;;  %v2835_v28 = vld [vmem:[#allocation2 + $0x380] sm:$0xff]  ;;  %v10690_v12 = vld [vmem:[#allocation43_spill] sm:$0xff] }
0x16d1   :  { %6834 = vmatpush3.bf16.msra.mxu0 %v2793_v47  ;;  %3222 = vmatprep.mubr.bf16.mxu0 %v10674_v13  ;;  %v2859_v63 = vld [vmem:[#allocation2 + $0x440] sm:$0xff]  ;;  %v10691_v47 = vld [vmem:[#allocation51_spill] sm:$0xff] }
0x16d2   :  { %3182 = vmatmul.mubr.bf16.gmra.mrb[132].mxu1 %v9071_v34  ;;  %6835 = vmatprep.subr.bf16.mxu0 %v2802_v44  ;;  %v2844_v34 = vld [vmem:[#allocation2 + $0x3c8] sm:$0xff]  ;;  %v2851_v44 = vld [vmem:[#allocation2 + $0x400] sm:$0xff]  ;;  %v10692_v13 = vld [vmem:[#allocation39_spill] sm:$0xff] }
0x16d3   :  { %6874 = vmatpush3.bf16.msra.mxu1 %v2809_v27  ;;  %3287 = vmatprep.mubr.bf16.mxu1 %v10675_v48  ;;  %v2875_v27 = vld [vmem:[#allocation2 + $0x4c0] sm:$0xff]  ;;  %v2852_v48 = vld [vmem:[#allocation2 + $0x408] sm:$0xff] }
0x16d4   :  { %6875 = vmatprep.subr.bf16.mxu1 %v2818_v33  ;;  %v2867_v33 = vld [vmem:[#allocation2 + $0x480] sm:$0xff] }
0x16d5   :  { %6836 = vmatpush3.bf16.msra.mxu0 %v2794_v56  ;;  %v2860_v56 = vld [vmem:[#allocation2 + $0x448] sm:$0xff] }
0x16d6   :  { %6901 = vmatprep.subr.bf16.mxu0 %v2827_v51  ;;  %v10693_v51 = vld [vmem:[#allocation47_spill] sm:$0xff] }
0x16d7   :  { %6876 = vmatpush3.bf16.msra.mxu1 %v2810_v37  ;;  %v2876_v37 = vld [vmem:[#allocation2 + $0x4c8] sm:$0xff] }
0x16d8   :  { %6941 = vmatprep.subr.bf16.mxu1 %v2843_v29  ;;  %3223 = vmatmul.mubr.bf16.vlgmr.msra.gmra.mrb[120].mxu0 %v10676_v50  ;;  %v2868_v29 = vld [vmem:[#allocation2 + $0x488] sm:$0xff]  ;;  %v2853_v50 = vld [vmem:[#allocation2 + $0x410] sm:$0xff] }
0x16d9   :  { %6902 = vmatpush3.bf16.msra.mxu0 %v2819_v10  ;;  %3230 = vmatprep.mubr.bf16.mxu0 %v10678_v8  ;;  %v10694_v10 = vld [vmem:[#allocation44_spill] sm:$0xff] }
0x16da   :  { %3288 = vmatmul.mubr.bf16.vlgmr.msra.gmra.mrb[136].mxu1 %v10677_v23  ;;  %6903 = vmatprep.subr.bf16.mxu0 %v2828_v7  ;;  %v10695_v7 = vld [vmem:[#allocation52_spill] sm:$0xff]  ;;  %v2869_v23 = vld [vmem:[#allocation2 + $0x490] sm:$0xff] }
0x16db   :  { %6942 = vmatpush3.bf16.msra.mxu1 %v2835_v28  ;;  %3295 = vmatprep.mubr.bf16.mxu1 %v10679_v19  ;;  %v2861_v28 = vld [vmem:[#allocation2 + $0x450] sm:$0xff]  ;;  %v10696_v8 = vld [vmem:[#allocation40_spill] sm:$0xff] }
0x16dc   :  { %6943 = vmatprep.subr.bf16.mxu1 %v2844_v34  ;;  %v2877_v34 = vld [vmem:[#allocation2 + $0x4d0] sm:$0xff]  ;;  %v2854_v19 = vld [vmem:[#allocation2 + $0x418] sm:$0xff] }
0x16dd   :  { %6904 = vmatpush3.bf16.msra.mxu0 %v2820_v2  ;;  %v2862_v2 = vld [vmem:[#allocation2 + $0x458] sm:$0xff] }
0x16de   :  { %6905 = vmatprep.subr.bf16.mxu0 %v2829_v30  ;;  %v10697_v30 = vld [vmem:[#allocation48_spill] sm:$0xff] }
0x16df   :  { %6944 = vmatpush3.bf16.msra.mxu1 %v2836_v54  ;;  %v2878_v54 = vld [vmem:[#allocation2 + $0x4d8] sm:$0xff] }
0x16e0   :  { %6945 = vmatprep.subr.bf16.mxu1 %v2845_v38  ;;  %3231 = vmatmul.mubr.bf16.gmra.mrb[124].mxu0 %v10680_v26  ;;  %v2870_v38 = vld [vmem:[#allocation2 + $0x498] sm:$0xff]  ;;  %v2855_v26 = vld [vmem:[#allocation2 + $0x420] sm:$0xff] }
0x16e1   :  { %6906 = vmatpush3.bf16.msra.mxu0 %v2821_v3  ;;  %3238 = vmatprep.mubr.bf16.mxu0 %v10682_v4  ;;  %v10698_v3 = vld [vmem:[#allocation45_spill] sm:$0xff] }
0x16e2   :  { %3296 = vmatmul.mubr.bf16.gmra.mrb[140].mxu1 %v10681_v39  ;;  %6907 = vmatprep.subr.bf16.mxu0 %v2830_v11  ;;  %v10699_v11 = vld [vmem:[#allocation53_spill] sm:$0xff] }
0x16e3   :  { %6946 = vmatpush3.bf16.msra.mxu1 %v2837_v14  ;;  %3303 = vmatprep.mubr.bf16.mxu1 %v10683_v24  ;;  %v2863_v14 = vld [vmem:[#allocation2 + $0x460] sm:$0xff]  ;;  %v2856_v24 = vld [vmem:[#allocation2 + $0x428] sm:$0xff] }
0x16e4   :  { %6947 = vmatprep.subr.bf16.mxu1 %v2846_v58  ;;  %v2879_v58 = vld [vmem:[#allocation2 + $0x4e0] sm:$0xff] }
0x16e5   :  { %6908 = vmatpush3.bf16.msra.mxu0 %v2822_v20  ;;  %v2871_v39 = vld [vmem:[#allocation2 + $0x4a0] sm:$0xff]  ;;  %v2864_v20 = vld [vmem:[#allocation2 + $0x468] sm:$0xff] }
0x16e6   :  { %6909 = vmatprep.subr.bf16.mxu0 %v2831_v46  ;;  %v10700_v4 = vld [vmem:[#allocation41_spill] sm:$0xff] }
0x16e7   :  { %6948 = vmatpush3.bf16.msra.mxu1 %v2838_v21  ;;  %v2880_v21 = vld [vmem:[#allocation2 + $0x4e8] sm:$0xff] }
0x16e8   :  { %6949 = vmatprep.subr.bf16.mxu1 %v2847_v61  ;;  %3239 = vmatmul.mubr.bf16.gmra.mrb[128].mxu0 %v10684_v59  ;;  %v10701_v46 = vld [vmem:[#allocation49_spill] sm:$0xff]  ;;  %v2857_v59 = vld [vmem:[#allocation2 + $0x430] sm:$0xff] }
0x16e9   :  { %6910 = vmatpush3.bf16.msra.mxu0 %v2823_v0  ;;  %3246 = vmatprep.mubr.bf16.mxu0 %v10686_v36  ;;  %v2872_v61 = vld [vmem:[#allocation2 + $0x4a8] sm:$0xff] }
0x16ea   :  { %3304 = vmatmul.mubr.bf16.gmra.mrb[144].mxu1 %v10685_v57  ;;  %6911 = vmatprep.subr.bf16.mxu0 %v2832_v41  ;;  %v10702_v0 = vld [vmem:[#allocation46_spill] sm:$0xff] }
0x16eb   :  { %6950 = vmatpush3.bf16.msra.mxu1 %v2839_v40  ;;  %3311 = vmatprep.mubr.bf16.mxu1 %v10687_v42  ;;  %v2865_v40 = vld [vmem:[#allocation2 + $0x470] sm:$0xff]  ;;  %v2858_v42 = vld [vmem:[#allocation2 + $0x438] sm:$0xff] }
0x16ec   :  { %6951 = vmatprep.subr.bf16.mxu1 %v2848_v31  ;;  %v10703_v41 = vld [vmem:[#allocation54_spill] sm:$0xff] }
0x16ed   :  { %6912 = vmatpush3.bf16.msra.mxu0 %v2824_v22  ;;  %v2881_v31 = vld [vmem:[#allocation2 + $0x4f0] sm:$0xff]  ;;  %v2866_v22 = vld [vmem:[#allocation2 + $0x478] sm:$0xff] }
0x16ee   :  { %6913 = vmatprep.subr.bf16.mxu0 %v2833_v17  ;;  %v2873_v57 = vld [vmem:[#allocation2 + $0x4b0] sm:$0xff] }
0x16ef   :  { %6952 = vmatpush3.bf16.msra.mxu1 %v2840_v15  ;;  %v2882_v15 = vld [vmem:[#allocation2 + $0x4f8] sm:$0xff]  ;;  %v10704_v36 = vld [vmem:[#allocation42_spill] sm:$0xff] }
0x16f0   :  { %6953 = vmatprep.subr.bf16.mxu1 %v2849_v1  ;;  %3247 = vmatmul.mubr.bf16.gmra.mrb[132].mxu0 %v10688_v49  ;;  %v10705_v17 = vld [vmem:[#allocation50_spill] sm:$0xff]  ;;  %v2874_v1 = vld [vmem:[#allocation2 + $0x4b8] sm:$0xff]  ;;  %v2883_v49 = vld [vmem:[#allocation2 + $0x500] sm:$0xff] }
0x16f1   :  { %6914 = vmatpush3.bf16.msra.mxu0 %v2825_v60  ;;  %3352 = vmatprep.mubr.bf16.mxu0 %v10690_v12  ;;  %v10706_v60 = vld [vmem:[#allocation59_spill] sm:$0xff] }
0x16f2   :  { %3312 = vmatmul.mubr.bf16.gmra.mrb[148].mxu1 %v10689_v18  ;;  %6915 = vmatprep.subr.bf16.mxu0 %v2834_v9  ;;  %v10707_v9 = vld [vmem:[#allocation67_spill] sm:$0xff]  ;;  %v2899_v18 = vld [vmem:[#allocation2 + $0x580] sm:$0xff] }
0x16f3   :  { %6954 = vmatpush3.bf16.msra.mxu1 %v2841_v53  ;;  %3417 = vmatprep.mubr.bf16.mxu1 %v10691_v47  ;;  %v2891_v53 = vld [vmem:[#allocation2 + $0x540] sm:$0xff]  ;;  %v10708_v12 = vld [vmem:[#allocation55_spill] sm:$0xff]  ;;  %v2884_v47 = vld [vmem:[#allocation2 + $0x508] sm:$0xff] }
0x16f4   :  { %6955 = vmatprep.subr.bf16.mxu1 %v2850_v16  ;;  %v2907_v16 = vld [vmem:[#allocation2 + $0x5c0] sm:$0xff] }
0x16f5   :  { %6916 = vmatpush3.bf16.msra.mxu0 %v2826_v55  ;;  %v2892_v55 = vld [vmem:[#allocation2 + $0x548] sm:$0xff] }
0x16f6   :  { %6981 = vmatprep.subr.bf16.mxu0 %v2859_v63  ;;  %v10709_v63 = vld [vmem:[#allocation63_spill] sm:$0xff] }
0x16f7   :  { %6956 = vmatpush3.bf16.msra.mxu1 %v2842_v62  ;;  %v2908_v62 = vld [vmem:[#allocation2 + $0x5c8] sm:$0xff] }
0x16f8   :  { %7021 = vmatprep.subr.bf16.mxu1 %v2875_v27  ;;  %3353 = vmatmul.mubr.bf16.vlgmr.msra.gmra.mrb[136].mxu0 %v10692_v13  ;;  %v2900_v27 = vld [vmem:[#allocation2 + $0x588] sm:$0xff]  ;;  %v2885_v13 = vld [vmem:[#allocation2 + $0x510] sm:$0xff] }
0x16f9   :  { %6982 = vmatpush3.bf16.msra.mxu0 %v2851_v44  ;;  %3360 = vmatprep.mubr.bf16.mxu0 %v10694_v10  ;;  %v10710_v44 = vld [vmem:[#allocation60_spill] sm:$0xff] }
0x16fa   :  { %3418 = vmatmul.mubr.bf16.vlgmr.msra.gmra.mrb[152].mxu1 %v10693_v51  ;;  %6983 = vmatprep.subr.bf16.mxu0 %v2860_v56  ;;  %v10711_v56 = vld [vmem:[#allocation68_spill] sm:$0xff]  ;;  %v2901_v51 = vld [vmem:[#allocation2 + $0x590] sm:$0xff] }
0x16fb   :  { %7022 = vmatpush3.bf16.msra.mxu1 %v2867_v33  ;;  %3425 = vmatprep.mubr.bf16.mxu1 %v10695_v7  ;;  %v2893_v33 = vld [vmem:[#allocation2 + $0x550] sm:$0xff]  ;;  %v10712_v10 = vld [vmem:[#allocation56_spill] sm:$0xff] }
0x16fc   :  { %7023 = vmatprep.subr.bf16.mxu1 %v2876_v37  ;;  %v2909_v37 = vld [vmem:[#allocation2 + $0x5d0] sm:$0xff]  ;;  %v2886_v7 = vld [vmem:[#allocation2 + $0x518] sm:$0xff] }
0x16fd   :  { %6984 = vmatpush3.bf16.msra.mxu0 %v2852_v48  ;;  %v2894_v48 = vld [vmem:[#allocation2 + $0x558] sm:$0xff] }
0x16fe   :  { %6985 = vmatprep.subr.bf16.mxu0 %v2861_v28  ;;  %v10713_v28 = vld [vmem:[#allocation64_spill] sm:$0xff] }
0x16ff   :  { %7024 = vmatpush3.bf16.msra.mxu1 %v2868_v29  ;;  %v2910_v29 = vld [vmem:[#allocation2 + $0x5d8] sm:$0xff] }
0x1700   :  { %7025 = vmatprep.subr.bf16.mxu1 %v2877_v34  ;;  %3361 = vmatmul.mubr.bf16.gmra.mrb[140].mxu0 %v10696_v8  ;;  %v2902_v34 = vld [vmem:[#allocation2 + $0x598] sm:$0xff]  ;;  %v2887_v8 = vld [vmem:[#allocation2 + $0x520] sm:$0xff] }
0x1701   :  { %6986 = vmatpush3.bf16.msra.mxu0 %v2853_v50  ;;  %3368 = vmatprep.mubr.bf16.mxu0 %v10698_v3  ;;  %v10714_v50 = vld [vmem:[#allocation61_spill] sm:$0xff] }
0x1702   :  { %3426 = vmatmul.mubr.bf16.gmra.mrb[156].mxu1 %v10697_v30  ;;  %6987 = vmatprep.subr.bf16.mxu0 %v2862_v2  ;;  %v10715_v2 = vld [vmem:[#allocation69_spill] sm:$0xff] }
0x1703   :  { %7026 = vmatpush3.bf16.msra.mxu1 %v2869_v23  ;;  %3433 = vmatprep.mubr.bf16.mxu1 %v10699_v11  ;;  %v2895_v23 = vld [vmem:[#allocation2 + $0x560] sm:$0xff]  ;;  %v2888_v11 = vld [vmem:[#allocation2 + $0x528] sm:$0xff] }
0x1704   :  { %7027 = vmatprep.subr.bf16.mxu1 %v2878_v54  ;;  %v2911_v54 = vld [vmem:[#allocation2 + $0x5e0] sm:$0xff] }
0x1705   :  { %6988 = vmatpush3.bf16.msra.mxu0 %v2854_v19  ;;  %v2903_v30 = vld [vmem:[#allocation2 + $0x5a0] sm:$0xff]  ;;  %v2896_v19 = vld [vmem:[#allocation2 + $0x568] sm:$0xff] }
0x1706   :  { %6989 = vmatprep.subr.bf16.mxu0 %v2863_v14  ;;  %v10716_v3 = vld [vmem:[#allocation57_spill] sm:$0xff] }
0x1707   :  { %7028 = vmatpush3.bf16.msra.mxu1 %v2870_v38  ;;  %v2912_v38 = vld [vmem:[#allocation2 + $0x5e8] sm:$0xff] }
0x1708   :  { %7029 = vmatprep.subr.bf16.mxu1 %v2879_v58  ;;  %3369 = vmatmul.mubr.bf16.gmra.mrb[144].mxu0 %v10700_v4  ;;  %v10717_v14 = vld [vmem:[#allocation65_spill] sm:$0xff]  ;;  %v2889_v4 = vld [vmem:[#allocation2 + $0x530] sm:$0xff] }
0x1709   :  { %6990 = vmatpush3.bf16.msra.mxu0 %v2855_v26  ;;  %3376 = vmatprep.mubr.bf16.mxu0 %v10702_v0  ;;  %v2904_v58 = vld [vmem:[#allocation2 + $0x5a8] sm:$0xff] }
0x170a   :  { %3434 = vmatmul.mubr.bf16.gmra.mrb[160].mxu1 %v10701_v46  ;;  %6991 = vmatprep.subr.bf16.mxu0 %v2864_v20  ;;  %v10718_v26 = vld [vmem:[#allocation62_spill] sm:$0xff] }
0x170b   :  { %7030 = vmatpush3.bf16.msra.mxu1 %v2871_v39  ;;  %3441 = vmatprep.mubr.bf16.mxu1 %v10703_v41  ;;  %v2897_v39 = vld [vmem:[#allocation2 + $0x570] sm:$0xff]  ;;  %v2890_v41 = vld [vmem:[#allocation2 + $0x538] sm:$0xff] }
0x170c   :  { %7031 = vmatprep.subr.bf16.mxu1 %v2880_v21  ;;  %v10719_v20 = vld [vmem:[#allocation70_spill] sm:$0xff] }
0x170d   :  { %6992 = vmatpush3.bf16.msra.mxu0 %v2856_v24  ;;  %v2913_v21 = vld [vmem:[#allocation2 + $0x5f0] sm:$0xff]  ;;  %v2898_v24 = vld [vmem:[#allocation2 + $0x578] sm:$0xff] }
0x170e   :  { %6993 = vmatprep.subr.bf16.mxu0 %v2865_v40  ;;  %v2905_v46 = vld [vmem:[#allocation2 + $0x5b0] sm:$0xff] }
0x170f   :  { %7032 = vmatpush3.bf16.msra.mxu1 %v2872_v61  ;;  %v2914_v61 = vld [vmem:[#allocation2 + $0x5f8] sm:$0xff]  ;;  %v10720_v0 = vld [vmem:[#allocation58_spill] sm:$0xff] }
0x1710   :  { %7033 = vmatprep.subr.bf16.mxu1 %v2881_v31  ;;  %3377 = vmatmul.mubr.bf16.gmra.mrb[148].mxu0 %v10704_v36  ;;  %v10721_v40 = vld [vmem:[#allocation66_spill] sm:$0xff]  ;;  %v2906_v31 = vld [vmem:[#allocation2 + $0x5b8] sm:$0xff] }
0x1711   :  { %6994 = vmatpush3.bf16.msra.mxu0 %v2857_v59  ;;  %3482 = vmatprep.mubr.bf16.mxu0 %v10706_v60  ;;  %v10722_v59 = vld [vmem:[#allocation75_spill] sm:$0xff]  ;;  %v10726_v60 = vld [vmem:[#allocation72_spill] sm:$0xff] }
0x1712   :  { %3442 = vmatmul.mubr.bf16.gmra.mrb[164].mxu1 %v10705_v17  ;;  %6995 = vmatprep.subr.bf16.mxu0 %v2866_v22  ;;  %v2916_v22 = vld [vmem:[#allocation2 + $0x608] sm:$0xff]  ;;  %v10724_v36 = vld [vmem:[#allocation79_spill] sm:$0xff]  ;;  %v10725_v17 = vld [vmem:[#allocation76_spill] sm:$0xff] }
0x1713   :  { %7034 = vmatpush3.bf16.msra.mxu1 %v2873_v57  ;;  %3547 = vmatprep.mubr.bf16.mxu1 %v10707_v9  ;;  %v2915_v57 = vld [vmem:[#allocation2 + $0x600] sm:$0xff] }
0x1714   :  { %7035 = vmatprep.subr.bf16.mxu1 %v2882_v15  ;;  %v10723_v15 = vld [vmem:[#allocation71_spill] sm:$0xff]  ;;  %v2919_v9 = vld [vmem:[#allocation2 + $0x620] sm:$0xff] }
0x1715   :  { %6996 = vmatpush3.bf16.msra.mxu0 %v2858_v42  ;;  %v2917_v42 = vld [vmem:[#allocation2 + $0x610] sm:$0xff] }
0x1716   :  { %7061 = vmatprep.subr.bf16.mxu0 %v2891_v53  ;;  %v10728_v53 = vld [vmem:[#allocation77_spill] sm:$0xff] }
0x1717   :  { %7036 = vmatpush3.bf16.msra.mxu1 %v2874_v1  ;;  %v2918_v1 = vld [vmem:[#allocation2 + $0x618] sm:$0xff] }
0x1718   :  { %7101 = vmatprep.subr.bf16.mxu1 %v2907_v16  ;;  %3483 = vmatmul.mubr.bf16.vlgmr.msra.gmra.mrb[152].mxu0 %v10708_v12  ;;  %v2920_v16 = vld [vmem:[#allocation2 + $0x628] sm:$0xff] }
0x1719   :  { %7062 = vmatpush3.bf16.msra.mxu0 %v2883_v49  ;;  %3490 = vmatprep.mubr.bf16.mxu0 %v10710_v44  ;;  %v10729_v49 = vld [vmem:[#allocation73_spill] sm:$0xff]  ;;  %v10732_v12 = vld [vmem:[#allocation74_spill] sm:$0xff] }
0x171a   :  { %3548 = vmatmul.mubr.bf16.vlgmr.msra.gmra.mrb[168].mxu1 %v10709_v63  ;;  %7063 = vmatprep.subr.bf16.mxu0 %v2892_v55  ;;  %v2921_v55 = vld [vmem:[#allocation2 + $0x630] sm:$0xff] }
0x171b   :  { %7102 = vmatpush3.bf16.msra.mxu1 %v2899_v18  ;;  %3555 = vmatprep.mubr.bf16.mxu1 %v10711_v56  ;;  %v10731_v18 = vld [vmem:[#allocation78_spill] sm:$0xff] }
0x171c   :  { %7103 = vmatprep.subr.bf16.mxu1 %v2908_v62  ;;  %v2922_v62 = vld [vmem:[#allocation2 + $0x638] sm:$0xff] }
0x171d   :  { %7064 = vmatpush3.bf16.msra.mxu0 %v2884_v47  ;;  %v6406_v47 = vld [vmem:[%s10545_s3] ss:$0 sm:$0xff] }
0x171e   :  { %7065 = vmatprep.subr.bf16.mxu0 %v2893_v33 }
0x171f   :  { %7104 = vmatpush3.bf16.msra.mxu1 %v2900_v27 }
0x1720   :  { %7105 = vmatprep.subr.bf16.mxu1 %v2909_v37  ;;  %3491 = vmatmul.mubr.bf16.gmra.mrb[156].mxu0 %v10712_v10 }
0x1721   :  { %7066 = vmatpush3.bf16.msra.mxu0 %v2885_v13  ;;  %3498 = vmatprep.mubr.bf16.mxu0 %v10714_v50 }
0x1722   :  { %3556 = vmatmul.mubr.bf16.gmra.mrb[172].mxu1 %v10713_v28  ;;  %7067 = vmatprep.subr.bf16.mxu0 %v2894_v48 }
0x1723   :  { %7106 = vmatpush3.bf16.msra.mxu1 %v2901_v51  ;;  %3563 = vmatprep.mubr.bf16.mxu1 %v10715_v2 }
0x1724   :  { %7107 = vmatprep.subr.bf16.mxu1 %v2910_v29 }
0x1725   :  { %7068 = vmatpush3.bf16.msra.mxu0 %v2886_v7 }
0x1726   :  { %7069 = vmatprep.subr.bf16.mxu0 %v2895_v23 }
0x1727   :  { %7108 = vmatpush3.bf16.msra.mxu1 %v2902_v34 }
0x1728   :  { %7109 = vmatprep.subr.bf16.mxu1 %v2911_v54  ;;  %3499 = vmatmul.mubr.bf16.gmra.mrb[160].mxu0 %v10716_v3 }
0x1729   :  { %7070 = vmatpush3.bf16.msra.mxu0 %v2887_v8  ;;  %3506 = vmatprep.mubr.bf16.mxu0 %v10718_v26 }
0x172a   :  { %3564 = vmatmul.mubr.bf16.gmra.mrb[176].mxu1 %v10717_v14  ;;  %7071 = vmatprep.subr.bf16.mxu0 %v2896_v19 }
0x172b   :  { %7110 = vmatpush3.bf16.msra.mxu1 %v2903_v30  ;;  %3571 = vmatprep.mubr.bf16.mxu1 %v10719_v20 }
0x172c   :  { %7111 = vmatprep.subr.bf16.mxu1 %v2912_v38 }
0x172d   :  { %7072 = vmatpush3.bf16.msra.mxu0 %v2888_v11 }
0x172e   :  { %7073 = vmatprep.subr.bf16.mxu0 %v2897_v39 }
0x172f   :  { %7112 = vmatpush3.bf16.msra.mxu1 %v2904_v58 }
0x1730   :  { %7113 = vmatprep.subr.bf16.mxu1 %v2913_v21  ;;  %3507 = vmatmul.mubr.bf16.gmra.mrb[164].mxu0 %v10720_v0 }
0x1731   :  { %7074 = vmatpush3.bf16.msra.mxu0 %v2889_v4  ;;  %3612 = vmatprep.mubr.bf16.mxu0 %v10722_v59 }
0x1732   :  { %3572 = vmatmul.mubr.bf16.gmra.mrb[180].mxu1 %v10721_v40  ;;  %7075 = vmatprep.subr.bf16.mxu0 %v2898_v24 }
0x1733   :  { %7114 = vmatpush3.bf16.msra.mxu1 %v2905_v46  ;;  %3677 = vmatprep.mubr.bf16.mxu1 %v10002_v43  ;;  %v10727_v43 = vld [vmem:[#allocation80_spill] sm:$0xff] }
0x1734   :  { %7115 = vmatprep.subr.bf16.mxu1 %v2914_v61 }
0x1735   :  { %7076 = vmatpush3.bf16.msra.mxu0 %v2890_v41 }
0x1736   :  { %7902 = vmatprep.subr.bf16.mxu0 %v2915_v57 }
0x1737   :  { %7116 = vmatpush3.bf16.msra.mxu1 %v2906_v31 }
0x1738   :  { %3613 = vmatmul.mubr.bf16.vlgmr.msra.gmra.mrb[168].mxu0 %v10723_v15 }
0x1739   :  { %7903 = vmatpush3.bf16.msra.mxu0 %v2915_v57  ;;  %3620 = vmatprep.mubr.bf16.mxu0 %v10725_v17 }
0x173a   :  { %3678 = vmatmul.mubr.bf16.vlgmr.msra.gmra.mrb[184].mxu1 %v10724_v36  ;;  %7904 = vmatprep.subr.bf16.mxu0 %v2916_v22 }
0x173b   :  { %3685 = vmatprep.mubr.bf16.mxu1 %v10000_v52  ;;  %v10730_v52 = vld [vmem:[#allocation81_spill] sm:$0xff] }
0x173d   :  { %7905 = vmatpush3.bf16.msra.mxu0 %v2916_v22 }
0x173e   :  { %7906 = vmatprep.subr.bf16.mxu0 %v2917_v42 }
0x1740   :  { %3621 = vmatmul.mubr.bf16.gmra.mrb[172].mxu0 %v10726_v60 }
0x1741   :  { %7907 = vmatpush3.bf16.msra.mxu0 %v2917_v42  ;;  %3628 = vmatprep.mubr.bf16.mxu0 %v10728_v53 }
0x1742   :  { %3686 = vmatmul.mubr.bf16.gmra.mrb[188].mxu1 %v10727_v43  ;;  %7908 = vmatprep.subr.bf16.mxu0 %v2918_v1 }
0x1743   :  { %3693 = vmatprep.mubr.bf16.mxu1 %v10014_v35  ;;  %v10733_v35 = vld [vmem:[#allocation82_spill] sm:$0xff] }
0x1745   :  { %7909 = vmatpush3.bf16.msra.mxu0 %v2918_v1 }
0x1746   :  { %7910 = vmatprep.subr.bf16.mxu0 %v2919_v9 }
0x1748   :  { %3629 = vmatmul.mubr.bf16.gmra.mrb[176].mxu0 %v10729_v49 }
0x1749   :  { %7911 = vmatpush3.bf16.msra.mxu0 %v2919_v9  ;;  %3636 = vmatprep.mubr.bf16.mxu0 %v10731_v18 }
0x174a   :  { %3694 = vmatmul.mubr.bf16.gmra.mrb[192].mxu1 %v10730_v52  ;;  %7912 = vmatprep.subr.bf16.mxu0 %v2920_v16 }
0x174b   :  { %3701 = vmatprep.mubr.bf16.mxu1 %v10011_v5 }
0x174d   :  { %7913 = vmatpush3.bf16.msra.mxu0 %v2920_v16 }
0x174e   :  { %7914 = vmatprep.subr.bf16.mxu0 %v2921_v55 }
0x1750   :  { %3637 = vmatmul.mubr.bf16.gmra.mrb[180].mxu0 %v10732_v12 }
0x1751   :  { %7915 = vmatpush3.bf16.msra.mxu0 %v2921_v55  ;;  %7918 = vmatprep.mubr.bf16.mxu0 %v10032_v6 }
0x1752   :  { %3702 = vmatmul.mubr.bf16.gmra.mrb[196].mxu1 %v10733_v35  ;;  %7916 = vmatprep.subr.bf16.mxu0 %v2922_v62 }
0x1755   :  { %7917 = vmatpush3.bf16.msra.mxu0 %v2922_v62 }
0x1758   :  { %7919 = vmatmul.mubr.bf16.vlgmr.msra.gmra.mrb[184].mxu0 %v10030_v45 }
0x1759   :  { %7922 = vmatprep.mubr.bf16.mxu0 %v10039_v25 }
0x1760   :  { %7923 = vmatmul.mubr.bf16.gmra.mrb[188].mxu0 %v10037_v32 }
0x176b   :  { %v6677_v5 = vpop.f32.mrb[88].mxu0 }
0x176c   :  { %v6678_v27 = vpop.f32.mrb[89].mxu0 }
0x176d   :  { %v6717_v63 = vpop.f32.mrb[104].mxu1  ;;  %v6679_v33 = vadd.f32 %v6678_v27, %v6677_v5  ;;  %v6680_v56 = vpop.f32.mrb[90].mxu0 }
0x176e   :  { %v6718_v44 = vpop.f32.mrb[105].mxu1  ;;  %v6681_v13 = vpop.f32.mrb[91].mxu0 }
0x176f   :  { %v6719_v37 = vadd.f32 %v6718_v44, %v6717_v63  ;;  %v6720_v6 = vpop.f32.mrb[106].mxu1  ;;  %v2965_v48 = vadd.f32 %v6679_v33, %v6406_v47  ;;  %v6682_v45 = vadd.f32 %v6681_v13, %v6680_v56 }
0x1770   :  { %v6721_v51 = vpop.f32.mrb[107].mxu1 }
0x1771   :  { %v6722_v29 = vadd.f32 %v6721_v51, %v6720_v6  ;;  %v2968_v25 = vadd.f32 %v6682_v45, %v6406_v47  ;;  %v3030_v10 = vadd.f32 %v6719_v37, %v2965_v48 }
0x1773   :  { %v3033_v32 = vadd.f32 %v6722_v29, %v2968_v25  ;;  %v6683_v28 = vpop.f32.mrb[92].mxu0 }
0x1774   :  { %v6684_v34 = vpop.f32.mrb[93].mxu0 }
0x1775   :  { %v6723_v7 = vpop.f32.mrb[108].mxu1  ;;  %v6685_v23 = vadd.f32 %v6684_v34, %v6683_v28  ;;  %v6686_v2 = vpop.f32.mrb[94].mxu0 }
0x1776   :  { %v6724_v50 = vpop.f32.mrb[109].mxu1  ;;  %v6687_v30 = vpop.f32.mrb[95].mxu0 }
0x1777   :  { %v6725_v54 = vadd.f32 %v6724_v50, %v6723_v7  ;;  %v6726_v8 = vpop.f32.mrb[110].mxu1  ;;  %v2973_v38 = vadd.f32 %v6685_v23, %v6406_v47  ;;  %v6688_v3 = vadd.f32 %v6687_v30, %v6686_v2 }
0x1778   :  { %v6727_v19 = vpop.f32.mrb[111].mxu1 }
0x1779   :  { %v6728_v14 = vadd.f32 %v6727_v19, %v6726_v8  ;;  %v2976_v11 = vadd.f32 %v6688_v3, %v6406_v47  ;;  %v3038_v58 = vadd.f32 %v6725_v54, %v2973_v38 }
0x177b   :  { %v3041_v26 = vadd.f32 %v6728_v14, %v2976_v11  ;;  %v6689_v39 = vpop.f32.mrb[96].mxu0 }
0x177c   :  { %v6690_v21 = vpop.f32.mrb[97].mxu0 }
0x177d   :  { %v6729_v20 = vpop.f32.mrb[112].mxu1  ;;  %v6691_v46 = vadd.f32 %v6690_v21, %v6689_v39  ;;  %v6692_v24 = vpop.f32.mrb[98].mxu0 }
0x177e   :  { %v6730_v4 = vpop.f32.mrb[113].mxu1  ;;  %v6693_v40 = vpop.f32.mrb[99].mxu0 }
0x177f   :  { %v6731_v61 = vadd.f32 %v6730_v4, %v6729_v20  ;;  %v6732_v0 = vpop.f32.mrb[114].mxu1  ;;  %v2981_v31 = vadd.f32 %v6691_v46, %v6406_v47  ;;  %v6694_v59 = vadd.f32 %v6693_v40, %v6692_v24 }
0x1780   :  { %v6733_v41 = vpop.f32.mrb[115].mxu1 }
0x1781   :  { %v6734_v57 = vadd.f32 %v6733_v41, %v6732_v0  ;;  %v2984_v22 = vadd.f32 %v6694_v59, %v6406_v47  ;;  %v3046_v15 = vadd.f32 %v6731_v61, %v2981_v31 }
0x1783   :  { %v3049_v36 = vadd.f32 %v6734_v57, %v2984_v22  ;;  %v6695_v17 = vpop.f32.mrb[100].mxu0 }
0x1784   :  { %v6696_v1 = vpop.f32.mrb[101].mxu0 }
0x1785   :  { %v6735_v42 = vpop.f32.mrb[116].mxu1  ;;  %v6697_v43 = vadd.f32 %v6696_v1, %v6695_v17  ;;  %v6698_v53 = vpop.f32.mrb[102].mxu0 }
0x1786   :  { %v6736_v60 = vpop.f32.mrb[117].mxu1  ;;  %v6699_v49 = vpop.f32.mrb[103].mxu0 }
0x1787   :  { %v6737_v9 = vadd.f32 %v6736_v60, %v6735_v42  ;;  %v6738_v16 = vpop.f32.mrb[118].mxu1  ;;  %v2989_v18 = vadd.f32 %v6697_v43, %v6406_v47  ;;  %v6700_v55 = vadd.f32 %v6699_v49, %v6698_v53 }
0x1788   :  { %v6739_v52 = vpop.f32.mrb[119].mxu1 }
0x1789   :  { %v6740_v62 = vadd.f32 %v6739_v52, %v6738_v16  ;;  %v2992_v12 = vadd.f32 %v6700_v55, %v6406_v47  ;;  %v3054_v35 = vadd.f32 %v6737_v9, %v2989_v18 }
0x178b   :  { %v3057_v5 = vadd.f32 %v6740_v62, %v2992_v12  ;;  %v6757_v63 = vpop.f32.mrb[104].mxu0 }
0x178c   :  { %v6758_v44 = vpop.f32.mrb[105].mxu0 }
0x178d   :  { %v6797_v27 = vpop.f32.mrb[120].mxu1  ;;  %v6759_v56 = vadd.f32 %v6758_v44, %v6757_v63  ;;  %v6760_v37 = vpop.f32.mrb[106].mxu0 }
0x178e   :  { %v6798_v33 = vpop.f32.mrb[121].mxu1  ;;  %v6761_v51 = vpop.f32.mrb[107].mxu0 }
0x178f   :  { %v6799_v6 = vadd.f32 %v6798_v33, %v6797_v27  ;;  %v6800_v13 = vpop.f32.mrb[122].mxu1  ;;  %v3095_v45 = vadd.f32 %v6759_v56, %v3030_v10  ;;  %v6762_v29 = vadd.f32 %v6761_v51, %v6760_v37 }
0x1790   :  { %v6801_v48 = vpop.f32.mrb[123].mxu1 }
0x1791   :  { %v6802_v25 = vadd.f32 %v6801_v48, %v6800_v13  ;;  %v3098_v28 = vadd.f32 %v6762_v29, %v3033_v32  ;;  %v3160_v7 = vadd.f32 %v6799_v6, %v3095_v45 }
0x1793   :  { %v3163_v34 = vadd.f32 %v6802_v25, %v3098_v28  ;;  %v6763_v50 = vpop.f32.mrb[108].mxu0 }
0x1794   :  { %v6764_v23 = vpop.f32.mrb[109].mxu0 }
0x1795   :  { %v6803_v47 = vpop.f32.mrb[124].mxu1  ;;  %v6765_v54 = vadd.f32 %v6764_v23, %v6763_v50  ;;  %v6766_v8 = vpop.f32.mrb[110].mxu0 }
0x1796   :  { %v6804_v2 = vpop.f32.mrb[125].mxu1  ;;  %v6767_v38 = vpop.f32.mrb[111].mxu0 }
0x1797   :  { %v6805_v30 = vadd.f32 %v6804_v2, %v6803_v47  ;;  %v6806_v19 = vpop.f32.mrb[126].mxu1  ;;  %v3103_v14 = vadd.f32 %v6765_v54, %v3038_v58  ;;  %v6768_v11 = vadd.f32 %v6767_v38, %v6766_v8 }
0x1798   :  { %v6807_v3 = vpop.f32.mrb[127].mxu1 }
0x1799   :  { %v6808_v39 = vadd.f32 %v6807_v3, %v6806_v19  ;;  %v3106_v20 = vadd.f32 %v6768_v11, %v3041_v26  ;;  %v3168_v10 = vadd.f32 %v6805_v30, %v3103_v14 }
0x179b   :  { %v3171_v21 = vadd.f32 %v6808_v39, %v3106_v20  ;;  %v6769_v4 = vpop.f32.mrb[112].mxu0 }
0x179c   :  { %v6770_v46 = vpop.f32.mrb[113].mxu0 }
0x179d   :  { %v6809_v32 = vpop.f32.mrb[128].mxu1  ;;  %v6771_v61 = vadd.f32 %v6770_v46, %v6769_v4  ;;  %v6772_v0 = vpop.f32.mrb[114].mxu0 }
0x179e   :  { %v6810_v24 = vpop.f32.mrb[129].mxu1  ;;  %v6773_v31 = vpop.f32.mrb[115].mxu0 }
0x179f   :  { %v6811_v40 = vadd.f32 %v6810_v24, %v6809_v32  ;;  %v6812_v41 = vpop.f32.mrb[130].mxu1  ;;  %v3111_v57 = vadd.f32 %v6771_v61, %v3046_v15  ;;  %v6774_v22 = vadd.f32 %v6773_v31, %v6772_v0 }
0x17a0   :  { %v6813_v59 = vpop.f32.mrb[131].mxu1 }
0x17a1   :  { %v6814_v17 = vadd.f32 %v6813_v59, %v6812_v41  ;;  %v3114_v42 = vadd.f32 %v6774_v22, %v3049_v36  ;;  %v10144_v58 = vadd.f32 %v6811_v40, %v3111_v57  ;;  %v8227_v40 = vmov 0.0  }
0x17a2   :  { %7926 = vmatprep.subr.bf16.mxu1 %v8227_v40  ;;  %7938 = vmatprep.subr.bf16.mxu0 %v8227_v40 }
0x17a3   :  { %v10146_v1 = vadd.f32 %v6814_v17, %v3114_v42  ;;  %v6775_v26 = vpop.f32.mrb[116].mxu0  ;;  %7928 = vmatprep.mubr.msk.bf16.mxu1 %vm8228_vm1, %v8227_v40  ;;  %7940 = vmatprep.mubr.msk.bf16.mxu0 %vm8228_vm1, %v8227_v40 }
0x17a4   :  { %v6776_v43 = vpop.f32.mrb[117].mxu0 }
0x17a5   :  { %v6815_v60 = vpop.f32.mrb[132].mxu1  ;;  %v6777_v9 = vadd.f32 %v6776_v43, %v6775_v26  ;;  %v6778_v16 = vpop.f32.mrb[118].mxu0 }
0x17a6   :  { %v6816_v53 = vpop.f32.mrb[133].mxu1  ;;  %v6779_v18 = vpop.f32.mrb[119].mxu0 }
0x17a7   :  { %v6817_v49 = vadd.f32 %v6816_v53, %v6815_v60  ;;  %v6818_v52 = vpop.f32.mrb[134].mxu1  ;;  %v3119_v62 = vadd.f32 %v6777_v9, %v3054_v35  ;;  %v6780_v12 = vadd.f32 %v6779_v18, %v6778_v16 }
0x17a8   :  { %v6819_v55 = vpop.f32.mrb[135].mxu1 }
0x17a9   :  { %v6820_v15 = vadd.f32 %v6819_v55, %v6818_v52  ;;  %v3122_v63 = vadd.f32 %v6780_v12, %v3057_v5  ;;  %v10148_v27 = vadd.f32 %v6817_v49, %v3119_v62 }
0x17ab   :  { %v10150_v36 = vadd.f32 %v6820_v15, %v3122_v63  ;;  %v6837_v44 = vpop.f32.mrb[120].mxu0 }
0x17ac   :  { %v6838_v56 = vpop.f32.mrb[121].mxu0 }
0x17ad   :  { %v6877_v33 = vpop.f32.mrb[136].mxu1  ;;  %v6839_v6 = vadd.f32 %v6838_v56, %v6837_v44  ;;  %v6840_v13 = vpop.f32.mrb[122].mxu0 }
0x17ae   :  { %v6878_v37 = vpop.f32.mrb[137].mxu1  ;;  %v6841_v45 = vpop.f32.mrb[123].mxu0 }
0x17af   :  { %v6879_v51 = vadd.f32 %v6878_v37, %v6877_v33  ;;  %v6880_v48 = vpop.f32.mrb[138].mxu1  ;;  %v3225_v25 = vadd.f32 %v6839_v6, %v3160_v7  ;;  %v6842_v28 = vadd.f32 %v6841_v45, %v6840_v13 }
0x17b0   :  { %v6881_v29 = vpop.f32.mrb[139].mxu1 }
0x17b1   :  { %v6882_v35 = vadd.f32 %v6881_v29, %v6880_v48  ;;  %v3228_v50 = vadd.f32 %v6842_v28, %v3163_v34  ;;  %v10152_v47 = vadd.f32 %v6879_v51, %v3225_v25 }
0x17b3   :  { %v10154_v5 = vadd.f32 %v6882_v35, %v3228_v50  ;;  %v6843_v23 = vpop.f32.mrb[124].mxu0 }
0x17b4   :  { %v6844_v54 = vpop.f32.mrb[125].mxu0 }
0x17b5   :  { %v6883_v2 = vpop.f32.mrb[140].mxu1  ;;  %v6845_v30 = vadd.f32 %v6844_v54, %v6843_v23  ;;  %v6846_v19 = vpop.f32.mrb[126].mxu0 }
0x17b6   :  { %v6884_v8 = vpop.f32.mrb[141].mxu1  ;;  %v6847_v14 = vpop.f32.mrb[127].mxu0 }
0x17b7   :  { %v6885_v38 = vadd.f32 %v6884_v8, %v6883_v2  ;;  %v6886_v3 = vpop.f32.mrb[142].mxu1  ;;  %v3233_v39 = vadd.f32 %v6845_v30, %v3168_v10  ;;  %v6848_v20 = vadd.f32 %v6847_v14, %v6846_v19 }
0x17b8   :  { %v6887_v11 = vpop.f32.mrb[143].mxu1 }
0x17b9   :  { %v6888_v7 = vadd.f32 %v6887_v11, %v6886_v3  ;;  %v3236_v4 = vadd.f32 %v6848_v20, %v3171_v21  ;;  %v10156_v32 = vadd.f32 %v6885_v38, %v3233_v39 }
0x17bb   :  { %v10158_v34 = vadd.f32 %v6888_v7, %v3236_v4  ;;  %v6849_v46 = vpop.f32.mrb[128].mxu0 }
0x17bc   :  { %v6850_v61 = vpop.f32.mrb[129].mxu0 }
0x17bd   :  { %v6889_v24 = vpop.f32.mrb[144].mxu1  ;;  %v6851_v41 = vadd.f32 %v6850_v61, %v6849_v46  ;;  %v6852_v31 = vpop.f32.mrb[130].mxu0 }
0x17be   :  { %v6890_v0 = vpop.f32.mrb[145].mxu1  ;;  %v6853_v57 = vpop.f32.mrb[131].mxu0 }
0x17bf   :  { %v6891_v59 = vadd.f32 %v6890_v0, %v6889_v24  ;;  %v6892_v10 = vpop.f32.mrb[146].mxu1  ;;  %v3241_v21 = vadd.f32 %v6851_v41, %v10144_v58  ;;  %v6854_v17 = vadd.f32 %v6853_v57, %v6852_v31 }
0x17c0   :  { %v6893_v22 = vpop.f32.mrb[147].mxu1 }
0x17c1   :  { %v6894_v42 = vadd.f32 %v6893_v22, %v6892_v10  ;;  %v3244_v26 = vadd.f32 %v6854_v17, %v10146_v1  ;;  %v10164_v60 = vadd.f32 %v6891_v59, %v3241_v21 }
0x17c3   :  { %v10166_v43 = vadd.f32 %v6894_v42, %v3244_v26  ;;  %v6855_v53 = vpop.f32.mrb[132].mxu0 }
0x17c4   :  { %v6856_v16 = vpop.f32.mrb[133].mxu0 }
0x17c5   :  { %v6895_v9 = vpop.f32.mrb[148].mxu1  ;;  %v6857_v52 = vadd.f32 %v6856_v16, %v6855_v53  ;;  %v6858_v18 = vpop.f32.mrb[134].mxu0 }
0x17c6   :  { %v6896_v49 = vpop.f32.mrb[149].mxu1  ;;  %v6859_v12 = vpop.f32.mrb[135].mxu0 }
0x17c7   :  { %v6897_v55 = vadd.f32 %v6896_v49, %v6895_v9  ;;  %v6898_v62 = vpop.f32.mrb[150].mxu1  ;;  %v3249_v58 = vadd.f32 %v6857_v52, %v10148_v27  ;;  %v6860_v63 = vadd.f32 %v6859_v12, %v6858_v18 }
0x17c8   :  { %v6899_v15 = vpop.f32.mrb[151].mxu1 }
0x17c9   :  { %v6900_v44 = vadd.f32 %v6899_v15, %v6898_v62  ;;  %v3252_v1 = vadd.f32 %v6860_v63, %v10150_v36  ;;  %v10170_v33 = vadd.f32 %v6897_v55, %v3249_v58 }
0x17cb   :  { %v10172_v56 = vadd.f32 %v6900_v44, %v3252_v1  ;;  %v6917_v37 = vpop.f32.mrb[136].mxu0 }
0x17cc   :  { %v6918_v13 = vpop.f32.mrb[137].mxu0 }
0x17cd   :  { %v6957_v6 = vpop.f32.mrb[152].mxu1  ;;  %v6919_v27 = vadd.f32 %v6918_v13, %v6917_v37  ;;  %v6920_v48 = vpop.f32.mrb[138].mxu0 }
0x17ce   :  { %v6958_v51 = vpop.f32.mrb[153].mxu1  ;;  %v6921_v36 = vpop.f32.mrb[139].mxu0 }
0x17cf   :  { %v6959_v45 = vadd.f32 %v6958_v51, %v6957_v6  ;;  %v6960_v29 = vpop.f32.mrb[154].mxu1  ;;  %v3355_v28 = vadd.f32 %v6919_v27, %v10152_v47  ;;  %v6922_v35 = vadd.f32 %v6921_v36, %v6920_v48 }
0x17d0   :  { %v6961_v25 = vpop.f32.mrb[155].mxu1 }
0x17d1   :  { %v6962_v50 = vadd.f32 %v6961_v25, %v6960_v29  ;;  %v3358_v23 = vadd.f32 %v6922_v35, %v10154_v5  ;;  %v3420_v2 = vadd.f32 %v6959_v45, %v3355_v28 }
0x17d3   :  { %v3423_v54 = vadd.f32 %v6962_v50, %v3358_v23  ;;  %v6923_v8 = vpop.f32.mrb[140].mxu0 }
0x17d4   :  { %v6924_v19 = vpop.f32.mrb[141].mxu0 }
0x17d5   :  { %v6963_v30 = vpop.f32.mrb[156].mxu1  ;;  %v6925_v3 = vadd.f32 %v6924_v19, %v6923_v8  ;;  %v6926_v14 = vpop.f32.mrb[142].mxu0 }
0x17d6   :  { %v6964_v38 = vpop.f32.mrb[157].mxu1  ;;  %v6927_v20 = vpop.f32.mrb[143].mxu0 }
0x17d7   :  { %v6965_v11 = vadd.f32 %v6964_v38, %v6963_v30  ;;  %v6966_v39 = vpop.f32.mrb[158].mxu1  ;;  %v3363_v4 = vadd.f32 %v6925_v3, %v10156_v32  ;;  %v6928_v46 = vadd.f32 %v6927_v20, %v6926_v14 }
0x17d8   :  { %v6967_v7 = vpop.f32.mrb[159].mxu1 }
0x17d9   :  { %v6968_v47 = vadd.f32 %v6967_v7, %v6966_v39  ;;  %v3366_v24 = vadd.f32 %v6928_v46, %v10158_v34  ;;  %v3428_v61 = vadd.f32 %v6965_v11, %v3363_v4 }
0x17db   :  { %v3431_v5 = vadd.f32 %v6968_v47, %v3366_v24  ;;  %v6929_v0 = vpop.f32.mrb[144].mxu0 }
0x17dc   :  { %v6930_v31 = vpop.f32.mrb[145].mxu0 }
0x17dd   :  { %v6969_v41 = vpop.f32.mrb[160].mxu1  ;;  %v6931_v10 = vadd.f32 %v6930_v31, %v6929_v0  ;;  %v6932_v57 = vpop.f32.mrb[146].mxu0 }
0x17de   :  { %v6970_v59 = vpop.f32.mrb[161].mxu1  ;;  %v6933_v17 = vpop.f32.mrb[147].mxu0 }
0x17df   :  { %v6971_v22 = vadd.f32 %v6970_v59, %v6969_v41  ;;  %v6972_v21 = vpop.f32.mrb[162].mxu1  ;;  %v3371_v26 = vadd.f32 %v6931_v10, %v10164_v60  ;;  %v6934_v53 = vadd.f32 %v6933_v17, %v6932_v57 }
0x17e0   :  { %v6973_v42 = vpop.f32.mrb[163].mxu1 }
0x17e1   :  { %v6974_v32 = vadd.f32 %v6973_v42, %v6972_v21  ;;  %v3374_v9 = vadd.f32 %v6934_v53, %v10166_v43  ;;  %v3436_v16 = vadd.f32 %v6971_v22, %v3371_v26 }
0x17e3   :  { %v3439_v34 = vadd.f32 %v6974_v32, %v3374_v9  ;;  %v6935_v49 = vpop.f32.mrb[148].mxu0 }
0x17e4   :  { %v6936_v18 = vpop.f32.mrb[149].mxu0 }
0x17e5   :  { %v6975_v52 = vpop.f32.mrb[164].mxu1  ;;  %v6937_v62 = vadd.f32 %v6936_v18, %v6935_v49  ;;  %v6938_v12 = vpop.f32.mrb[150].mxu0 }
0x17e6   :  { %v6976_v55 = vpop.f32.mrb[165].mxu1  ;;  %v6939_v63 = vpop.f32.mrb[151].mxu0 }
0x17e7   :  { %v6977_v15 = vadd.f32 %v6976_v55, %v6975_v52  ;;  %v6978_v58 = vpop.f32.mrb[166].mxu1  ;;  %v3379_v1 = vadd.f32 %v6937_v62, %v10170_v33  ;;  %v6940_v37 = vadd.f32 %v6939_v63, %v6938_v12 }
0x17e8   :  { %v6979_v44 = vpop.f32.mrb[167].mxu1 }
0x17e9   :  { %v6980_v60 = vadd.f32 %v6979_v44, %v6978_v58  ;;  %v3382_v6 = vadd.f32 %v6940_v37, %v10172_v56  ;;  %v3444_v13 = vadd.f32 %v6977_v15, %v3379_v1 }
0x17eb   :  { %v3447_v43 = vadd.f32 %v6980_v60, %v3382_v6  ;;  %v6997_v51 = vpop.f32.mrb[152].mxu0 }
0x17ec   :  { %v6998_v48 = vpop.f32.mrb[153].mxu0 }
0x17ed   :  { %v7037_v27 = vpop.f32.mrb[168].mxu1  ;;  %v6999_v29 = vadd.f32 %v6998_v48, %v6997_v51  ;;  %v7000_v36 = vpop.f32.mrb[154].mxu0 }
0x17ee   :  { %v7038_v45 = vpop.f32.mrb[169].mxu1  ;;  %v7001_v35 = vpop.f32.mrb[155].mxu0 }
0x17ef   :  { %v7039_v25 = vadd.f32 %v7038_v45, %v7037_v27  ;;  %v7040_v28 = vpop.f32.mrb[170].mxu1  ;;  %v3485_v23 = vadd.f32 %v6999_v29, %v3420_v2  ;;  %v7002_v8 = vadd.f32 %v7001_v35, %v7000_v36 }
0x17f0   :  { %v7041_v50 = vpop.f32.mrb[171].mxu1 }
0x17f1   :  { %v7042_v30 = vadd.f32 %v7041_v50, %v7040_v28  ;;  %v3488_v33 = vadd.f32 %v7002_v8, %v3423_v54  ;;  %v3550_v19 = vadd.f32 %v7039_v25, %v3485_v23 }
0x17f3   :  { %v3553_v38 = vadd.f32 %v7042_v30, %v3488_v33  ;;  %v7003_v3 = vpop.f32.mrb[156].mxu0 }
0x17f4   :  { %v7004_v14 = vpop.f32.mrb[157].mxu0 }
0x17f5   :  { %v7043_v56 = vpop.f32.mrb[172].mxu1  ;;  %v7005_v39 = vadd.f32 %v7004_v14, %v7003_v3  ;;  %v7006_v20 = vpop.f32.mrb[158].mxu0 }
0x17f6   :  { %v7044_v11 = vpop.f32.mrb[173].mxu1  ;;  %v7007_v46 = vpop.f32.mrb[159].mxu0 }
0x17f7   :  { %v7045_v7 = vadd.f32 %v7044_v11, %v7043_v56  ;;  %v7046_v4 = vpop.f32.mrb[174].mxu1  ;;  %v3493_v24 = vadd.f32 %v7005_v39, %v3428_v61  ;;  %v7008_v0 = vadd.f32 %v7007_v46, %v7006_v20 }
0x17f8   :  { %v7047_v47 = vpop.f32.mrb[175].mxu1 }
0x17f9   :  { %v7048_v41 = vadd.f32 %v7047_v47, %v7046_v4  ;;  %v3496_v31 = vadd.f32 %v7008_v0, %v3431_v5  ;;  %v3558_v2 = vadd.f32 %v7045_v7, %v3493_v24 }
0x17fb   :  { %v3561_v59 = vadd.f32 %v7048_v41, %v3496_v31  ;;  %v7009_v10 = vpop.f32.mrb[160].mxu0 }
0x17fc   :  { %v7010_v57 = vpop.f32.mrb[161].mxu0 }
0x17fd   :  { %v7049_v54 = vpop.f32.mrb[176].mxu1  ;;  %v7011_v21 = vadd.f32 %v7010_v57, %v7009_v10  ;;  %v7012_v17 = vpop.f32.mrb[162].mxu0 }
0x17fe   :  { %v7050_v22 = vpop.f32.mrb[177].mxu1  ;;  %v7013_v53 = vpop.f32.mrb[163].mxu0 }
0x17ff   :  { %v7051_v42 = vadd.f32 %v7050_v22, %v7049_v54  ;;  %v7052_v26 = vpop.f32.mrb[178].mxu1  ;;  %v3501_v9 = vadd.f32 %v7011_v21, %v3436_v16  ;;  %v7014_v49 = vadd.f32 %v7013_v53, %v7012_v17 }
0x1800   :  { %v7053_v32 = vpop.f32.mrb[179].mxu1 }
0x1801   :  { %v7054_v52 = vadd.f32 %v7053_v32, %v7052_v26  ;;  %v3504_v18 = vadd.f32 %v7014_v49, %v3439_v34  ;;  %v3566_v61 = vadd.f32 %v7051_v42, %v3501_v9 }
0x1803   :  { %v3569_v55 = vadd.f32 %v7054_v52, %v3504_v18  ;;  %v7015_v62 = vpop.f32.mrb[164].mxu0 }
0x1804   :  { %v7016_v12 = vpop.f32.mrb[165].mxu0 }
0x1805   :  { %v7055_v5 = vpop.f32.mrb[180].mxu1  ;;  %v7017_v58 = vadd.f32 %v7016_v12, %v7015_v62  ;;  %v7018_v63 = vpop.f32.mrb[166].mxu0 }
0x1806   :  { %v7056_v15 = vpop.f32.mrb[181].mxu1  ;;  %v7019_v37 = vpop.f32.mrb[167].mxu0 }
0x1807   :  { %v7057_v44 = vadd.f32 %v7056_v15, %v7055_v5  ;;  %v7058_v1 = vpop.f32.mrb[182].mxu1  ;;  %v3509_v6 = vadd.f32 %v7017_v58, %v3444_v13  ;;  %v7020_v51 = vadd.f32 %v7019_v37, %v7018_v63 }
0x1808   :  { %v7059_v60 = vpop.f32.mrb[183].mxu1 }
0x1809   :  { %v7060_v27 = vadd.f32 %v7059_v60, %v7058_v1  ;;  %v3512_v48 = vadd.f32 %v7020_v51, %v3447_v43  ;;  %v3574_v16 = vadd.f32 %v7057_v44, %v3509_v6 }
0x180b   :  { %v3577_v45 = vadd.f32 %v7060_v27, %v3512_v48  ;;  %v7077_v29 = vpop.f32.mrb[168].mxu0 }
0x180c   :  { %v7078_v36 = vpop.f32.mrb[169].mxu0 }
0x180d   :  { %v7117_v34 = vpop.f32.mrb[184].mxu1  ;;  %v7079_v28 = vadd.f32 %v7078_v36, %v7077_v29  ;;  %v7080_v35 = vpop.f32.mrb[170].mxu0 }
0x180e   :  { %v7118_v25 = vpop.f32.mrb[185].mxu1  ;;  %v7081_v8 = vpop.f32.mrb[171].mxu0 }
0x180f   :  { %v7119_v50 = vadd.f32 %v7118_v25, %v7117_v34  ;;  %v7120_v23 = vpop.f32.mrb[186].mxu1  ;;  %v3615_v33 = vadd.f32 %v7079_v28, %v3550_v19  ;;  %v7082_v3 = vadd.f32 %v7081_v8, %v7080_v35 }
0x1810   :  { %v7121_v30 = vpop.f32.mrb[187].mxu1 }
0x1811   :  { %v7122_v56 = vadd.f32 %v7121_v30, %v7120_v23  ;;  %v3618_v14 = vadd.f32 %v7082_v3, %v3553_v38  ;;  %v3680_v13 = vadd.f32 %v7119_v50, %v3615_v33 }
0x1813   :  { %v7083_v11 = vpop.f32.mrb[172].mxu0  ;;  %v3683_v43 = vadd.f32 %v7122_v56, %v3618_v14 }
0x1814   :  { %v7084_v20 = vpop.f32.mrb[173].mxu0 }
0x1815   :  { %v7123_v39 = vpop.f32.mrb[188].mxu1  ;;  %v7085_v4 = vadd.f32 %v7084_v20, %v7083_v11  ;;  %v7086_v46 = vpop.f32.mrb[174].mxu0 }
0x1816   :  { %v7124_v7 = vpop.f32.mrb[189].mxu1  ;;  %v7087_v0 = vpop.f32.mrb[175].mxu0 }
0x1817   :  { %v7125_v47 = vadd.f32 %v7124_v7, %v7123_v39  ;;  %v7126_v24 = vpop.f32.mrb[190].mxu1  ;;  %v3623_v31 = vadd.f32 %v7085_v4, %v3558_v2  ;;  %v7088_v10 = vadd.f32 %v7087_v0, %v7086_v46 }
0x1818   :  { %v7127_v41 = vpop.f32.mrb[191].mxu1 }
0x1819   :  { %v7128_v54 = vadd.f32 %v7127_v41, %v7126_v24  ;;  %v3626_v57 = vadd.f32 %v7088_v10, %v3561_v59  ;;  %v3688_v19 = vadd.f32 %v7125_v47, %v3623_v31 }
0x181b   :  { %v7089_v22 = vpop.f32.mrb[176].mxu0  ;;  %v3691_v38 = vadd.f32 %v7128_v54, %v3626_v57 }
0x181c   :  { %v7090_v17 = vpop.f32.mrb[177].mxu0 }
0x181d   :  { %v7129_v21 = vpop.f32.mrb[192].mxu1  ;;  %v7091_v26 = vadd.f32 %v7090_v17, %v7089_v22  ;;  %v7092_v53 = vpop.f32.mrb[178].mxu0 }
0x181e   :  { %v7130_v42 = vpop.f32.mrb[193].mxu1  ;;  %v7093_v49 = vpop.f32.mrb[179].mxu0 }
0x181f   :  { %v7131_v32 = vadd.f32 %v7130_v42, %v7129_v21  ;;  %v7132_v9 = vpop.f32.mrb[194].mxu1  ;;  %v3631_v18 = vadd.f32 %v7091_v26, %v3566_v61  ;;  %v7094_v62 = vadd.f32 %v7093_v49, %v7092_v53  ;;  %v10191_v49 = vld [vmem:[%s10544_s2] sm:$0xff]  }
0x1820   :  { %v7133_v52 = vpop.f32.mrb[195].mxu1 }
0x1821   :  { %v7134_v5 = vadd.f32 %v7133_v52, %v7132_v9  ;;  %v3634_v12 = vadd.f32 %v7094_v62, %v3569_v55  ;;  %v3696_v2 = vadd.f32 %v7131_v32, %v3631_v18 }
0x1823   :  { %v7095_v15 = vpop.f32.mrb[180].mxu0  ;;  %v3699_v59 = vadd.f32 %v7134_v5, %v3634_v12 }
0x1824   :  { %v7096_v63 = vpop.f32.mrb[181].mxu0 }
0x1825   :  { %v7135_v58 = vpop.f32.mrb[196].mxu1  ;;  %v7097_v1 = vadd.f32 %v7096_v63, %v7095_v15  ;;  %v7098_v37 = vpop.f32.mrb[182].mxu0 }
0x1826   :  { %v7136_v44 = vpop.f32.mrb[197].mxu1  ;;  %v7099_v51 = vpop.f32.mrb[183].mxu0 }
0x1827   :  { %v7137_v60 = vadd.f32 %v7136_v44, %v7135_v58  ;;  %v7138_v6 = vpop.f32.mrb[198].mxu1  ;;  %v3639_v48 = vadd.f32 %v7097_v1, %v3574_v16  ;;  %v7100_v29 = vadd.f32 %v7099_v51, %v7098_v37 }
0x1828   :  { %v7139_v27 = vpop.f32.mrb[199].mxu1 }
0x1829   :  { %v7140_v34 = vadd.f32 %v7139_v27, %v7138_v6  ;;  %v3642_v36 = vadd.f32 %v7100_v29, %v3577_v45  ;;  %v3704_v61 = vadd.f32 %v7137_v60, %v3639_v48 }
0x182b   :  { %v7920_v25 = vpop.f32.mrb[184].mxu0  ;;  %v3707_v28 = vadd.f32 %v7140_v34, %v3642_v36 }
0x182c   :  { %v3753_v55 = vadd.f32 %v7920_v25, %v3688_v19  ;;  %v3744_v35 = vpop.f32.mrb[185].mxu0 }
0x182d   :  { %v3745_v50 = vadd.f32 %v3744_v35, %v3680_v13  ;;  %v7921_v23 = vpop.f32.mrb[186].mxu0 }
0x182e   :  { %v3777_v8 = vmax.f32 %v3753_v55, 0.0  ;;  %v3756_v30 = vadd.f32 %v7921_v23, %v3691_v38  ;;  %v3747_v33 = vpop.f32.mrb[187].mxu0 }
0x182f   :  { %v3775_v3 = vmax.f32 %v3745_v50, 0.0  ;;  %v3748_v56 = vadd.f32 %v3747_v33, %v3683_v43 }
0x1830   :  { %3785 = vst [vmem:[#allocation7 + $0x10] sm:$0xff] %v3777_v8  ;;  %v3778_v14 = vmax.f32 %v3756_v30, 0.0 }
0x1831   :  { %3783 = vst [vmem:[#allocation7] sm:$0xff] %v3775_v3  ;;  %v3776_v11 = vmax.f32 %v3748_v56, 0.0 }
0x1832   :  { %3786 = vst [vmem:[#allocation7 + $0x18] sm:$0xff] %v3778_v14 }
0x1833   :  { %3784 = vst [vmem:[#allocation7 + $0x8] sm:$0xff] %v3776_v11  ;;  %v7924_v16 = vpop.f32.mrb[188].mxu0 }
0x1834   :  { %v3769_v45 = vadd.f32 %v7924_v16, %v3704_v61  ;;  %v3760_v39 = vpop.f32.mrb[189].mxu0 }
0x1835   :  { %v3761_v20 = vadd.f32 %v3760_v39, %v3696_v2  ;;  %v7925_v7 = vpop.f32.mrb[190].mxu0 }
0x1836   :  { %v3781_v4 = vmax.f32 %v3769_v45, 0.0  ;;  %v3772_v46 = vadd.f32 %v7925_v7, %v3707_v28  ;;  %v3763_v13 = vpop.f32.mrb[191].mxu0 }
0x1837   :  { %v3779_v47 = vmax.f32 %v3761_v20, 0.0  ;;  %v3764_v24 = vadd.f32 %v3763_v13, %v3699_v59 }
0x1838   :  { %3789 = vst [vmem:[#allocation7 + $0x30] sm:$0xff] %v3781_v4  ;;  %v3782_v0 = vmax.f32 %v3772_v46, 0.0 }
0x1839   :  { %3787 = vst [vmem:[#allocation7 + $0x20] sm:$0xff] %v3779_v47  ;;  %v3780_v43 = vmax.f32 %v3764_v24, 0.0 }
0x183a   :  { %3790 = vst [vmem:[#allocation7 + $0x38] sm:$0xff] %v3782_v0  ;;  %v3791_v41 = vld [vmem:[#allocation7] ss:$4 sm:$0xff]  ;;  %v3795_v31 = vld [vmem:[#allocation7 + $0x1] ss:$4 sm:$0xff] }
0x183b   :  { %3788 = vst [vmem:[#allocation7 + $0x28] sm:$0xff] %v3780_v43  ;;  %v3798_v10 = vmax.f32 %v3791_v41, %v3795_v31  ;;  %v3801_v19 = vld [vmem:[#allocation7 + $0x2] ss:$4 sm:$0xff]  ;;  %v3807_v42 = vld [vmem:[#allocation7 + $0x3] ss:$4 sm:$0xff] }
0x183d   :  { %v3804_v21 = vmax.f32 %v3798_v10, %v3801_v19 }
0x183f   :  { %v3810_v53 = vmax.f32 %v3804_v21, %v3807_v42 }
0x1842   :  { %v3793_v54 = vld [vmem:[#allocation7 + $0x20] ss:$4 sm:$0xff]  ;;  %v3797_v57 = vld [vmem:[#allocation7 + $0x21] ss:$4 sm:$0xff]  ;;  %v3803_v38 = vld [vmem:[#allocation7 + $0x22] ss:$4 sm:$0xff] }
0x1843   :  { %v3799_v22 = vmax.f32 %v3793_v54, %v3797_v57  ;;  %v3809_v26 = vld [vmem:[#allocation7 + $0x23] ss:$4 sm:$0xff] }
0x1845   :  { %v3805_v17 = vmax.f32 %v3799_v22, %v3803_v38 }
0x1847   :  { %v3811_v32 = vmax.f32 %v3805_v17, %v3809_v26 }
0x1849   :  { %v10186_v9 = vpack.c.bf16 %v3811_v32, %v3810_v53 }
0x184b   :  { %7927 = vmatpush3.bf16.msra.mxu1 %v10186_v9 }
0x184c   :  { %7932 = vmatprep.subr.bf16.mxu1 %v8227_v40 }
0x184e   :  { %7929 = vmatmul.mubr.msk.bf16.vlgmr.msra.gmra.mrb[200].mxu1 %vm3821_vm2, %v10191_v49 }
0x184f   :  { %7934 = vmatprep.mubr.msk.bf16.mxu1 %vm8228_vm1, %v8227_v40 }
0x1921   :  { %v3859_v52 = vpop.f32.mrb[200].mxu1 }
0x1922   :  { %v7930_v18 = vpop.f32.mrb[201].mxu1  ;;  %v3866_v5 = vmul.f32 0.5, %v3859_v52 }
0x1923   :  { %v3862_v62 = vpop.f32.mrb[202].mxu1 }
0x1924   :  { %v3867_v12 = vmul.f32 0.5, %v3862_v62  ;;  %v7931_v2 = vpop.f32.mrb[203].mxu1 }
0x1926   :  { %v10199_v15 = vpack.c.bf16 %v3867_v12, %v3866_v5 }
0x1928   :  { %7933 = vmatpush3.bf16.msra.mxu1 %v10199_v15 }
0x1929   :  { %7944 = vmatprep.subr.bf16.mxu1 %v8227_v40 }
0x192b   :  { %7935 = vmatmul.mubr.msk.bf16.vlgmr.msra.gmra.mrb[204].mxu1 %vm3821_vm2, %v10191_v49 }
0x192c   :  { %7946 = vmatprep.mubr.msk.bf16.mxu1 %vm8228_vm1, %v8227_v40 }
0x19fe   :  { %v3904_v58 = vpop.f32.mrb[204].mxu1 }
0x19ff   :  { %v7936_v59 = vpop.f32.mrb[205].mxu1  ;;  %v3911_v44 = vsub.f32 %v3904_v58, %v3810_v53 }
0x1a00   :  { %v3907_v63 = vpop.f32.mrb[206].mxu1 }
0x1a01   :  { %v3912_v1 = vsub.f32 %v3907_v63, %v3811_v32  ;;  %v7937_v37 = vpop.f32.mrb[207].mxu1 }
0x1a03   :  { %v10207_v60 = vpack.c.bf16 %v3912_v1, %v3911_v44 }
0x1a05   :  { %7939 = vmatpush3.bf16.msra.mxu0 %v10207_v60 }
0x1a06   :  { %7950 = vmatprep.subr.bf16.mxu0 %v8227_v40 }
0x1a08   :  { %7941 = vmatmul.mubr.msk.bf16.vlgmr.msra.gmra.mrb[192].mxu0 %vm3821_vm2, %v10191_v49 }
0x1a09   :  { %7952 = vmatprep.mubr.msk.bf16.mxu0 %vm8228_vm1, %v8227_v40 }
0x1adb   :  { %v3949_v6 = vpop.f32.mrb[192].mxu0 }
0x1adc   :  { %v7942_v51 = vpop.f32.mrb[193].mxu0  ;;  %v3956_v48 = vsub.f32 %v3949_v6, %v3866_v5 }
0x1add   :  { %v3952_v27 = vpop.f32.mrb[194].mxu0 }
0x1ade   :  { %v3957_v29 = vsub.f32 %v3952_v27, %v3867_v12  ;;  %v7943_v34 = vpop.f32.mrb[195].mxu0 }
0x1ae0   :  { %v10215_v36 = vpack.c.bf16 %v3957_v29, %v3956_v48 }
0x1ae2   :  { %7945 = vmatpush3.bf16.msra.mxu1 %v10215_v36 }
0x1ae3   :  { %7956 = vmatprep.subr.bf16.mxu1 %v8227_v40 }
0x1ae5   :  { %7947 = vmatmul.mubr.msk.bf16.vlgmr.msra.gmra.mrb[208].mxu1 %vm3821_vm2, %v10191_v49 }
0x1ae6   :  { %7958 = vmatprep.mubr.msk.bf16.mxu1 %vm8228_vm1, %v8227_v40 }
0x1bb8   :  { %v3994_v61 = vpop.f32.mrb[208].mxu1 }
0x1bb9   :  { %v7948_v25 = vpop.f32.mrb[209].mxu1  ;;  %v4001_v55 = vsub.f32 %v3994_v61, %v3911_v44 }
0x1bba   :  { %v3997_v28 = vpop.f32.mrb[210].mxu1 }
0x1bbb   :  { %v4002_v35 = vsub.f32 %v3997_v28, %v3912_v1  ;;  %v7949_v50 = vpop.f32.mrb[211].mxu1 }
0x1bbd   :  { %v10223_v23 = vpack.c.bf16 %v4002_v35, %v4001_v55 }
0x1bbf   :  { %7951 = vmatpush3.bf16.msra.mxu0 %v10223_v23 }
0x1bc0   :  { %7962 = vmatprep.subr.bf16.mxu0 %v8227_v40 }
0x1bc2   :  { %7953 = vmatmul.mubr.msk.bf16.vlgmr.msra.gmra.mrb[196].mxu0 %vm3821_vm2, %v10191_v49 }
0x1bc3   :  { %7964 = vmatprep.mubr.msk.bf16.mxu0 %vm8228_vm1, %v8227_v40 }
0x1c95   :  { %v4039_v8 = vpop.f32.mrb[196].mxu0 }
0x1c96   :  { %v7954_v30 = vpop.f32.mrb[197].mxu0  ;;  %v4046_v3 = vsub.f32 %v4039_v8, %v3956_v48 }
0x1c97   :  { %v4042_v33 = vpop.f32.mrb[198].mxu0 }
0x1c98   :  { %v4047_v56 = vsub.f32 %v4042_v33, %v3957_v29  ;;  %v7955_v14 = vpop.f32.mrb[199].mxu0 }
0x1c9a   :  { %v10231_v11 = vpack.c.bf16 %v4047_v56, %v4046_v3 }
0x1c9c   :  { %7957 = vmatpush3.bf16.msra.mxu1 %v10231_v11 }
0x1c9d   :  { %7968 = vmatprep.subr.bf16.mxu1 %v8227_v40 }
0x1c9f   :  { %7959 = vmatmul.mubr.msk.bf16.vlgmr.msra.gmra.mrb[212].mxu1 %vm3821_vm2, %v10191_v49 }
0x1ca0   :  { %7970 = vmatprep.mubr.msk.bf16.mxu1 %vm8228_vm1, %v8227_v40 }
0x1d72   :  { %v4084_v16 = vpop.f32.mrb[212].mxu1 }
0x1d73   :  { %v7960_v45 = vpop.f32.mrb[213].mxu1  ;;  %v4091_v20 = vsub.f32 %v4084_v16, %v4001_v55 }
0x1d74   :  { %v4087_v39 = vpop.f32.mrb[214].mxu1 }
0x1d75   :  { %v4092_v7 = vsub.f32 %v4087_v39, %v4002_v35  ;;  %v7961_v4 = vpop.f32.mrb[215].mxu1 }
0x1d77   :  { %v10239_v46 = vpack.c.bf16 %v4092_v7, %v4091_v20 }
0x1d79   :  { %7963 = vmatpush3.bf16.msra.mxu0 %v10239_v46 }
0x1d7a   :  { %7974 = vmatprep.subr.bf16.mxu0 %v8227_v40 }
0x1d7c   :  { %7965 = vmatmul.mubr.msk.bf16.vlgmr.msra.gmra.mrb[200].mxu0 %vm3821_vm2, %v10191_v49 }
0x1d7d   :  { %7976 = vmatprep.mubr.msk.bf16.mxu0 %vm8228_vm1, %v8227_v40 }
0x1e4f   :  { %v4129_v13 = vpop.f32.mrb[200].mxu0 }
0x1e50   :  { %v7966_v47 = vpop.f32.mrb[201].mxu0  ;;  %v4136_v0 = vsub.f32 %v4129_v13, %v4046_v3 }
0x1e51   :  { %v4132_v24 = vpop.f32.mrb[202].mxu0 }
0x1e52   :  { %v4137_v43 = vsub.f32 %v4132_v24, %v4047_v56  ;;  %v7967_v41 = vpop.f32.mrb[203].mxu0 }
0x1e54   :  { %v10247_v31 = vpack.c.bf16 %v4137_v43, %v4136_v0 }
0x1e56   :  { %7969 = vmatpush3.bf16.msra.mxu1 %v10247_v31 }
0x1e57   :  { %7980 = vmatprep.subr.bf16.mxu1 %v8227_v40 }
0x1e59   :  { %7971 = vmatmul.mubr.msk.bf16.vlgmr.msra.gmra.mrb[216].mxu1 %vm3821_vm2, %v10191_v49 }
0x1e5a   :  { %7982 = vmatprep.mubr.msk.bf16.mxu1 %vm8228_vm1, %v8227_v40 }
0x1f2c   :  { %v4174_v10 = vpop.f32.mrb[216].mxu1 }
0x1f2d   :  { %v7972_v54 = vpop.f32.mrb[217].mxu1  ;;  %v4181_v19 = vsub.f32 %v4174_v10, %v4091_v20 }
0x1f2e   :  { %v4177_v57 = vpop.f32.mrb[218].mxu1 }
0x1f2f   :  { %v4182_v22 = vsub.f32 %v4177_v57, %v4092_v7  ;;  %v7973_v21 = vpop.f32.mrb[219].mxu1 }
0x1f31   :  { %v10255_v38 = vpack.c.bf16 %v4182_v22, %v4181_v19 }
0x1f33   :  { %7975 = vmatpush3.bf16.msra.mxu0 %v10255_v38 }
0x1f34   :  { %7986 = vmatprep.subr.bf16.mxu0 %v8227_v40 }
0x1f36   :  { %7977 = vmatmul.mubr.msk.bf16.vlgmr.msra.gmra.mrb[204].mxu0 %vm3821_vm2, %v10191_v49 }
0x1f37   :  { %7988 = vmatprep.mubr.msk.bf16.mxu0 %vm8228_vm1, %v8227_v40 }
0x2009   :  { %v4219_v17 = vpop.f32.mrb[204].mxu0 }
0x200a   :  { %v7978_v42 = vpop.f32.mrb[205].mxu0  ;;  %v4226_v53 = vsub.f32 %v4219_v17, %v4136_v0 }
0x200b   :  { %v4222_v26 = vpop.f32.mrb[206].mxu0 }
0x200c   :  { %v4227_v32 = vsub.f32 %v4222_v26, %v4137_v43  ;;  %v7979_v52 = vpop.f32.mrb[207].mxu0 }
0x200e   :  { %v10263_v18 = vpack.c.bf16 %v4227_v32, %v4226_v53 }
0x2010   :  { %7981 = vmatpush3.bf16.msra.mxu1 %v10263_v18 }
0x2011   :  { %7992 = vmatprep.subr.bf16.mxu1 %v8227_v40 }
0x2013   :  { %7983 = vmatmul.mubr.msk.bf16.vlgmr.msra.gmra.mrb[220].mxu1 %vm3821_vm2, %v10191_v49 }
0x2014   :  { %7994 = vmatprep.mubr.msk.bf16.mxu1 %vm8228_vm1, %v8227_v40 }
0x20e6   :  { %v4264_v62 = vpop.f32.mrb[220].mxu1 }
0x20e7   :  { %v7984_v5 = vpop.f32.mrb[221].mxu1  ;;  %v4271_v2 = vsub.f32 %v4264_v62, %v4181_v19 }
0x20e8   :  { %v4267_v12 = vpop.f32.mrb[222].mxu1 }
0x20e9   :  { %v4272_v58 = vsub.f32 %v4267_v12, %v4182_v22  ;;  %v7985_v59 = vpop.f32.mrb[223].mxu1 }
0x20eb   :  { %v10271_v63 = vpack.c.bf16 %v4272_v58, %v4271_v2 }
0x20ed   :  { %7987 = vmatpush3.bf16.msra.mxu0 %v10271_v63 }
0x20ee   :  { %7998 = vmatprep.subr.bf16.mxu0 %v8227_v40 }
0x20f0   :  { %7989 = vmatmul.mubr.msk.bf16.vlgmr.msra.gmra.mrb[208].mxu0 %vm3821_vm2, %v10191_v49 }
0x20f1   :  { %8000 = vmatprep.mubr.msk.bf16.mxu0 %vm8228_vm1, %v8227_v40 }
0x21c3   :  { %v4309_v44 = vpop.f32.mrb[208].mxu0 }
0x21c4   :  { %v7990_v1 = vpop.f32.mrb[209].mxu0  ;;  %v4316_v6 = vsub.f32 %v4309_v44, %v4226_v53 }
0x21c5   :  { %v4312_v37 = vpop.f32.mrb[210].mxu0 }
0x21c6   :  { %v4317_v51 = vsub.f32 %v4312_v37, %v4227_v32  ;;  %v7991_v27 = vpop.f32.mrb[211].mxu0 }
0x21c8   :  { %v10279_v48 = vpack.c.bf16 %v4317_v51, %v4316_v6 }
0x21ca   :  { %7993 = vmatpush3.bf16.msra.mxu1 %v10279_v48 }
0x21cb   :  { %8004 = vmatprep.subr.bf16.mxu1 %v8227_v40 }
0x21cd   :  { %7995 = vmatmul.mubr.msk.bf16.vlgmr.msra.gmra.mrb[224].mxu1 %vm3821_vm2, %v10191_v49 }
0x21ce   :  { %8006 = vmatprep.mubr.msk.bf16.mxu1 %vm8228_vm1, %v8227_v40 }
0x22a0   :  { %v4354_v29 = vpop.f32.mrb[224].mxu1 }
0x22a1   :  { %v7996_v34 = vpop.f32.mrb[225].mxu1  ;;  %v4361_v25 = vsub.f32 %v4354_v29, %v4271_v2 }
0x22a2   :  { %v4357_v61 = vpop.f32.mrb[226].mxu1 }
0x22a3   :  { %v4362_v28 = vsub.f32 %v4357_v61, %v4272_v58  ;;  %v7997_v55 = vpop.f32.mrb[227].mxu1 }
0x22a5   :  { %v10287_v35 = vpack.c.bf16 %v4362_v28, %v4361_v25 }
0x22a7   :  { %7999 = vmatpush3.bf16.msra.mxu0 %v10287_v35 }
0x22a8   :  { %8010 = vmatprep.subr.bf16.mxu0 %v8227_v40 }
0x22aa   :  { %8001 = vmatmul.mubr.msk.bf16.vlgmr.msra.gmra.mrb[212].mxu0 %vm3821_vm2, %v10191_v49 }
0x22ab   :  { %8012 = vmatprep.mubr.msk.bf16.mxu0 %vm8228_vm1, %v8227_v40 }
0x237d   :  { %v4399_v50 = vpop.f32.mrb[212].mxu0 }
0x237e   :  { %v8002_v8 = vpop.f32.mrb[213].mxu0  ;;  %v4406_v33 = vsub.f32 %v4399_v50, %v4316_v6 }
0x237f   :  { %v4402_v30 = vpop.f32.mrb[214].mxu0 }
0x2380   :  { %v4407_v3 = vsub.f32 %v4402_v30, %v4317_v51  ;;  %v8003_v56 = vpop.f32.mrb[215].mxu0 }
0x2382   :  { %v10295_v14 = vpack.c.bf16 %v4407_v3, %v4406_v33 }
0x2384   :  { %8005 = vmatpush3.bf16.msra.mxu1 %v10295_v14 }
0x2385   :  { %8016 = vmatprep.subr.bf16.mxu1 %v8227_v40 }
0x2387   :  { %8007 = vmatmul.mubr.msk.bf16.vlgmr.msra.gmra.mrb[228].mxu1 %vm3821_vm2, %v10191_v49 }
0x2388   :  { %8018 = vmatprep.mubr.msk.bf16.mxu1 %vm8228_vm1, %v8227_v40 }
0x245a   :  { %v4444_v16 = vpop.f32.mrb[228].mxu1 }
0x245b   :  { %v8008_v45 = vpop.f32.mrb[229].mxu1  ;;  %v4451_v20 = vsub.f32 %v4444_v16, %v4361_v25 }
0x245c   :  { %v4447_v39 = vpop.f32.mrb[230].mxu1 }
0x245d   :  { %v4452_v7 = vsub.f32 %v4447_v39, %v4362_v28  ;;  %v8009_v4 = vpop.f32.mrb[231].mxu1 }
0x245f   :  { %v10303_v13 = vpack.c.bf16 %v4452_v7, %v4451_v20 }
0x2461   :  { %8011 = vmatpush3.bf16.msra.mxu0 %v10303_v13 }
0x2462   :  { %8022 = vmatprep.subr.bf16.mxu0 %v8227_v40 }
0x2464   :  { %8013 = vmatmul.mubr.msk.bf16.vlgmr.msra.gmra.mrb[216].mxu0 %vm3821_vm2, %v10191_v49 }
0x2465   :  { %8024 = vmatprep.mubr.msk.bf16.mxu0 %vm8228_vm1, %v8227_v40 }
0x2537   :  { %v4489_v47 = vpop.f32.mrb[216].mxu0 }
0x2538   :  { %v8014_v24 = vpop.f32.mrb[217].mxu0  ;;  %v4496_v43 = vsub.f32 %v4489_v47, %v4406_v33 }
0x2539   :  { %v4492_v0 = vpop.f32.mrb[218].mxu0 }
0x253a   :  { %v4497_v41 = vsub.f32 %v4492_v0, %v4407_v3  ;;  %v8015_v10 = vpop.f32.mrb[219].mxu0 }
0x253c   :  { %v10311_v54 = vpack.c.bf16 %v4497_v41, %v4496_v43 }
0x253e   :  { %8017 = vmatpush3.bf16.msra.mxu1 %v10311_v54 }
0x253f   :  { %8028 = vmatprep.subr.bf16.mxu1 %v8227_v40 }
0x2541   :  { %8019 = vmatmul.mubr.msk.bf16.vlgmr.msra.gmra.mrb[232].mxu1 %vm3821_vm2, %v10191_v49 }
0x2542   :  { %8030 = vmatprep.mubr.msk.bf16.mxu1 %vm8228_vm1, %v8227_v40 }
0x2614   :  { %v4534_v57 = vpop.f32.mrb[232].mxu1 }
0x2615   :  { %v8020_v19 = vpop.f32.mrb[233].mxu1  ;;  %v4541_v21 = vsub.f32 %v4534_v57, %v4451_v20 }
0x2616   :  { %v4537_v22 = vpop.f32.mrb[234].mxu1 }
0x2617   :  { %v4542_v17 = vsub.f32 %v4537_v22, %v4452_v7  ;;  %v8021_v42 = vpop.f32.mrb[235].mxu1 }
0x2619   :  { %v10319_v26 = vpack.c.bf16 %v4542_v17, %v4541_v21 }
0x261b   :  { %8023 = vmatpush3.bf16.msra.mxu0 %v10319_v26 }
0x261c   :  { %8034 = vmatprep.subr.bf16.mxu0 %v8227_v40 }
0x261e   :  { %8025 = vmatmul.mubr.msk.bf16.vlgmr.msra.gmra.mrb[220].mxu0 %vm3821_vm2, %v10191_v49 }
0x261f   :  { %8036 = vmatprep.mubr.msk.bf16.mxu0 %vm8228_vm1, %v8227_v40 }
0x26f1   :  { %v4579_v53 = vpop.f32.mrb[220].mxu0 }
0x26f2   :  { %v8026_v32 = vpop.f32.mrb[221].mxu0  ;;  %v4586_v62 = vsub.f32 %v4579_v53, %v4496_v43 }
0x26f3   :  { %v4582_v52 = vpop.f32.mrb[222].mxu0 }
0x26f4   :  { %v4587_v5 = vsub.f32 %v4582_v52, %v4497_v41  ;;  %v8027_v12 = vpop.f32.mrb[223].mxu0 }
0x26f6   :  { %v10327_v2 = vpack.c.bf16 %v4587_v5, %v4586_v62 }
0x26f8   :  { %8029 = vmatpush3.bf16.msra.mxu1 %v10327_v2 }
0x26f9   :  { %8040 = vmatprep.subr.bf16.mxu1 %v8227_v40 }
0x26fb   :  { %8031 = vmatmul.mubr.msk.bf16.vlgmr.msra.gmra.mrb[236].mxu1 %vm3821_vm2, %v10191_v49 }
0x26fc   :  { %8042 = vmatprep.mubr.msk.bf16.mxu1 %vm8228_vm1, %v8227_v40 }
0x27ce   :  { %v4624_v58 = vpop.f32.mrb[236].mxu1 }
0x27cf   :  { %v8032_v59 = vpop.f32.mrb[237].mxu1  ;;  %v4631_v1 = vsub.f32 %v4624_v58, %v4541_v21 }
0x27d0   :  { %v4627_v44 = vpop.f32.mrb[238].mxu1 }
0x27d1   :  { %v4632_v37 = vsub.f32 %v4627_v44, %v4542_v17  ;;  %v8033_v6 = vpop.f32.mrb[239].mxu1 }
0x27d3   :  { %v10335_v51 = vpack.c.bf16 %v4632_v37, %v4631_v1 }
0x27d5   :  { %8035 = vmatpush3.bf16.msra.mxu0 %v10335_v51 }
0x27d6   :  { %8046 = vmatprep.subr.bf16.mxu0 %v8227_v40 }
0x27d8   :  { %8037 = vmatmul.mubr.msk.bf16.vlgmr.msra.gmra.mrb[224].mxu0 %vm3821_vm2, %v10191_v49 }
0x27d9   :  { %8048 = vmatprep.mubr.msk.bf16.mxu0 %vm8228_vm1, %v8227_v40 }
0x28ab   :  { %v4669_v27 = vpop.f32.mrb[224].mxu0 }
0x28ac   :  { %v8038_v29 = vpop.f32.mrb[225].mxu0  ;;  %v4676_v61 = vsub.f32 %v4669_v27, %v4586_v62 }
0x28ad   :  { %v4672_v34 = vpop.f32.mrb[226].mxu0 }
0x28ae   :  { %v4677_v25 = vsub.f32 %v4672_v34, %v4587_v5  ;;  %v8039_v28 = vpop.f32.mrb[227].mxu0 }
0x28b0   :  { %v10343_v55 = vpack.c.bf16 %v4677_v25, %v4676_v61 }
0x28b2   :  { %8041 = vmatpush3.bf16.msra.mxu1 %v10343_v55 }
0x28b3   :  { %8052 = vmatprep.subr.bf16.mxu1 %v8227_v40 }
0x28b5   :  { %8043 = vmatmul.mubr.msk.bf16.vlgmr.msra.gmra.mrb[240].mxu1 %vm3821_vm2, %v10191_v49 }
0x28b6   :  { %8054 = vmatprep.mubr.msk.bf16.mxu1 %vm8228_vm1, %v8227_v40 }
0x2988   :  { %v4714_v50 = vpop.f32.mrb[240].mxu1 }
0x2989   :  { %v8044_v8 = vpop.f32.mrb[241].mxu1  ;;  %v4721_v33 = vsub.f32 %v4714_v50, %v4631_v1 }
0x298a   :  { %v4717_v30 = vpop.f32.mrb[242].mxu1 }
0x298b   :  { %v4722_v3 = vsub.f32 %v4717_v30, %v4632_v37  ;;  %v8045_v56 = vpop.f32.mrb[243].mxu1 }
0x298d   :  { %v10351_v16 = vpack.c.bf16 %v4722_v3, %v4721_v33 }
0x298f   :  { %8047 = vmatpush3.bf16.msra.mxu0 %v10351_v16 }
0x2990   :  { %8058 = vmatprep.subr.bf16.mxu0 %v8227_v40 }
0x2992   :  { %8049 = vmatmul.mubr.msk.bf16.vlgmr.msra.gmra.mrb[228].mxu0 %vm3821_vm2, %v10191_v49 }
0x2993   :  { %8060 = vmatprep.mubr.msk.bf16.mxu0 %vm8228_vm1, %v8227_v40 }
0x2a65   :  { %v4759_v45 = vpop.f32.mrb[228].mxu0 }
0x2a66   :  { %v8050_v39 = vpop.f32.mrb[229].mxu0  ;;  %v4766_v7 = vsub.f32 %v4759_v45, %v4676_v61 }
0x2a67   :  { %v4762_v20 = vpop.f32.mrb[230].mxu0 }
0x2a68   :  { %v4767_v4 = vsub.f32 %v4762_v20, %v4677_v25  ;;  %v8051_v47 = vpop.f32.mrb[231].mxu0 }
0x2a6a   :  { %v10359_v24 = vpack.c.bf16 %v4767_v4, %v4766_v7 }
0x2a6c   :  { %8053 = vmatpush3.bf16.msra.mxu1 %v10359_v24 }
0x2a6d   :  { %8064 = vmatprep.subr.bf16.mxu1 %v8227_v40 }
0x2a6f   :  { %8055 = vmatmul.mubr.msk.bf16.vlgmr.msra.gmra.mrb[244].mxu1 %vm3821_vm2, %v10191_v49 }
0x2a70   :  { %8066 = vmatprep.mubr.msk.bf16.mxu1 %vm8228_vm1, %v8227_v40 }
0x2b42   :  { %v4804_v0 = vpop.f32.mrb[244].mxu1 }
0x2b43   :  { %v8056_v43 = vpop.f32.mrb[245].mxu1  ;;  %v4811_v10 = vsub.f32 %v4804_v0, %v4721_v33 }
0x2b44   :  { %v4807_v41 = vpop.f32.mrb[246].mxu1 }
0x2b45   :  { %v4812_v57 = vsub.f32 %v4807_v41, %v4722_v3  ;;  %v8057_v19 = vpop.f32.mrb[247].mxu1 }
0x2b47   :  { %v10367_v22 = vpack.c.bf16 %v4812_v57, %v4811_v10 }
0x2b49   :  { %8059 = vmatpush3.bf16.msra.mxu0 %v10367_v22 }
0x2b4c   :  { %8061 = vmatmul.mubr.msk.bf16.vlgmr.msra.gmra.mrb[232].mxu0 %vm3821_vm2, %v10191_v49 }
0x2c1f   :  { %v4849_v21 = vpop.f32.mrb[232].mxu0 }
0x2c20   :  { %v8062_v17 = vpop.f32.mrb[233].mxu0  ;;  %v4856_v53 = vsub.f32 %v4849_v21, %v4766_v7 }
0x2c21   :  { %v4852_v42 = vpop.f32.mrb[234].mxu0 }
0x2c22   :  { %v4857_v32 = vsub.f32 %v4852_v42, %v4767_v4  ;;  %v8063_v52 = vpop.f32.mrb[235].mxu0 }
0x2c24   :  { %v10372_v62 = vpack.c.bf16 %v4857_v32, %v4856_v53 }
0x2c26   :  { %8065 = vmatpush3.bf16.msra.mxu1 %v10372_v62 }
0x2c29   :  { %8067 = vmatmul.mubr.msk.bf16.vlgmr.msra.gmra.mrb[248].mxu1 %vm3821_vm2, %v10191_v49 }
0x2cfc   :  { %v4894_v5 = vpop.f32.mrb[248].mxu1 }
0x2cfd   :  { %v8068_v12 = vpop.f32.mrb[249].mxu1  ;;  %v4901_v59 = vsub.f32 %v4894_v5, %v4811_v10 }
0x2cfe   :  { %v4897_v58 = vpop.f32.mrb[250].mxu1 }
0x2cff   :  { %v4902_v44 = vsub.f32 %v4897_v58, %v4812_v57  ;;  %v8069_v1 = vpop.f32.mrb[251].mxu1 }
0x2d01   :  { %v10377_v37 = vpack.c.bf16 %v4902_v44, %v4901_v59 }
0x2d02   :  { %8219 = dma.done.wait [#allocation5 + $0x1], 25600 }
0x2d03   :  { %8220 = vsyncadd [#allocation5 + $0x1], 4294941696  ;;  %5171 = vmatprep.mubr.bf16.mxu0 %v10199_v15  ;;  %5212 = vmatprep.mubr.bf16.mxu1 %v10215_v36  ;;  %v4940_v6 = vld [vmem:[#allocation3 + $0x40] sm:$0xff]  ;;  %v4941_v34 = vld [vmem:[#allocation3 + $0x48] sm:$0xff]  ;;  %vm5715_vm3 = vcmask 1040384  }
0x2d04   :  { %v4932_v27 = vld [vmem:[#allocation3] sm:$0xff]  ;;  %7201 = vmatprep.subr.bf16.mxu0 %v4940_v6  ;;  %v4957_v61 = vld [vmem:[#allocation3 + $0xc8] sm:$0xff]  ;;  %v4942_v50 = vld [vmem:[#allocation3 + $0x50] sm:$0xff] }
0x2d05   :  { %v4956_v29 = vld [vmem:[#allocation3 + $0xc0] sm:$0xff]  ;;  %7202 = vmatpush3.bf16.msra.mxu0 %v4932_v27  ;;  %v4933_v25 = vld [vmem:[#allocation3 + $0x8] sm:$0xff]  ;;  %v4958_v8 = vld [vmem:[#allocation3 + $0xd0] sm:$0xff] }
0x2d06   :  { %7223 = vmatprep.subr.bf16.mxu1 %v4956_v29  ;;  %v4948_v49 = vld [vmem:[#allocation3 + $0x80] sm:$0xff]  ;;  %7203 = vmatprep.subr.bf16.mxu0 %v4941_v34  ;;  %v4949_v28 = vld [vmem:[#allocation3 + $0x88] sm:$0xff]  ;;  %v4934_v15 = vld [vmem:[#allocation3 + $0x10] sm:$0xff] }
0x2d07   :  { %7224 = vmatpush3.bf16.msra.mxu1 %v4948_v49  ;;  %v4950_v36 = vld [vmem:[#allocation3 + $0x90] sm:$0xff]  ;;  %v4943_v30 = vld [vmem:[#allocation3 + $0x58] sm:$0xff]  ;;  %v4944_v45 = vld [vmem:[#allocation3 + $0x60] sm:$0xff] }
0x2d08   :  { %7225 = vmatprep.subr.bf16.mxu1 %v4957_v61  ;;  %v4959_v33 = vld [vmem:[#allocation3 + $0xd8] sm:$0xff]  ;;  %v4960_v39 = vld [vmem:[#allocation3 + $0xe0] sm:$0xff]  ;;  %v4945_v4 = vld [vmem:[#allocation3 + $0x68] sm:$0xff] }
0x2d09   :  { %7204 = vmatpush3.bf16.msra.mxu0 %v4933_v25  ;;  %v4935_v3 = vld [vmem:[#allocation3 + $0x18] sm:$0xff]  ;;  %v4936_v20 = vld [vmem:[#allocation3 + $0x20] sm:$0xff]  ;;  %v4961_v47 = vld [vmem:[#allocation3 + $0xe8] sm:$0xff] }
0x2d0a   :  { %7205 = vmatprep.subr.bf16.mxu0 %v4942_v50  ;;  %v4951_v56 = vld [vmem:[#allocation3 + $0x98] sm:$0xff]  ;;  %v4952_v7 = vld [vmem:[#allocation3 + $0xa0] sm:$0xff]  ;;  %v4937_v0 = vld [vmem:[#allocation3 + $0x28] sm:$0xff] }
0x2d0b   :  { %7226 = vmatpush3.bf16.msra.mxu1 %v4949_v28  ;;  %v4953_v43 = vld [vmem:[#allocation3 + $0xa8] sm:$0xff]  ;;  %v4946_v41 = vld [vmem:[#allocation3 + $0x70] sm:$0xff]  ;;  %v4947_v21 = vld [vmem:[#allocation3 + $0x78] sm:$0xff] }
0x2d0c   :  { %7227 = vmatprep.subr.bf16.mxu1 %v4958_v8  ;;  %v4962_v10 = vld [vmem:[#allocation3 + $0xf0] sm:$0xff]  ;;  %v4963_v17 = vld [vmem:[#allocation3 + $0xf8] sm:$0xff]  ;;  %v4972_v32 = vld [vmem:[#allocation3 + $0x140] sm:$0xff] }
0x2d0d   :  { %7206 = vmatpush3.bf16.msra.mxu0 %v4934_v15  ;;  %v4938_v57 = vld [vmem:[#allocation3 + $0x30] sm:$0xff]  ;;  %v4939_v42 = vld [vmem:[#allocation3 + $0x38] sm:$0xff]  ;;  %v4988_v52 = vld [vmem:[#allocation3 + $0x1c0] sm:$0xff] }
0x2d0e   :  { %7207 = vmatprep.subr.bf16.mxu0 %v4943_v30  ;;  %v4954_v19 = vld [vmem:[#allocation3 + $0xb0] sm:$0xff]  ;;  %v4955_v53 = vld [vmem:[#allocation3 + $0xb8] sm:$0xff]  ;;  %v4964_v5 = vld [vmem:[#allocation3 + $0x100] sm:$0xff] }
0x2d0f   :  { %7228 = vmatpush3.bf16.msra.mxu1 %v4950_v36  ;;  %v4980_v12 = vld [vmem:[#allocation3 + $0x180] sm:$0xff]  ;;  %v4973_v58 = vld [vmem:[#allocation3 + $0x148] sm:$0xff]  ;;  %v4974_v6 = vld [vmem:[#allocation3 + $0x150] sm:$0xff] }
0x2d10   :  { %7229 = vmatprep.subr.bf16.mxu1 %v4959_v33  ;;  %v4989_v59 = vld [vmem:[#allocation3 + $0x1c8] sm:$0xff]  ;;  %v4990_v27 = vld [vmem:[#allocation3 + $0x1d0] sm:$0xff]  ;;  %v4975_v49 = vld [vmem:[#allocation3 + $0x158] sm:$0xff] }
0x2d11   :  { %7208 = vmatpush3.bf16.msra.mxu0 %v4935_v3  ;;  %v4965_v44 = vld [vmem:[#allocation3 + $0x108] sm:$0xff]  ;;  %v4966_v29 = vld [vmem:[#allocation3 + $0x110] sm:$0xff]  ;;  %v4967_v34 = vld [vmem:[#allocation3 + $0x118] sm:$0xff] }
0x2d12   :  { %7209 = vmatprep.subr.bf16.mxu0 %v4944_v45  ;;  %v4981_v1 = vld [vmem:[#allocation3 + $0x188] sm:$0xff]  ;;  %v4983_v61 = vld [vmem:[#allocation3 + $0x198] sm:$0xff]  ;;  %v4976_v25 = vld [vmem:[#allocation3 + $0x160] sm:$0xff] }
0x2d13   :  { %7230 = vmatpush3.bf16.msra.mxu1 %v4951_v56  ;;  %v4992_v28 = vld [vmem:[#allocation3 + $0x1e0] sm:$0xff]  ;;  %v4977_v50 = vld [vmem:[#allocation3 + $0x168] sm:$0xff]  ;;  %v4978_v30 = vld [vmem:[#allocation3 + $0x170] sm:$0xff] }
0x2d14   :  { %7231 = vmatprep.subr.bf16.mxu1 %v4960_v39  ;;  %v4993_v8 = vld [vmem:[#allocation3 + $0x1e8] sm:$0xff]  ;;  %v4994_v33 = vld [vmem:[#allocation3 + $0x1f0] sm:$0xff]  ;;  %v4979_v45 = vld [vmem:[#allocation3 + $0x178] sm:$0xff] }
0x2d15   :  { %7210 = vmatpush3.bf16.msra.mxu0 %v4936_v20  ;;  %v4969_v15 = vld [vmem:[#allocation3 + $0x128] sm:$0xff]  ;;  %v4970_v3 = vld [vmem:[#allocation3 + $0x130] sm:$0xff]  ;;  %v4995_v39 = vld [vmem:[#allocation3 + $0x1f8] sm:$0xff] }
0x2d16   :  { %7211 = vmatprep.subr.bf16.mxu0 %v4945_v4  ;;  %v4985_v36 = vld [vmem:[#allocation3 + $0x1a8] sm:$0xff]  ;;  %v4986_v56 = vld [vmem:[#allocation3 + $0x1b0] sm:$0xff]  ;;  %v4971_v20 = vld [vmem:[#allocation3 + $0x138] sm:$0xff] }
0x2d17   :  { %7232 = vmatpush3.bf16.msra.mxu1 %v4952_v7  ;;  %v4987_v7 = vld [vmem:[#allocation3 + $0x1b8] sm:$0xff]  ;;  %v5004_v4 = vld [vmem:[#allocation3 + $0x240] sm:$0xff] }
0x2d18   :  { %7233 = vmatprep.subr.bf16.mxu1 %v4961_v47  ;;  %v5020_v47 = vld [vmem:[#allocation3 + $0x2c0] sm:$0xff] }
0x2d19   :  { %7212 = vmatpush3.bf16.msra.mxu0 %v4937_v0  ;;  %v4996_v0 = vld [vmem:[#allocation3 + $0x200] sm:$0xff] }
0x2d1a   :  { %7213 = vmatprep.subr.bf16.mxu0 %v4946_v41  ;;  %v5005_v41 = vld [vmem:[#allocation3 + $0x248] sm:$0xff] }
0x2d1b   :  { %7234 = vmatpush3.bf16.msra.mxu1 %v4953_v43  ;;  %v5012_v43 = vld [vmem:[#allocation3 + $0x280] sm:$0xff] }
0x2d1c   :  { %7235 = vmatprep.subr.bf16.mxu1 %v4962_v10  ;;  %v5021_v10 = vld [vmem:[#allocation3 + $0x2c8] sm:$0xff] }
0x2d1d   :  { %7214 = vmatpush3.bf16.msra.mxu0 %v4938_v57  ;;  %v4997_v57 = vld [vmem:[#allocation3 + $0x208] sm:$0xff] }
0x2d1e   :  { %7215 = vmatprep.subr.bf16.mxu0 %v4947_v21  ;;  %v5006_v21 = vld [vmem:[#allocation3 + $0x250] sm:$0xff] }
0x2d1f   :  { %7236 = vmatpush3.bf16.msra.mxu1 %v4954_v19  ;;  %v5013_v19 = vld [vmem:[#allocation3 + $0x288] sm:$0xff] }
0x2d20   :  { %7237 = vmatprep.subr.bf16.mxu1 %v4963_v17  ;;  %v5022_v17 = vld [vmem:[#allocation3 + $0x2d0] sm:$0xff] }
0x2d21   :  { %7216 = vmatpush3.bf16.msra.mxu0 %v4939_v42  ;;  %v4998_v42 = vld [vmem:[#allocation3 + $0x210] sm:$0xff] }
0x2d22   :  { %7245 = vmatprep.subr.bf16.mxu0 %v4972_v32  ;;  %v4999_v32 = vld [vmem:[#allocation3 + $0x218] sm:$0xff] }
0x2d23   :  { %7238 = vmatpush3.bf16.msra.mxu1 %v4955_v53  ;;  %v5007_v53 = vld [vmem:[#allocation3 + $0x258] sm:$0xff] }
0x2d24   :  { %7267 = vmatprep.subr.bf16.mxu1 %v4988_v52  ;;  %5172 = vmatmul.mubr.bf16.vlgmr.msra.gmra.mrb[236].mxu0 %v10186_v9  ;;  %v4982_v9 = vld [vmem:[#allocation3 + $0x190] sm:$0xff]  ;;  %v5015_v52 = vld [vmem:[#allocation3 + $0x298] sm:$0xff] }
0x2d25   :  { %7246 = vmatpush3.bf16.msra.mxu0 %v4964_v5  ;;  %5253 = vmatprep.mubr.bf16.mxu0 %v10231_v11  ;;  %v4968_v11 = vld [vmem:[#allocation3 + $0x120] sm:$0xff] }
0x2d26   :  { %5213 = vmatmul.mubr.bf16.vlgmr.msra.gmra.mrb[252].mxu1 %v10207_v60  ;;  %7247 = vmatprep.subr.bf16.mxu0 %v4973_v58  ;;  %v4991_v60 = vld [vmem:[#allocation3 + $0x1d8] sm:$0xff]  ;;  %v5008_v5 = vld [vmem:[#allocation3 + $0x260] sm:$0xff]  ;;  %v5009_v58 = vld [vmem:[#allocation3 + $0x268] sm:$0xff] }
0x2d27   :  { %7268 = vmatpush3.bf16.msra.mxu1 %v4980_v12  ;;  %5294 = vmatprep.mubr.bf16.mxu1 %v10247_v31  ;;  %v4984_v31 = vld [vmem:[#allocation3 + $0x1a0] sm:$0xff] }
0x2d28   :  { %7269 = vmatprep.subr.bf16.mxu1 %v4989_v59  ;;  %v5024_v12 = vld [vmem:[#allocation3 + $0x2e0] sm:$0xff]  ;;  %v5025_v59 = vld [vmem:[#allocation3 + $0x2e8] sm:$0xff] }
0x2d29   :  { %7248 = vmatpush3.bf16.msra.mxu0 %v4965_v44  ;;  %v5001_v44 = vld [vmem:[#allocation3 + $0x228] sm:$0xff] }
0x2d2a   :  { %7249 = vmatprep.subr.bf16.mxu0 %v4974_v6  ;;  %v5010_v6 = vld [vmem:[#allocation3 + $0x270] sm:$0xff] }
0x2d2b   :  { %7270 = vmatpush3.bf16.msra.mxu1 %v4981_v1  ;;  %v5017_v1 = vld [vmem:[#allocation3 + $0x2a8] sm:$0xff] }
0x2d2c   :  { %7271 = vmatprep.subr.bf16.mxu1 %v4990_v27  ;;  %v5026_v27 = vld [vmem:[#allocation3 + $0x2f0] sm:$0xff] }
0x2d2d   :  { %7250 = vmatpush3.bf16.msra.mxu0 %v4966_v29  ;;  %v5002_v29 = vld [vmem:[#allocation3 + $0x230] sm:$0xff] }
0x2d2e   :  { %7251 = vmatprep.subr.bf16.mxu0 %v4975_v49  ;;  %v5011_v49 = vld [vmem:[#allocation3 + $0x278] sm:$0xff] }
0x2d2f   :  { %7272 = vmatpush3.bf16.msra.mxu1 %v4982_v9  ;;  %v5018_v9 = vld [vmem:[#allocation3 + $0x2b0] sm:$0xff] }
0x2d30   :  { %7273 = vmatprep.subr.bf16.mxu1 %v4991_v60  ;;  %v5027_v60 = vld [vmem:[#allocation3 + $0x2f8] sm:$0xff] }
0x2d31   :  { %7252 = vmatpush3.bf16.msra.mxu0 %v4967_v34  ;;  %v5003_v34 = vld [vmem:[#allocation3 + $0x238] sm:$0xff] }
0x2d32   :  { %7253 = vmatprep.subr.bf16.mxu0 %v4976_v25  ;;  %v5036_v25 = vld [vmem:[#allocation3 + $0x340] sm:$0xff] }
0x2d33   :  { %7274 = vmatpush3.bf16.msra.mxu1 %v4983_v61  ;;  %v5019_v61 = vld [vmem:[#allocation3 + $0x2b8] sm:$0xff] }
0x2d34   :  { %7275 = vmatprep.subr.bf16.mxu1 %v4992_v28  ;;  %v5052_v28 = vld [vmem:[#allocation3 + $0x3c0] sm:$0xff] }
0x2d35   :  { %7254 = vmatpush3.bf16.msra.mxu0 %v4968_v11  ;;  %v5028_v11 = vld [vmem:[#allocation3 + $0x300] sm:$0xff] }
0x2d36   :  { %7255 = vmatprep.subr.bf16.mxu0 %v4977_v50  ;;  %v5037_v50 = vld [vmem:[#allocation3 + $0x348] sm:$0xff] }
0x2d37   :  { %7276 = vmatpush3.bf16.msra.mxu1 %v4984_v31  ;;  %v5044_v31 = vld [vmem:[#allocation3 + $0x380] sm:$0xff] }
0x2d38   :  { %7277 = vmatprep.subr.bf16.mxu1 %v4993_v8  ;;  %v5053_v8 = vld [vmem:[#allocation3 + $0x3c8] sm:$0xff] }
0x2d39   :  { %7256 = vmatpush3.bf16.msra.mxu0 %v4969_v15  ;;  %v5029_v15 = vld [vmem:[#allocation3 + $0x308] sm:$0xff] }
0x2d3a   :  { %7257 = vmatprep.subr.bf16.mxu0 %v4978_v30  ;;  %v5038_v30 = vld [vmem:[#allocation3 + $0x350] sm:$0xff] }
0x2d3b   :  { %7278 = vmatpush3.bf16.msra.mxu1 %v4985_v36  ;;  %v5045_v36 = vld [vmem:[#allocation3 + $0x388] sm:$0xff] }
0x2d3c   :  { %7279 = vmatprep.subr.bf16.mxu1 %v4994_v33  ;;  %v5054_v33 = vld [vmem:[#allocation3 + $0x3d0] sm:$0xff] }
0x2d3d   :  { %7258 = vmatpush3.bf16.msra.mxu0 %v4970_v3  ;;  %v5030_v3 = vld [vmem:[#allocation3 + $0x310] sm:$0xff] }
0x2d3e   :  { %7259 = vmatprep.subr.bf16.mxu0 %v4979_v45  ;;  %v5031_v45 = vld [vmem:[#allocation3 + $0x318] sm:$0xff] }
0x2d3f   :  { %7280 = vmatpush3.bf16.msra.mxu1 %v4986_v56  ;;  %v5039_v56 = vld [vmem:[#allocation3 + $0x358] sm:$0xff] }
0x2d40   :  { %7281 = vmatprep.subr.bf16.mxu1 %v4995_v39  ;;  %v5047_v39 = vld [vmem:[#allocation3 + $0x398] sm:$0xff] }
0x2d41   :  { %7260 = vmatpush3.bf16.msra.mxu0 %v4971_v20  ;;  %v5040_v20 = vld [vmem:[#allocation3 + $0x360] sm:$0xff] }
0x2d42   :  { %7289 = vmatprep.subr.bf16.mxu0 %v5004_v4  ;;  %v5041_v4 = vld [vmem:[#allocation3 + $0x368] sm:$0xff] }
0x2d43   :  { %7282 = vmatpush3.bf16.msra.mxu1 %v4987_v7  ;;  %v5056_v7 = vld [vmem:[#allocation3 + $0x3e0] sm:$0xff] }
0x2d44   :  { %7311 = vmatprep.subr.bf16.mxu1 %v5020_v47  ;;  %5254 = vmatmul.mubr.bf16.vlgmr.msra.gmra.mrb[240].mxu0 %v10223_v23  ;;  %v5014_v23 = vld [vmem:[#allocation3 + $0x290] sm:$0xff]  ;;  %v5057_v47 = vld [vmem:[#allocation3 + $0x3e8] sm:$0xff] }
0x2d45   :  { %7290 = vmatpush3.bf16.msra.mxu0 %v4996_v0  ;;  %5335 = vmatprep.mubr.bf16.mxu0 %v10263_v18  ;;  %v5000_v18 = vld [vmem:[#allocation3 + $0x220] sm:$0xff]  ;;  %v5033_v0 = vld [vmem:[#allocation3 + $0x328] sm:$0xff] }
0x2d46   :  { %5295 = vmatmul.mubr.bf16.vlgmr.msra.gmra.mrb[0].mxu1 %v10239_v46  ;;  %7291 = vmatprep.subr.bf16.mxu0 %v5005_v41  ;;  %v5023_v46 = vld [vmem:[#allocation3 + $0x2d8] sm:$0xff]  ;;  %v5042_v41 = vld [vmem:[#allocation3 + $0x370] sm:$0xff] }
0x2d47   :  { %7312 = vmatpush3.bf16.msra.mxu1 %v5012_v43  ;;  %5376 = vmatprep.mubr.bf16.mxu1 %v10279_v48  ;;  %v5016_v48 = vld [vmem:[#allocation3 + $0x2a0] sm:$0xff]  ;;  %v5049_v43 = vld [vmem:[#allocation3 + $0x3a8] sm:$0xff] }
0x2d48   :  { %7313 = vmatprep.subr.bf16.mxu1 %v5021_v10  ;;  %v5058_v10 = vld [vmem:[#allocation3 + $0x3f0] sm:$0xff] }
0x2d49   :  { %7292 = vmatpush3.bf16.msra.mxu0 %v4997_v57  ;;  %v5034_v57 = vld [vmem:[#allocation3 + $0x330] sm:$0xff] }
0x2d4a   :  { %7293 = vmatprep.subr.bf16.mxu0 %v5006_v21  ;;  %v5043_v21 = vld [vmem:[#allocation3 + $0x378] sm:$0xff] }
0x2d4b   :  { %7314 = vmatpush3.bf16.msra.mxu1 %v5013_v19  ;;  %v5050_v19 = vld [vmem:[#allocation3 + $0x3b0] sm:$0xff] }
0x2d4c   :  { %7315 = vmatprep.subr.bf16.mxu1 %v5022_v17  ;;  %v5059_v17 = vld [vmem:[#allocation3 + $0x3f8] sm:$0xff] }
0x2d4d   :  { %7294 = vmatpush3.bf16.msra.mxu0 %v4998_v42  ;;  %v5035_v42 = vld [vmem:[#allocation3 + $0x338] sm:$0xff] }
0x2d4e   :  { %7295 = vmatprep.subr.bf16.mxu0 %v5007_v53  ;;  %v5068_v53 = vld [vmem:[#allocation3 + $0x440] sm:$0xff] }
0x2d4f   :  { %7316 = vmatpush3.bf16.msra.mxu1 %v5014_v23  ;;  %v5051_v23 = vld [vmem:[#allocation3 + $0x3b8] sm:$0xff] }
0x2d50   :  { %7317 = vmatprep.subr.bf16.mxu1 %v5023_v46  ;;  %v5084_v46 = vld [vmem:[#allocation3 + $0x4c0] sm:$0xff] }
0x2d51   :  { %7296 = vmatpush3.bf16.msra.mxu0 %v4999_v32  ;;  %v5060_v32 = vld [vmem:[#allocation3 + $0x400] sm:$0xff] }
0x2d52   :  { %7297 = vmatprep.subr.bf16.mxu0 %v5008_v5  ;;  %v5069_v5 = vld [vmem:[#allocation3 + $0x448] sm:$0xff] }
0x2d53   :  { %7318 = vmatpush3.bf16.msra.mxu1 %v5015_v52  ;;  %v5076_v52 = vld [vmem:[#allocation3 + $0x480] sm:$0xff] }
0x2d54   :  { %7319 = vmatprep.subr.bf16.mxu1 %v5024_v12  ;;  %v5085_v12 = vld [vmem:[#allocation3 + $0x4c8] sm:$0xff] }
0x2d55   :  { %7298 = vmatpush3.bf16.msra.mxu0 %v5000_v18  ;;  %v5061_v18 = vld [vmem:[#allocation3 + $0x408] sm:$0xff] }
0x2d56   :  { %7299 = vmatprep.subr.bf16.mxu0 %v5009_v58  ;;  %v5070_v58 = vld [vmem:[#allocation3 + $0x450] sm:$0xff] }
0x2d57   :  { %7320 = vmatpush3.bf16.msra.mxu1 %v5016_v48  ;;  %v5077_v48 = vld [vmem:[#allocation3 + $0x488] sm:$0xff] }
0x2d58   :  { %7321 = vmatprep.subr.bf16.mxu1 %v5025_v59  ;;  %v5086_v59 = vld [vmem:[#allocation3 + $0x4d0] sm:$0xff] }
0x2d59   :  { %7300 = vmatpush3.bf16.msra.mxu0 %v5001_v44  ;;  %v5062_v44 = vld [vmem:[#allocation3 + $0x410] sm:$0xff] }
0x2d5a   :  { %7301 = vmatprep.subr.bf16.mxu0 %v5010_v6  ;;  %v5063_v6 = vld [vmem:[#allocation3 + $0x418] sm:$0xff] }
0x2d5b   :  { %7322 = vmatpush3.bf16.msra.mxu1 %v5017_v1  ;;  %v5071_v1 = vld [vmem:[#allocation3 + $0x458] sm:$0xff] }
0x2d5c   :  { %7323 = vmatprep.subr.bf16.mxu1 %v5026_v27  ;;  %v5079_v27 = vld [vmem:[#allocation3 + $0x498] sm:$0xff] }
0x2d5d   :  { %7302 = vmatpush3.bf16.msra.mxu0 %v5002_v29  ;;  %v5072_v29 = vld [vmem:[#allocation3 + $0x460] sm:$0xff] }
0x2d5e   :  { %7303 = vmatprep.subr.bf16.mxu0 %v5011_v49  ;;  %v5073_v49 = vld [vmem:[#allocation3 + $0x468] sm:$0xff] }
0x2d5f   :  { %7324 = vmatpush3.bf16.msra.mxu1 %v5018_v9  ;;  %v5088_v9 = vld [vmem:[#allocation3 + $0x4e0] sm:$0xff] }
0x2d60   :  { %7325 = vmatprep.subr.bf16.mxu1 %v5027_v60  ;;  %v5089_v60 = vld [vmem:[#allocation3 + $0x4e8] sm:$0xff] }
0x2d61   :  { %7304 = vmatpush3.bf16.msra.mxu0 %v5003_v34  ;;  %v5065_v34 = vld [vmem:[#allocation3 + $0x428] sm:$0xff] }
0x2d62   :  { %7333 = vmatprep.subr.bf16.mxu0 %v5036_v25  ;;  %v5074_v25 = vld [vmem:[#allocation3 + $0x470] sm:$0xff] }
0x2d63   :  { %7326 = vmatpush3.bf16.msra.mxu1 %v5019_v61  ;;  %v5081_v61 = vld [vmem:[#allocation3 + $0x4a8] sm:$0xff] }
0x2d64   :  { %7355 = vmatprep.subr.bf16.mxu1 %v5052_v28  ;;  %5336 = vmatmul.mubr.bf16.vlgmr.msra.gmra.mrb[244].mxu0 %v10255_v38  ;;  %v5046_v38 = vld [vmem:[#allocation3 + $0x390] sm:$0xff] }
0x2d65   :  { %7334 = vmatpush3.bf16.msra.mxu0 %v5028_v11  ;;  %5417 = vmatprep.mubr.bf16.mxu0 %v10295_v14  ;;  %v5032_v14 = vld [vmem:[#allocation3 + $0x320] sm:$0xff]  ;;  %v5090_v28 = vld [vmem:[#allocation3 + $0x4f0] sm:$0xff] }
0x2d66   :  { %5377 = vmatmul.mubr.bf16.vlgmr.msra.gmra.mrb[4].mxu1 %v10271_v63  ;;  %7335 = vmatprep.subr.bf16.mxu0 %v5037_v50  ;;  %v5055_v63 = vld [vmem:[#allocation3 + $0x3d8] sm:$0xff]  ;;  %v5066_v11 = vld [vmem:[#allocation3 + $0x430] sm:$0xff] }
0x2d67   :  { %7356 = vmatpush3.bf16.msra.mxu1 %v5044_v31  ;;  %5458 = vmatprep.mubr.bf16.mxu1 %v10311_v54  ;;  %v5048_v54 = vld [vmem:[#allocation3 + $0x3a0] sm:$0xff]  ;;  %v5082_v31 = vld [vmem:[#allocation3 + $0x4b0] sm:$0xff]  ;;  %v5075_v50 = vld [vmem:[#allocation3 + $0x478] sm:$0xff] }
0x2d68   :  { %7357 = vmatprep.subr.bf16.mxu1 %v5053_v8  ;;  %v5091_v8 = vld [vmem:[#allocation3 + $0x4f8] sm:$0xff] }
0x2d69   :  { %7336 = vmatpush3.bf16.msra.mxu0 %v5029_v15  ;;  %v5067_v15 = vld [vmem:[#allocation3 + $0x438] sm:$0xff] }
0x2d6a   :  { %7337 = vmatprep.subr.bf16.mxu0 %v5038_v30  ;;  %v5100_v30 = vld [vmem:[#allocation3 + $0x540] sm:$0xff] }
0x2d6b   :  { %7358 = vmatpush3.bf16.msra.mxu1 %v5045_v36  ;;  %v5083_v36 = vld [vmem:[#allocation3 + $0x4b8] sm:$0xff] }
0x2d6c   :  { %7359 = vmatprep.subr.bf16.mxu1 %v5054_v33  ;;  %v5116_v33 = vld [vmem:[#allocation3 + $0x5c0] sm:$0xff] }
0x2d6d   :  { %7338 = vmatpush3.bf16.msra.mxu0 %v5030_v3  ;;  %v5092_v3 = vld [vmem:[#allocation3 + $0x500] sm:$0xff] }
0x2d6e   :  { %7339 = vmatprep.subr.bf16.mxu0 %v5039_v56  ;;  %v5101_v56 = vld [vmem:[#allocation3 + $0x548] sm:$0xff] }
0x2d6f   :  { %7360 = vmatpush3.bf16.msra.mxu1 %v5046_v38  ;;  %v5108_v38 = vld [vmem:[#allocation3 + $0x580] sm:$0xff] }
0x2d70   :  { %7361 = vmatprep.subr.bf16.mxu1 %v5055_v63  ;;  %v5117_v63 = vld [vmem:[#allocation3 + $0x5c8] sm:$0xff] }
0x2d71   :  { %7340 = vmatpush3.bf16.msra.mxu0 %v5031_v45  ;;  %v5093_v45 = vld [vmem:[#allocation3 + $0x508] sm:$0xff] }
0x2d72   :  { %7341 = vmatprep.subr.bf16.mxu0 %v5040_v20  ;;  %v5102_v20 = vld [vmem:[#allocation3 + $0x550] sm:$0xff] }
0x2d73   :  { %7362 = vmatpush3.bf16.msra.mxu1 %v5047_v39  ;;  %v5109_v39 = vld [vmem:[#allocation3 + $0x588] sm:$0xff] }
0x2d74   :  { %7363 = vmatprep.subr.bf16.mxu1 %v5056_v7  ;;  %v5118_v7 = vld [vmem:[#allocation3 + $0x5d0] sm:$0xff] }
0x2d75   :  { %7342 = vmatpush3.bf16.msra.mxu0 %v5032_v14  ;;  %v5094_v14 = vld [vmem:[#allocation3 + $0x510] sm:$0xff] }
0x2d76   :  { %7343 = vmatprep.subr.bf16.mxu0 %v5041_v4  ;;  %v5095_v4 = vld [vmem:[#allocation3 + $0x518] sm:$0xff] }
0x2d77   :  { %7364 = vmatpush3.bf16.msra.mxu1 %v5048_v54  ;;  %v5103_v54 = vld [vmem:[#allocation3 + $0x558] sm:$0xff] }
0x2d78   :  { %7365 = vmatprep.subr.bf16.mxu1 %v5057_v47  ;;  %v5111_v47 = vld [vmem:[#allocation3 + $0x598] sm:$0xff] }
0x2d79   :  { %7344 = vmatpush3.bf16.msra.mxu0 %v5033_v0  ;;  %v5104_v0 = vld [vmem:[#allocation3 + $0x560] sm:$0xff] }
0x2d7a   :  { %7345 = vmatprep.subr.bf16.mxu0 %v5042_v41  ;;  %v5105_v41 = vld [vmem:[#allocation3 + $0x568] sm:$0xff] }
0x2d7b   :  { %7366 = vmatpush3.bf16.msra.mxu1 %v5049_v43  ;;  %v5120_v43 = vld [vmem:[#allocation3 + $0x5e0] sm:$0xff] }
0x2d7c   :  { %7367 = vmatprep.subr.bf16.mxu1 %v5058_v10  ;;  %v5121_v10 = vld [vmem:[#allocation3 + $0x5e8] sm:$0xff] }
0x2d7d   :  { %7346 = vmatpush3.bf16.msra.mxu0 %v5034_v57  ;;  %v5097_v57 = vld [vmem:[#allocation3 + $0x528] sm:$0xff] }
0x2d7e   :  { %7347 = vmatprep.subr.bf16.mxu0 %v5043_v21  ;;  %v5106_v21 = vld [vmem:[#allocation3 + $0x570] sm:$0xff] }
0x2d7f   :  { %7368 = vmatpush3.bf16.msra.mxu1 %v5050_v19  ;;  %v5113_v19 = vld [vmem:[#allocation3 + $0x5a8] sm:$0xff] }
0x2d80   :  { %7369 = vmatprep.subr.bf16.mxu1 %v5059_v17  ;;  %v5122_v17 = vld [vmem:[#allocation3 + $0x5f0] sm:$0xff] }
0x2d81   :  { %7348 = vmatpush3.bf16.msra.mxu0 %v5035_v42  ;;  %v5098_v42 = vld [vmem:[#allocation3 + $0x530] sm:$0xff] }
0x2d82   :  { %7377 = vmatprep.subr.bf16.mxu0 %v5068_v53  ;;  %v5107_v53 = vld [vmem:[#allocation3 + $0x578] sm:$0xff] }
0x2d83   :  { %7370 = vmatpush3.bf16.msra.mxu1 %v5051_v23  ;;  %v5114_v23 = vld [vmem:[#allocation3 + $0x5b0] sm:$0xff] }
0x2d84   :  { %7399 = vmatprep.subr.bf16.mxu1 %v5084_v46  ;;  %5418 = vmatmul.mubr.bf16.vlgmr.msra.gmra.mrb[248].mxu0 %v10287_v35  ;;  %v5078_v35 = vld [vmem:[#allocation3 + $0x490] sm:$0xff]  ;;  %v5123_v46 = vld [vmem:[#allocation3 + $0x5f8] sm:$0xff] }
0x2d85   :  { %7378 = vmatpush3.bf16.msra.mxu0 %v5060_v32  ;;  %5499 = vmatprep.mubr.bf16.mxu0 %v10327_v2  ;;  %v5064_v2 = vld [vmem:[#allocation3 + $0x420] sm:$0xff]  ;;  %v5099_v32 = vld [vmem:[#allocation3 + $0x538] sm:$0xff] }
0x2d86   :  { %5459 = vmatmul.mubr.bf16.vlgmr.msra.gmra.mrb[8].mxu1 %v10303_v13  ;;  %7379 = vmatprep.subr.bf16.mxu0 %v5069_v5  ;;  %v5087_v13 = vld [vmem:[#allocation3 + $0x4d8] sm:$0xff]  ;;  %v5124_v5 = vld [vmem:[#allocation3 + $0x600] sm:$0xff] }
0x2d87   :  { %7400 = vmatpush3.bf16.msra.mxu1 %v5076_v52  ;;  %5540 = vmatprep.mubr.bf16.mxu1 %v10343_v55  ;;  %v5080_v55 = vld [vmem:[#allocation3 + $0x4a0] sm:$0xff]  ;;  %v5115_v52 = vld [vmem:[#allocation3 + $0x5b8] sm:$0xff] }
0x2d88   :  { %7401 = vmatprep.subr.bf16.mxu1 %v5085_v12  ;;  %v5125_v12 = vld [vmem:[#allocation3 + $0x608] sm:$0xff] }
0x2d89   :  { %7380 = vmatpush3.bf16.msra.mxu0 %v5061_v18  ;;  %v5126_v18 = vld [vmem:[#allocation3 + $0x610] sm:$0xff] }
0x2d8a   :  { %7381 = vmatprep.subr.bf16.mxu0 %v5070_v58  ;;  %v5130_v58 = vld [vmem:[#allocation3 + $0x630] sm:$0xff] }
0x2d8b   :  { %7402 = vmatpush3.bf16.msra.mxu1 %v5077_v48  ;;  %v5127_v48 = vld [vmem:[#allocation3 + $0x618] sm:$0xff] }
0x2d8c   :  { %7403 = vmatprep.subr.bf16.mxu1 %v5086_v59  ;;  %v5131_v59 = vld [vmem:[#allocation3 + $0x638] sm:$0xff] }
0x2d8d   :  { %7382 = vmatpush3.bf16.msra.mxu0 %v5062_v44 }
0x2d8e   :  { %7383 = vmatprep.subr.bf16.mxu0 %v5071_v1  ;;  %v6432_v1 = vld [vmem:[%s10546_s4] ss:$0 sm:$0xff]  ;;  %s8229_s4 = smov 64  }
0x2d8f   :  { %7404 = vmatpush3.bf16.msra.mxu1 %v5078_v35 }
0x2d90   :  { %7405 = vmatprep.subr.bf16.mxu1 %v5087_v13 }
0x2d91   :  { %7384 = vmatpush3.bf16.msra.mxu0 %v5063_v6 }
0x2d92   :  { %7385 = vmatprep.subr.bf16.mxu0 %v5072_v29 }
0x2d93   :  { %7406 = vmatpush3.bf16.msra.mxu1 %v5079_v27 }
0x2d94   :  { %7407 = vmatprep.subr.bf16.mxu1 %v5088_v9 }
0x2d95   :  { %7386 = vmatpush3.bf16.msra.mxu0 %v5064_v2 }
0x2d96   :  { %7387 = vmatprep.subr.bf16.mxu0 %v5073_v49 }
0x2d97   :  { %7408 = vmatpush3.bf16.msra.mxu1 %v5080_v55 }
0x2d98   :  { %7409 = vmatprep.subr.bf16.mxu1 %v5089_v60 }
0x2d99   :  { %7388 = vmatpush3.bf16.msra.mxu0 %v5065_v34 }
0x2d9a   :  { %7389 = vmatprep.subr.bf16.mxu0 %v5074_v25 }
0x2d9b   :  { %7410 = vmatpush3.bf16.msra.mxu1 %v5081_v61 }
0x2d9c   :  { %7411 = vmatprep.subr.bf16.mxu1 %v5090_v28 }
0x2d9d   :  { %7390 = vmatpush3.bf16.msra.mxu0 %v5066_v11 }
0x2d9e   :  { %7391 = vmatprep.subr.bf16.mxu0 %v5075_v50 }
0x2d9f   :  { %7412 = vmatpush3.bf16.msra.mxu1 %v5082_v31 }
0x2da0   :  { %7413 = vmatprep.subr.bf16.mxu1 %v5091_v8 }
0x2da1   :  { %7392 = vmatpush3.bf16.msra.mxu0 %v5067_v15 }
0x2da2   :  { %7421 = vmatprep.subr.bf16.mxu0 %v5100_v30 }
0x2da3   :  { %7414 = vmatpush3.bf16.msra.mxu1 %v5083_v36 }
0x2da4   :  { %7443 = vmatprep.subr.bf16.mxu1 %v5116_v33  ;;  %5500 = vmatmul.mubr.bf16.vlgmr.msra.gmra.mrb[252].mxu0 %v10319_v26  ;;  %v5110_v26 = vld [vmem:[#allocation3 + $0x590] sm:$0xff] }
0x2da5   :  { %7422 = vmatpush3.bf16.msra.mxu0 %v5092_v3  ;;  %5581 = vmatprep.mubr.bf16.mxu0 %v10359_v24  ;;  %v5096_v24 = vld [vmem:[#allocation3 + $0x520] sm:$0xff] }
0x2da6   :  { %5541 = vmatmul.mubr.bf16.vlgmr.msra.gmra.mrb[12].mxu1 %v10335_v51  ;;  %7423 = vmatprep.subr.bf16.mxu0 %v5101_v56  ;;  %v5119_v51 = vld [vmem:[#allocation3 + $0x5d8] sm:$0xff] }
0x2da7   :  { %7444 = vmatpush3.bf16.msra.mxu1 %v5108_v38  ;;  %5622 = vmatprep.mubr.bf16.mxu1 %v10372_v62  ;;  %v5112_v62 = vld [vmem:[#allocation3 + $0x5a0] sm:$0xff] }
0x2da8   :  { %7445 = vmatprep.subr.bf16.mxu1 %v5117_v63 }
0x2da9   :  { %7424 = vmatpush3.bf16.msra.mxu0 %v5093_v45 }
0x2daa   :  { %7425 = vmatprep.subr.bf16.mxu0 %v5102_v20 }
0x2dab   :  { %7446 = vmatpush3.bf16.msra.mxu1 %v5109_v39 }
0x2dac   :  { %7447 = vmatprep.subr.bf16.mxu1 %v5118_v7 }
0x2dad   :  { %7426 = vmatpush3.bf16.msra.mxu0 %v5094_v14 }
0x2dae   :  { %7427 = vmatprep.subr.bf16.mxu0 %v5103_v54 }
0x2daf   :  { %7448 = vmatpush3.bf16.msra.mxu1 %v5110_v26 }
0x2db0   :  { %7449 = vmatprep.subr.bf16.mxu1 %v5119_v51 }
0x2db1   :  { %7428 = vmatpush3.bf16.msra.mxu0 %v5095_v4 }
0x2db2   :  { %7429 = vmatprep.subr.bf16.mxu0 %v5104_v0 }
0x2db3   :  { %7450 = vmatpush3.bf16.msra.mxu1 %v5111_v47 }
0x2db4   :  { %7451 = vmatprep.subr.bf16.mxu1 %v5120_v43 }
0x2db5   :  { %7430 = vmatpush3.bf16.msra.mxu0 %v5096_v24 }
0x2db6   :  { %7431 = vmatprep.subr.bf16.mxu0 %v5105_v41 }
0x2db7   :  { %7452 = vmatpush3.bf16.msra.mxu1 %v5112_v62 }
0x2db8   :  { %7453 = vmatprep.subr.bf16.mxu1 %v5121_v10 }
0x2db9   :  { %7432 = vmatpush3.bf16.msra.mxu0 %v5097_v57 }
0x2dba   :  { %7433 = vmatprep.subr.bf16.mxu0 %v5106_v21 }
0x2dbb   :  { %7454 = vmatpush3.bf16.msra.mxu1 %v5113_v19 }
0x2dbc   :  { %7455 = vmatprep.subr.bf16.mxu1 %v5122_v17 }
0x2dbd   :  { %7434 = vmatpush3.bf16.msra.mxu0 %v5098_v42 }
0x2dbe   :  { %7435 = vmatprep.subr.bf16.mxu0 %v5107_v53 }
0x2dbf   :  { %7456 = vmatpush3.bf16.msra.mxu1 %v5114_v23 }
0x2dc0   :  { %7457 = vmatprep.subr.bf16.mxu1 %v5123_v46 }
0x2dc1   :  { %7436 = vmatpush3.bf16.msra.mxu0 %v5099_v32 }
0x2dc2   :  { %8070 = vmatprep.subr.bf16.mxu0 %v8227_v40 }
0x2dc3   :  { %7458 = vmatpush3.bf16.msra.mxu1 %v5115_v52 }
0x2dc4   :  { %5582 = vmatmul.mubr.bf16.vlgmr.msra.gmra.mrb[0].mxu0 %v10351_v16  ;;  %v5128_v16 = vld [vmem:[#allocation3 + $0x620] sm:$0xff] }
0x2dc5   :  { %8071 = vmatpush3.bf16.msra.mxu0 %v5124_v5  ;;  %8086 = vmatprep.mubr.msk.bf16.mxu0 %vm8228_vm1, %v8227_v40 }
0x2dc6   :  { %5623 = vmatmul.mubr.bf16.vlgmr.msra.gmra.mrb[16].mxu1 %v10367_v22  ;;  %8072 = vmatprep.subr.bf16.mxu0 %v8227_v40  ;;  %v5129_v22 = vld [vmem:[#allocation3 + $0x628] sm:$0xff] }
0x2dc9   :  { %8073 = vmatpush3.bf16.msra.mxu0 %v5125_v12 }
0x2dca   :  { %8074 = vmatprep.subr.bf16.mxu0 %v8227_v40 }
0x2dcd   :  { %8075 = vmatpush3.bf16.msra.mxu0 %v5126_v18 }
0x2dce   :  { %8076 = vmatprep.subr.bf16.mxu0 %v8227_v40 }
0x2dd1   :  { %8077 = vmatpush3.bf16.msra.mxu0 %v5127_v48 }
0x2dd2   :  { %8078 = vmatprep.subr.bf16.mxu0 %v8227_v40 }
0x2dd5   :  { %8079 = vmatpush3.bf16.msra.mxu0 %v5128_v16 }
0x2dd6   :  { %8080 = vmatprep.subr.bf16.mxu0 %v8227_v40 }
0x2dd9   :  { %8081 = vmatpush3.bf16.msra.mxu0 %v5129_v22 }
0x2dda   :  { %8082 = vmatprep.subr.bf16.mxu0 %v8227_v40 }
0x2ddd   :  { %8083 = vmatpush3.bf16.msra.mxu0 %v5130_v58 }
0x2dde   :  { %8084 = vmatprep.subr.bf16.mxu0 %v8227_v40 }
0x2de1   :  { %8085 = vmatpush3.bf16.msra.mxu0 %v5131_v59 }
0x2de4   :  { %8087 = vmatmul.mubr.bf16.vlgmr.msra.gmra.mrb[4].mxu0 %v10377_v37 }
0x2df7   :  { %v7217_v44 = vpop.f32.mrb[236].mxu0 }
0x2df8   :  { %v7218_v13 = vpop.f32.mrb[237].mxu0 }
0x2df9   :  { %v7239_v35 = vpop.f32.mrb[252].mxu1  ;;  %v7219_v27 = vadd.f32 %v7218_v13, %v7217_v44  ;;  %v7220_v29 = vpop.f32.mrb[238].mxu0 }
0x2dfa   :  { %v7240_v6 = vpop.f32.mrb[253].mxu1  ;;  %v7221_v55 = vpop.f32.mrb[239].mxu0 }
0x2dfb   :  { %v7241_v9 = vadd.f32 %v7240_v6, %v7239_v35  ;;  %v7242_v2 = vpop.f32.mrb[254].mxu1  ;;  %v5174_v60 = vadd.f32 %v7219_v27, %v6432_v1  ;;  %v7222_v40 = vadd.f32 %v7221_v55, %v7220_v29 }
0x2dfc   :  { %v7243_v49 = vpop.f32.mrb[255].mxu1 }
0x2dfd   :  { %v7244_v34 = vadd.f32 %v7243_v49, %v7242_v2  ;;  %v5177_v61 = vadd.f32 %v7222_v40, %v6432_v1  ;;  %v5215_v25 = vadd.f32 %v7241_v9, %v5174_v60 }
0x2dff   :  { %v5218_v37 = vadd.f32 %v7244_v34, %v5177_v61 }
0x2e17   :  { %v7261_v28 = vpop.f32.mrb[240].mxu0 }
0x2e18   :  { %v7262_v31 = vpop.f32.mrb[241].mxu0 }
0x2e19   :  { %v7283_v11 = vpop.f32.mrb[0].mxu1  ;;  %v7263_v8 = vadd.f32 %v7262_v31, %v7261_v28  ;;  %v7264_v15 = vpop.f32.mrb[242].mxu0 }
0x2e1a   :  { %v7284_v50 = vpop.f32.mrb[1].mxu1  ;;  %v7265_v33 = vpop.f32.mrb[243].mxu0 }
0x2e1b   :  { %v7285_v36 = vadd.f32 %v7284_v50, %v7283_v11  ;;  %v7286_v30 = vpop.f32.mrb[2].mxu1  ;;  %v5256_v38 = vadd.f32 %v7263_v8, %v5215_v25  ;;  %v7266_v56 = vadd.f32 %v7265_v33, %v7264_v15 }
0x2e1c   :  { %v7287_v3 = vpop.f32.mrb[3].mxu1 }
0x2e1d   :  { %v7288_v63 = vadd.f32 %v7287_v3, %v7286_v30  ;;  %v5259_v45 = vadd.f32 %v7266_v56, %v5218_v37  ;;  %v5297_v39 = vadd.f32 %v7285_v36, %v5256_v38 }
0x2e1f   :  { %v5300_v20 = vadd.f32 %v7288_v63, %v5259_v45 }
0x2e37   :  { %v7305_v7 = vpop.f32.mrb[244].mxu0 }
0x2e38   :  { %v7306_v26 = vpop.f32.mrb[245].mxu0 }
0x2e39   :  { %v7327_v14 = vpop.f32.mrb[4].mxu1  ;;  %v7307_v51 = vadd.f32 %v7306_v26, %v7305_v7  ;;  %v7308_v4 = vpop.f32.mrb[246].mxu0 }
0x2e3a   :  { %v7328_v54 = vpop.f32.mrb[5].mxu1  ;;  %v7309_v43 = vpop.f32.mrb[247].mxu0 }
0x2e3b   :  { %v7329_v47 = vadd.f32 %v7328_v54, %v7327_v14  ;;  %v7330_v0 = vpop.f32.mrb[6].mxu1  ;;  %v5338_v62 = vadd.f32 %v7307_v51, %v5297_v39  ;;  %v7310_v41 = vadd.f32 %v7309_v43, %v7308_v4 }
0x2e3c   :  { %v7331_v24 = vpop.f32.mrb[7].mxu1 }
0x2e3d   :  { %v7332_v10 = vadd.f32 %v7331_v24, %v7330_v0  ;;  %v5341_v57 = vadd.f32 %v7310_v41, %v5300_v20  ;;  %v5379_v19 = vadd.f32 %v7329_v47, %v5338_v62 }
0x2e3f   :  { %v5382_v21 = vadd.f32 %v7332_v10, %v5341_v57 }
0x2e57   :  { %v7349_v17 = vpop.f32.mrb[248].mxu0 }
0x2e58   :  { %v7350_v23 = vpop.f32.mrb[249].mxu0 }
0x2e59   :  { %v7371_v42 = vpop.f32.mrb[8].mxu1  ;;  %v7351_v46 = vadd.f32 %v7350_v23, %v7349_v17  ;;  %v7352_v32 = vpop.f32.mrb[250].mxu0 }
0x2e5a   :  { %v7372_v53 = vpop.f32.mrb[9].mxu1  ;;  %v7353_v12 = vpop.f32.mrb[251].mxu0 }
0x2e5b   :  { %v7373_v52 = vadd.f32 %v7372_v53, %v7371_v42  ;;  %v7374_v5 = vpop.f32.mrb[10].mxu1  ;;  %v5420_v48 = vadd.f32 %v7351_v46, %v5379_v19  ;;  %v7354_v16 = vadd.f32 %v7353_v12, %v7352_v32 }
0x2e5c   :  { %v7375_v18 = vpop.f32.mrb[11].mxu1 }
0x2e5d   :  { %v7376_v22 = vadd.f32 %v7375_v18, %v7374_v5  ;;  %v5423_v58 = vadd.f32 %v7354_v16, %v5382_v21  ;;  %v5461_v59 = vadd.f32 %v7373_v52, %v5420_v48 }
0x2e5f   :  { %v5464_v44 = vadd.f32 %v7376_v22, %v5423_v58 }
0x2e77   :  { %v7393_v35 = vpop.f32.mrb[252].mxu0 }
0x2e78   :  { %v7394_v13 = vpop.f32.mrb[253].mxu0 }
0x2e79   :  { %v7415_v1 = vpop.f32.mrb[12].mxu1  ;;  %v7395_v27 = vadd.f32 %v7394_v13, %v7393_v35  ;;  %v7396_v29 = vpop.f32.mrb[254].mxu0 }
0x2e7a   :  { %v7416_v6 = vpop.f32.mrb[13].mxu1  ;;  %v7397_v55 = vpop.f32.mrb[255].mxu0 }
0x2e7b   :  { %v7417_v9 = vadd.f32 %v7416_v6, %v7415_v1  ;;  %v7418_v2 = vpop.f32.mrb[14].mxu1  ;;  %v5502_v60 = vadd.f32 %v7395_v27, %v5461_v59  ;;  %v7398_v40 = vadd.f32 %v7397_v55, %v7396_v29 }
0x2e7c   :  { %v7419_v49 = vpop.f32.mrb[15].mxu1 }
0x2e7d   :  { %v7420_v34 = vadd.f32 %v7419_v49, %v7418_v2  ;;  %v5505_v61 = vadd.f32 %v7398_v40, %v5464_v44  ;;  %v5543_v25 = vadd.f32 %v7417_v9, %v5502_v60 }
0x2e7f   :  { %v5546_v37 = vadd.f32 %v7420_v34, %v5505_v61 }
0x2e97   :  { %v7437_v28 = vpop.f32.mrb[0].mxu0 }
0x2e98   :  { %v7438_v31 = vpop.f32.mrb[1].mxu0 }
0x2e99   :  { %v7459_v11 = vpop.f32.mrb[16].mxu1  ;;  %v7439_v8 = vadd.f32 %v7438_v31, %v7437_v28  ;;  %v7440_v15 = vpop.f32.mrb[2].mxu0 }
0x2e9a   :  { %v7460_v50 = vpop.f32.mrb[17].mxu1  ;;  %v7441_v33 = vpop.f32.mrb[3].mxu0 }
0x2e9b   :  { %v7461_v36 = vadd.f32 %v7460_v50, %v7459_v11  ;;  %v7462_v30 = vpop.f32.mrb[18].mxu1  ;;  %v5584_v38 = vadd.f32 %v7439_v8, %v5543_v25  ;;  %v7442_v56 = vadd.f32 %v7441_v33, %v7440_v15 }
0x2e9c   :  { %v7463_v3 = vpop.f32.mrb[19].mxu1 }
0x2e9d   :  { %v7464_v63 = vadd.f32 %v7463_v3, %v7462_v30  ;;  %v5587_v45 = vadd.f32 %v7442_v56, %v5546_v37  ;;  %v5625_v39 = vadd.f32 %v7461_v36, %v5584_v38 }
0x2e9f   :  { %v5628_v20 = vadd.f32 %v7464_v63, %v5587_v45 }
0x2eb7   :  { %v5665_v7 = vpop.f32.mrb[4].mxu0 }
0x2eb8   :  { %v5666_v14 = vadd.f32 %v5665_v7, %v5625_v39  ;;  %v8088_v26 = vpop.f32.mrb[5].mxu0 }
0x2eb9   :  { %v5668_v54 = vpop.f32.mrb[6].mxu0 }
0x2eba   :  { %v5672_v51 = vmax.f32 %v5666_v14, 0.0  ;;  %v5669_v4 = vadd.f32 %v5668_v54, %v5628_v20  ;;  %v8089_v47 = vpop.f32.mrb[7].mxu0 }
0x2ebc   :  { %5674 = vst [vmem:[#allocation9] sm:$0xff] %v5672_v51  ;;  %v5673_v0 = vmax.f32 %v5669_v4, 0.0 }
0x2ebe   :  { %5675 = vst [vmem:[#allocation9 + $0x8] sm:$0xff] %v5673_v0 }
0x2ec5   :  { %v5676_v43 = vld [vmem:[#allocation9] ss:$4 sm:$0xf]  ;;  %v5678_v24 = vld [vmem:[#allocation9 + $0x1] ss:$4 sm:$0xf] }
0x2ec6   :  { %v5679_v62 = vmax.f32 %v5676_v43, %v5678_v24  ;;  %v5681_v41 = vld [vmem:[#allocation9 + $0x2] ss:$4 sm:$0xf]  ;;  %v5684_v57 = vld [vmem:[#allocation9 + $0x3] ss:$4 sm:$0xf] }
0x2ec8   :  { %v5682_v10 = vmax.f32 %v5679_v62, %v5681_v41 }
0x2eca   :  { %v5685_v19 = vmax.f32 %v5682_v10, %v5684_v57 }
0x2ecc   :  { %v5691_v21 = vrot.slane %v5685_v19, 2  ;;  %v5687_v42 = vrot.slane %v5685_v19, 1  ;;  %v5693_v23 = vrot.slane %v5685_v19, 3 }
0x2ece   :  { %v8105_v17 = vpack.i.bf16 %v5691_v21, %v5685_v19  ;;  %v8110_v53 = vpack.i.bf16 %v5693_v23, %v5687_v42 }
0x2ed0   :  { %8106 = vrot.lane.b32.xlu0 %v8105_v17, %s8229_s4 }
0x2ed4   :  { %8111 = vrot.lane.b32.xlu0 %v8110_v53, %s8229_s4 }
0x2f42   :  { %v8107_v46 = vpop.permute.xlu0 %8106 }
0x2f43   :  { %v8109_v32 = vunpack.i.h.bf16 %v8107_v46  ;;  %v8108_v52 = vunpack.i.l.bf16 %v8107_v46 }
0x2f45   :  { %v5708_v5 = vsel %vm662_vm0, %v8109_v32, %v5693_v23  ;;  %v5707_v12 = vsel %vm662_vm0, %v8108_v52, %v5687_v42 }
0x2f46   :  { %v8112_v18 = vpop.permute.xlu0 %8111  ;;  %v5712_v22 = vrot.slane %v5708_v5, 7  ;;  %v5711_v58 = vrot.slane %v5707_v12, 7 }
0x2f47   :  { %v8114_v48 = vunpack.i.h.bf16 %v8112_v18  ;;  %v8113_v16 = vunpack.i.l.bf16 %v8112_v18 }
0x2f49   :  { %v5698_v59 = vsel %vm662_vm0, %v5691_v21, %v8114_v48  ;;  %v5697_v44 = vsel %vm662_vm0, %v5685_v19, %v8113_v16 }
0x2f4a   :  { %v5717_v35 = vsel %vm5715_vm3, %v5698_v59, %v5712_v22  ;;  %v5716_v1 = vsel %vm5715_vm3, %v5697_v44, %v5711_v58 }
0x2f4b   :  { %v5719_v13 = vpack.c.bf16 %v5717_v35, %v5717_v35  ;;  %v10421_v6 = vpack.c.bf16 %v5716_v1, %v5716_v1 }
0x2f4c   :  { %8221 = dma.done.wait [#allocation5 + $0x2], 8192 }
0x2f4d   :  { %8222 = vsyncadd [#allocation5 + $0x2], 4294959104  ;;  %5842 = vmatprep.mubr.bf16.mxu1 %v5719_v13  ;;  %5883 = vmatprep.mubr.bf16.mxu0 %v5719_v13  ;;  %v5725_v27 = vld [vmem:[#allocation4 + $0x8] sm:$0xff]  ;;  %v5727_v29 = vld [vmem:[#allocation4 + $0x18] sm:$0xff]  ;;  %vm6243_vm4 = vcmask 74752  }
0x2f4e   :  { %v5724_v9 = vld [vmem:[#allocation4] sm:$0xff]  ;;  %5810 = vmatprep.subr.bf16.mxu1 %v5725_v27  ;;  %5851 = vmatprep.subr.bf16.mxu0 %v5727_v29  ;;  %v5726_v2 = vld [vmem:[#allocation4 + $0x10] sm:$0xff]  ;;  %v5729_v55 = vld [vmem:[#allocation4 + $0x28] sm:$0xff] }
0x2f4f   :  { %v5731_v49 = vld [vmem:[#allocation4 + $0x38] sm:$0xff]  ;;  %5811 = vmatpush1.bf16.msra.mxu1 %v5724_v9  ;;  %5852 = vmatpush1.bf16.msra.mxu0 %v5726_v2  ;;  %v5728_v60 = vld [vmem:[#allocation4 + $0x20] sm:$0xff]  ;;  %v5730_v40 = vld [vmem:[#allocation4 + $0x30] sm:$0xff] }
0x2f50   :  { %5812 = vmatprep.subr.bf16.mxu1 %v5729_v55  ;;  %5853 = vmatprep.subr.bf16.mxu0 %v5731_v49  ;;  %v5733_v34 = vld [vmem:[#allocation4 + $0x48] sm:$0xff]  ;;  %v5735_v61 = vld [vmem:[#allocation4 + $0x58] sm:$0xff]  ;;  %v5732_v25 = vld [vmem:[#allocation4 + $0x40] sm:$0xff] }
0x2f51   :  { %v5734_v37 = vld [vmem:[#allocation4 + $0x50] sm:$0xff]  ;;  %v5737_v28 = vld [vmem:[#allocation4 + $0x68] sm:$0xff]  ;;  %v5739_v11 = vld [vmem:[#allocation4 + $0x78] sm:$0xff] }
0x2f52   :  { %v5736_v31 = vld [vmem:[#allocation4 + $0x60] sm:$0xff]  ;;  %v5738_v50 = vld [vmem:[#allocation4 + $0x70] sm:$0xff]  ;;  %v5741_v8 = vld [vmem:[#allocation4 + $0x88] sm:$0xff] }
0x2f53   :  { %5813 = vmatpush1.bf16.msra.mxu1 %v5728_v60  ;;  %5854 = vmatpush1.bf16.msra.mxu0 %v5730_v40  ;;  %v5743_v15 = vld [vmem:[#allocation4 + $0x98] sm:$0xff]  ;;  %v5740_v36 = vld [vmem:[#allocation4 + $0x80] sm:$0xff]  ;;  %v5742_v30 = vld [vmem:[#allocation4 + $0x90] sm:$0xff] }
0x2f54   :  { %5814 = vmatprep.subr.bf16.mxu1 %v5733_v34  ;;  %5855 = vmatprep.subr.bf16.mxu0 %v5735_v61  ;;  %v5745_v33 = vld [vmem:[#allocation4 + $0xa8] sm:$0xff]  ;;  %v5747_v3 = vld [vmem:[#allocation4 + $0xb8] sm:$0xff]  ;;  %v5744_v38 = vld [vmem:[#allocation4 + $0xa0] sm:$0xff] }
0x2f55   :  { %v5746_v56 = vld [vmem:[#allocation4 + $0xb0] sm:$0xff]  ;;  %v5749_v63 = vld [vmem:[#allocation4 + $0xc8] sm:$0xff]  ;;  %v5751_v45 = vld [vmem:[#allocation4 + $0xd8] sm:$0xff] }
0x2f56   :  { %v5748_v39 = vld [vmem:[#allocation4 + $0xc0] sm:$0xff]  ;;  %v5750_v20 = vld [vmem:[#allocation4 + $0xd0] sm:$0xff]  ;;  %v5753_v7 = vld [vmem:[#allocation4 + $0xe8] sm:$0xff] }
0x2f57   :  { %5815 = vmatpush1.bf16.msra.mxu1 %v5732_v25  ;;  %5856 = vmatpush1.bf16.msra.mxu0 %v5734_v37  ;;  %v5755_v14 = vld [vmem:[#allocation4 + $0xf8] sm:$0xff]  ;;  %v5752_v26 = vld [vmem:[#allocation4 + $0xe0] sm:$0xff]  ;;  %v5754_v54 = vld [vmem:[#allocation4 + $0xf0] sm:$0xff] }
0x2f58   :  { %5816 = vmatprep.subr.bf16.mxu1 %v5737_v28  ;;  %5857 = vmatprep.subr.bf16.mxu0 %v5739_v11  ;;  %v5757_v51 = vld [vmem:[#allocation4 + $0x108] sm:$0xff]  ;;  %v5759_v4 = vld [vmem:[#allocation4 + $0x118] sm:$0xff]  ;;  %v5756_v47 = vld [vmem:[#allocation4 + $0x100] sm:$0xff] }
0x2f59   :  { %v5758_v0 = vld [vmem:[#allocation4 + $0x110] sm:$0xff]  ;;  %v5761_v43 = vld [vmem:[#allocation4 + $0x128] sm:$0xff]  ;;  %v5763_v24 = vld [vmem:[#allocation4 + $0x138] sm:$0xff] }
0x2f5a   :  { %v5760_v62 = vld [vmem:[#allocation4 + $0x120] sm:$0xff]  ;;  %v5762_v41 = vld [vmem:[#allocation4 + $0x130] sm:$0xff]  ;;  %v5765_v10 = vld [vmem:[#allocation4 + $0x148] sm:$0xff] }
0x2f5b   :  { %5817 = vmatpush1.bf16.msra.mxu1 %v5736_v31  ;;  %5858 = vmatpush1.bf16.msra.mxu0 %v5738_v50  ;;  %v5767_v57 = vld [vmem:[#allocation4 + $0x158] sm:$0xff]  ;;  %v5764_v19 = vld [vmem:[#allocation4 + $0x140] sm:$0xff]  ;;  %v5766_v21 = vld [vmem:[#allocation4 + $0x150] sm:$0xff] }
0x2f5c   :  { %5818 = vmatprep.subr.bf16.mxu1 %v5741_v8  ;;  %5859 = vmatprep.subr.bf16.mxu0 %v5743_v15  ;;  %v5769_v17 = vld [vmem:[#allocation4 + $0x168] sm:$0xff]  ;;  %v5771_v42 = vld [vmem:[#allocation4 + $0x178] sm:$0xff]  ;;  %v5768_v23 = vld [vmem:[#allocation4 + $0x160] sm:$0xff] }
0x2f5d   :  { %v5770_v53 = vld [vmem:[#allocation4 + $0x170] sm:$0xff]  ;;  %v5773_v46 = vld [vmem:[#allocation4 + $0x188] sm:$0xff]  ;;  %v5775_v32 = vld [vmem:[#allocation4 + $0x198] sm:$0xff] }
0x2f5e   :  { %v5772_v52 = vld [vmem:[#allocation4 + $0x180] sm:$0xff]  ;;  %v5774_v5 = vld [vmem:[#allocation4 + $0x190] sm:$0xff]  ;;  %v5777_v12 = vld [vmem:[#allocation4 + $0x1a8] sm:$0xff] }
0x2f5f   :  { %5819 = vmatpush1.bf16.msra.mxu1 %v5740_v36  ;;  %5860 = vmatpush1.bf16.msra.mxu0 %v5742_v30  ;;  %v5779_v18 = vld [vmem:[#allocation4 + $0x1b8] sm:$0xff]  ;;  %v5776_v48 = vld [vmem:[#allocation4 + $0x1a0] sm:$0xff]  ;;  %v5778_v16 = vld [vmem:[#allocation4 + $0x1b0] sm:$0xff] }
0x2f60   :  { %5820 = vmatprep.subr.bf16.mxu1 %v5745_v33  ;;  %5861 = vmatprep.subr.bf16.mxu0 %v5747_v3  ;;  %v5781_v22 = vld [vmem:[#allocation4 + $0x1c8] sm:$0xff]  ;;  %v5783_v58 = vld [vmem:[#allocation4 + $0x1d8] sm:$0xff]  ;;  %v5780_v59 = vld [vmem:[#allocation4 + $0x1c0] sm:$0xff] }
0x2f61   :  { %v5782_v44 = vld [vmem:[#allocation4 + $0x1d0] sm:$0xff]  ;;  %v5785_v35 = vld [vmem:[#allocation4 + $0x1e8] sm:$0xff]  ;;  %v5787_v1 = vld [vmem:[#allocation4 + $0x1f8] sm:$0xff] }
0x2f62   :  { %v5784_v13 = vld [vmem:[#allocation4 + $0x1e0] sm:$0xff]  ;;  %v5786_v27 = vld [vmem:[#allocation4 + $0x1f0] sm:$0xff]  ;;  %v8119_v49 = vld [vmem:[%s10549_s7 + $0x48] sm:$0xff]  }
0x2f63   :  { %5821 = vmatpush1.bf16.msra.mxu1 %v5744_v38  ;;  %5862 = vmatpush1.bf16.msra.mxu0 %v5746_v56  ;;  %v8115_v29 = vld [vmem:[%s10549_s7 + $0x40] sm:$0xff]   ;;  %v8120_v60 = vld [vmem:[%s10549_s7 + $0xc8] sm:$0xff]   ;;  %v8123_v61 = vld [vmem:[%s10549_s7 + $0x50] sm:$0xff]  }
0x2f64   :  { %5822 = vmatprep.subr.bf16.mxu1 %v5749_v63  ;;  %5863 = vmatprep.subr.bf16.mxu0 %v5751_v45  ;;  %v8116_v9 = vld [vmem:[%s10549_s7 + $0xc0] sm:$0xff]   ;;  %v8121_v40 = vld [vmem:[%s10549_s7 + $0x8] sm:$0xff]   ;;  %v8125_v25 = vld [vmem:[%s10549_s7 + $0x10] sm:$0xff]  }
0x2f65   :  { %v8117_v2 = vld [vmem:[%s10549_s7] sm:$0xff]   ;;  %v8122_v34 = vld [vmem:[%s10549_s7 + $0x88] sm:$0xff]   ;;  %v8126_v37 = vld [vmem:[%s10549_s7 + $0x90] sm:$0xff]  }
0x2f66   :  { %v8118_v55 = vld [vmem:[%s10549_s7 + $0x80] sm:$0xff]   ;;  %v8127_v28 = vld [vmem:[%s10549_s7 + $0x58] sm:$0xff]   ;;  %v8135_v33 = vld [vmem:[%s10549_s7 + $0x68] sm:$0xff]  }
0x2f67   :  { %5823 = vmatpush1.bf16.msra.mxu1 %v5748_v39  ;;  %5864 = vmatpush1.bf16.msra.mxu0 %v5750_v20  ;;  %v8128_v11 = vld [vmem:[%s10549_s7 + $0xd8] sm:$0xff]   ;;  %v8131_v8 = vld [vmem:[%s10549_s7 + $0x60] sm:$0xff]   ;;  %v8136_v3 = vld [vmem:[%s10549_s7 + $0xe8] sm:$0xff]  }
0x2f68   :  { %5824 = vmatprep.subr.bf16.mxu1 %v5753_v7  ;;  %5865 = vmatprep.subr.bf16.mxu0 %v5755_v14  ;;  %v8129_v31 = vld [vmem:[%s10549_s7 + $0x18] sm:$0xff]   ;;  %v8132_v15 = vld [vmem:[%s10549_s7 + $0xe0] sm:$0xff]   ;;  %v8137_v38 = vld [vmem:[%s10549_s7 + $0x28] sm:$0xff]  }
0x2f69   :  { %v8130_v50 = vld [vmem:[%s10549_s7 + $0x98] sm:$0xff]   ;;  %v8133_v36 = vld [vmem:[%s10549_s7 + $0x20] sm:$0xff]   ;;  %v8138_v56 = vld [vmem:[%s10549_s7 + $0xa8] sm:$0xff]  }
0x2f6a   :  { %v8134_v30 = vld [vmem:[%s10549_s7 + $0xa0] sm:$0xff]   ;;  %v8139_v63 = vld [vmem:[%s10549_s7 + $0x70] sm:$0xff]   ;;  %v8143_v7 = vld [vmem:[%s10549_s7 + $0x78] sm:$0xff]  }
0x2f6b   :  { %5825 = vmatpush1.bf16.msra.mxu1 %v5752_v26  ;;  %5866 = vmatpush1.bf16.msra.mxu0 %v5754_v54  ;;  %v8140_v45 = vld [vmem:[%s10549_s7 + $0xf0] sm:$0xff]   ;;  %v8144_v14 = vld [vmem:[%s10549_s7 + $0xf8] sm:$0xff]  }
0x2f6c   :  { %5826 = vmatprep.subr.bf16.mxu1 %v5757_v51  ;;  %5867 = vmatprep.subr.bf16.mxu0 %v5759_v4  ;;  %v8141_v39 = vld [vmem:[%s10549_s7 + $0x30] sm:$0xff]   ;;  %v8145_v26 = vld [vmem:[%s10549_s7 + $0x38] sm:$0xff]   ;;  %v5790_v51 = vlaneseq }
0x2f6d   :  { %v8142_v20 = vld [vmem:[%s10549_s7 + $0xb0] sm:$0xff]   ;;  %v8146_v54 = vld [vmem:[%s10549_s7 + $0xb8] sm:$0xff]  }
0x2f6e   :  { %v5791_v4 = vshrl.u32 %v5790_v51, 7 }
0x2f6f   :  { %5827 = vmatpush1.bf16.msra.mxu1 %v5756_v47  ;;  %5868 = vmatpush1.bf16.msra.mxu0 %v5758_v0 }
0x2f70   :  { %5828 = vmatprep.subr.bf16.mxu1 %v5761_v43  ;;  %5869 = vmatprep.subr.bf16.mxu0 %v5763_v24  ;;  %v5792_v47 = vsub.s32 0, %v5791_v4  ;;  %v5800_v0 = vsub.s32 2, %v5791_v4  ;;  %v5788_v43 = vld [vmem:[%s10547_s5] sm:$0xf]  ;;  %v5796_v24 = vsub.s32 1, %v5791_v4 }
0x2f73   :  { %5829 = vmatpush1.bf16.msra.mxu1 %v5760_v62  ;;  %5870 = vmatpush1.bf16.msra.mxu0 %v5762_v41  ;;  %v5804_v62 = vsub.s32 3, %v5791_v4  ;;  %v5793_v41 = vrot.slane %v5788_v43, %v5792_v47 }
0x2f74   :  { %5830 = vmatprep.subr.bf16.mxu1 %v5765_v10  ;;  %5871 = vmatprep.subr.bf16.mxu0 %v5767_v57  ;;  %v5801_v10 = vrot.slane %v5788_v43, %v5800_v0  ;;  %v5797_v57 = vrot.slane %v5788_v43, %v5796_v24 }
0x2f77   :  { %5831 = vmatpush1.bf16.msra.mxu1 %v5764_v19  ;;  %5872 = vmatpush1.bf16.msra.mxu0 %v5766_v21  ;;  %v5805_v19 = vrot.slane %v5788_v43, %v5804_v62 }
0x2f78   :  { %5832 = vmatprep.subr.bf16.mxu1 %v5769_v17  ;;  %5873 = vmatprep.subr.bf16.mxu0 %v5771_v42 }
0x2f7b   :  { %5833 = vmatpush1.bf16.msra.mxu1 %v5768_v23  ;;  %5874 = vmatpush1.bf16.msra.mxu0 %v5770_v53 }
0x2f7c   :  { %5834 = vmatprep.subr.bf16.mxu1 %v5773_v46  ;;  %5875 = vmatprep.subr.bf16.mxu0 %v5775_v32 }
0x2f7f   :  { %5835 = vmatpush1.bf16.msra.mxu1 %v5772_v52  ;;  %5876 = vmatpush1.bf16.msra.mxu0 %v5774_v5 }
0x2f80   :  { %5836 = vmatprep.subr.bf16.mxu1 %v5777_v12  ;;  %5877 = vmatprep.subr.bf16.mxu0 %v5779_v18 }
0x2f83   :  { %5837 = vmatpush1.bf16.msra.mxu1 %v5776_v48  ;;  %5878 = vmatpush1.bf16.msra.mxu0 %v5778_v16 }
0x2f84   :  { %5838 = vmatprep.subr.bf16.mxu1 %v5781_v22  ;;  %5879 = vmatprep.subr.bf16.mxu0 %v5783_v58 }
0x2f87   :  { %5839 = vmatpush1.bf16.msra.mxu1 %v5780_v59  ;;  %5880 = vmatpush1.bf16.msra.mxu0 %v5782_v44 }
0x2f88   :  { %5840 = vmatprep.subr.bf16.mxu1 %v5785_v35  ;;  %5881 = vmatprep.subr.bf16.mxu0 %v5787_v1 }
0x2f8b   :  { %5841 = vmatpush1.bf16.msra.mxu1 %v5784_v13  ;;  %5882 = vmatpush1.bf16.msra.mxu0 %v5786_v27 }
0x2f8c   :  { %7474 = vmatprep.subr.bf16.mxu1 %v8115_v29  ;;  %7496 = vmatprep.subr.bf16.mxu0 %v8116_v9  ;;  %v6433_v9 = vld [vmem:[%s10548_s6] ss:$0 sm:$0xff]  ;;  %s8230_s6 = smov [#allocation10]  }
0x2f8d   :  { %s6264_s21 = sshll.u32 %s8230_s6, 4  ;;  %s6265_s21 = int_to_ptr.vmem [resolvable:$true] %s6264_s21 }
0x2f8e   :  { %5843 = vmatmul.mubr.bf16.vlgmr.msra.gmra.mrb[20].mxu1 %v10421_v6  ;;  %5884 = vmatmul.mubr.bf16.vlgmr.msra.gmra.mrb[8].mxu0 %v10421_v6  ;;  %v8124_v6 = vld [vmem:[%s10549_s7 + $0xd0] sm:$0xff]   ;;  %s8195_s23 = scalar_lea.vmem %s6265_s21, 32  ;;  %p8200_p3 = scmp.lt.s32.totalorder %s6265_s21, %s6265_s21 }
0x2f8f   :  { %7475 = vmatpush3.bf16.msra.mxu1 %v8117_v2  ;;  %7497 = vmatpush3.bf16.msra.mxu0 %v8118_v55  ;;  %p8196_p2 = scmp.ne.s32.totalorder %s6265_s21, %s8195_s23  ;;  %p8201_p4 = scmp.lt.s32.totalorder %s8195_s23, %s8195_s23 }
0x2f90   :  { %7476 = vmatprep.subr.bf16.mxu1 %v8119_v49  ;;  %7498 = vmatprep.subr.bf16.mxu0 %v8120_v60 }
0x2f91   :  { %p8202_p5 = por %p8201_p4, %p8200_p3 }
0x2f93   :  { %7477 = vmatpush3.bf16.msra.mxu1 %v8121_v40  ;;  %7499 = vmatpush3.bf16.msra.mxu0 %v8122_v34  ;;  %p8203_p6 = pnand %p8202_p5, %p8196_p2 }
0x2f94   :  { %7478 = vmatprep.subr.bf16.mxu1 %v8123_v61  ;;  %7500 = vmatprep.subr.bf16.mxu0 %v8124_v6 }
0x2f97   :  { %7479 = vmatpush3.bf16.msra.mxu1 %v8125_v25  ;;  %7501 = vmatpush3.bf16.msra.mxu0 %v8126_v37 }
0x2f98   :  { %7480 = vmatprep.subr.bf16.mxu1 %v8127_v28  ;;  %7502 = vmatprep.subr.bf16.mxu0 %v8128_v11 }
0x2f9b   :  { %7481 = vmatpush3.bf16.msra.mxu1 %v8129_v31  ;;  %7503 = vmatpush3.bf16.msra.mxu0 %v8130_v50 }
0x2f9c   :  { %7482 = vmatprep.subr.bf16.mxu1 %v8131_v8  ;;  %7504 = vmatprep.subr.bf16.mxu0 %v8132_v15 }
0x2f9f   :  { %7483 = vmatpush3.bf16.msra.mxu1 %v8133_v36  ;;  %7505 = vmatpush3.bf16.msra.mxu0 %v8134_v30 }
0x2fa0   :  { %7484 = vmatprep.subr.bf16.mxu1 %v8135_v33  ;;  %7506 = vmatprep.subr.bf16.mxu0 %v8136_v3 }
0x2fa3   :  { %7485 = vmatpush3.bf16.msra.mxu1 %v8137_v38  ;;  %7507 = vmatpush3.bf16.msra.mxu0 %v8138_v56 }
0x2fa4   :  { %7486 = vmatprep.subr.bf16.mxu1 %v8139_v63  ;;  %7508 = vmatprep.subr.bf16.mxu0 %v8140_v45 }
0x2fa7   :  { %7487 = vmatpush3.bf16.msra.mxu1 %v8141_v39  ;;  %7509 = vmatpush3.bf16.msra.mxu0 %v8142_v20 }
0x2fa8   :  { %7488 = vmatprep.subr.bf16.mxu1 %v8143_v7  ;;  %7510 = vmatprep.subr.bf16.mxu0 %v8144_v14 }
0x2fab   :  { %7489 = vmatpush3.bf16.msra.mxu1 %v8145_v26  ;;  %7511 = vmatpush3.bf16.msra.mxu0 %v8146_v54 }
0x3061   :  { %v5844_v21 = vpop.f32.mrb[20].mxu1  ;;  %v5885_v17 = vpop.f32.mrb[8].mxu0 }
0x3062   :  { %v5845_v42 = vadd.f32 %v5844_v21, %v5793_v41  ;;  %v5886_v23 = vadd.f32 %v5885_v17, %v5801_v10  ;;  %v5846_v53 = vpop.f32.mrb[21].mxu1  ;;  %v5887_v46 = vpop.f32.mrb[9].mxu0 }
0x3063   :  { %v5847_v32 = vadd.f32 %v5846_v53, %v5797_v57  ;;  %v5888_v52 = vadd.f32 %v5887_v46, %v5805_v19  ;;  %v5848_v5 = vpop.f32.mrb[22].mxu1  ;;  %v5889_v12 = vpop.f32.mrb[10].mxu0 }
0x3064   :  { %v5892_v18 = vmax.f32 %v5845_v42, 0.0  ;;  %v5894_v48 = vmax.f32 %v5886_v23, 0.0  ;;  %v5849_v16 = vpop.f32.mrb[23].mxu1  ;;  %v5890_v22 = vpop.f32.mrb[11].mxu0 }
0x3065   :  { %v5893_v58 = vmax.f32 %v5847_v32, 0.0  ;;  %v5895_v59 = vmax.f32 %v5888_v52, 0.0 }
0x3066   :  { %v5898_v44 = vpack.c.bf16 %v5894_v48, %v5894_v48  ;;  %v5896_v13 = vpack.c.bf16 %v5892_v18, %v5892_v18 }
0x3067   :  { %v5897_v35 = vpack.c.bf16 %v5893_v58, %v5893_v58  ;;  %v5899_v1 = vpack.c.bf16 %v5895_v59, %v5895_v59 }
0x3069   :  { %6195 = vmatprep.mubr.bf16.mxu1 %v5897_v35  ;;  %6235 = vmatprep.mubr.bf16.mxu0 %v5899_v1 }
0x306a   :  { %6196 = vmatmul.mubr.bf16.vlgmr.msra.gmra.mrb[24].mxu1 %v5896_v13  ;;  %6236 = vmatmul.mubr.bf16.vlgmr.msra.gmra.mrb[12].mxu0 %v5898_v44 }
0x313d   :  { %v7490_v27 = vpop.f32.mrb[24].mxu1  ;;  %v7512_v29 = vpop.f32.mrb[12].mxu0 }
0x313e   :  { %v7491_v2 = vpop.f32.mrb[25].mxu1  ;;  %v7513_v55 = vpop.f32.mrb[13].mxu0 }
0x313f   :  { %v7492_v49 = vadd.f32 %v7491_v2, %v7490_v27  ;;  %v7514_v60 = vadd.f32 %v7513_v55, %v7512_v29  ;;  %v7493_v40 = vpop.f32.mrb[26].mxu1  ;;  %v7515_v34 = vpop.f32.mrb[14].mxu0 }
0x3140   :  { %v7494_v61 = vpop.f32.mrb[27].mxu1  ;;  %v7516_v6 = vpop.f32.mrb[15].mxu0 }
0x3141   :  { %v6198_v25 = vadd.f32 %v7492_v49, %v6433_v9 }
0x3143   :  { %v6238_v37 = vadd.f32 %v7514_v60, %v6198_v25 }
0x3145   :  { %v6244_v28 = vsel %vm6243_vm4, %v6238_v37, -inf }
0x3146   :  { %6245 = vmax.xlane.f32.xlu0 %v6244_v28 }
0x31d3   :  { %v6246_v11 = vpop.xlane.xlu0 %6245 }
0x31d4   :  { %v6247_v31 = vsub.f32 %v6238_v37, %v6246_v11 }
0x31d6   :  { %v6248_v50 = vmul.f32 1.442695, %v6247_v31 }
0x31d8   :  { %8147 = vpow2.f32 %v6248_v50 }
0x31e2   :  { %v8148_v8 = vpop.eup %8147 }
0x31e3   :  { %v6250_v15 = vsel %vm6243_vm4, %v8148_v8, 0.0 }
0x31e4   :  { %6251 = vadd.xlane.f32.xlu0 %v6250_v15 }
0x3271   :  { %v6252_v36 = vpop.xlane.xlu0 %6251 }
0x3272   :  { %8149 = vlog2.f32 %v6252_v36 }
0x327c   :  { %v8150_v30 = vpop.eup %8149 }
0x327d   :  { %v6254_v33 = vmul.f32 0.6931472, %v8150_v30 }
0x327f   :  { %v6255_v3 = vadd.f32 %v6254_v33, %v6246_v11 }
0x3281   :  { %v6256_v38 = vsub.f32 %v6238_v37, %v6255_v3 }
0x3283   :  { %6257 = vst.msk [vmem:[#allocation10] sm:$0x3] %vm6243_vm4, %v6256_v38 }
0x3284   :  { %8206 = shalt.err (!%p8203_p6)
}
0x3285   :  { %s8207_s10 = scalar_lea.hbm %s10553_s11, 32 }
0x3286   :  { %p8208_p7 = scmp.ne.s32.totalorder %s10553_s11, %s8207_s10  ;;  %p8211_p8 = scmp.lt.u32.totalorder %s8207_s10, %s10553_s11 }
0x3288   :  { %p8213_p9 = pnand %p8211_p8, %p8208_p7 }
0x328a   :  { %8216 = shalt.err (!%p8213_p9)
}
0x328b   :  { %6267 = dma.vmem_to_hbm [thread:$0]  %s6265_s21, 32, %s10553_s11, [#allocation11]  }
0x328c   :  { %8223 = dma.done.wait [#allocation11], 32  }
0x328d   :  { %8224 = vsyncadd [#allocation11], 4294967264 }
0x328e   :  { %6271 = vsyncpa [#allocation11], 1 }
0x328f   :  { %6272 = vsyncmov [#allocation5] }
0x3292   :  { %s6273_s30 = vpop.sfrf %6272 }
0x3293   :  { %p6466_p10 = scmp.ne.s32.totalorder %s6273_s30, 0 }
0x3295   :  { %6277 = shalt.err (%p6466_p10)  }
0x3296   :  { %6279 = vsyncmov [#allocation5 + $0x1] }
0x3299   :  { %s6280_s2 = vpop.sfrf %6279 }
0x329a   :  { %p6467_p11 = scmp.ne.s32.totalorder %s6280_s2, 0 }
0x329c   :  { %6284 = shalt.err (%p6467_p11)  }
0x329d   :  { %6286 = vsyncmov [#allocation5 + $0x2] }
0x32a0   :  { %s6287_s9 = vpop.sfrf %6286 }
0x32a1   :  { %p6468_p12 = scmp.ne.s32.totalorder %s6287_s9, 0 }
0x32a3   :  { %6291 = shalt.err (%p6468_p12)  }

</bundles_post_ra>
